<compile_context>
chip_gen: v7x
topology: tpu7x:2x2x1
jax: 0.10.0
libtpu: 0.0.40
codegen_flags: <defaults>
</compile_context>

<pallas_src>
import functools

import jax
import jax.numpy as jnp
from jax.experimental import pallas as pl
from jax.experimental.pallas import tpu as pltpu

CPAD = 128   # channel padding -> lane width
HALO = 8     # sublane-tile-aligned left offset of the interior in the halo buf
FEAT = 2048  # embedding width (matches x.view(-1, 2048))


# ----------------------------- Pallas kernel --------------------------------

def _embedder_kernel(x_ref, w1_ref, b1_ref, w2_ref, b2_ref, wh_ref, bh_ref,
                     o_ref, xp_ref, *, H, W):
    """Fused conv1+ReLU -> conv2+ReLU -> global-avg-pool -> 2048-d FC, 1 image.

    x_ref : (1, H, W, C)   bf16  input tile (one image, C = 128 padded)
    w*_ref: (9, C, C)      bf16  conv taps in (ky, kx) order
    b*_ref: (1, C)         f32
    wh_ref: (C, 2048)      bf16  head weight
    bh_ref: (1, 2048)      f32
    o_ref : (1, 1, 2048)   f32   embedding row for this image
    xp_ref: VMEM scratch (H + 2, W + 2*HALO, C) bf16 zero-halo buffer
    """
    C = x_ref.shape[-1]

    def conv3x3_bias_relu(w_ref, b_ref):
        # 9 shifted-slice MXU dots (fused im2col), bf16 operands, f32 acc.
        acc = jnp.zeros((H * W, C), jnp.float32)
        for ky in range(3):
            for kx in range(3):
                patch = xp_ref[ky:ky + H, HALO - 1 + kx:HALO - 1 + kx + W, :]
                acc = acc + jnp.dot(patch.reshape(H * W, C),
                                    w_ref[ky * 3 + kx],
                                    preferred_element_type=jnp.float32)
        return jnp.maximum(acc + b_ref[...], 0.0)        # bias + ReLU in f32

    # Zero the halo buffer.  Re-done every grid step: scratch is per-core and
    # uninitialized, and under megacore sharding a first-step pl.when init is
    # not safe.  The zero fill is trivial vs. the 18 MXU dots below.
    xp_ref[...] = jnp.zeros_like(xp_ref)

    # ---- conv1 + ReLU ----
    xp_ref[1:H + 1, HALO:HALO + W, :] = x_ref[0]
    y1 = conv3x3_bias_relu(w1_ref, b1_ref)               # (H*W, C) f32

    # ---- conv2 + ReLU ---- (reuse the halo buffer; borders are still zero,
    # only the interior is rewritten)
    xp_ref[1:H + 1, HALO:HALO + W, :] = (
        y1.reshape(H, W, C).astype(xp_ref.dtype))
    y2 = conv3x3_bias_relu(w2_ref, b2_ref)               # (H*W, C) f32

    # ---- global average pool + 2048-d head, fused ----
    pooled = jnp.mean(y2, axis=0, keepdims=True)         # (1, C) f32
    emb = jnp.dot(pooled.astype(jnp.bfloat16), wh_ref[...],
                  preferred_element_type=jnp.float32) + bh_ref[...]
    o_ref[...] = emb.reshape(o_ref.shape).astype(o_ref.dtype)


# ------------------------------ wrapper --------------------------------------

def face_expression_embedder(params, images_nchw):
    """Forward pass: backbone -> x.view(-1, 2048)."""
    # NCHW (PyTorch) -> NHWC (channels = lanes), pad channels to 128, bf16.
    x = jnp.transpose(images_nchw, (0, 2, 3, 1)).astype(jnp.float32)
    B, H, W, Cin = x.shape
    x = jnp.pad(x, ((0, 0), (0, 0), (0, 0), (0, CPAD - Cin))).astype(jnp.bfloat16)

    kernel = functools.partial(_embedder_kernel, H=H, W=W)
    out = pl.pallas_call(
        kernel,
        out_shape=jax.ShapeDtypeStruct((B, 1, FEAT), jnp.float32),
        grid=(B,),
        in_specs=[
            pl.BlockSpec((1, H, W, CPAD), lambda bb: (bb, 0, 0, 0)),
            pl.BlockSpec((9, CPAD, CPAD), lambda bb: (0, 0, 0)),   # w1 resident
            pl.BlockSpec((1, CPAD), lambda bb: (0, 0)),            # b1
            pl.BlockSpec((9, CPAD, CPAD), lambda bb: (0, 0, 0)),   # w2 resident
            pl.BlockSpec((1, CPAD), lambda bb: (0, 0)),            # b2
            pl.BlockSpec((CPAD, FEAT), lambda bb: (0, 0)),         # head W
            pl.BlockSpec((1, FEAT), lambda bb: (0, 0)),            # head b
        ],
        out_specs=pl.BlockSpec((1, 1, FEAT), lambda bb: (bb, 0, 0)),
        scratch_shapes=[pltpu.VMEM((H + 2, W + 2 * HALO, CPAD), jnp.bfloat16)],
        compiler_params=pltpu.CompilerParams(
            dimension_semantics=("parallel",)),
    )(x, params["w1"], params["b1"], params["w2"], params["b2"],
      params["w_head"], params["b_head"])
    return out.reshape(-1, FEAT)                          # x.view(-1, 2048)


# --------------------------- params (stand-in backbone) ----------------------

def init_params(key):
    k1, k2, k3 = jax.random.split(key, 3)
    scale = 0.05
    return {
        "w1": jax.random.normal(k1, (3, 3, 3, 32), jnp.float32) * scale,
        "b1": jnp.zeros((32,), jnp.float32),
        "w2": jax.random.normal(k2, (3, 3, 32, 64), jnp.float32) * scale,
        "b2": jnp.zeros((64,), jnp.float32),
        "w_head": jax.random.normal(k3, (64, FEAT), jnp.float32) * scale,
        "b_head": jnp.zeros((FEAT,), jnp.float32),
    }


def prepare_params(p):
    """Zero-pad channel dims to CPAD lanes and cast matmul operands to bf16."""
    def pad_conv(w, b):
        kh, kw, cin, cout = w.shape
        wp = jnp.zeros((kh, kw, CPAD, CPAD), jnp.float32)
        wp = wp.at[:, :, :cin, :cout].set(w)
        wp = wp.reshape(kh * kw, CPAD, CPAD).astype(jnp.bfloat16)
        bp = jnp.zeros((CPAD,), jnp.float32).at[:cout].set(b).reshape(1, CPAD)
        return wp, bp

    w1, b1 = pad_conv(p["w1"], p["b1"])
    w2, b2 = pad_conv(p["w2"], p["b2"])
    chead, f = p["w_head"].shape
    w_head = jnp.zeros((CPAD, f), jnp.float32).at[:chead].set(
        p["w_head"]).astype(jnp.bfloat16)
    return {"w1": w1, "b1": b1, "w2": w2, "b2": b2,
            "w_head": w_head, "b_head": p["b_head"].reshape(1, f)}


if __name__ == "__main__":
    key = jax.random.PRNGKey(0)
    k_params, k_img = jax.random.split(key)
    params = prepare_params(init_params(k_params))

    # Small deterministic example input: batch=2, 3-channel 16x16 images (NCHW).
    images = jax.random.normal(k_img, (2, 3, 16, 16), jnp.float32)

    fwd = jax.jit(face_expression_embedder)
    out = jax.block_until_ready(fwd(params, images))

    assert out.shape == (2, FEAT), out.shape
    assert out.dtype == jnp.float32, out.dtype
    print("KERNEL_OK")
</pallas_src>

<mosaic_0001>
module attributes {stable_mosaic.version = 11 : i64} {
  func.func @_embedder_kernel(%arg0: i32, %arg1: memref<1x16x16x128xbf16, #tpu.memory_space<vmem>>, %arg2: memref<9x128x128xbf16, #tpu.memory_space<vmem>>, %arg3: memref<1x128xf32, #tpu.memory_space<vmem>>, %arg4: memref<9x128x128xbf16, #tpu.memory_space<vmem>>, %arg5: memref<1x128xf32, #tpu.memory_space<vmem>>, %arg6: memref<128x2048xbf16, #tpu.memory_space<vmem>>, %arg7: memref<1x2048xf32, #tpu.memory_space<vmem>>, %arg8: memref<1x1x2048xf32, #tpu.memory_space<vmem>>, %arg9: memref<18x32x128xbf16, #tpu.memory_space<vmem>>) attributes {dimension_semantics = [#tpu.dimension_semantics<parallel>], iteration_bounds = array<i64: 2>, scalar_prefetch = 0 : i64, scratch_operands = 1 : i64, tpu.core_type = #tpu.core_type<tc>, window_params = [{transform_indices = @transform_0, window_bounds = array<i64: 1, 16, 16, 128>}, {pipeline_mode = #tpu.pipeline_mode<synchronous>, transform_indices = @transform_1, window_bounds = array<i64: 9, 128, 128>}, {pipeline_mode = #tpu.pipeline_mode<synchronous>, transform_indices = @transform_2, window_bounds = array<i64: 1, 128>}, {pipeline_mode = #tpu.pipeline_mode<synchronous>, transform_indices = @transform_3, window_bounds = array<i64: 9, 128, 128>}, {pipeline_mode = #tpu.pipeline_mode<synchronous>, transform_indices = @transform_4, window_bounds = array<i64: 1, 128>}, {pipeline_mode = #tpu.pipeline_mode<synchronous>, transform_indices = @transform_5, window_bounds = array<i64: 128, 2048>}, {pipeline_mode = #tpu.pipeline_mode<synchronous>, transform_indices = @transform_6, window_bounds = array<i64: 1, 2048>}, {transform_indices = @transform_7, window_bounds = array<i64: 1, 1, 2048>}]} {
    %cst = arith.constant 0.000000e+00 : bf16
    %0 = vector.broadcast %cst : bf16 to vector<18x32x128xbf16>
    %c0 = arith.constant 0 : index
    %c0_0 = arith.constant 0 : index
    %c0_1 = arith.constant 0 : index
    %1 = vector.load %arg9[%c0, %c0_0, %c0_1] : memref<18x32x128xbf16, #tpu.memory_space<vmem>>, vector<18x32x128xbf16>
    tpu.vector_store %arg9[%c0, %c0_0, %c0_1], %0 {strides = array<i32>} : memref<18x32x128xbf16, #tpu.memory_space<vmem>>, vector<18x32x128xbf16>,
    %c0_2 = arith.constant 0 : index
    %c0_3 = arith.constant 0 : index
    %c0_4 = arith.constant 0 : index
    %c0_5 = arith.constant 0 : index
    %2 = vector.load %arg1[%c0_2, %c0_3, %c0_4, %c0_5] : memref<1x16x16x128xbf16, #tpu.memory_space<vmem>>, vector<1x16x16x128xbf16>
    %3 = vector.shape_cast %2 : vector<1x16x16x128xbf16> to vector<16x16x128xbf16>
    %c1 = arith.constant 1 : index
    %c8 = arith.constant 8 : index
    %c0_6 = arith.constant 0 : index
    %4 = vector.load %arg9[%c1, %c8, %c0_6] : memref<18x32x128xbf16, #tpu.memory_space<vmem>>, vector<16x16x128xbf16>
    tpu.vector_store %arg9[%c1, %c8, %c0_6], %3 {strides = array<i32>} : memref<18x32x128xbf16, #tpu.memory_space<vmem>>, vector<16x16x128xbf16>,
    %cst_7 = arith.constant 0.000000e+00 : f32
    %5 = vector.broadcast %cst_7 : f32 to vector<256x128xf32>
    %c0_8 = arith.constant 0 : index
    %c7 = arith.constant 7 : index
    %c0_9 = arith.constant 0 : index
    %6 = vector.load %arg9[%c0_8, %c7, %c0_9] : memref<18x32x128xbf16, #tpu.memory_space<vmem>>, vector<16x16x128xbf16>
    %7 = vector.shape_cast %6 : vector<16x16x128xbf16> to vector<256x128xbf16>
    %c0_10 = arith.constant 0 : index
    %c0_11 = arith.constant 0 : index
    %c0_12 = arith.constant 0 : index
    %8 = vector.load %arg2[%c0_10, %c0_11, %c0_12] : memref<9x128x128xbf16, #tpu.memory_space<vmem>>, vector<1x128x128xbf16>
    %9 = vector.shape_cast %8 : vector<1x128x128xbf16> to vector<128x128xbf16>
    %cst_13 = arith.constant dense<0.000000e+00> : vector<256x128xf32>
    %10 = tpu.matmul %7, %9, %cst_13 {dimension_numbers = #tpu.dot_dimension_numbers<[1], [0], [0], [1], [0, 0, 1, 1], [], []>} : vector<256x128xbf16>, vector<128x128xbf16>, vector<256x128xf32> -> vector<256x128xf32>
    %11 = arith.addf %5, %10 : vector<256x128xf32>
    %c0_14 = arith.constant 0 : index
    %c8_15 = arith.constant 8 : index
    %c0_16 = arith.constant 0 : index
    %12 = vector.load %arg9[%c0_14, %c8_15, %c0_16] : memref<18x32x128xbf16, #tpu.memory_space<vmem>>, vector<16x16x128xbf16>
    %13 = vector.shape_cast %12 : vector<16x16x128xbf16> to vector<256x128xbf16>
    %c1_17 = arith.constant 1 : index
    %c0_18 = arith.constant 0 : index
    %c0_19 = arith.constant 0 : index
    %14 = vector.load %arg2[%c1_17, %c0_18, %c0_19] : memref<9x128x128xbf16, #tpu.memory_space<vmem>>, vector<1x128x128xbf16>
    %15 = vector.shape_cast %14 : vector<1x128x128xbf16> to vector<128x128xbf16>
    %cst_20 = arith.constant dense<0.000000e+00> : vector<256x128xf32>
    %16 = tpu.matmul %13, %15, %cst_20 {dimension_numbers = #tpu.dot_dimension_numbers<[1], [0], [0], [1], [0, 0, 1, 1], [], []>} : vector<256x128xbf16>, vector<128x128xbf16>, vector<256x128xf32> -> vector<256x128xf32>
    %17 = arith.addf %11, %16 : vector<256x128xf32>
    %c0_21 = arith.constant 0 : index
    %c9 = arith.constant 9 : index
    %c0_22 = arith.constant 0 : index
    %18 = vector.load %arg9[%c0_21, %c9, %c0_22] : memref<18x32x128xbf16, #tpu.memory_space<vmem>>, vector<16x16x128xbf16>
    %19 = vector.shape_cast %18 : vector<16x16x128xbf16> to vector<256x128xbf16>
    %c2 = arith.constant 2 : index
    %c0_23 = arith.constant 0 : index
    %c0_24 = arith.constant 0 : index
    %20 = vector.load %arg2[%c2, %c0_23, %c0_24] : memref<9x128x128xbf16, #tpu.memory_space<vmem>>, vector<1x128x128xbf16>
    %21 = vector.shape_cast %20 : vector<1x128x128xbf16> to vector<128x128xbf16>
    %cst_25 = arith.constant dense<0.000000e+00> : vector<256x128xf32>
    %22 = tpu.matmul %19, %21, %cst_25 {dimension_numbers = #tpu.dot_dimension_numbers<[1], [0], [0], [1], [0, 0, 1, 1], [], []>} : vector<256x128xbf16>, vector<128x128xbf16>, vector<256x128xf32> -> vector<256x128xf32>
    %23 = arith.addf %17, %22 : vector<256x128xf32>
    %c1_26 = arith.constant 1 : index
    %c7_27 = arith.constant 7 : index
    %c0_28 = arith.constant 0 : index
    %24 = vector.load %arg9[%c1_26, %c7_27, %c0_28] : memref<18x32x128xbf16, #tpu.memory_space<vmem>>, vector<16x16x128xbf16>
    %25 = vector.shape_cast %24 : vector<16x16x128xbf16> to vector<256x128xbf16>
    %c3 = arith.constant 3 : index
    %c0_29 = arith.constant 0 : index
    %c0_30 = arith.constant 0 : index
    %26 = vector.load %arg2[%c3, %c0_29, %c0_30] : memref<9x128x128xbf16, #tpu.memory_space<vmem>>, vector<1x128x128xbf16>
    %27 = vector.shape_cast %26 : vector<1x128x128xbf16> to vector<128x128xbf16>
    %cst_31 = arith.constant dense<0.000000e+00> : vector<256x128xf32>
    %28 = tpu.matmul %25, %27, %cst_31 {dimension_numbers = #tpu.dot_dimension_numbers<[1], [0], [0], [1], [0, 0, 1, 1], [], []>} : vector<256x128xbf16>, vector<128x128xbf16>, vector<256x128xf32> -> vector<256x128xf32>
    %29 = arith.addf %23, %28 : vector<256x128xf32>
    %c1_32 = arith.constant 1 : index
    %c8_33 = arith.constant 8 : index
    %c0_34 = arith.constant 0 : index
    %30 = vector.load %arg9[%c1_32, %c8_33, %c0_34] : memref<18x32x128xbf16, #tpu.memory_space<vmem>>, vector<16x16x128xbf16>
    %31 = vector.shape_cast %30 : vector<16x16x128xbf16> to vector<256x128xbf16>
    %c4 = arith.constant 4 : index
    %c0_35 = arith.constant 0 : index
    %c0_36 = arith.constant 0 : index
    %32 = vector.load %arg2[%c4, %c0_35, %c0_36] : memref<9x128x128xbf16, #tpu.memory_space<vmem>>, vector<1x128x128xbf16>
    %33 = vector.shape_cast %32 : vector<1x128x128xbf16> to vector<128x128xbf16>
    %cst_37 = arith.constant dense<0.000000e+00> : vector<256x128xf32>
    %34 = tpu.matmul %31, %33, %cst_37 {dimension_numbers = #tpu.dot_dimension_numbers<[1], [0], [0], [1], [0, 0, 1, 1], [], []>} : vector<256x128xbf16>, vector<128x128xbf16>, vector<256x128xf32> -> vector<256x128xf32>
    %35 = arith.addf %29, %34 : vector<256x128xf32>
    %c1_38 = arith.constant 1 : index
    %c9_39 = arith.constant 9 : index
    %c0_40 = arith.constant 0 : index
    %36 = vector.load %arg9[%c1_38, %c9_39, %c0_40] : memref<18x32x128xbf16, #tpu.memory_space<vmem>>, vector<16x16x128xbf16>
    %37 = vector.shape_cast %36 : vector<16x16x128xbf16> to vector<256x128xbf16>
    %c5 = arith.constant 5 : index
    %c0_41 = arith.constant 0 : index
    %c0_42 = arith.constant 0 : index
    %38 = vector.load %arg2[%c5, %c0_41, %c0_42] : memref<9x128x128xbf16, #tpu.memory_space<vmem>>, vector<1x128x128xbf16>
    %39 = vector.shape_cast %38 : vector<1x128x128xbf16> to vector<128x128xbf16>
    %cst_43 = arith.constant dense<0.000000e+00> : vector<256x128xf32>
    %40 = tpu.matmul %37, %39, %cst_43 {dimension_numbers = #tpu.dot_dimension_numbers<[1], [0], [0], [1], [0, 0, 1, 1], [], []>} : vector<256x128xbf16>, vector<128x128xbf16>, vector<256x128xf32> -> vector<256x128xf32>
    %41 = arith.addf %35, %40 : vector<256x128xf32>
    %c2_44 = arith.constant 2 : index
    %c7_45 = arith.constant 7 : index
    %c0_46 = arith.constant 0 : index
    %42 = vector.load %arg9[%c2_44, %c7_45, %c0_46] : memref<18x32x128xbf16, #tpu.memory_space<vmem>>, vector<16x16x128xbf16>
    %43 = vector.shape_cast %42 : vector<16x16x128xbf16> to vector<256x128xbf16>
    %c6 = arith.constant 6 : index
    %c0_47 = arith.constant 0 : index
    %c0_48 = arith.constant 0 : index
    %44 = vector.load %arg2[%c6, %c0_47, %c0_48] : memref<9x128x128xbf16, #tpu.memory_space<vmem>>, vector<1x128x128xbf16>
    %45 = vector.shape_cast %44 : vector<1x128x128xbf16> to vector<128x128xbf16>
    %cst_49 = arith.constant dense<0.000000e+00> : vector<256x128xf32>
    %46 = tpu.matmul %43, %45, %cst_49 {dimension_numbers = #tpu.dot_dimension_numbers<[1], [0], [0], [1], [0, 0, 1, 1], [], []>} : vector<256x128xbf16>, vector<128x128xbf16>, vector<256x128xf32> -> vector<256x128xf32>
    %47 = arith.addf %41, %46 : vector<256x128xf32>
    %c2_50 = arith.constant 2 : index
    %c8_51 = arith.constant 8 : index
    %c0_52 = arith.constant 0 : index
    %48 = vector.load %arg9[%c2_50, %c8_51, %c0_52] : memref<18x32x128xbf16, #tpu.memory_space<vmem>>, vector<16x16x128xbf16>
    %49 = vector.shape_cast %48 : vector<16x16x128xbf16> to vector<256x128xbf16>
    %c7_53 = arith.constant 7 : index
    %c0_54 = arith.constant 0 : index
    %c0_55 = arith.constant 0 : index
    %50 = vector.load %arg2[%c7_53, %c0_54, %c0_55] : memref<9x128x128xbf16, #tpu.memory_space<vmem>>, vector<1x128x128xbf16>
    %51 = vector.shape_cast %50 : vector<1x128x128xbf16> to vector<128x128xbf16>
    %cst_56 = arith.constant dense<0.000000e+00> : vector<256x128xf32>
    %52 = tpu.matmul %49, %51, %cst_56 {dimension_numbers = #tpu.dot_dimension_numbers<[1], [0], [0], [1], [0, 0, 1, 1], [], []>} : vector<256x128xbf16>, vector<128x128xbf16>, vector<256x128xf32> -> vector<256x128xf32>
    %53 = arith.addf %47, %52 : vector<256x128xf32>
    %c2_57 = arith.constant 2 : index
    %c9_58 = arith.constant 9 : index
    %c0_59 = arith.constant 0 : index
    %54 = vector.load %arg9[%c2_57, %c9_58, %c0_59] : memref<18x32x128xbf16, #tpu.memory_space<vmem>>, vector<16x16x128xbf16>
    %55 = vector.shape_cast %54 : vector<16x16x128xbf16> to vector<256x128xbf16>
    %c8_60 = arith.constant 8 : index
    %c0_61 = arith.constant 0 : index
    %c0_62 = arith.constant 0 : index
    %56 = vector.load %arg2[%c8_60, %c0_61, %c0_62] : memref<9x128x128xbf16, #tpu.memory_space<vmem>>, vector<1x128x128xbf16>
    %57 = vector.shape_cast %56 : vector<1x128x128xbf16> to vector<128x128xbf16>
    %cst_63 = arith.constant dense<0.000000e+00> : vector<256x128xf32>
    %58 = tpu.matmul %55, %57, %cst_63 {dimension_numbers = #tpu.dot_dimension_numbers<[1], [0], [0], [1], [0, 0, 1, 1], [], []>} : vector<256x128xbf16>, vector<128x128xbf16>, vector<256x128xf32> -> vector<256x128xf32>
    %59 = arith.addf %53, %58 : vector<256x128xf32>
    %c0_64 = arith.constant 0 : index
    %c0_65 = arith.constant 0 : index
    %60 = vector.load %arg3[%c0_64, %c0_65] : memref<1x128xf32, #tpu.memory_space<vmem>>, vector<1x128xf32>
    %61 = vector.broadcast %60 : vector<1x128xf32> to vector<256x128xf32>
    %62 = arith.addf %59, %61 : vector<256x128xf32>
    %cst_66 = arith.constant 0.000000e+00 : f32
    %63 = vector.broadcast %cst_66 : f32 to vector<256x128xf32>
    %64 = arith.maximumf %62, %63 : vector<256x128xf32>
    %65 = vector.shape_cast %64 : vector<256x128xf32> to vector<16x16x128xf32>
    %66 = arith.truncf %65 : vector<16x16x128xf32> to vector<16x16x128xbf16>
    %c1_67 = arith.constant 1 : index
    %c8_68 = arith.constant 8 : index
    %c0_69 = arith.constant 0 : index
    %67 = vector.load %arg9[%c1_67, %c8_68, %c0_69] : memref<18x32x128xbf16, #tpu.memory_space<vmem>>, vector<16x16x128xbf16>
    tpu.vector_store %arg9[%c1_67, %c8_68, %c0_69], %66 {strides = array<i32>} : memref<18x32x128xbf16, #tpu.memory_space<vmem>>, vector<16x16x128xbf16>,
    %cst_70 = arith.constant 0.000000e+00 : f32
    %68 = vector.broadcast %cst_70 : f32 to vector<256x128xf32>
    %c0_71 = arith.constant 0 : index
    %c7_72 = arith.constant 7 : index
    %c0_73 = arith.constant 0 : index
    %69 = vector.load %arg9[%c0_71, %c7_72, %c0_73] : memref<18x32x128xbf16, #tpu.memory_space<vmem>>, vector<16x16x128xbf16>
    %70 = vector.shape_cast %69 : vector<16x16x128xbf16> to vector<256x128xbf16>
    %c0_74 = arith.constant 0 : index
    %c0_75 = arith.constant 0 : index
    %c0_76 = arith.constant 0 : index
    %71 = vector.load %arg4[%c0_74, %c0_75, %c0_76] : memref<9x128x128xbf16, #tpu.memory_space<vmem>>, vector<1x128x128xbf16>
    %72 = vector.shape_cast %71 : vector<1x128x128xbf16> to vector<128x128xbf16>
    %cst_77 = arith.constant dense<0.000000e+00> : vector<256x128xf32>
    %73 = tpu.matmul %70, %72, %cst_77 {dimension_numbers = #tpu.dot_dimension_numbers<[1], [0], [0], [1], [0, 0, 1, 1], [], []>} : vector<256x128xbf16>, vector<128x128xbf16>, vector<256x128xf32> -> vector<256x128xf32>
    %74 = arith.addf %68, %73 : vector<256x128xf32>
    %c0_78 = arith.constant 0 : index
    %c8_79 = arith.constant 8 : index
    %c0_80 = arith.constant 0 : index
    %75 = vector.load %arg9[%c0_78, %c8_79, %c0_80] : memref<18x32x128xbf16, #tpu.memory_space<vmem>>, vector<16x16x128xbf16>
    %76 = vector.shape_cast %75 : vector<16x16x128xbf16> to vector<256x128xbf16>
    %c1_81 = arith.constant 1 : index
    %c0_82 = arith.constant 0 : index
    %c0_83 = arith.constant 0 : index
    %77 = vector.load %arg4[%c1_81, %c0_82, %c0_83] : memref<9x128x128xbf16, #tpu.memory_space<vmem>>, vector<1x128x128xbf16>
    %78 = vector.shape_cast %77 : vector<1x128x128xbf16> to vector<128x128xbf16>
    %cst_84 = arith.constant dense<0.000000e+00> : vector<256x128xf32>
    %79 = tpu.matmul %76, %78, %cst_84 {dimension_numbers = #tpu.dot_dimension_numbers<[1], [0], [0], [1], [0, 0, 1, 1], [], []>} : vector<256x128xbf16>, vector<128x128xbf16>, vector<256x128xf32> -> vector<256x128xf32>
    %80 = arith.addf %74, %79 : vector<256x128xf32>
    %c0_85 = arith.constant 0 : index
    %c9_86 = arith.constant 9 : index
    %c0_87 = arith.constant 0 : index
    %81 = vector.load %arg9[%c0_85, %c9_86, %c0_87] : memref<18x32x128xbf16, #tpu.memory_space<vmem>>, vector<16x16x128xbf16>
    %82 = vector.shape_cast %81 : vector<16x16x128xbf16> to vector<256x128xbf16>
    %c2_88 = arith.constant 2 : index
    %c0_89 = arith.constant 0 : index
    %c0_90 = arith.constant 0 : index
    %83 = vector.load %arg4[%c2_88, %c0_89, %c0_90] : memref<9x128x128xbf16, #tpu.memory_space<vmem>>, vector<1x128x128xbf16>
    %84 = vector.shape_cast %83 : vector<1x128x128xbf16> to vector<128x128xbf16>
    %cst_91 = arith.constant dense<0.000000e+00> : vector<256x128xf32>
    %85 = tpu.matmul %82, %84, %cst_91 {dimension_numbers = #tpu.dot_dimension_numbers<[1], [0], [0], [1], [0, 0, 1, 1], [], []>} : vector<256x128xbf16>, vector<128x128xbf16>, vector<256x128xf32> -> vector<256x128xf32>
    %86 = arith.addf %80, %85 : vector<256x128xf32>
    %c1_92 = arith.constant 1 : index
    %c7_93 = arith.constant 7 : index
    %c0_94 = arith.constant 0 : index
    %87 = vector.load %arg9[%c1_92, %c7_93, %c0_94] : memref<18x32x128xbf16, #tpu.memory_space<vmem>>, vector<16x16x128xbf16>
    %88 = vector.shape_cast %87 : vector<16x16x128xbf16> to vector<256x128xbf16>
    %c3_95 = arith.constant 3 : index
    %c0_96 = arith.constant 0 : index
    %c0_97 = arith.constant 0 : index
    %89 = vector.load %arg4[%c3_95, %c0_96, %c0_97] : memref<9x128x128xbf16, #tpu.memory_space<vmem>>, vector<1x128x128xbf16>
    %90 = vector.shape_cast %89 : vector<1x128x128xbf16> to vector<128x128xbf16>
    %cst_98 = arith.constant dense<0.000000e+00> : vector<256x128xf32>
    %91 = tpu.matmul %88, %90, %cst_98 {dimension_numbers = #tpu.dot_dimension_numbers<[1], [0], [0], [1], [0, 0, 1, 1], [], []>} : vector<256x128xbf16>, vector<128x128xbf16>, vector<256x128xf32> -> vector<256x128xf32>
    %92 = arith.addf %86, %91 : vector<256x128xf32>
    %c1_99 = arith.constant 1 : index
    %c8_100 = arith.constant 8 : index
    %c0_101 = arith.constant 0 : index
    %93 = vector.load %arg9[%c1_99, %c8_100, %c0_101] : memref<18x32x128xbf16, #tpu.memory_space<vmem>>, vector<16x16x128xbf16>
    %94 = vector.shape_cast %93 : vector<16x16x128xbf16> to vector<256x128xbf16>
    %c4_102 = arith.constant 4 : index
    %c0_103 = arith.constant 0 : index
    %c0_104 = arith.constant 0 : index
    %95 = vector.load %arg4[%c4_102, %c0_103, %c0_104] : memref<9x128x128xbf16, #tpu.memory_space<vmem>>, vector<1x128x128xbf16>
    %96 = vector.shape_cast %95 : vector<1x128x128xbf16> to vector<128x128xbf16>
    %cst_105 = arith.constant dense<0.000000e+00> : vector<256x128xf32>
    %97 = tpu.matmul %94, %96, %cst_105 {dimension_numbers = #tpu.dot_dimension_numbers<[1], [0], [0], [1], [0, 0, 1, 1], [], []>} : vector<256x128xbf16>, vector<128x128xbf16>, vector<256x128xf32> -> vector<256x128xf32>
    %98 = arith.addf %92, %97 : vector<256x128xf32>
    %c1_106 = arith.constant 1 : index
    %c9_107 = arith.constant 9 : index
    %c0_108 = arith.constant 0 : index
    %99 = vector.load %arg9[%c1_106, %c9_107, %c0_108] : memref<18x32x128xbf16, #tpu.memory_space<vmem>>, vector<16x16x128xbf16>
    %100 = vector.shape_cast %99 : vector<16x16x128xbf16> to vector<256x128xbf16>
    %c5_109 = arith.constant 5 : index
    %c0_110 = arith.constant 0 : index
    %c0_111 = arith.constant 0 : index
    %101 = vector.load %arg4[%c5_109, %c0_110, %c0_111] : memref<9x128x128xbf16, #tpu.memory_space<vmem>>, vector<1x128x128xbf16>
    %102 = vector.shape_cast %101 : vector<1x128x128xbf16> to vector<128x128xbf16>
    %cst_112 = arith.constant dense<0.000000e+00> : vector<256x128xf32>
    %103 = tpu.matmul %100, %102, %cst_112 {dimension_numbers = #tpu.dot_dimension_numbers<[1], [0], [0], [1], [0, 0, 1, 1], [], []>} : vector<256x128xbf16>, vector<128x128xbf16>, vector<256x128xf32> -> vector<256x128xf32>
    %104 = arith.addf %98, %103 : vector<256x128xf32>
    %c2_113 = arith.constant 2 : index
    %c7_114 = arith.constant 7 : index
    %c0_115 = arith.constant 0 : index
    %105 = vector.load %arg9[%c2_113, %c7_114, %c0_115] : memref<18x32x128xbf16, #tpu.memory_space<vmem>>, vector<16x16x128xbf16>
    %106 = vector.shape_cast %105 : vector<16x16x128xbf16> to vector<256x128xbf16>
    %c6_116 = arith.constant 6 : index
    %c0_117 = arith.constant 0 : index
    %c0_118 = arith.constant 0 : index
    %107 = vector.load %arg4[%c6_116, %c0_117, %c0_118] : memref<9x128x128xbf16, #tpu.memory_space<vmem>>, vector<1x128x128xbf16>
    %108 = vector.shape_cast %107 : vector<1x128x128xbf16> to vector<128x128xbf16>
    %cst_119 = arith.constant dense<0.000000e+00> : vector<256x128xf32>
    %109 = tpu.matmul %106, %108, %cst_119 {dimension_numbers = #tpu.dot_dimension_numbers<[1], [0], [0], [1], [0, 0, 1, 1], [], []>} : vector<256x128xbf16>, vector<128x128xbf16>, vector<256x128xf32> -> vector<256x128xf32>
    %110 = arith.addf %104, %109 : vector<256x128xf32>
    %c2_120 = arith.constant 2 : index
    %c8_121 = arith.constant 8 : index
    %c0_122 = arith.constant 0 : index
    %111 = vector.load %arg9[%c2_120, %c8_121, %c0_122] : memref<18x32x128xbf16, #tpu.memory_space<vmem>>, vector<16x16x128xbf16>
    %112 = vector.shape_cast %111 : vector<16x16x128xbf16> to vector<256x128xbf16>
    %c7_123 = arith.constant 7 : index
    %c0_124 = arith.constant 0 : index
    %c0_125 = arith.constant 0 : index
    %113 = vector.load %arg4[%c7_123, %c0_124, %c0_125] : memref<9x128x128xbf16, #tpu.memory_space<vmem>>, vector<1x128x128xbf16>
    %114 = vector.shape_cast %113 : vector<1x128x128xbf16> to vector<128x128xbf16>
    %cst_126 = arith.constant dense<0.000000e+00> : vector<256x128xf32>
    %115 = tpu.matmul %112, %114, %cst_126 {dimension_numbers = #tpu.dot_dimension_numbers<[1], [0], [0], [1], [0, 0, 1, 1], [], []>} : vector<256x128xbf16>, vector<128x128xbf16>, vector<256x128xf32> -> vector<256x128xf32>
    %116 = arith.addf %110, %115 : vector<256x128xf32>
    %c2_127 = arith.constant 2 : index
    %c9_128 = arith.constant 9 : index
    %c0_129 = arith.constant 0 : index
    %117 = vector.load %arg9[%c2_127, %c9_128, %c0_129] : memref<18x32x128xbf16, #tpu.memory_space<vmem>>, vector<16x16x128xbf16>
    %118 = vector.shape_cast %117 : vector<16x16x128xbf16> to vector<256x128xbf16>
    %c8_130 = arith.constant 8 : index
    %c0_131 = arith.constant 0 : index
    %c0_132 = arith.constant 0 : index
    %119 = vector.load %arg4[%c8_130, %c0_131, %c0_132] : memref<9x128x128xbf16, #tpu.memory_space<vmem>>, vector<1x128x128xbf16>
    %120 = vector.shape_cast %119 : vector<1x128x128xbf16> to vector<128x128xbf16>
    %cst_133 = arith.constant dense<0.000000e+00> : vector<256x128xf32>
    %121 = tpu.matmul %118, %120, %cst_133 {dimension_numbers = #tpu.dot_dimension_numbers<[1], [0], [0], [1], [0, 0, 1, 1], [], []>} : vector<256x128xbf16>, vector<128x128xbf16>, vector<256x128xf32> -> vector<256x128xf32>
    %122 = arith.addf %116, %121 : vector<256x128xf32>
    %c0_134 = arith.constant 0 : index
    %c0_135 = arith.constant 0 : index
    %123 = vector.load %arg5[%c0_134, %c0_135] : memref<1x128xf32, #tpu.memory_space<vmem>>, vector<1x128xf32>
    %124 = vector.broadcast %123 : vector<1x128xf32> to vector<256x128xf32>
    %125 = arith.addf %122, %124 : vector<256x128xf32>
    %cst_136 = arith.constant 0.000000e+00 : f32
    %126 = vector.broadcast %cst_136 : f32 to vector<256x128xf32>
    %127 = arith.maximumf %125, %126 : vector<256x128xf32>
    %cst_137 = arith.constant dense<0.000000e+00> : vector<128xf32>
    %128 = vector.multi_reduction <add>, %127, %cst_137 [0] : vector<256x128xf32> to vector<128xf32>
    %129 = vector.shape_cast %128 : vector<128xf32> to vector<1x128xf32>
    %cst_138 = arith.constant 2.560000e+02 : f32
    %130 = vector.broadcast %cst_138 : f32 to vector<1x128xf32>
    %131 = arith.divf %129, %130 : vector<1x128xf32>
    %132 = arith.truncf %131 : vector<1x128xf32> to vector<1x128xbf16>
    %c0_139 = arith.constant 0 : index
    %c0_140 = arith.constant 0 : index
    %133 = vector.load %arg6[%c0_139, %c0_140] : memref<128x2048xbf16, #tpu.memory_space<vmem>>, vector<128x2048xbf16>
    %cst_141 = arith.constant dense<0.000000e+00> : vector<1x2048xf32>
    %134 = tpu.matmul %132, %133, %cst_141 {dimension_numbers = #tpu.dot_dimension_numbers<[1], [0], [0], [1], [0, 0, 1, 1], [], []>} : vector<1x128xbf16>, vector<128x2048xbf16>, vector<1x2048xf32> -> vector<1x2048xf32>
    %c0_142 = arith.constant 0 : index
    %c0_143 = arith.constant 0 : index
    %135 = vector.load %arg7[%c0_142, %c0_143] : memref<1x2048xf32, #tpu.memory_space<vmem>>, vector<1x2048xf32>
    %136 = arith.addf %134, %135 : vector<1x2048xf32>
    %137 = vector.shape_cast %136 : vector<1x2048xf32> to vector<1x1x2048xf32>
    %c0_144 = arith.constant 0 : index
    %c0_145 = arith.constant 0 : index
    %c0_146 = arith.constant 0 : index
    %138 = vector.load %arg8[%c0_144, %c0_145, %c0_146] : memref<1x1x2048xf32, #tpu.memory_space<vmem>>, vector<1x1x2048xf32>
    tpu.vector_store %arg8[%c0_144, %c0_145, %c0_146], %137 {strides = array<i32>} : memref<1x1x2048xf32, #tpu.memory_space<vmem>>, vector<1x1x2048xf32>,
    return
  }
  func.func @transform_0(%arg0: i32) -> (i32, i32, i32, i32) {
    %c0_i32 = arith.constant 0 : i32
    %c0_i32_0 = arith.constant 0 : i32
    %c0_i32_1 = arith.constant 0 : i32
    %c0_i32_2 = arith.constant 0 : i32
    return %arg0, %c0_i32, %c0_i32_0, %c0_i32_1 : i32, i32, i32, i32
  }
  func.func @transform_1(%arg0: i32) -> (i32, i32, i32) {
    %c0_i32 = arith.constant 0 : i32
    %c0_i32_0 = arith.constant 0 : i32
    %c0_i32_1 = arith.constant 0 : i32
    %c0_i32_2 = arith.constant 0 : i32
    return %c0_i32, %c0_i32_0, %c0_i32_1 : i32, i32, i32
  }
  func.func @transform_2(%arg0: i32) -> (i32, i32) {
    %c0_i32 = arith.constant 0 : i32
    %c0_i32_0 = arith.constant 0 : i32
    %c0_i32_1 = arith.constant 0 : i32
    return %c0_i32, %c0_i32_0 : i32, i32
  }
  func.func @transform_3(%arg0: i32) -> (i32, i32, i32) {
    %c0_i32 = arith.constant 0 : i32
    %c0_i32_0 = arith.constant 0 : i32
    %c0_i32_1 = arith.constant 0 : i32
    %c0_i32_2 = arith.constant 0 : i32
    return %c0_i32, %c0_i32_0, %c0_i32_1 : i32, i32, i32
  }
  func.func @transform_4(%arg0: i32) -> (i32, i32) {
    %c0_i32 = arith.constant 0 : i32
    %c0_i32_0 = arith.constant 0 : i32
    %c0_i32_1 = arith.constant 0 : i32
    return %c0_i32, %c0_i32_0 : i32, i32
  }
  func.func @transform_5(%arg0: i32) -> (i32, i32) {
    %c0_i32 = arith.constant 0 : i32
    %c0_i32_0 = arith.constant 0 : i32
    %c0_i32_1 = arith.constant 0 : i32
    return %c0_i32, %c0_i32_0 : i32, i32
  }
  func.func @transform_6(%arg0: i32) -> (i32, i32) {
    %c0_i32 = arith.constant 0 : i32
    %c0_i32_0 = arith.constant 0 : i32
    %c0_i32_1 = arith.constant 0 : i32
    return %c0_i32, %c0_i32_0 : i32, i32
  }
  func.func @transform_7(%arg0: i32) -> (i32, i32, i32) {
    %c0_i32 = arith.constant 0 : i32
    %c0_i32_0 = arith.constant 0 : i32
    %c0_i32_1 = arith.constant 0 : i32
    return %arg0, %c0_i32, %c0_i32_0 : i32, i32, i32
  }
}

</mosaic_0001>

<bundles_post_ra>
// kernel: face_expression_embedder.1
= control target key start
LH: loop header
LB: loop body
LE: loop exit
PB: predicated region body
PF: predicated region fallthrough
CT: control target
= control target key end

     0   :  { %12 = vsyncpa [#allocation4], 0  ;;  %s15574_s0 = inlined_call_operand.vmem [shape: bf16[2,16,16,128], index: 0, kind: input, shape index: {}]   ;;  %s15575_s1 = inlined_call_operand.vmem [shape: bf16[9,128,128], index: 1, kind: input, shape index: {}]   ;;  %s15576_s2 = inlined_call_operand.vmem [shape: f32[1,128], index: 2, kind: input, shape index: {}]   ;;  %s15577_s3 = inlined_call_operand.hbm [shape: bf16[9,128,128], index: 3, kind: input, shape index: {}]   ;;  %s15578_s4 = inlined_call_operand.vmem [shape: f32[1,128], index: 4, kind: input, shape index: {}]   ;;  %s15579_s5 = inlined_call_operand.hbm [shape: bf16[128,2048], index: 5, kind: input, shape index: {}]   ;;  %s15580_s6 = inlined_call_operand.vmem [shape: f32[1,2048], index: 6, kind: input, shape index: {}]   ;;  %s15581_s7 = inlined_call_operand.vmem [shape: f32[2,1,2048], index: 7, kind: output, shape index: {}]  }
   0x1   :  { %13 = vsyncpa [#allocation6], 0  ;;  %s13711_s24 = smov 0  }
   0x2 LB: > { %s13717_s25 = sadd.s32 4294967295, %s13662_s24   ;;  %p11124_p0 = scmp.ge.s32.totalorder %s13662_s24, 1  ;;  %s13662_s24 = sphi %s13711_s24, %s19_s24  }
   0x3   : > { %p202_p1 = scmp.lt.s32.totalorder %s13662_s24, 3  ;;  %s13664_s26 = smov [#allocation3]  }
   0x4   : > { %s220_s27 = sshll.u32 %s13664_s26, 4  ;;  %p15582_p3 = scmp.eq.s32.totalorder %s13717_s25, 0  ;;  %s221_s27 = int_to_ptr.vmem [resolvable:$true] %s220_s27 }
   0x5   : > { %p13721_p2 = pnand %p11124_p0, %p202_p1  ;;  %s13665_s29 = smov [#allocation5]  }
   0x6   : > { %s236_s30 = sshll.u32 %s13665_s29, 4  ;;  %s13592_s11 = scalar_lea.hbm %s15577_s3, 9216  ;;  %s13734_s30 = int_to_ptr.vmem [resolvable:$true] %s236_s30 }
   0x7   : > { %s15584_s28 = scalar_select %p13721_p2, 1, 0 }
   0x8   : > { %p13387_p4 = pneg %p13721_p2  ;;  %p13593_p6 = scmp.ne.s32.totalorder %s15577_s3, %s13592_s11 }
   0x9   : > { %p13599_p10 = scmp.lt.u32.totalorder %s13592_s11, %s15577_s3 }
   0xa   : > { %p13730_p5 = pnand %p15582_p3, %p13387_p4 }
   0xc   : > { %p13594_p7 = pneg %p13730_p5 }
   0xe   : > { %p13595_p8 = pnand %p13594_p7, %p13593_p6 }
  0x10   : > { %p13596_p9 = pneg %p13595_p8 }
  0x12   : > { %p13601_p11 = pnand %p13599_p10, %p13596_p9 }
  0x14   : > { %13604 = shalt.err (!%p13601_p11)
}
  0x15   : > { %s13605_s16 = scalar_lea.vmem %s221_s27, 9216  ;;  %p13613_p1 = scmp.lt.s32.totalorder %s221_s27, %s221_s27 }
  0x16   : > { %p13606_p12 = scmp.ne.s32.totalorder %s221_s27, %s13605_s16  ;;  %p13614_p4 = scmp.lt.s32.totalorder %s13605_s16, %s13605_s16 }
  0x18   : > { %p13608_p13 = pnand %p13606_p12, %p13594_p7  ;;  %p13615_p3 = por %p13614_p4, %p13613_p1 }
  0x1a   : > { %p13609_p0 = pneg %p13608_p13 }
  0x1c   : > { %p13616_p2 = pnand %p13615_p3, %p13609_p0 }
  0x1e   : > { %13619 = shalt.err (!%p13616_p2)
}
  0x1f   : > { %s13666_s17 = smov 64   ;;  %s13667_s18 = smov 4  }
  0x20   : > { %13390 = dma.hbm_to_vmem [thread:$0]  (!%p13730_p5), %s15577_s3, 9216, %s221_s27, [#allocation4], %s13666_s17, %s13666_s17, %s13667_s18  }
  0x21   : > { %s13620_s23 = scalar_lea.hbm %s15579_s5, 16384 }
  0x22   : > { %p13621_p6 = scmp.ne.s32.totalorder %s15579_s5, %s13620_s23  ;;  %p13627_p8 = scmp.lt.u32.totalorder %s13620_s23, %s15579_s5 }
  0x24   : > { %p13623_p2 = pnand %p13621_p6, %p13594_p7 }
  0x26   : > { %p13624_p3 = pneg %p13623_p2 }
  0x28   : > { %p13629_p9 = pnand %p13627_p8, %p13624_p3 }
  0x2a   : > { %13632 = shalt.err (!%p13629_p9)
}
  0x2b   : > { %s13633_s27 = scalar_lea.vmem %s13734_s30, 16384  ;;  %p13641_p13 = scmp.lt.s32.totalorder %s13734_s30, %s13734_s30 }
  0x2c   : > { %p13634_p10 = scmp.ne.s32.totalorder %s13734_s30, %s13633_s27  ;;  %p13642_p0 = scmp.lt.s32.totalorder %s13633_s27, %s13633_s27 }
  0x2e   : > { %p13636_p11 = pnand %p13634_p10, %p13594_p7  ;;  %p13643_p1 = por %p13642_p0, %p13641_p13 }
  0x30   : > { %p13637_p12 = pneg %p13636_p11 }
  0x32   : > { %p13644_p4 = pnand %p13643_p1, %p13637_p12 }
  0x34   : > { %13647 = shalt.err (!%p13644_p4)
}
  0x35   : > { %s13668_s11 = smov 1024   ;;  %p15586_p6 = scmp.ne.s32.totalorder %s15584_s28, 0 }
  0x36   : > { %13393 = dma.hbm_to_vmem [thread:$0]  (!%p13730_p5), %s15579_s5, 16384, %s13734_s30, [#allocation6], %s13668_s11, %s13668_s11, %s13666_s17  }
  0x37   : > { %263 = sbr.rel (%p15586_p6) target bundleno = 1978 (0x7ba), region = 48  ;;  %p15587_p7 = scmp.eq.s32.totalorder (!%p15586_p6), %s13717_s25, 0 }
  0x3e   : > { %13653 = dma.done.wait (%p15587_p7), [#allocation4], 9216   ;;  %p15588_p2 = pmov %p15587_p7 }
  0x40   : > { %13655 = vsyncadd (%p15588_p2), [#allocation4], 4294958080  ;;  %p15589_p3 = pmov %p15588_p2 }
  0x41   : > { %p15590_p8 = pmov %p15588_p2 }
  0x42   : > { %13657 = dma.done.wait (%p15589_p3), [#allocation6], 16384  }
  0x43   : > { %13659 = vsyncadd (%p15590_p8), [#allocation6], 4294950912  ;;  %v13669_v0 = vmov 0   ;;  %p298_p5 = scmp.lt.s32.totalorder %s13717_s25, 1  ;;  %v13413_v1 = vld [vmem:[%s15575_s1 + $0x40] sm:$0xff]   ;;  %v13414_v2 = vld [vmem:[%s15575_s1 + $0x48] sm:$0xff]  }
  0x44   : > { %308 = vst [vmem:[#allocation2] sm:$0xff] %v13669_v0  ;;  %309 = vst [vmem:[#allocation2 + $0x8] sm:$0xff] %v13669_v0  ;;  %12003 = vmatprep.subr.bf16.mxu0 %v13413_v1  ;;  %v13415_v3 = vld [vmem:[%s15575_s1 + $0x50] sm:$0xff]   ;;  %v13416_v4 = vld [vmem:[%s15575_s1 + $0x58] sm:$0xff]   ;;  %vm922_vm0 = vcmask 1043456  }
  0x45   : > { %310 = vst [vmem:[#allocation2 + $0x10] sm:$0xff] %v13669_v0  ;;  %311 = vst [vmem:[#allocation2 + $0x18] sm:$0xff] %v13669_v0  ;;  %s15592_s25 = smov (!%p298_p5, %s13717_s25), 1  ;;  %12004 = vmatpush3.bf16.msra.mxu0 %v13413_v1  ;;  %v13417_v11 = vld [vmem:[%s15575_s1 + $0x60] sm:$0xff]   ;;  %v13418_v17 = vld [vmem:[%s15575_s1 + $0x68] sm:$0xff]  }
  0x46   : > { %312 = vst [vmem:[#allocation2 + $0x20] sm:$0xff] %v13669_v0  ;;  %313 = vst [vmem:[#allocation2 + $0x28] sm:$0xff] %v13669_v0  ;;  %s11570_s15 = sshll.u32 %s15592_s25, 7  ;;  %12005 = vmatprep.subr.bf16.mxu0 %v13414_v2  ;;  %v13419_v22 = vld [vmem:[%s15575_s1 + $0x70] sm:$0xff]   ;;  %v13420_v25 = vld [vmem:[%s15575_s1 + $0x78] sm:$0xff]   ;;  %s11133_s19 = sshll.u32 %s15592_s25, 4 }
  0x47   : > { %314 = vst [vmem:[#allocation2 + $0x30] sm:$0xff] %v13669_v0  ;;  %315 = vst [vmem:[#allocation2 + $0x38] sm:$0xff] %v13669_v0  ;;  %s13810_s20 = scalar_lea.vmem %s15574_s0, %s11570_s15  ;;  %v13423_v34 = vld [vmem:[%s15575_s1] sm:$0xff]   ;;  %v13428_v41 = vld [vmem:[%s15575_s1 + $0x8] sm:$0xff]   ;;  %vm569_vm1 = vsmask.f32 4352  ;;  %s15558_s23 = scalar_lea.vmem %s15581_s7, %s11133_s19 }
  0x48   : > { %316 = vst [vmem:[#allocation2 + $0x40] sm:$0xff] %v13669_v0  ;;  %317 = vst [vmem:[#allocation2 + $0x48] sm:$0xff] %v13669_v0  ;;  %v13421_v9 = vld [vmem:[%s13810_s20] ss:$0 sps:$4 sm:$0xff]   ;;  %v13422_v10 = vld [vmem:[%s13810_s20 + $0x4] ss:$0 sps:$4 sm:$0xff]  }
  0x49   : > { %318 = vst [vmem:[#allocation2 + $0x50] sm:$0xff] %v13669_v0  ;;  %319 = vst [vmem:[#allocation2 + $0x58] sm:$0xff] %v13669_v0  ;;  %12006 = vmatpush3.bf16.msra.mxu0 %v13414_v2  ;;  %v13424_v13 = vld [vmem:[%s13810_s20 + $0x8] ss:$0 sps:$4 sm:$0xff]   ;;  %v13425_v14 = vld [vmem:[%s13810_s20 + $0xc] ss:$0 sps:$4 sm:$0xff]  }
  0x4a   : > { %320 = vst [vmem:[#allocation2 + $0x60] sm:$0xff] %v13669_v0  ;;  %321 = vst [vmem:[#allocation2 + $0x68] sm:$0xff] %v13669_v0  ;;  %12007 = vmatprep.subr.bf16.mxu0 %v13415_v3  ;;  %v13426_v15 = vld [vmem:[%s13810_s20 + $0x10] ss:$0 sps:$4 sm:$0xff]   ;;  %v13427_v16 = vld [vmem:[%s13810_s20 + $0x14] ss:$0 sps:$4 sm:$0xff]  }
  0x4b   : > { %322 = vst [vmem:[#allocation2 + $0x70] sm:$0xff] %v13669_v0  ;;  %323 = vst [vmem:[#allocation2 + $0x78] sm:$0xff] %v13669_v0  ;;  %v13815_v5 = vld [vmem:[#allocation2 + $0x8] sm:$0xf]  ;;  %v874_v6 = vld [vmem:[#allocation2] sm:$0xf0] }
  0x4c   : > { %324 = vst [vmem:[#allocation2 + $0x80] sm:$0xff] %v13669_v0  ;;  %325 = vst [vmem:[#allocation2 + $0x88] sm:$0xff] %v13669_v0  ;;  %v923_v7 = vrot.slane %v874_v6, 4  ;;  %v924_v8 = vrot.slane %v13815_v5, 4  ;;  %v13429_v18 = vld [vmem:[%s13810_s20 + $0x18] ss:$0 sps:$4 sm:$0xff]  }
  0x4d   : > { %326 = vst [vmem:[#allocation2 + $0x90] sm:$0xff] %v13669_v0  ;;  %327 = vst [vmem:[#allocation2 + $0x98] sm:$0xff] %v13669_v0  ;;  %12008 = vmatpush3.bf16.msra.mxu0 %v13415_v3  ;;  %v13430_v19 = vld [vmem:[%s13810_s20 + $0x1c] ss:$0 sps:$4 sm:$0xff]   ;;  %v13431_v20 = vld [vmem:[%s13810_s20 + $0x20] ss:$0 sps:$4 sm:$0xff]  }
  0x4e   : > { %328 = vst [vmem:[#allocation2 + $0xa0] sm:$0xff] %v13669_v0  ;;  %329 = vst [vmem:[#allocation2 + $0xa8] sm:$0xff] %v13669_v0  ;;  %v925_v12 = vsel %vm922_vm0, %v923_v7, %v924_v8  ;;  %12009 = vmatprep.subr.bf16.mxu0 %v13416_v4  ;;  %v13432_v21 = vld [vmem:[%s13810_s20 + $0x24] ss:$0 sps:$4 sm:$0xff]   ;;  %v13434_v23 = vld [vmem:[%s13810_s20 + $0x28] ss:$0 sps:$4 sm:$0xff]  }
  0x4f   : > { %330 = vst [vmem:[#allocation2 + $0xb0] sm:$0xff] %v13669_v0  ;;  %331 = vst [vmem:[#allocation2 + $0xb8] sm:$0xff] %v13669_v0  ;;  %12019 = vmatprep.mubr.bf16.mxu0 %v925_v12  ;;  %v13435_v24 = vld [vmem:[%s13810_s20 + $0x2c] ss:$0 sps:$4 sm:$0xff]   ;;  %v13436_v30 = vld [vmem:[%s13810_s20 + $0x30] ss:$0 sps:$4 sm:$0xff]  }
  0x50   : > { %332 = vst [vmem:[#allocation2 + $0xc0] sm:$0xff] %v13669_v0  ;;  %333 = vst [vmem:[#allocation2 + $0xc8] sm:$0xff] %v13669_v0  ;;  %v13437_v31 = vld [vmem:[%s13810_s20 + $0x34] ss:$0 sps:$4 sm:$0xff]   ;;  %v13439_v37 = vld [vmem:[%s13810_s20 + $0x38] ss:$0 sps:$4 sm:$0xff]  }
  0x51   : > { %334 = vst [vmem:[#allocation2 + $0xd0] sm:$0xff] %v13669_v0  ;;  %335 = vst [vmem:[#allocation2 + $0xd8] sm:$0xff] %v13669_v0  ;;  %12010 = vmatpush3.bf16.msra.mxu0 %v13416_v4  ;;  %v13440_v38 = vld [vmem:[%s13810_s20 + $0x3c] ss:$0 sps:$4 sm:$0xff]   ;;  %v13441_v43 = vld [vmem:[%s13810_s20 + $0x40] ss:$0 sps:$4 sm:$0xff]  }
  0x52   : > { %336 = vst [vmem:[#allocation2 + $0xe0] sm:$0xff] %v13669_v0  ;;  %337 = vst [vmem:[#allocation2 + $0xe8] sm:$0xff] %v13669_v0  ;;  %12011 = vmatprep.subr.bf16.mxu0 %v13417_v11  ;;  %v13442_v46 = vld [vmem:[%s13810_s20 + $0x44] ss:$0 sps:$4 sm:$0xff]   ;;  %v13444_v50 = vld [vmem:[%s13810_s20 + $0x48] ss:$0 sps:$4 sm:$0xff]  }
  0x53   : > { %338 = vst [vmem:[#allocation2 + $0xf0] sm:$0xff] %v13669_v0  ;;  %339 = vst [vmem:[#allocation2 + $0xf8] sm:$0xff] %v13669_v0  ;;  %v13433_v53 = vld [vmem:[%s15575_s1 + $0x10] sm:$0xff]   ;;  %v13445_v54 = vld [vmem:[%s13810_s20 + $0x4c] ss:$0 sps:$4 sm:$0xff]  }
  0x54   : > { %340 = vst [vmem:[#allocation2 + $0x100] sm:$0xff] %v13669_v0  ;;  %341 = vst [vmem:[#allocation2 + $0x108] sm:$0xff] %v13669_v0  ;;  %v13446_v55 = vld [vmem:[%s13810_s20 + $0x50] ss:$0 sps:$4 sm:$0xff]   ;;  %v13447_v56 = vld [vmem:[%s13810_s20 + $0x54] ss:$0 sps:$4 sm:$0xff]  }
  0x55   : > { %342 = vst [vmem:[#allocation2 + $0x110] sm:$0xff] %v13669_v0  ;;  %343 = vst [vmem:[#allocation2 + $0x118] sm:$0xff] %v13669_v0  ;;  %12012 = vmatpush3.bf16.msra.mxu0 %v13417_v11  ;;  %v13438_v57 = vld [vmem:[%s15575_s1 + $0x18] sm:$0xff]   ;;  %v13451_v1 = vld [vmem:[%s13810_s20 + $0x60] ss:$0 sps:$4 sm:$0xff]  }
  0x56   : > { %505 = vst [vmem:[#allocation2 + $0x10] sm:$0xf0] %v13421_v9  ;;  %506 = vst [vmem:[#allocation2 + $0x18] sm:$0xf] %v13422_v10  ;;  %12013 = vmatprep.subr.bf16.mxu0 %v13418_v17  ;;  %v13449_v58 = vld [vmem:[%s13810_s20 + $0x58] ss:$0 sps:$4 sm:$0xff]  }
  0x57   : > { %507 = vst [vmem:[#allocation2 + $0x20] sm:$0xf0] %v13424_v13  ;;  %508 = vst [vmem:[#allocation2 + $0x28] sm:$0xf] %v13425_v14  ;;  %v13450_v59 = vld [vmem:[%s13810_s20 + $0x5c] ss:$0 sps:$4 sm:$0xff]  }
  0x58   : > { %509 = vst [vmem:[#allocation2 + $0x30] sm:$0xf0] %v13426_v15  ;;  %510 = vst [vmem:[#allocation2 + $0x38] sm:$0xf] %v13427_v16  ;;  %v13452_v3 = vld [vmem:[%s13810_s20 + $0x64] ss:$0 sps:$4 sm:$0xff]  }
  0x59   : > { %511 = vst [vmem:[#allocation2 + $0x40] sm:$0xf0] %v13429_v18  ;;  %512 = vst [vmem:[#allocation2 + $0x48] sm:$0xf] %v13430_v19  ;;  %12014 = vmatpush3.bf16.msra.mxu0 %v13418_v17  ;;  %v13443_v9 = vld [vmem:[%s15575_s1 + $0x20] sm:$0xff]   ;;  %v13448_v15 = vld [vmem:[%s15575_s1 + $0x28] sm:$0xff]  }
  0x5a   : > { %513 = vst [vmem:[#allocation2 + $0x50] sm:$0xf0] %v13431_v20  ;;  %514 = vst [vmem:[#allocation2 + $0x58] sm:$0xf] %v13432_v21  ;;  %12015 = vmatprep.subr.bf16.mxu0 %v13419_v22  ;;  %v13454_v10 = vld [vmem:[%s13810_s20 + $0x68] ss:$0 sps:$4 sm:$0xff]  }
  0x5b   : > { %515 = vst [vmem:[#allocation2 + $0x60] sm:$0xf0] %v13434_v23  ;;  %516 = vst [vmem:[#allocation2 + $0x68] sm:$0xf] %v13435_v24  ;;  %v13455_v11 = vld [vmem:[%s13810_s20 + $0x6c] ss:$0 sps:$4 sm:$0xff]  }
  0x5c   : > { %517 = vst [vmem:[#allocation2 + $0x70] sm:$0xf0] %v13436_v30  ;;  %518 = vst [vmem:[#allocation2 + $0x78] sm:$0xf] %v13437_v31  ;;  %v13456_v12 = vld [vmem:[%s13810_s20 + $0x70] ss:$0 sps:$4 sm:$0xff]  }
  0x5d   : > { %v13843_v26 = vld [vmem:[#allocation2 + $0x18] sm:$0xf]  ;;  %v13845_v27 = vld [vmem:[#allocation2 + $0x10] sm:$0xf0]  ;;  %12016 = vmatpush3.bf16.msra.mxu0 %v13419_v22  ;;  %519 = vst [vmem:[#allocation2 + $0x80] sm:$0xf0] %v13439_v37 }
  0x5e   : > { %v13847_v28 = vld [vmem:[#allocation2 + $0x28] sm:$0xf]  ;;  %v13849_v29 = vld [vmem:[#allocation2 + $0x20] sm:$0xf0]  ;;  %v926_v32 = vrot.slane %v13845_v27, 4  ;;  %v927_v33 = vrot.slane %v13843_v26, 4  ;;  %12017 = vmatprep.subr.bf16.mxu0 %v13420_v25 }
  0x5f   : > { %v929_v35 = vrot.slane %v13849_v29, 4  ;;  %v930_v36 = vrot.slane %v13847_v28, 4  ;;  %v13862_v39 = vld [vmem:[#allocation2 + $0x38] sm:$0xf]  ;;  %v13864_v40 = vld [vmem:[#allocation2 + $0x30] sm:$0xf0] }
  0x60   : > { %v13869_v42 = vld [vmem:[#allocation2 + $0x40] sm:$0xf0]  ;;  %520 = vst [vmem:[#allocation2 + $0x88] sm:$0xf] %v13440_v38  ;;  %v928_v44 = vsel %vm922_vm0, %v926_v32, %v927_v33  ;;  %v13873_v45 = vld [vmem:[#allocation2 + $0x48] sm:$0xf] }
  0x61   : > { %12018 = vmatpush3.bf16.msra.mxu0 %v13420_v25  ;;  %v931_v47 = vsel %vm922_vm0, %v929_v35, %v930_v36  ;;  %521 = vst [vmem:[#allocation2 + $0x90] sm:$0xf0] %v13441_v43  ;;  %v932_v48 = vrot.slane %v13864_v40, 4  ;;  %v933_v49 = vrot.slane %v13862_v39, 4  ;;  %522 = vst [vmem:[#allocation2 + $0x98] sm:$0xf] %v13442_v46 }
  0x62   : > { %12051 = vmatprep.subr.bf16.mxu0 %v13423_v34  ;;  %v935_v51 = vrot.slane %v13869_v42, 4  ;;  %v936_v52 = vrot.slane %v13873_v45, 4  ;;  %523 = vst [vmem:[#allocation2 + $0xa0] sm:$0xf0] %v13444_v50  ;;  %524 = vst [vmem:[#allocation2 + $0xa8] sm:$0xf] %v13445_v54 }
  0x63   : > { %525 = vst [vmem:[#allocation2 + $0xb0] sm:$0xf0] %v13446_v55  ;;  %526 = vst [vmem:[#allocation2 + $0xb8] sm:$0xf] %v13447_v56  ;;  %v934_v60 = vsel %vm922_vm0, %v932_v48, %v933_v49  ;;  %v13894_v61 = vld [vmem:[#allocation2 + $0x58] sm:$0xf] }
  0x64   : > { %12020 = vmatmul.mubr.bf16.vlgmr.msra.gmra.mrb[0].mxu0 %v928_v44  ;;  %v937_v62 = vsel %vm922_vm0, %v935_v51, %v936_v52  ;;  %v13897_v63 = vld [vmem:[#allocation2 + $0x50] sm:$0xf0]  ;;  %v13899_v0 = vld [vmem:[#allocation2 + $0x60] sm:$0xf0]  ;;  %527 = vst [vmem:[#allocation2 + $0xc0] sm:$0xf0] %v13449_v58 }
  0x65   : > { %12052 = vmatpush3.bf16.msra.mxu0 %v13423_v34  ;;  %12023 = vmatprep.mubr.bf16.mxu0 %v931_v47  ;;  %528 = vst [vmem:[#allocation2 + $0xc8] sm:$0xf] %v13450_v59  ;;  %v13902_v2 = vld [vmem:[#allocation2 + $0x68] sm:$0xf]  ;;  %529 = vst [vmem:[#allocation2 + $0xd0] sm:$0xf0] %v13451_v1 }
  0x66   : > { %12053 = vmatprep.subr.bf16.mxu0 %v13428_v41  ;;  %v938_v4 = vrot.slane %v13897_v63, 4  ;;  %v939_v6 = vrot.slane %v13894_v61, 4  ;;  %530 = vst [vmem:[#allocation2 + $0xd8] sm:$0xf] %v13452_v3  ;;  %v941_v7 = vrot.slane %v13899_v0, 4  ;;  %v942_v8 = vrot.slane %v13902_v2, 4 }
  0x67   : > { %v13916_v14 = vld [vmem:[#allocation2 + $0x78] sm:$0xf]  ;;  %531 = vst [vmem:[#allocation2 + $0xe0] sm:$0xf0] %v13454_v10  ;;  %532 = vst [vmem:[#allocation2 + $0xe8] sm:$0xf] %v13455_v11 }
  0x68   : > { %v940_v13 = vsel %vm922_vm0, %v938_v4, %v939_v6  ;;  %v13457_v16 = vld [vmem:[%s13810_s20 + $0x74] ss:$0 sps:$4 sm:$0xff]   ;;  %v943_v17 = vsel %vm922_vm0, %v941_v7, %v942_v8  ;;  %533 = vst [vmem:[#allocation2 + $0xf0] sm:$0xf0] %v13456_v12  ;;  %v13925_v19 = vld [vmem:[#allocation2 + $0x88] sm:$0xf] }
  0x69   : > { %12054 = vmatpush3.bf16.msra.mxu0 %v13428_v41  ;;  %v13923_v18 = vld [vmem:[#allocation2 + $0x70] sm:$0xf0]  ;;  %v13927_v20 = vld [vmem:[#allocation2 + $0x80] sm:$0xf0]  ;;  %534 = vst [vmem:[#allocation2 + $0xf8] sm:$0xf] %v13457_v16 }
  0x6a   : > { %12055 = vmatprep.subr.bf16.mxu0 %v13433_v53  ;;  %v944_v21 = vrot.slane %v13923_v18, 4  ;;  %v945_v22 = vrot.slane %v13916_v14, 4  ;;  %v947_v23 = vrot.slane %v13927_v20, 4  ;;  %v948_v24 = vrot.slane %v13925_v19, 4  ;;  %v13453_v25 = vld [vmem:[%s15575_s1 + $0x30] sm:$0xff]   ;;  %v13458_v31 = vld [vmem:[%s15575_s1 + $0x38] sm:$0xff]  }
  0x6b   : > { %v13941_v33 = vld [vmem:[#allocation2 + $0x98] sm:$0xf]  ;;  %v13943_v34 = vld [vmem:[#allocation2 + $0x90] sm:$0xf0]  ;;  %v13945_v35 = vld [vmem:[#allocation2 + $0xa0] sm:$0xf0] }
  0x6c   : > { %12024 = vmatmul.mubr.bf16.gmra.mrb[4].mxu0 %v934_v60  ;;  %v946_v30 = vsel %vm922_vm0, %v944_v21, %v945_v22  ;;  %v949_v32 = vsel %vm922_vm0, %v947_v23, %v948_v24  ;;  %v13947_v36 = vld [vmem:[#allocation2 + $0xa8] sm:$0xf]  ;;  %v950_v37 = vrot.slane %v13943_v34, 4  ;;  %v951_v38 = vrot.slane %v13941_v33, 4  ;;  %v13956_v44 = vld [vmem:[%s15575_s1 + $0x80] sm:$0xff]  }
  0x6d   : > { %12027 = vmatprep.mubr.bf16.mxu0 %v937_v62  ;;  %12056 = vmatpush3.bf16.msra.mxu0 %v13433_v53  ;;  %v953_v41 = vrot.slane %v13945_v35, 4  ;;  %v954_v43 = vrot.slane %v13947_v36, 4  ;;  %v13960_v48 = vld [vmem:[#allocation2 + $0xb8] sm:$0xf]  ;;  %v13962_v49 = vld [vmem:[#allocation2 + $0xb0] sm:$0xf0] }
  0x6e   : > { %12057 = vmatprep.subr.bf16.mxu0 %v13438_v57  ;;  %v952_v46 = vsel %vm922_vm0, %v950_v37, %v951_v38  ;;  %v13965_v50 = vld [vmem:[#allocation2 + $0xc8] sm:$0xf]  ;;  %v13967_v51 = vld [vmem:[#allocation2 + $0xc0] sm:$0xf0]  ;;  %v956_v52 = vrot.slane %v13962_v49, 4  ;;  %v957_v53 = vrot.slane %v13960_v48, 4 }
  0x6f   : > { %v955_v47 = vsel %vm922_vm0, %v953_v41, %v954_v43  ;;  %v959_v54 = vrot.slane %v13967_v51, 4  ;;  %v960_v55 = vrot.slane %v13965_v50, 4  ;;  %v13977_v59 = vld [vmem:[#allocation2 + $0xd8] sm:$0xf]  ;;  %v537_v60 = vld [vmem:[#allocation2] sm:$0xf8] }
  0x70   : > { %v958_v56 = vsel %vm922_vm0, %v956_v52, %v957_v53  ;;  %v13979_v62 = vld [vmem:[#allocation2 + $0xe8] sm:$0xf]  ;;  %v13981_v1 = vld [vmem:[#allocation2 + $0xe0] sm:$0xf0]  ;;  %v579_v3 = vshrl.u32 %v13815_v5, 16  ;;  %v582_v4 = vshll.u32 %v13815_v5, 16 }
  0x71   : > { %12058 = vmatpush3.bf16.msra.mxu0 %v13438_v57  ;;  %v13974_v57 = vld [vmem:[#allocation2 + $0xd0] sm:$0xf0]  ;;  %v961_v58 = vsel %vm922_vm0, %v959_v54, %v960_v55  ;;  %v963_v7 = vrot.slane %v13977_v59, 4  ;;  %v571_v8 = vshrl.u32 %v537_v60, 16  ;;  %v965_v10 = vrot.slane %v13981_v1, 4 }
  0x72   : > { %12059 = vmatprep.subr.bf16.mxu0 %v13443_v9  ;;  %v962_v6 = vrot.slane %v13974_v57, 4  ;;  %v966_v11 = vrot.slane %v13979_v62, 4  ;;  %v581_v12 = vrot.slane %v579_v3, 3  ;;  %v539_v21 = vld [vmem:[#allocation2 + $0x10] sm:$0xf8]  ;;  %v613_v43 = vshrl.u32 %v13847_v28, 16 }
  0x73   : > { %v13991_v22 = vld [vmem:[#allocation2 + $0xf8] sm:$0xf]  ;;  %v13993_v23 = vld [vmem:[#allocation2 + $0xf0] sm:$0xf0]  ;;  %v541_v24 = vld [vmem:[#allocation2 + $0x20] sm:$0xf8] }
  0x74   : > { %12028 = vmatmul.mubr.bf16.gmra.mrb[8].mxu0 %v940_v13  ;;  %v964_v13 = vsel %vm922_vm0, %v962_v6, %v963_v7  ;;  %v967_v5 = vsel %vm922_vm0, %v965_v10, %v966_v11  ;;  %v968_v37 = vrot.slane %v13993_v23, 4  ;;  %v969_v38 = vrot.slane %v13991_v22, 4 }
  0x75   : > { %12031 = vmatprep.mubr.bf16.mxu0 %v943_v17  ;;  %12060 = vmatpush3.bf16.msra.mxu0 %v13443_v9  ;;  %v574_v9 = vshll.u32 %v537_v60, 16  ;;  %v584_v17 = vrot.slane %v582_v4, 4  ;;  %v605_v41 = vshrl.u32 %v541_v24, 16  ;;  %v608_v52 = vshll.u32 %v541_v24, 16 }
  0x76   : > { %12061 = vmatprep.subr.bf16.mxu0 %v13448_v15  ;;  %v616_v53 = vshll.u32 %v13847_v28, 16  ;;  %v615_v3 = vrot.slane %v613_v43, 3  ;;  %v630_v28 = vshrl.u32 %v13862_v39, 16  ;;  %v647_v24 = vshrl.u32 %v13873_v45, 16 }
  0x77   : > { %v576_v16 = vrot.slane %v574_v9, 4  ;;  %v607_v6 = vrot.slane %v605_v41, 3  ;;  %v610_v7 = vrot.slane %v608_v52, 4  ;;  %v545_v9 = vld [vmem:[#allocation2 + $0x40] sm:$0xf8] }
  0x78   : > { %v649_v52 = vrot.slane %v647_v24, 3  ;;  %vm1438_vm2 = vsmask.f32 3328 }
  0x79   : > { %12062 = vmatpush3.bf16.msra.mxu0 %v13448_v15  ;;  %v573_v15 = vrot.slane %v571_v8, 3  ;;  %v618_v8 = vrot.slane %v616_v53, 4 }
  0x7a   : > { %12063 = vmatprep.subr.bf16.mxu0 %v13453_v25 }
  0x7c   : > { %12032 = vmatmul.mubr.bf16.gmra.mrb[12].mxu0 %v946_v30  ;;  %v591_v30 = vshll.u32 %v539_v21, 16 }
  0x7d   : > { %12035 = vmatprep.mubr.bf16.mxu0 %v949_v32  ;;  %12064 = vmatpush3.bf16.msra.mxu0 %v13453_v25  ;;  %v588_v25 = vshrl.u32 %v539_v21, 16  ;;  %v599_v32 = vshll.u32 %v13843_v26, 16  ;;  %v611_v21 = vor.u32 %v610_v7, %v607_v6 }
  0x7e   : > { %12065 = vmatprep.subr.bf16.mxu0 %v13458_v31  ;;  %v593_v60 = vrot.slane %v591_v30, 4 }
  0x7f   : > { %v590_v54 = vrot.slane %v588_v25, 3  ;;  %v650_v25 = vshll.u32 %v13873_v45, 16 }
  0x81   : > { %12066 = vmatpush3.bf16.msra.mxu0 %v13458_v31  ;;  %v596_v31 = vshrl.u32 %v13843_v26, 16  ;;  %v970_v26 = vsel %vm922_vm0, %v968_v37, %v969_v38  ;;  %v652_v53 = vrot.slane %v650_v25, 4 }
  0x82   : > { %12099 = vmatprep.subr.bf16.mxu0 %v13956_v44 }
  0x83   : > { %v598_v55 = vrot.slane %v596_v31, 3  ;;  %v653_v7 = vor.u32 %v652_v53, %v649_v52  ;;  %v718_v52 = vshll.u32 %v13925_v19, 16  ;;  %v13463_v53 = vld [vmem:[%s15575_s1 + $0xa0] sm:$0xff]  }
  0x84   : > { %12036 = vmatmul.mubr.bf16.gmra.mrb[16].mxu0 %v952_v46  ;;  %v577_v46 = vor.u32 %v576_v16, %v573_v15  ;;  %v639_v16 = vshrl.u32 %v545_v9, 16 }
  0x85   : > { %12039 = vmatprep.mubr.bf16.mxu0 %v955_v47  ;;  %v585_v47 = vor.u32 %v584_v17, %v581_v12  ;;  %v633_v12 = vshll.u32 %v13862_v39, 16  ;;  %v642_v17 = vshll.u32 %v545_v9, 16  ;;  %v13460_v39 = vld [vmem:[%s15575_s1 + $0x88] sm:$0xff]   ;;  %v681_v9 = vshrl.u32 %v13902_v2, 16 }
  0x86   : > { %v641_v41 = vrot.slane %v639_v16, 3 }
  0x87   : > { %v586_v4 = vsel %vm569_vm1, %v577_v46, %v585_v47  ;;  %v635_v37 = vrot.slane %v633_v12, 4  ;;  %v644_v43 = vrot.slane %v642_v17, 4  ;;  %v547_v46 = vld [vmem:[#allocation2 + $0x50] sm:$0xf8] }
  0x88   : > { %v551_v17 = vld [vmem:[#allocation2 + $0x70] sm:$0xf8] }
  0x89   : > { %v645_v6 = vor.u32 %v644_v43, %v641_v41  ;;  %v690_v25 = vshrl.u32 %v551_v17, 16 }
  0x8c   : > { %12040 = vmatmul.mubr.bf16.gmra.mrb[20].mxu0 %v958_v56  ;;  %v601_v56 = vrot.slane %v599_v32, 4  ;;  %v632_v32 = vrot.slane %v630_v28, 3 }
  0x8d   : > { %12043 = vmatprep.mubr.bf16.mxu0 %v961_v58  ;;  %v543_v58 = vld [vmem:[#allocation2 + $0x30] sm:$0xf8] }
  0x8e   : > { %v622_v10 = vshrl.u32 %v543_v58, 16  ;;  %v625_v11 = vshll.u32 %v543_v58, 16  ;;  %v602_v15 = vor.u32 %v601_v56, %v598_v55  ;;  %v636_v55 = vor.u32 %v635_v37, %v632_v32 }
  0x8f   : > { %v656_v56 = vshrl.u32 %v547_v46, 16  ;;  %v659_v58 = vshll.u32 %v547_v46, 16  ;;  %v701_v32 = vshll.u32 %v13916_v14, 16 }
  0x90   : > { %v624_v30 = vrot.slane %v622_v10, 3  ;;  %v627_v31 = vrot.slane %v625_v11, 4  ;;  %v684_v10 = vshll.u32 %v13902_v2, 16  ;;  %v553_v2 = vld [vmem:[#allocation2 + $0x80] sm:$0xf8] }
  0x91   : > { %v658_v11 = vrot.slane %v656_v56, 3  ;;  %v661_v28 = vrot.slane %v659_v58, 4  ;;  %v707_v41 = vshrl.u32 %v553_v2, 16  ;;  %v710_v46 = vshll.u32 %v553_v2, 16 }
  0x92   : > { %v628_v45 = vor.u32 %v627_v31, %v624_v30  ;;  %v686_v24 = vrot.slane %v684_v10, 4  ;;  %v693_v30 = vshll.u32 %v551_v17, 16  ;;  %v698_v31 = vshrl.u32 %v13916_v14, 16 }
  0x93   : > { %v662_v37 = vor.u32 %v661_v28, %v658_v11  ;;  %v709_v58 = vrot.slane %v707_v41, 3  ;;  %v732_v11 = vshrl.u32 %v13941_v33, 16  ;;  %v735_v28 = vshll.u32 %v13941_v33, 16  ;;  %v561_v33 = vld [vmem:[#allocation2 + $0xc0] sm:$0xf8] }
  0x94   : > { %12044 = vmatmul.mubr.bf16.gmra.mrb[24].mxu0 %v964_v13  ;;  %v594_v13 = vor.u32 %v593_v60, %v590_v54  ;;  %v549_v54 = vld [vmem:[#allocation2 + $0x60] sm:$0xf8]  ;;  %v667_v60 = vshll.u32 %v13894_v61, 16  ;;  %v700_v14 = vrot.slane %v698_v31, 3  ;;  %v752_v17 = vshll.u32 %v13947_v36, 16 }
  0x95   : > { %12047 = vmatprep.mubr.bf16.mxu0 %v967_v5  ;;  %v619_v5 = vor.u32 %v618_v8, %v615_v3  ;;  %v673_v3 = vshrl.u32 %v549_v54, 16  ;;  %v13461_v8 = vld [vmem:[%s15575_s1 + $0x90] sm:$0xff]   ;;  %v734_v31 = vrot.slane %v732_v11, 3 }
  0x96   : > { %v603_v38 = vsel %vm569_vm1, %v594_v13, %v602_v15  ;;  %v669_v13 = vrot.slane %v667_v60, 4  ;;  %v754_v41 = vrot.slane %v752_v17, 4 }
  0x97   : > { %v620_v47 = vsel %vm569_vm1, %v611_v21, %v619_v5  ;;  %v675_v15 = vrot.slane %v673_v3, 3  ;;  %v654_v21 = vsel %vm569_vm1, %v645_v6, %v653_v7  ;;  %v683_v5 = vrot.slane %v681_v9, 3  ;;  %v13464_v7 = vld [vmem:[%s15575_s1 + $0xa8] sm:$0xff]  }
  0x98   : > { %v712_v3 = vrot.slane %v710_v46, 4  ;;  %v720_v6 = vrot.slane %v718_v52, 4  ;;  %v769_v52 = vshll.u32 %v13960_v48, 16 }
  0x99   : > { %v687_v43 = vor.u32 %v686_v24, %v683_v5  ;;  %v559_v5 = vld [vmem:[#allocation2 + $0xb0] sm:$0xf8] }
  0x9a   : > { %v761_v46 = vshll.u32 %v559_v5, 16 }
  0x9c   : > { %12048 = vmatmul.mubr.bf16.gmra.mrb[28].mxu0 %v970_v26  ;;  %v664_v26 = vshrl.u32 %v13894_v61, 16  ;;  %v13462_v61 = vld [vmem:[%s15575_s1 + $0x98] sm:$0xff]  }
  0x9d   : > { %12067 = vmatprep.mubr.bf16.mxu0 %v586_v4  ;;  %v676_v4 = vshll.u32 %v549_v54, 16  ;;  %v692_v54 = vrot.slane %v690_v25, 3 }
  0x9e   : > { %v666_v12 = vrot.slane %v664_v26, 3  ;;  %v555_v26 = vld [vmem:[#allocation2 + $0x90] sm:$0xf8] }
  0x9f   : > { %v678_v16 = vrot.slane %v676_v4, 4  ;;  %v724_v10 = vshrl.u32 %v555_v26, 16 }
  0xa1   : > { %v726_v2 = vrot.slane %v724_v10, 3  ;;  %v565_v10 = vld [vmem:[#allocation2 + $0xe0] sm:$0xf8] }
  0xa2   : > { %v809_v17 = vshrl.u32 %v565_v10, 16 }
  0xa4   : > { %12068 = vmatmul.mubr.bf16.vlgmr.msra.gmra.mrb[0].mxu0 %v603_v38  ;;  %v670_v38 = vor.u32 %v669_v13, %v666_v12  ;;  %v713_v13 = vor.u32 %v712_v3, %v709_v58  ;;  %v783_v58 = vshrl.u32 %v13965_v50, 16  ;;  %v563_v3 = vld [vmem:[#allocation2 + $0xd0] sm:$0xf8] }
  0xa5   : > { %12100 = vmatpush3.bf16.msra.mxu0 %v13956_v44  ;;  %12071 = vmatprep.mubr.bf16.mxu0 %v620_v47  ;;  %v637_v44 = vsel %vm569_vm1, %v628_v45, %v636_v55  ;;  %v715_v47 = vshrl.u32 %v13925_v19, 16  ;;  %v695_v45 = vrot.slane %v693_v30, 4  ;;  %v703_v55 = vrot.slane %v701_v32, 4  ;;  %v557_v19 = vld [vmem:[#allocation2 + $0xa0] sm:$0xf8]  ;;  %v13466_v30 = vld [vmem:[%s15575_s1 + $0xb8] sm:$0xff]  }
  0xa6   : > { %12101 = vmatprep.subr.bf16.mxu0 %v13460_v39  ;;  %v671_v56 = vsel %vm569_vm1, %v662_v37, %v670_v38  ;;  %v744_v12 = vshll.u32 %v557_v19, 16  ;;  %v737_v32 = vrot.slane %v735_v28, 4  ;;  %v792_v28 = vshrl.u32 %v563_v3, 16 }
  0xa7   : > { %v717_v4 = vrot.slane %v715_v47, 3  ;;  %v704_v9 = vor.u32 %v703_v55, %v700_v14  ;;  %v766_v47 = vshrl.u32 %v13960_v48, 16  ;;  %v778_v14 = vshll.u32 %v561_v33, 16 }
  0xa8   : > { %v746_v38 = vrot.slane %v744_v12, 4 }
  0xa9   : > { %12102 = vmatpush3.bf16.msra.mxu0 %v13460_v39  ;;  %v679_v39 = vor.u32 %v678_v16, %v675_v15  ;;  %v721_v15 = vor.u32 %v720_v6, %v717_v4  ;;  %v749_v16 = vshrl.u32 %v13947_v36, 16  ;;  %v763_v4 = vrot.slane %v761_v46, 4  ;;  %v1422_v46 = vld [vmem:[#allocation2 + $0x8] sm:$0x1f] }
  0xaa   : > { %12103 = vmatprep.subr.bf16.mxu0 %v13461_v8  ;;  %v768_v6 = vrot.slane %v766_v47, 3 }
  0xab   : > { %v688_v60 = vsel %vm569_vm1, %v679_v39, %v687_v43  ;;  %v722_v36 = vsel %vm569_vm1, %v713_v13, %v721_v15  ;;  %v751_v39 = vrot.slane %v749_v16, 3  ;;  %v758_v43 = vshrl.u32 %v559_v5, 16 }
  0xac   : > { %12072 = vmatmul.mubr.bf16.gmra.mrb[4].mxu0 %v637_v44  ;;  %v727_v44 = vshll.u32 %v555_v26, 16  ;;  %v786_v26 = vshll.u32 %v13965_v50, 16  ;;  %v785_v50 = vrot.slane %v783_v58, 3  ;;  %v800_v15 = vshrl.u32 %v13977_v59, 16 }
  0xad   : > { %12075 = vmatprep.mubr.bf16.mxu0 %v654_v21  ;;  %12104 = vmatpush3.bf16.msra.mxu0 %v13461_v8  ;;  %v696_v8 = vor.u32 %v695_v45, %v692_v54  ;;  %v13465_v21 = vld [vmem:[%s15575_s1 + $0xb0] sm:$0xff]   ;;  %v738_v54 = vor.u32 %v737_v32, %v734_v31  ;;  %v775_v45 = vshrl.u32 %v561_v33, 16  ;;  %v760_v48 = vrot.slane %v758_v43, 3 }
  0xae   : > { %12105 = vmatprep.subr.bf16.mxu0 %v13462_v61  ;;  %v729_v25 = vrot.slane %v727_v44, 4  ;;  %v788_v11 = vrot.slane %v786_v26, 4  ;;  %v803_v16 = vshll.u32 %v13977_v59, 16  ;;  %v817_v5 = vshrl.u32 %v13979_v62, 16  ;;  %v567_v31 = vld [vmem:[#allocation2 + $0xf0] sm:$0xf8] }
  0xaf   : > { %v705_v24 = vsel %vm569_vm1, %v696_v8, %v704_v9  ;;  %v777_v8 = vrot.slane %v775_v45, 3  ;;  %v780_v9 = vrot.slane %v778_v14, 4  ;;  %v764_v12 = vor.u32 %v763_v4, %v760_v48  ;;  %v1423_v4 = vld [vmem:[#allocation2 + $0x18] sm:$0x1f] }
  0xb0   : > { %v794_v33 = vrot.slane %v792_v28, 3  ;;  %v834_v14 = vshrl.u32 %v13991_v22, 16  ;;  %v1451_v48 = vshll.u32 %v1422_v46, 16 }
  0xb1   : > { %12106 = vmatpush3.bf16.msra.mxu0 %v13462_v61  ;;  %v741_v61 = vshrl.u32 %v557_v19, 16  ;;  %v771_v19 = vrot.slane %v769_v52, 4  ;;  %v826_v52 = vshrl.u32 %v567_v31, 16 }
  0xb2   : > { %12107 = vmatprep.subr.bf16.mxu0 %v13463_v53 }
  0xb3   : > { %v743_v37 = vrot.slane %v741_v61, 3  ;;  %v795_v61 = vshll.u32 %v563_v3, 16  ;;  %v772_v13 = vor.u32 %v771_v19, %v768_v6  ;;  %v1448_v3 = vshrl.u32 %v1422_v46, 16  ;;  %v1424_v6 = vld [vmem:[#allocation2 + $0x28] sm:$0x1f] }
  0xb4   : > { %12076 = vmatmul.mubr.bf16.gmra.mrb[8].mxu0 %v671_v56  ;;  %v755_v56 = vor.u32 %v754_v41, %v751_v39  ;;  %v819_v41 = vrot.slane %v817_v5, 3  ;;  %v13482_v19 = vld [vmem:[%s13810_s20 + $0x78] ss:$0 sps:$4 sm:$0xff]   ;;  %v1477_v5 = vshll.u32 %v13849_v29, 16 }
  0xb5   : > { %12079 = vmatprep.mubr.bf16.mxu0 %v688_v60  ;;  %12108 = vmatpush3.bf16.msra.mxu0 %v13463_v53  ;;  %v730_v53 = vor.u32 %v729_v25, %v726_v2  ;;  %v747_v55 = vor.u32 %v746_v38, %v743_v37  ;;  %v14056_v60 = vld [vmem:[%s15575_s1 + $0xc0] sm:$0xff]   ;;  %v781_v2 = vor.u32 %v780_v9, %v777_v8  ;;  %v802_v37 = vrot.slane %v800_v15, 3  ;;  %v13483_v9 = vld [vmem:[%s13810_s20 + $0x7c] ss:$0 sps:$4 sm:$0xff]  }
  0xb6   : > { %12109 = vmatprep.subr.bf16.mxu0 %v13464_v7  ;;  %v789_v25 = vor.u32 %v788_v11, %v785_v50  ;;  %v773_v32 = vsel %vm569_vm1, %v764_v12, %v772_v13  ;;  %v805_v38 = vrot.slane %v803_v16, 4  ;;  %v828_v8 = vrot.slane %v826_v52, 3  ;;  %535 = vst [vmem:[#allocation2 + $0x100] sm:$0xf0] %v13482_v19  ;;  %536 = vst [vmem:[#allocation2 + $0x108] sm:$0xf] %v13483_v9 }
  0xb7   : > { %v756_v44 = vsel %vm569_vm1, %v747_v55, %v755_v56  ;;  %v837_v55 = vshll.u32 %v13991_v22, 16  ;;  %v13589_v56 = vld [vmem:[#allocation2] sm:$0xf0]  ;;  %v836_v50 = vrot.slane %v834_v14, 3  ;;  %v1453_v12 = vrot.slane %v1451_v48, 5 }
  0xb8   : > { %v790_v43 = vsel %vm569_vm1, %v781_v2, %v789_v25  ;;  %v1440_v58 = vshrl.u32 %v13589_v56, 16  ;;  %v1443_v26 = vshll.u32 %v13589_v56, 16  ;;  %v1457_v13 = vshrl.u32 %v13845_v27, 16 }
  0xb9   : > { %12110 = vmatpush3.bf16.msra.mxu0 %v13464_v7  ;;  %v739_v7 = vsel %vm569_vm1, %v730_v53, %v738_v54  ;;  %v829_v53 = vshll.u32 %v567_v31, 16  ;;  %v839_v11 = vrot.slane %v837_v55, 4  ;;  %v1460_v15 = vshll.u32 %v13845_v27, 16 }
  0xba   : > { %12111 = vmatprep.subr.bf16.mxu0 %v13465_v21  ;;  %v1442_v28 = vrot.slane %v1440_v58, 4  ;;  %v1445_v22 = vrot.slane %v1443_v26, 5  ;;  %v1465_v16 = vshrl.u32 %v1423_v4, 16  ;;  %v1485_v2 = vshll.u32 %v1424_v6, 16 }
  0xbb   : > { %v1494_v52 = vshll.u32 %v13864_v40, 16  ;;  %v1508_v55 = vshrl.u32 %v13869_v42, 16  ;;  %v1511_v26 = vshll.u32 %v13869_v42, 16  ;;  %v13468_v42 = vld [vmem:[%s15575_s1 + $0xc8] sm:$0xff]  }
  0xbc   : > { %12080 = vmatmul.mubr.bf16.gmra.mrb[12].mxu0 %v705_v24  ;;  %v820_v24 = vshll.u32 %v13979_v62, 16  ;;  %v806_v62 = vor.u32 %v805_v38, %v802_v37  ;;  %v1459_v37 = vrot.slane %v1457_v13, 4  ;;  %v1462_v38 = vrot.slane %v1460_v15, 5 }
  0xbd   : > { %12083 = vmatprep.mubr.bf16.mxu0 %v722_v36  ;;  %12112 = vmatpush3.bf16.msra.mxu0 %v13465_v21  ;;  %v812_v21 = vshll.u32 %v565_v10, 16  ;;  %v811_v36 = vrot.slane %v809_v17, 3  ;;  %v1468_v17 = vshll.u32 %v1423_v4, 16  ;;  %v1427_v4 = vld [vmem:[#allocation2 + $0x58] sm:$0x1f]  ;;  %v1496_v19 = vrot.slane %v1494_v52, 5 }
  0xbe   : > { %12113 = vmatprep.subr.bf16.mxu0 %v13466_v30  ;;  %v822_v59 = vrot.slane %v820_v24, 4  ;;  %v1482_v24 = vshrl.u32 %v1424_v6, 16  ;;  %v1510_v9 = vrot.slane %v1508_v55, 4  ;;  %v1536_v13 = vshll.u32 %v1427_v4, 16  ;;  %v13470_v55 = vld [vmem:[%s15575_s1 + $0xd8] sm:$0xff]  }
  0xbf   : > { %v814_v39 = vrot.slane %v812_v21, 4  ;;  %v1474_v21 = vshrl.u32 %v13849_v29, 16  ;;  %v1470_v27 = vrot.slane %v1468_v17, 5  ;;  %v1426_v29 = vld [vmem:[#allocation2 + $0x48] sm:$0x1f]  ;;  %v1542_v15 = vshrl.u32 %v13899_v0, 16 }
  0xc0   : > { %v823_v45 = vor.u32 %v822_v59, %v819_v41  ;;  %v1479_v41 = vrot.slane %v1477_v5, 5  ;;  %v1484_v59 = vrot.slane %v1482_v24, 4  ;;  %v1519_v48 = vshll.u32 %v1426_v29, 16 }
  0xc1   : > { %12114 = vmatpush3.bf16.msra.mxu0 %v13466_v30  ;;  %v797_v30 = vrot.slane %v795_v61, 4  ;;  %v815_v54 = vor.u32 %v814_v39, %v811_v36  ;;  %v1450_v61 = vrot.slane %v1448_v3, 4  ;;  %v1467_v36 = vrot.slane %v1465_v16, 4 }
  0xc2   : > { %12147 = vmatprep.subr.bf16.mxu0 %v14056_v60  ;;  %v1476_v39 = vrot.slane %v1474_v21, 4  ;;  %v1516_v3 = vshrl.u32 %v1426_v29, 16  ;;  %v1545_v16 = vshll.u32 %v13899_v0, 16  ;;  %v1430_v0 = vld [vmem:[#allocation2 + $0x88] sm:$0x1f]  ;;  %v1576_v29 = vshrl.u32 %v13927_v20, 16 }
  0xc3   : > { %v798_v47 = vor.u32 %v797_v30, %v794_v33  ;;  %v824_v10 = vsel %vm569_vm1, %v815_v54, %v823_v45  ;;  %v840_v33 = vor.u32 %v839_v11, %v836_v50  ;;  %v1446_v30 = vor.u32 %v1445_v22, %v1442_v28 }
  0xc4   : > { %12084 = vmatmul.mubr.bf16.gmra.mrb[16].mxu0 %v739_v7  ;;  %v1454_v31 = vor.u32 %v1453_v12, %v1450_v61  ;;  %v1463_v54 = vor.u32 %v1462_v38, %v1459_v37  ;;  %v1471_v45 = vor.u32 %v1470_v27, %v1467_v36  ;;  %v1480_v56 = vor.u32 %v1479_v41, %v1476_v39  ;;  %v13469_v37 = vld [vmem:[%s15575_s1 + $0xd0] sm:$0xff]  }
  0xc5   : > { %12087 = vmatprep.mubr.bf16.mxu0 %v756_v44  ;;  %v807_v7 = vsel %vm569_vm1, %v798_v47, %v806_v62  ;;  %v831_v44 = vrot.slane %v829_v53, 4  ;;  %v1491_v62 = vshrl.u32 %v13864_v40, 16  ;;  %v1513_v11 = vrot.slane %v1511_v26, 5 }
  0xc6   : > { %v1455_v47 = vsel %vm1438_vm2, %v1446_v30, %v1454_v31  ;;  %v1518_v28 = vrot.slane %v1516_v3, 4  ;;  %v1521_v22 = vrot.slane %v1519_v48, 5  ;;  %v1528_v61 = vshll.u32 %v13897_v63, 16 }
  0xc7   : > { %v832_v25 = vor.u32 %v831_v44, %v828_v8  ;;  %v1493_v6 = vrot.slane %v1491_v62, 4  ;;  %v1472_v44 = vsel %vm1438_vm2, %v1463_v54, %v1471_v45  ;;  %v1533_v12 = vshrl.u32 %v1427_v4, 16  ;;  %v1432_v4 = vld [vmem:[#allocation2 + $0xa8] sm:$0x1f] }
  0xc8   : > { %v1522_v30 = vor.u32 %v1521_v22, %v1518_v28  ;;  %v1530_v31 = vrot.slane %v1528_v61, 5  ;;  %v1544_v38 = vrot.slane %v1542_v15, 4  ;;  %v1547_v36 = vrot.slane %v1545_v16, 5  ;;  %v13472_v16 = vld [vmem:[%s15575_s1 + $0xe8] sm:$0xff]  }
  0xc9   : > { %v841_v46 = vsel %vm569_vm1, %v832_v25, %v840_v33  ;;  %v1497_v5 = vor.u32 %v1496_v19, %v1493_v6  ;;  %v1429_v33 = vld [vmem:[#allocation2 + $0x78] sm:$0x1f]  ;;  %v1579_v52 = vshll.u32 %v13927_v20, 16  ;;  %v13471_v20 = vld [vmem:[%s15575_s1 + $0xe0] sm:$0xff]   ;;  %v1578_v6 = vrot.slane %v1576_v29, 4 }
  0xca   : > { %v1548_v45 = vor.u32 %v1547_v36, %v1544_v38  ;;  %v1610_v28 = vshrl.u32 %v13945_v35, 16  ;;  %v1613_v22 = vshll.u32 %v13945_v35, 16  ;;  %v1618_v61 = vshrl.u32 %v1432_v4, 16 }
  0xcb   : > { %v1581_v19 = vrot.slane %v1579_v52, 5  ;;  %v1630_v15 = vshll.u32 %v13962_v49, 16 }
  0xcc   : > { %12088 = vmatmul.mubr.bf16.gmra.mrb[20].mxu0 %v773_v32  ;;  %v1425_v32 = vld [vmem:[#allocation2 + $0x38] sm:$0x1f] }
  0xcd   : > { %12091 = vmatprep.mubr.bf16.mxu0 %v790_v43  ;;  %v1487_v43 = vrot.slane %v1485_v2, 5  ;;  %v1499_v53 = vshrl.u32 %v1425_v32, 16  ;;  %v1502_v14 = vshll.u32 %v1425_v32, 16  ;;  %v1514_v2 = vor.u32 %v1513_v11, %v1510_v9 }
  0xce   : > { %v1538_v32 = vrot.slane %v1536_v13, 5  ;;  %v1627_v13 = vshrl.u32 %v13962_v49, 16 }
  0xcf   : > { %v1488_v58 = vor.u32 %v1487_v43, %v1484_v59  ;;  %v1501_v8 = vrot.slane %v1499_v53, 4  ;;  %v1504_v40 = vrot.slane %v1502_v14, 5  ;;  %v1559_v59 = vshrl.u32 %v13923_v18, 16 }
  0xd0   : > { %v1567_v43 = vshrl.u32 %v1429_v33, 16  ;;  %v1584_v53 = vshrl.u32 %v1430_v0, 16  ;;  %v14136_v36 = vrot.slane %v1627_v13, 4 }
  0xd1   : > { %v1489_v50 = vsel %vm1438_vm2, %v1480_v56, %v1488_v58  ;;  %v1505_v24 = vor.u32 %v1504_v40, %v1501_v8  ;;  %v1431_v56 = vld [vmem:[#allocation2 + $0x98] sm:$0x1f]  ;;  %v1561_v58 = vrot.slane %v1559_v59, 4  ;;  %v1593_v8 = vshrl.u32 %v13943_v34, 16 }
  0xd2   : > { %v1569_v3 = vrot.slane %v1567_v43, 4  ;;  %v1433_v40 = vld [vmem:[#allocation2 + $0xb8] sm:$0x1f]  ;;  %v1604_v11 = vshll.u32 %v1431_v56, 16  ;;  %v1647_v43 = vshll.u32 %v13967_v51, 16 }
  0xd3   : > { %v1506_v41 = vsel %vm1438_vm2, %v1497_v5, %v1505_v24  ;;  %v1638_v5 = vshll.u32 %v1433_v40, 16  ;;  %v1434_v24 = vld [vmem:[#allocation2 + $0xc8] sm:$0x1f] }
  0xd4   : > { %12092 = vmatmul.mubr.bf16.gmra.mrb[24].mxu0 %v807_v7  ;;  %v1428_v7 = vld [vmem:[#allocation2 + $0x68] sm:$0x1f]  ;;  %v14125_v49 = vrot.slane %v1604_v11, 5  ;;  %v1655_v52 = vshll.u32 %v1434_v24, 16  ;;  %v14180_v11 = vld [vmem:[%s15575_s1 + $0x100] sm:$0xff]  }
  0xd5   : > { %12095 = vmatprep.mubr.bf16.mxu0 %v824_v10  ;;  %v1525_v10 = vshrl.u32 %v13897_v63, 16  ;;  %v1550_v17 = vshrl.u32 %v1428_v7, 16  ;;  %v1553_v21 = vshll.u32 %v1428_v7, 16  ;;  %v1535_v63 = vrot.slane %v1533_v12, 4 }
  0xd6   : > { %v1586_v7 = vrot.slane %v1584_v53, 4  ;;  %v1621_v12 = vshll.u32 %v1432_v4, 16 }
  0xd7   : > { %v1527_v25 = vrot.slane %v1525_v10, 4  ;;  %v1552_v27 = vrot.slane %v1550_v17, 4  ;;  %v1555_v39 = vrot.slane %v1553_v21, 5  ;;  %v1539_v54 = vor.u32 %v1538_v32, %v1535_v63 }
  0xd8   : > { %v14127_v63 = vrot.slane %v1610_v28, 4  ;;  %v1644_v32 = vshrl.u32 %v13967_v51, 16  ;;  %v14134_v38 = vrot.slane %v1621_v12, 5  ;;  %v1681_v51 = vshll.u32 %v13981_v1, 16 }
  0xd9   : > { %v1531_v62 = vor.u32 %v1530_v31, %v1527_v25  ;;  %v1556_v14 = vor.u32 %v1555_v39, %v1552_v27  ;;  %v13473_v27 = vld [vmem:[%s15575_s1 + $0xf0] sm:$0xff]   ;;  %v1436_v39 = vld [vmem:[#allocation2 + $0xe8] sm:$0x1f] }
  0xda   : > { %v14150_v53 = vrot.slane %v1644_v32, 4  ;;  %v1683_v28 = vrot.slane %v1681_v51, 5 }
  0xdb   : > { %v1540_v9 = vsel %vm1438_vm2, %v1531_v62, %v1539_v54  ;;  %v1557_v10 = vsel %vm1438_vm2, %v1548_v45, %v1556_v14  ;;  %v1652_v62 = vshrl.u32 %v1434_v24, 16  ;;  %v1661_v54 = vshrl.u32 %v13974_v57, 16  ;;  %v14192_v24 = vld [vmem:[#allocation2 + $0x28] sm:$0xf] }
  0xdc   : > { %12096 = vmatmul.mubr.bf16.gmra.mrb[28].mxu0 %v841_v46  ;;  %v1570_v46 = vshll.u32 %v1429_v33, 16  ;;  %v14119_v33 = vrot.slane %v1593_v8, 4  ;;  %v1664_v45 = vshll.u32 %v13974_v57, 16  ;;  %v1695_v57 = vshrl.u32 %v13993_v23, 16 }
  0xdd   : > { %12115 = vmatprep.mubr.bf16.mxu0 %v1455_v47  ;;  %v1523_v47 = vsel %vm1438_vm2, %v1514_v2, %v1522_v30  ;;  %v1582_v2 = vor.u32 %v1581_v19, %v1578_v6  ;;  %v1435_v30 = vld [vmem:[#allocation2 + $0xd8] sm:$0x1f]  ;;  %v1698_v6 = vshll.u32 %v13993_v23, 16  ;;  %v1654_v8 = vrot.slane %v1652_v62, 4 }
  0xde   : > { %v1572_v48 = vrot.slane %v1570_v46, 5  ;;  %v1437_v46 = vld [vmem:[#allocation2 + $0xf8] sm:$0x1f]  ;;  %v1669_v14 = vshrl.u32 %v1435_v30, 16  ;;  %v14182_v12 = vrot.slane %v1695_v57, 4 }
  0xdf   : > { %v1703_v19 = vshrl.u32 %v1437_v46, 16  ;;  %v14184_v13 = vrot.slane %v1698_v6, 5  ;;  %v1993_v57 = vld [vmem:[#allocation2 + $0x50] sm:$0xf8] }
  0xe0   : > { %v1573_v21 = vor.u32 %v1572_v48, %v1569_v3  ;;  %v1689_v48 = vshll.u32 %v1436_v39, 16 }
  0xe1   : > { %v1701_v6 = vor.u32 %v14184_v13, %v14182_v12  ;;  %v1995_v12 = vld [vmem:[#allocation2 + $0x60] sm:$0xf8] }
  0xe4   : > { %12116 = vmatmul.mubr.bf16.vlgmr.msra.gmra.mrb[0].mxu0 %v1472_v44 }
  0xe5   : > { %12148 = vmatpush3.bf16.msra.mxu0 %v14056_v60  ;;  %12119 = vmatprep.mubr.bf16.mxu0 %v1489_v50  ;;  %v1562_v60 = vshll.u32 %v13923_v18, 16  ;;  %v1587_v18 = vshll.u32 %v1430_v0, 16  ;;  %v1596_v50 = vshll.u32 %v13943_v34, 16  ;;  %v1635_v34 = vshrl.u32 %v1433_v40, 16 }
  0xe6   : > { %12149 = vmatprep.subr.bf16.mxu0 %v13468_v42  ;;  %v14132_v0 = vrot.slane %v1618_v61, 4  ;;  %v1657_v40 = vrot.slane %v1655_v52, 5  ;;  %v1691_v61 = vrot.slane %v1689_v48, 5  ;;  %v14216_v48 = vld [vmem:[#allocation2 + $0x48] sm:$0xf] }
  0xe7   : > { %v1564_v26 = vrot.slane %v1562_v60, 5  ;;  %v1589_v44 = vrot.slane %v1587_v18, 5  ;;  %v14121_v35 = vrot.slane %v1596_v50, 5  ;;  %v14143_v59 = vrot.slane %v1635_v34, 4 }
  0xe8   : > { %v14145_v60 = vrot.slane %v1638_v5, 5  ;;  %v1678_v18 = vshrl.u32 %v13981_v1, 16  ;;  %v1624_v1 = vor.u32 %v14134_v38, %v14132_v0  ;;  %v14173_v50 = vrot.slane %v1669_v14, 4  ;;  %v1987_v5 = vld [vmem:[#allocation2 + $0x20] sm:$0xf8] }
  0xe9   : > { %12150 = vmatpush3.bf16.msra.mxu0 %v13468_v42  ;;  %v1601_v42 = vshrl.u32 %v1431_v56, 16  ;;  %v1565_v17 = vor.u32 %v1564_v26, %v1561_v58  ;;  %v1590_v25 = vor.u32 %v1589_v44, %v1586_v7  ;;  %v1686_v56 = vshrl.u32 %v1436_v39, 16  ;;  %v13474_v58 = vld [vmem:[%s15575_s1 + $0xf8] sm:$0xff]  }
  0xea   : > { %12151 = vmatprep.subr.bf16.mxu0 %v13469_v37  ;;  %v1599_v26 = vor.u32 %v14121_v35, %v14119_v33  ;;  %v1649_v7 = vrot.slane %v1647_v43, 5  ;;  %v14171_v44 = vrot.slane %v1664_v45, 5  ;;  %v1680_v23 = vrot.slane %v1678_v18, 4 }
  0xeb   : > { %v14123_v31 = vrot.slane %v1601_v42, 4  ;;  %v1574_v29 = vsel %vm1438_vm2, %v1565_v17, %v1573_v21  ;;  %v14190_v21 = vld [vmem:[#allocation2 + $0x18] sm:$0xf]  ;;  %v2035_v32 = vshrl.u32 %v1987_v5, 16  ;;  %v2038_v0 = vshll.u32 %v1987_v5, 16 }
  0xec   : > { %12120 = vmatmul.mubr.bf16.gmra.mrb[4].mxu0 %v1506_v41  ;;  %v14141_v41 = vrot.slane %v1630_v15, 5  ;;  %v14186_v15 = vrot.slane %v1703_v19, 4  ;;  %v2043_v38 = vshrl.u32 %v14192_v24, 16  ;;  %v1650_v39 = vor.u32 %v1649_v7, %v14150_v53 }
  0xed   : > { %12123 = vmatprep.mubr.bf16.mxu0 %v1523_v47  ;;  %12152 = vmatpush3.bf16.msra.mxu0 %v13469_v37  ;;  %v14130_v37 = vrot.slane %v1613_v22, 5  ;;  %v1591_v47 = vsel %vm1438_vm2, %v1582_v2, %v1590_v25  ;;  %v1607_v3 = vor.u32 %v14125_v49, %v14123_v31  ;;  %v1688_v22 = vrot.slane %v1686_v56, 4  ;;  %v1989_v25 = vld [vmem:[#allocation2 + $0x30] sm:$0xf8] }
  0xee   : > { %12153 = vmatprep.subr.bf16.mxu0 %v13470_v55  ;;  %v1633_v35 = vor.u32 %v14141_v41, %v14136_v36  ;;  %v2026_v49 = vshrl.u32 %v14190_v21, 16  ;;  %v1658_v36 = vor.u32 %v1657_v40, %v1654_v8  ;;  %v2052_v41 = vshrl.u32 %v1989_v25, 16 }
  0xef   : > { %v1616_v4 = vor.u32 %v14130_v37, %v14127_v63  ;;  %v1608_v2 = vsel %vm1438_vm2, %v1599_v26, %v1607_v3  ;;  %v2029_v63 = vshll.u32 %v14190_v21, 16  ;;  %v2055_v43 = vshll.u32 %v1989_v25, 16  ;;  %v1991_v3 = vld [vmem:[#allocation2 + $0x40] sm:$0xf8] }
  0xf0   : > { %v2028_v62 = vrot.slane %v2026_v49, 3  ;;  %v2040_v53 = vrot.slane %v2038_v0, 4  ;;  %v2045_v45 = vrot.slane %v2043_v38, 3  ;;  %v1684_v51 = vor.u32 %v1683_v28, %v1680_v23 }
  0xf1   : > { %12154 = vmatpush3.bf16.msra.mxu0 %v13470_v55  ;;  %v1672_v55 = vshll.u32 %v1435_v30, 16  ;;  %v1625_v33 = vsel %vm1438_vm2, %v1616_v4, %v1624_v1  ;;  %v1641_v30 = vor.u32 %v14145_v60, %v14143_v59  ;;  %v14206_v59 = vld [vmem:[#allocation2 + $0x38] sm:$0xf]  ;;  %v2031_v52 = vrot.slane %v2029_v63, 4 }
  0xf2   : > { %12155 = vmatprep.subr.bf16.mxu0 %v13471_v20  ;;  %v2060_v18 = vshrl.u32 %v14206_v59, 16  ;;  %v1692_v56 = vor.u32 %v1691_v61, %v1688_v22  ;;  %v2063_v26 = vshll.u32 %v14206_v59, 16  ;;  %v14219_v4 = vld [vmem:[#allocation2 + $0x58] sm:$0xf]  ;;  %v2069_v40 = vshrl.u32 %v1991_v3, 16 }
  0xf3   : > { %v14175_v42 = vrot.slane %v1672_v55, 5  ;;  %v1642_v60 = vsel %vm1438_vm2, %v1633_v35, %v1641_v30  ;;  %v2054_v55 = vrot.slane %v2052_v41, 3  ;;  %v2032_v28 = vor.u32 %v2031_v52, %v2028_v62  ;;  %v1997_v35 = vld [vmem:[#allocation2 + $0x70] sm:$0xf8]  ;;  %v14234_v30 = vld [vmem:[#allocation2 + $0x78] sm:$0xf] }
  0xf4   : > { %12124 = vmatmul.mubr.bf16.gmra.mrb[8].mxu0 %v1540_v9  ;;  %v1706_v9 = vshll.u32 %v1437_v46, 16  ;;  %v1659_v46 = vsel %vm1438_vm2, %v1650_v39, %v1658_v36  ;;  %v1693_v1 = vsel %vm1438_vm2, %v1684_v51, %v1692_v56  ;;  %v2062_v7 = vrot.slane %v2060_v18, 3  ;;  %v1999_v62 = vld [vmem:[#allocation2 + $0x80] sm:$0xf8]  ;;  %v13477_v56 = vld [vmem:[%s15575_s1 + $0x110] sm:$0xff]  }
  0xf5   : > { %12127 = vmatprep.mubr.bf16.mxu0 %v1557_v10  ;;  %12156 = vmatpush3.bf16.msra.mxu0 %v13471_v20  ;;  %v1985_v20 = vld [vmem:[#allocation2 + $0x10] sm:$0xf8]  ;;  %v14169_v10 = vrot.slane %v1661_v54, 4  ;;  %v2037_v54 = vrot.slane %v2035_v32, 3  ;;  %v2065_v8 = vrot.slane %v2063_v26, 4  ;;  %v2094_v22 = vshrl.u32 %v14219_v4, 16 }
  0xf6   : > { %12157 = vmatprep.subr.bf16.mxu0 %v13472_v16  ;;  %v14188_v17 = vrot.slane %v1706_v9, 5  ;;  %v2021_v34 = vshll.u32 %v1985_v20, 16  ;;  %v2072_v9 = vshll.u32 %v1991_v3, 16  ;;  %v2097_v61 = vshll.u32 %v14219_v4, 16  ;;  %v14250_v26 = vld [vmem:[#allocation2 + $0x98] sm:$0xf] }
  0xf7   : > { %v2071_v25 = vrot.slane %v2069_v40, 3  ;;  %v2103_v32 = vshrl.u32 %v1995_v12, 16  ;;  %v2096_v0 = vrot.slane %v2094_v22, 3  ;;  %v2120_v41 = vshrl.u32 %v1997_v35, 16 }
  0xf8   : > { %v2023_v37 = vrot.slane %v2021_v34, 4  ;;  %v1709_v19 = vor.u32 %v14188_v17, %v14186_v15  ;;  %v14232_v34 = vld [vmem:[#allocation2 + $0x68] sm:$0xf]  ;;  %v2099_v38 = vrot.slane %v2097_v61, 4 }
  0xf9   : > { %12158 = vmatpush3.bf16.msra.mxu0 %v13472_v16  ;;  %v2018_v16 = vshrl.u32 %v1985_v20, 16  ;;  %v2111_v39 = vshrl.u32 %v14232_v34, 16  ;;  %v2114_v36 = vshll.u32 %v14232_v34, 16  ;;  %v2105_v18 = vrot.slane %v2103_v32, 3 }
  0xfa   : > { %12159 = vmatprep.subr.bf16.mxu0 %v13473_v27  ;;  %v1710_v13 = vsel %vm1438_vm2, %v1701_v6, %v1709_v19 }
  0xfb   : > { %v2020_v31 = vrot.slane %v2018_v16, 3  ;;  %v2041_v16 = vor.u32 %v2040_v53, %v2037_v54  ;;  %v2113_v3 = vrot.slane %v2111_v39, 3 }
  0xfc   : > { %12128 = vmatmul.mubr.bf16.gmra.mrb[12].mxu0 %v1574_v29  ;;  %v1667_v29 = vor.u32 %v14171_v44, %v14169_v10  ;;  %v2077_v10 = vshrl.u32 %v14216_v48, 16  ;;  %v2080_v44 = vshll.u32 %v14216_v48, 16 }
  0xfd   : > { %12131 = vmatprep.mubr.bf16.mxu0 %v1591_v47  ;;  %12160 = vmatpush3.bf16.msra.mxu0 %v13473_v27  ;;  %v2046_v27 = vshll.u32 %v14192_v24, 16  ;;  %v1675_v47 = vor.u32 %v14175_v42, %v14173_v50  ;;  %v2086_v50 = vshrl.u32 %v1993_v57, 16  ;;  %v2089_v42 = vshll.u32 %v1993_v57, 16 }
  0xfe   : > { %12161 = vmatprep.subr.bf16.mxu0 %v13474_v58  ;;  %v2024_v23 = vor.u32 %v2023_v37, %v2020_v31  ;;  %v2079_v31 = vrot.slane %v2077_v10, 3  ;;  %v2082_v49 = vrot.slane %v2080_v44, 4  ;;  %v2116_v57 = vrot.slane %v2114_v36, 4 }
  0xff   : > { %v2048_v14 = vrot.slane %v2046_v27, 4  ;;  %v1676_v20 = vsel %vm1438_vm2, %v1667_v29, %v1675_v47  ;;  %v2088_v63 = vrot.slane %v2086_v50, 3  ;;  %v2091_v37 = vrot.slane %v2089_v42, 4 }
 0x100   : > { %v2033_v15 = vsel %vm569_vm1, %v2024_v23, %v2032_v28  ;;  %v2106_v27 = vshll.u32 %v1995_v12, 16  ;;  %v2128_v29 = vshrl.u32 %v14234_v30, 16  ;;  %v2131_v47 = vshll.u32 %v14234_v30, 16  ;;  %v2003_v28 = vld [vmem:[#allocation2 + $0xa0] sm:$0xf8] }
 0x101   : > { %12162 = vmatpush3.bf16.msra.mxu0 %v13474_v58  ;;  %v2057_v58 = vrot.slane %v2055_v43, 4  ;;  %v2049_v17 = vor.u32 %v2048_v14, %v2045_v45  ;;  %v2123_v43 = vshll.u32 %v1997_v35, 16  ;;  %v2083_v53 = vor.u32 %v2082_v49, %v2079_v31  ;;  %v14245_v45 = vld [vmem:[#allocation2 + $0x88] sm:$0xf] }
 0x102   : > { %12195 = vmatprep.subr.bf16.mxu0 %v14180_v11  ;;  %v2092_v14 = vor.u32 %v2091_v37, %v2088_v63  ;;  %v2108_v51 = vrot.slane %v2106_v27, 4  ;;  %v2130_v6 = vrot.slane %v2128_v29, 3  ;;  %v2133_v19 = vrot.slane %v2131_v47, 4  ;;  %v14262_v12 = vld [vmem:[#allocation2 + $0xa8] sm:$0xf] }
 0x103   : > { %v2058_v5 = vor.u32 %v2057_v58, %v2054_v55  ;;  %v2100_v55 = vor.u32 %v2099_v38, %v2096_v0  ;;  %v2001_v58 = vld [vmem:[#allocation2 + $0x90] sm:$0xf8]  ;;  %v2145_v40 = vshrl.u32 %v14245_v45, 16  ;;  %v2162_v42 = vshrl.u32 %v14250_v26, 16  ;;  %v2007_v29 = vld [vmem:[#allocation2 + $0xc0] sm:$0xf8] }
 0x104   : > { %12132 = vmatmul.mubr.bf16.gmra.mrb[16].mxu0 %v1608_v2  ;;  %v2066_v2 = vor.u32 %v2065_v8, %v2062_v7  ;;  %v2137_v7 = vshrl.u32 %v1999_v62, 16  ;;  %v2140_v8 = vshll.u32 %v1999_v62, 16  ;;  %v2154_v10 = vshrl.u32 %v2001_v58, 16 }
 0x105   : > { %12135 = vmatprep.mubr.bf16.mxu0 %v1625_v33  ;;  %v2074_v33 = vrot.slane %v2072_v9, 4  ;;  %v2148_v9 = vshll.u32 %v14245_v45, 16  ;;  %v2157_v44 = vshll.u32 %v2001_v58, 16  ;;  %v2165_v23 = vshll.u32 %v14250_v26, 16 }
 0x106   : > { %v2067_v52 = vsel %vm569_vm1, %v2058_v5, %v2066_v2  ;;  %v2101_v22 = vsel %vm569_vm1, %v2092_v14, %v2100_v55  ;;  %v2109_v61 = vor.u32 %v2108_v51, %v2105_v18  ;;  %v13479_v5 = vld [vmem:[%s15575_s1 + $0x120] sm:$0xff]   ;;  %v2005_v2 = vld [vmem:[#allocation2 + $0xb0] sm:$0xf8]  ;;  %v2147_v35 = vrot.slane %v2145_v40, 3  ;;  %v14278_v55 = vld [vmem:[#allocation2 + $0xc8] sm:$0xf] }
 0x107   : > { %v2075_v54 = vor.u32 %v2074_v33, %v2071_v25  ;;  %v14267_v25 = vld [vmem:[#allocation2 + $0xb8] sm:$0xf]  ;;  %v2142_v33 = vrot.slane %v2140_v8, 4  ;;  %v2150_v31 = vrot.slane %v2148_v9, 4  ;;  %v2156_v49 = vrot.slane %v2154_v10, 3 }
 0x108   : > { %v2159_v63 = vrot.slane %v2157_v44, 4  ;;  %v2164_v32 = vrot.slane %v2162_v42, 3  ;;  %v2167_v37 = vrot.slane %v2165_v23, 4  ;;  %v2171_v0 = vshrl.u32 %v2003_v28, 16  ;;  %v2009_v18 = vld [vmem:[#allocation2 + $0xd0] sm:$0xf8] }
 0x109   : > { %v2084_v50 = vsel %vm569_vm1, %v2075_v54, %v2083_v53  ;;  %v2174_v38 = vshll.u32 %v2003_v28, 16  ;;  %v2179_v27 = vshrl.u32 %v14262_v12, 16  ;;  %v2182_v39 = vshll.u32 %v14262_v12, 16  ;;  %v13484_v44 = vld [vmem:[%s15575_s1 + $0x138] sm:$0xff]   ;;  %v2011_v23 = vld [vmem:[#allocation2 + $0xe0] sm:$0xf8] }
 0x10a   : > { %v2188_v36 = vshrl.u32 %v2005_v2, 16  ;;  %v2199_v62 = vshll.u32 %v14267_v25, 16  ;;  %v2151_v54 = vor.u32 %v2150_v31, %v2147_v35  ;;  %v2160_v53 = vor.u32 %v2159_v63, %v2156_v49  ;;  %v14299_v35 = vld [vmem:[%s15575_s1 + $0x140] sm:$0xff]  }
 0x10b   : > { %v2173_v14 = vrot.slane %v2171_v0, 3  ;;  %v2168_v51 = vor.u32 %v2167_v37, %v2164_v32  ;;  %v2181_v58 = vrot.slane %v2179_v27, 3  ;;  %v2208_v40 = vshll.u32 %v2007_v29, 16  ;;  %v2013_v37 = vld [vmem:[#allocation2 + $0xf0] sm:$0xf8] }
 0x10c   : > { %12136 = vmatmul.mubr.bf16.gmra.mrb[20].mxu0 %v1642_v60  ;;  %v13476_v60 = vld [vmem:[%s15575_s1 + $0x108] sm:$0xff]   ;;  %v2201_v8 = vrot.slane %v2199_v62, 4  ;;  %v2213_v9 = vshrl.u32 %v14278_v55, 16  ;;  %v2216_v10 = vshll.u32 %v14278_v55, 16  ;;  %v2225_v42 = vshll.u32 %v2009_v18, 16 }
 0x10d   : > { %12139 = vmatprep.mubr.bf16.mxu0 %v1659_v46  ;;  %v2050_v46 = vsel %vm569_vm1, %v2041_v16, %v2049_v17  ;;  %v2134_v16 = vor.u32 %v2133_v19, %v2130_v6  ;;  %v2139_v17 = vrot.slane %v2137_v7, 3  ;;  %v2205_v19 = vshrl.u32 %v2007_v29, 16  ;;  %v14283_v7 = vld [vmem:[#allocation2 + $0xd8] sm:$0xf] }
 0x10e   : > { %v2169_v28 = vsel %vm569_vm1, %v2160_v53, %v2168_v51  ;;  %v2215_v31 = vrot.slane %v2213_v9, 3  ;;  %v2218_v49 = vrot.slane %v2216_v10, 4  ;;  %v2239_v32 = vshrl.u32 %v2011_v23, 16 }
 0x10f   : > { %v2227_v0 = vrot.slane %v2225_v42, 4  ;;  %v2256_v29 = vshrl.u32 %v2013_v37, 16 }
 0x110   : > { %v2241_v51 = vrot.slane %v2239_v32, 3  ;;  %v2612_v32 = vrot.slane %v14190_v21, 4 }
 0x114   : > { %12140 = vmatmul.mubr.bf16.gmra.mrb[24].mxu0 %v1676_v20  ;;  %v2122_v20 = vrot.slane %v2120_v41, 3  ;;  %v13480_v41 = vld [vmem:[%s15575_s1 + $0x128] sm:$0xff]  }
 0x115   : > { %12143 = vmatprep.mubr.bf16.mxu0 %v1693_v1  ;;  %v2125_v1 = vrot.slane %v2123_v43, 4 }
 0x11c   : > { %12144 = vmatmul.mubr.bf16.gmra.mrb[28].mxu0 %v1710_v13  ;;  %v2117_v13 = vor.u32 %v2116_v57, %v2113_v3  ;;  %v2184_v3 = vrot.slane %v2182_v39, 4  ;;  %v13481_v57 = vld [vmem:[%s15575_s1 + $0x130] sm:$0xff]   ;;  %v2242_v39 = vshll.u32 %v2011_v23, 16 }
 0x11d   : > { %12163 = vmatprep.mubr.bf16.mxu0 %v2033_v15  ;;  %v2126_v15 = vor.u32 %v2125_v1, %v2122_v20  ;;  %v2190_v20 = vrot.slane %v2188_v36, 3  ;;  %v14301_v36 = vld [vmem:[#allocation2 + $0xf8] sm:$0xf] }
 0x11e   : > { %v2118_v43 = vsel %vm569_vm1, %v2109_v61, %v2117_v13  ;;  %v2233_v61 = vshll.u32 %v14283_v7, 16  ;;  %v2267_v53 = vshll.u32 %v14301_v36, 16 }
 0x11f   : > { %v2135_v47 = vsel %vm569_vm1, %v2126_v15, %v2134_v16  ;;  %v2185_v15 = vor.u32 %v2184_v3, %v2181_v58  ;;  %v14294_v16 = vld [vmem:[#allocation2 + $0xe8] sm:$0xf]  ;;  %v2015_v58 = vld [vmem:[#allocation2 + $0x100] sm:$0xf8] }
 0x120   : > { %v2235_v27 = vrot.slane %v2233_v61, 4  ;;  %v2273_v10 = vshrl.u32 %v2015_v58, 16 }
 0x122   : > { %v2275_v61 = vrot.slane %v2273_v10, 3  ;;  %v2636_v10 = vrot.slane %v14250_v26, 4 }
 0x124   : > { %12164 = vmatmul.mubr.bf16.vlgmr.msra.gmra.mrb[0].mxu0 %v2050_v46  ;;  %v2196_v46 = vshrl.u32 %v14267_v25, 16 }
 0x125   : > { %12196 = vmatpush3.bf16.msra.mxu0 %v14180_v11  ;;  %12167 = vmatprep.mubr.bf16.mxu0 %v2067_v52  ;;  %v13478_v11 = vld [vmem:[%s15575_s1 + $0x118] sm:$0xff]   ;;  %v2143_v52 = vor.u32 %v2142_v33, %v2139_v17  ;;  %v2210_v33 = vrot.slane %v2208_v40, 4  ;;  %v2269_v40 = vrot.slane %v2267_v53, 4  ;;  %v13487_v53 = vld [vmem:[%s15575_s1 + $0x150] sm:$0xff]  }
 0x126   : > { %12197 = vmatprep.subr.bf16.mxu0 %v13476_v60  ;;  %v2198_v6 = vrot.slane %v2196_v46, 3 }
 0x129   : > { %12198 = vmatpush3.bf16.msra.mxu0 %v13476_v60  ;;  %v2191_v60 = vshll.u32 %v2005_v2, 16  ;;  %v2207_v2 = vrot.slane %v2205_v19, 3 }
 0x12a   : > { %12199 = vmatprep.subr.bf16.mxu0 %v13477_v56 }
 0x12b   : > { %v2193_v1 = vrot.slane %v2191_v60, 4  ;;  %v2250_v60 = vshll.u32 %v14294_v16, 16  ;;  %v2211_v62 = vor.u32 %v2210_v33, %v2207_v2  ;;  %v14318_v33 = vld [vmem:[#allocation2 + $0x10] sm:$0xf0] }
 0x12c   : > { %12168 = vmatmul.mubr.bf16.gmra.mrb[4].mxu0 %v2084_v50  ;;  %v2222_v50 = vshrl.u32 %v2009_v18, 16 }
 0x12d   : > { %12171 = vmatprep.mubr.bf16.mxu0 %v2101_v22  ;;  %12200 = vmatpush3.bf16.msra.mxu0 %v13477_v56  ;;  %v2176_v56 = vrot.slane %v2174_v38, 4  ;;  %v2230_v22 = vshrl.u32 %v14283_v7, 16  ;;  %v2194_v17 = vor.u32 %v2193_v1, %v2190_v20  ;;  %v2258_v20 = vrot.slane %v2256_v29, 3  ;;  %v14334_v29 = vld [vmem:[#allocation2 + $0x40] sm:$0xf0] }
 0x12e   : > { %12201 = vmatprep.subr.bf16.mxu0 %v13478_v11  ;;  %v2224_v63 = vrot.slane %v2222_v50, 3 }
 0x12f   : > { %v2177_v13 = vor.u32 %v2176_v56, %v2173_v14  ;;  %v2232_v38 = vrot.slane %v2230_v22, 3  ;;  %v2244_v56 = vrot.slane %v2242_v39, 4 }
 0x130   : > { %v2228_v14 = vor.u32 %v2227_v0, %v2224_v63  ;;  %v2611_v63 = vrot.slane %v14318_v33, 4 }
 0x131   : > { %12202 = vmatpush3.bf16.msra.mxu0 %v13478_v11  ;;  %v2152_v11 = vsel %vm569_vm1, %v2143_v52, %v2151_v54  ;;  %v2219_v52 = vor.u32 %v2218_v49, %v2215_v31  ;;  %v2264_v54 = vshrl.u32 %v14301_v36, 16  ;;  %v2236_v18 = vor.u32 %v2235_v27, %v2232_v38  ;;  %v14324_v38 = vld [vmem:[#allocation2 + $0x20] sm:$0xf0]  ;;  %v14326_v27 = vld [vmem:[#allocation2 + $0x30] sm:$0xf0] }
 0x132   : > { %12203 = vmatprep.subr.bf16.mxu0 %v13479_v5  ;;  %v2613_v0 = vsel %vm922_vm0, %v2611_v63, %v2612_v32  ;;  %v2614_v39 = vrot.slane %v14324_v38, 4 }
 0x133   : > { %v2220_v19 = vsel %vm569_vm1, %v2211_v62, %v2219_v52  ;;  %v2237_v9 = vsel %vm569_vm1, %v2228_v14, %v2236_v18  ;;  %v14339_v62 = vld [vmem:[#allocation2 + $0x50] sm:$0xf0] }
 0x134   : > { %12172 = vmatmul.mubr.bf16.gmra.mrb[8].mxu0 %v2118_v43  ;;  %v2247_v43 = vshrl.u32 %v14294_v16, 16  ;;  %v2623_v52 = vrot.slane %v14339_v62, 4 }
 0x135   : > { %12175 = vmatprep.mubr.bf16.mxu0 %v2135_v47  ;;  %12204 = vmatpush3.bf16.msra.mxu0 %v13479_v5  ;;  %v2202_v5 = vor.u32 %v2201_v8, %v2198_v6  ;;  %v2259_v47 = vshll.u32 %v2013_v37, 16  ;;  %v14310_v6 = vld [vmem:[#allocation2 + $0x108] sm:$0xf]  ;;  %v2266_v8 = vrot.slane %v2264_v54, 3  ;;  %v2624_v54 = vrot.slane %v14219_v4, 4 }
 0x136   : > { %12205 = vmatprep.subr.bf16.mxu0 %v13480_v41  ;;  %v2249_v3 = vrot.slane %v2247_v43, 3  ;;  %v2281_v42 = vshrl.u32 %v14310_v6, 16  ;;  %v2284_v23 = vshll.u32 %v14310_v6, 16  ;;  %v2617_v43 = vrot.slane %v14326_v27, 4 }
 0x137   : > { %v2203_v46 = vsel %vm569_vm1, %v2194_v17, %v2202_v5  ;;  %v2261_v1 = vrot.slane %v2259_v47, 4  ;;  %v2270_v22 = vor.u32 %v2269_v40, %v2266_v8  ;;  %v13486_v47 = vld [vmem:[%s15575_s1 + $0x148] sm:$0xff]   ;;  %v2625_v18 = vsel %vm922_vm0, %v2623_v52, %v2624_v54  ;;  %v14372_v8 = vld [vmem:[#allocation2 + $0x90] sm:$0xf0] }
 0x138   : > { %v2283_v17 = vrot.slane %v2281_v42, 3  ;;  %v2286_v5 = vrot.slane %v2284_v23, 4  ;;  %v2633_v40 = vrot.slane %v14245_v45, 4  ;;  %v14383_v42 = vld [vmem:[#allocation2 + $0xa0] sm:$0xf0]  ;;  %v13492_v45 = vld [vmem:[%s15575_s1 + $0x178] sm:$0xff]  }
 0x139   : > { %12206 = vmatpush3.bf16.msra.mxu0 %v13480_v41  ;;  %v2186_v41 = vsel %vm569_vm1, %v2177_v13, %v2185_v15  ;;  %v14388_v23 = vld [vmem:[#allocation2 + $0xb0] sm:$0xf0]  ;;  %v2638_v26 = vrot.slane %v14383_v42, 4  ;;  %v2934_v54 = vld [vmem:[#allocation2 + $0x28] sm:$0x1f] }
 0x13a   : > { %12207 = vmatprep.subr.bf16.mxu0 %v13481_v57  ;;  %v2287_v49 = vor.u32 %v2286_v5, %v2283_v17  ;;  %v14401_v5 = vld [vmem:[#allocation2 + $0xc0] sm:$0xf0] }
 0x13c   : > { %12176 = vmatmul.mubr.bf16.gmra.mrb[12].mxu0 %v2152_v11  ;;  %v2245_v11 = vor.u32 %v2244_v56, %v2241_v51  ;;  %v14356_v51 = vld [vmem:[#allocation2 + $0x70] sm:$0xf0]  ;;  %v2627_v56 = vrot.slane %v14232_v34, 4  ;;  %v13490_v34 = vld [vmem:[%s15575_s1 + $0x168] sm:$0xff]  }
 0x13d   : > { %12179 = vmatprep.mubr.bf16.mxu0 %v2169_v28  ;;  %12208 = vmatpush3.bf16.msra.mxu0 %v13481_v57  ;;  %v2252_v57 = vrot.slane %v2250_v60, 4  ;;  %v2262_v28 = vor.u32 %v2261_v1, %v2258_v20  ;;  %v2618_v60 = vrot.slane %v14206_v59, 4  ;;  %v2621_v59 = vrot.slane %v14216_v48, 4  ;;  %v13488_v48 = vld [vmem:[%s15575_s1 + $0x158] sm:$0xff]  }
 0x13e   : > { %12209 = vmatprep.subr.bf16.mxu0 %v13484_v44 }
 0x13f   : > { %v2253_v50 = vor.u32 %v2252_v57, %v2249_v3  ;;  %v2271_v2 = vsel %vm569_vm1, %v2262_v28, %v2270_v22  ;;  %v2630_v3 = vrot.slane %v14234_v30, 4  ;;  %v13489_v57 = vld [vmem:[%s15575_s1 + $0x160] sm:$0xff]   ;;  %v2639_v28 = vrot.slane %v14262_v12, 4  ;;  %v14404_v12 = vld [vmem:[#allocation2 + $0xd0] sm:$0xf0] }
 0x140   : > { %v2641_v22 = vrot.slane %v14388_v23, 4 }
 0x141   : > { %12210 = vmatpush3.bf16.msra.mxu0 %v13484_v44  ;;  %v2276_v44 = vshll.u32 %v2015_v58, 16  ;;  %v2254_v15 = vsel %vm569_vm1, %v2245_v11, %v2253_v50  ;;  %v2629_v58 = vrot.slane %v14356_v51, 4 }
 0x142   : > { %12243 = vmatprep.subr.bf16.mxu0 %v14299_v35 }
 0x143   : > { %v2278_v13 = vrot.slane %v2276_v44, 4  ;;  %v2631_v1 = vsel %vm922_vm0, %v2629_v58, %v2630_v3  ;;  %v13491_v44 = vld [vmem:[%s15575_s1 + $0x170] sm:$0xff]   ;;  %v2975_v58 = vshrl.u32 %v2934_v54, 16  ;;  %v2978_v3 = vshll.u32 %v2934_v54, 16 }
 0x144   : > { %12180 = vmatmul.mubr.bf16.gmra.mrb[16].mxu0 %v2186_v41  ;;  %v2615_v41 = vrot.slane %v14192_v24, 4  ;;  %v2620_v24 = vrot.slane %v14334_v29, 4 }
 0x145   : > { %12183 = vmatprep.mubr.bf16.mxu0 %v2203_v46  ;;  %v2279_v31 = vor.u32 %v2278_v13, %v2275_v61  ;;  %v2619_v46 = vsel %vm922_vm0, %v2617_v43, %v2618_v60  ;;  %v2642_v61 = vrot.slane %v14267_v25, 4  ;;  %v14397_v13 = vld [vmem:[%s15575_s1 + $0x180] sm:$0xff]   ;;  %v2644_v25 = vrot.slane %v14401_v5, 4 }
 0x146   : > { %v2616_v21 = vsel %vm922_vm0, %v2614_v39, %v2615_v41  ;;  %v2622_v14 = vsel %vm922_vm0, %v2620_v24, %v2621_v59  ;;  %v2933_v39 = vld [vmem:[#allocation2 + $0x18] sm:$0x1f]  ;;  %v2651_v43 = vrot.slane %v14294_v16, 4  ;;  %v2654_v60 = vrot.slane %v14301_v36, 4  ;;  %v14422_v24 = vld [vmem:[#allocation2 + $0x100] sm:$0xf0] }
 0x147   : > { %v2288_v37 = vsel %vm569_vm1, %v2279_v31, %v2287_v49  ;;  %v2643_v17 = vsel %vm922_vm0, %v2641_v22, %v2642_v61  ;;  %v2647_v31 = vrot.slane %v14404_v12, 4  ;;  %v2648_v49 = vrot.slane %v14283_v7, 4  ;;  %v2937_v61 = vld [vmem:[#allocation2 + $0x58] sm:$0x1f] }
 0x148   : > { %v2950_v7 = vshrl.u32 %v14318_v33, 16  ;;  %v2656_v36 = vrot.slane %v14422_v24, 4 }
 0x149   : > { %v2649_v32 = vsel %vm922_vm0, %v2647_v31, %v2648_v49 }
 0x14c   : > { %12184 = vmatmul.mubr.bf16.gmra.mrb[20].mxu0 %v2220_v19  ;;  %v14367_v19 = vld [vmem:[#allocation2 + $0x80] sm:$0xf0] }
 0x14d   : > { %12187 = vmatprep.mubr.bf16.mxu0 %v2237_v9  ;;  %v2632_v30 = vrot.slane %v14367_v19, 4  ;;  %v2635_v9 = vrot.slane %v14372_v8, 4 }
 0x14f   : > { %v2634_v11 = vsel %vm922_vm0, %v2632_v30, %v2633_v40  ;;  %v2637_v50 = vsel %vm922_vm0, %v2635_v9, %v2636_v10 }
 0x154   : > { %12188 = vmatmul.mubr.bf16.gmra.mrb[24].mxu0 %v2254_v15  ;;  %v2640_v15 = vsel %vm922_vm0, %v2638_v26, %v2639_v28  ;;  %v2936_v28 = vld [vmem:[#allocation2 + $0x48] sm:$0x1f] }
 0x155   : > { %12191 = vmatprep.mubr.bf16.mxu0 %v2271_v2  ;;  %v2645_v2 = vrot.slane %v14278_v55, 4 }
 0x157   : > { %v2646_v63 = vsel %vm922_vm0, %v2644_v25, %v2645_v2  ;;  %v3012_v25 = vshll.u32 %v2936_v28, 16 }
 0x15c   : > { %12192 = vmatmul.mubr.bf16.gmra.mrb[28].mxu0 %v2288_v37  ;;  %v14412_v37 = vld [vmem:[#allocation2 + $0xe0] sm:$0xf0] }
 0x15d   : > { %12211 = vmatprep.mubr.bf16.mxu0 %v2613_v0  ;;  %v14414_v0 = vld [vmem:[#allocation2 + $0xf0] sm:$0xf0]  ;;  %v2650_v41 = vrot.slane %v14412_v37, 4 }
 0x15e   : > { %v2653_v55 = vrot.slane %v14414_v0, 4 }
 0x15f   : > { %v2652_v59 = vsel %vm922_vm0, %v2650_v41, %v2651_v43  ;;  %v3026_v41 = vshrl.u32 %v2937_v61, 16  ;;  %v3029_v43 = vshll.u32 %v2937_v61, 16  ;;  %v2941_v61 = vld [vmem:[#allocation2 + $0x98] sm:$0x1f] }
 0x160   : > { %v2655_v52 = vsel %vm922_vm0, %v2653_v55, %v2654_v60 }
 0x161   : > { %v3028_v54 = vrot.slane %v3026_v41, 4 }
 0x164   : > { %12212 = vmatmul.mubr.bf16.vlgmr.msra.gmra.mrb[0].mxu0 %v2616_v21  ;;  %v2953_v21 = vshll.u32 %v14318_v33, 16  ;;  %v2967_v33 = vshrl.u32 %v14324_v38, 16 }
 0x165   : > { %12244 = vmatpush3.bf16.msra.mxu0 %v14299_v35  ;;  %12215 = vmatprep.mubr.bf16.mxu0 %v2619_v46  ;;  %v14351_v35 = vld [vmem:[#allocation2 + $0x60] sm:$0xf0]  ;;  %v2958_v46 = vshrl.u32 %v2933_v39, 16 }
 0x166   : > { %12245 = vmatprep.subr.bf16.mxu0 %v13486_v47  ;;  %v2626_v4 = vrot.slane %v14351_v35, 4  ;;  %v2969_v10 = vrot.slane %v2967_v33, 4 }
 0x167   : > { %v2960_v16 = vrot.slane %v2958_v46, 4 }
 0x168   : > { %v2628_v20 = vsel %vm922_vm0, %v2626_v4, %v2627_v56  ;;  %v2657_v4 = vrot.slane %v14310_v6, 4  ;;  %v2970_v56 = vshll.u32 %v14324_v38, 16 }
 0x169   : > { %12246 = vmatpush3.bf16.msra.mxu0 %v13486_v47  ;;  %v2961_v47 = vshll.u32 %v2933_v39, 16  ;;  %v3021_v39 = vshll.u32 %v14339_v62, 16 }
 0x16a   : > { %12247 = vmatprep.subr.bf16.mxu0 %v13487_v53  ;;  %v2658_v9 = vsel %vm922_vm0, %v2656_v36, %v2657_v4  ;;  %v2972_v6 = vrot.slane %v2970_v56, 5  ;;  %v3038_v36 = vshll.u32 %v14351_v35, 16  ;;  %v3052_v56 = vshrl.u32 %v14356_v51, 16 }
 0x16c   : > { %12216 = vmatmul.mubr.bf16.gmra.mrb[4].mxu0 %v2622_v14  ;;  %v2955_v14 = vrot.slane %v2953_v21, 5  ;;  %v2973_v2 = vor.u32 %v2972_v6, %v2969_v10  ;;  %v3014_v21 = vrot.slane %v3012_v25, 5  ;;  %v3054_v6 = vrot.slane %v3052_v56, 4 }
 0x16d   : > { %12219 = vmatprep.mubr.bf16.mxu0 %v2625_v18  ;;  %12248 = vmatpush3.bf16.msra.mxu0 %v13487_v53  ;;  %v2952_v53 = vrot.slane %v2950_v7, 4  ;;  %v2963_v18 = vrot.slane %v2961_v47, 5  ;;  %v13494_v47 = vld [vmem:[%s15575_s1 + $0x188] sm:$0xff]   ;;  %v3086_v25 = vshrl.u32 %v14372_v8, 16 }
 0x16e   : > { %12249 = vmatprep.subr.bf16.mxu0 %v13488_v48 }
 0x16f   : > { %v2956_v30 = vor.u32 %v2955_v14, %v2952_v53  ;;  %v2964_v40 = vor.u32 %v2963_v18, %v2960_v16  ;;  %v3031_v53 = vrot.slane %v3029_v43, 5  ;;  %v2938_v14 = vld [vmem:[#allocation2 + $0x68] sm:$0x1f] }
 0x170   : > { %v3043_v4 = vshrl.u32 %v2938_v14, 16  ;;  %v3046_v33 = vshll.u32 %v2938_v14, 16  ;;  %v3106_v14 = vshll.u32 %v14383_v42, 16 }
 0x171   : > { %12250 = vmatpush3.bf16.msra.mxu0 %v13488_v48  ;;  %v2935_v48 = vld [vmem:[#allocation2 + $0x38] sm:$0x1f]  ;;  %v2965_v22 = vsel %vm1438_vm2, %v2956_v30, %v2964_v40  ;;  %v2940_v40 = vld [vmem:[#allocation2 + $0x88] sm:$0x1f] }
 0x172   : > { %12251 = vmatprep.subr.bf16.mxu0 %v13489_v57  ;;  %v3048_v10 = vrot.slane %v3046_v33, 5 }
 0x174   : > { %12220 = vmatmul.mubr.bf16.gmra.mrb[8].mxu0 %v2628_v20  ;;  %v2987_v20 = vshll.u32 %v14326_v27, 16 }
 0x175   : > { %12223 = vmatprep.mubr.bf16.mxu0 %v2631_v1  ;;  %12252 = vmatpush3.bf16.msra.mxu0 %v13489_v57  ;;  %v2984_v57 = vshrl.u32 %v14326_v27, 16  ;;  %v2992_v1 = vshrl.u32 %v2935_v48, 16  ;;  %v3001_v27 = vshrl.u32 %v14334_v29, 16 }
 0x176   : > { %12253 = vmatprep.subr.bf16.mxu0 %v13490_v34 }
 0x177   : > { %v2994_v38 = vrot.slane %v2992_v1, 4  ;;  %v3003_v55 = vrot.slane %v3001_v27, 4 }
 0x179   : > { %12254 = vmatpush3.bf16.msra.mxu0 %v13490_v34  ;;  %v2995_v34 = vshll.u32 %v2935_v48, 16  ;;  %v3035_v48 = vshrl.u32 %v14351_v35, 16 }
 0x17a   : > { %12255 = vmatprep.subr.bf16.mxu0 %v13491_v44 }
 0x17b   : > { %v2997_v26 = vrot.slane %v2995_v34, 5  ;;  %v3037_v30 = vrot.slane %v3035_v48, 4  ;;  %v3123_v48 = vshll.u32 %v14388_v23, 16 }
 0x17c   : > { %12224 = vmatmul.mubr.bf16.gmra.mrb[12].mxu0 %v2634_v11  ;;  %v2980_v11 = vrot.slane %v2978_v3, 5 }
 0x17d   : > { %12227 = vmatprep.mubr.bf16.mxu0 %v2637_v50  ;;  %12256 = vmatpush3.bf16.msra.mxu0 %v13491_v44  ;;  %v2977_v44 = vrot.slane %v2975_v58, 4  ;;  %v2986_v50 = vrot.slane %v2984_v57, 4  ;;  %v3055_v58 = vshll.u32 %v14356_v51, 16  ;;  %v3032_v57 = vor.u32 %v3031_v53, %v3028_v54 }
 0x17e   : > { %12257 = vmatprep.subr.bf16.mxu0 %v13492_v45  ;;  %v3103_v53 = vshrl.u32 %v14383_v42, 16 }
 0x17f   : > { %v2981_v31 = vor.u32 %v2980_v11, %v2977_v44  ;;  %v3057_v44 = vrot.slane %v3055_v58, 5  ;;  %v13499_v58 = vld [vmem:[%s15575_s1 + $0x1b0] sm:$0xff]  }
 0x180   : > { %v3105_v42 = vrot.slane %v3103_v53, 4 }
 0x181   : > { %12258 = vmatpush3.bf16.msra.mxu0 %v13492_v45  ;;  %v2989_v45 = vrot.slane %v2987_v20, 5  ;;  %v2982_v46 = vsel %vm1438_vm2, %v2973_v2, %v2981_v31  ;;  %v13495_v20 = vld [vmem:[%s15575_s1 + $0x190] sm:$0xff]   ;;  %v3089_v31 = vshll.u32 %v14372_v8, 16 }
 0x182   : > { %12291 = vmatprep.subr.bf16.mxu0 %v14397_v13 }
 0x183   : > { %v2990_v49 = vor.u32 %v2989_v45, %v2986_v50  ;;  %v13496_v45 = vld [vmem:[%s15575_s1 + $0x198] sm:$0xff]  }
 0x184   : > { %12228 = vmatmul.mubr.bf16.gmra.mrb[16].mxu0 %v2640_v15  ;;  %v3004_v15 = vshll.u32 %v14334_v29, 16 }
 0x185   : > { %12231 = vmatprep.mubr.bf16.mxu0 %v2643_v17  ;;  %v3009_v17 = vshrl.u32 %v2936_v28, 16  ;;  %v3077_v28 = vshrl.u32 %v2940_v40, 16 }
 0x186   : > { %v3006_v60 = vrot.slane %v3004_v15, 5 }
 0x187   : > { %v3011_v7 = vrot.slane %v3009_v17, 4  ;;  %v3058_v17 = vor.u32 %v3057_v44, %v3054_v6  ;;  %v3079_v41 = vrot.slane %v3077_v28, 4  ;;  %v3154_v28 = vshrl.u32 %v14404_v12, 16 }
 0x188   : > { %v3007_v16 = vor.u32 %v3006_v60, %v3003_v55  ;;  %v3088_v60 = vrot.slane %v3086_v25, 4  ;;  %v2946_v25 = vld [vmem:[#allocation2 + $0xe8] sm:$0x1f] }
 0x189   : > { %v3015_v18 = vor.u32 %v3014_v21, %v3011_v7  ;;  %v2942_v7 = vld [vmem:[#allocation2 + $0xa8] sm:$0x1f] }
 0x18b   : > { %v3016_v35 = vsel %vm1438_vm2, %v3007_v16, %v3015_v18  ;;  %v3114_v16 = vshll.u32 %v2942_v7, 16  ;;  %v3120_v18 = vshrl.u32 %v14388_v23, 16 }
 0x18c   : > { %12232 = vmatmul.mubr.bf16.gmra.mrb[20].mxu0 %v2646_v63  ;;  %v2998_v63 = vor.u32 %v2997_v26, %v2994_v38  ;;  %v3069_v38 = vshrl.u32 %v14367_v19, 16  ;;  %v3072_v26 = vshll.u32 %v14367_v19, 16  ;;  %v13497_v19 = vld [vmem:[%s15575_s1 + $0x1a0] sm:$0xff]  }
 0x18d   : > { %12235 = vmatprep.mubr.bf16.mxu0 %v2649_v32  ;;  %v3018_v32 = vshrl.u32 %v14339_v62, 16  ;;  %v2939_v62 = vld [vmem:[#allocation2 + $0x78] sm:$0x1f] }
 0x18e   : > { %v2999_v29 = vsel %vm1438_vm2, %v2990_v49, %v2998_v63  ;;  %v3060_v1 = vshrl.u32 %v2939_v62, 16  ;;  %v3063_v34 = vshll.u32 %v2939_v62, 16  ;;  %v3094_v49 = vshrl.u32 %v2941_v61, 16 }
 0x18f   : > { %v3097_v63 = vshll.u32 %v2941_v61, 16  ;;  %v3111_v62 = vshrl.u32 %v2942_v7, 16  ;;  %v2947_v7 = vld [vmem:[#allocation2 + $0xf8] sm:$0x1f] }
 0x190   : > { %v3062_v11 = vrot.slane %v3060_v1, 4  ;;  %v3065_v50 = vrot.slane %v3063_v34, 5  ;;  %v3116_v1 = vrot.slane %v3114_v16, 5  ;;  %v3122_v34 = vrot.slane %v3120_v18, 4 }
 0x191   : > { %v3099_v8 = vrot.slane %v3097_v63, 5 }
 0x192   : > { %v3066_v2 = vor.u32 %v3065_v50, %v3062_v11  ;;  %v3140_v11 = vshll.u32 %v14401_v5, 16 }
 0x194   : > { %12236 = vmatmul.mubr.bf16.gmra.mrb[24].mxu0 %v2652_v59  ;;  %v3020_v59 = vrot.slane %v3018_v32, 4  ;;  %v3071_v32 = vrot.slane %v3069_v38, 4  ;;  %v3067_v21 = vsel %vm1438_vm2, %v3058_v17, %v3066_v2 }
 0x195   : > { %12239 = vmatprep.mubr.bf16.mxu0 %v2655_v52  ;;  %v3023_v52 = vrot.slane %v3021_v39, 5  ;;  %v3074_v39 = vrot.slane %v3072_v26, 5 }
 0x197   : > { %v3024_v3 = vor.u32 %v3023_v52, %v3020_v59  ;;  %v13498_v59 = vld [vmem:[%s15575_s1 + $0x1a8] sm:$0xff]   ;;  %v3075_v52 = vor.u32 %v3074_v39, %v3071_v32 }
 0x199   : > { %v3033_v51 = vsel %vm1438_vm2, %v3024_v3, %v3032_v57  ;;  %v3108_v57 = vrot.slane %v3106_v14, 5 }
 0x19b   : > { %v3109_v6 = vor.u32 %v3108_v57, %v3105_v42  ;;  %v3205_v57 = vshrl.u32 %v14422_v24, 16 }
 0x19c   : > { %12240 = vmatmul.mubr.bf16.gmra.mrb[28].mxu0 %v2658_v9  ;;  %v3045_v9 = vrot.slane %v3043_v4, 4 }
 0x19d   : > { %12259 = vmatprep.mubr.bf16.mxu0 %v2965_v22  ;;  %v3080_v22 = vshll.u32 %v2940_v40, 16  ;;  %v2944_v40 = vld [vmem:[#allocation2 + $0xc8] sm:$0x1f] }
 0x19e   : > { %v3049_v15 = vor.u32 %v3048_v10, %v3045_v9  ;;  %v13500_v9 = vld [vmem:[%s15575_s1 + $0x1b8] sm:$0xff]   ;;  %v3145_v38 = vshrl.u32 %v2944_v40, 16  ;;  %v3148_v26 = vshll.u32 %v2944_v40, 16 }
 0x19f   : > { %v3082_v43 = vrot.slane %v3080_v22, 5  ;;  %v2945_v10 = vld [vmem:[#allocation2 + $0xd8] sm:$0x1f]  ;;  %v3157_v22 = vshll.u32 %v14404_v12, 16 }
 0x1a0   : > { %v3162_v61 = vshrl.u32 %v2945_v10, 16  ;;  %v3150_v63 = vrot.slane %v3148_v26, 5  ;;  %v3498_v26 = vld [vmem:[#allocation2 + $0x30] sm:$0xf8] }
 0x1a1   : > { %v3083_v54 = vor.u32 %v3082_v43, %v3079_v41  ;;  %v3159_v12 = vrot.slane %v3157_v22, 5  ;;  %v3171_v41 = vshrl.u32 %v14412_v37, 16  ;;  %v3174_v43 = vshll.u32 %v14412_v37, 16  ;;  %v14506_v22 = vld [vmem:[#allocation2 + $0x38] sm:$0xf] }
 0x1a2   : > { %v3164_v32 = vrot.slane %v3162_v61, 4  ;;  %v3500_v61 = vld [vmem:[#allocation2 + $0x40] sm:$0xf8] }
 0x1a3   : > { %v3084_v3 = vsel %vm1438_vm2, %v3075_v52, %v3083_v54  ;;  %v3196_v52 = vshrl.u32 %v2947_v7, 16  ;;  %v3199_v54 = vshll.u32 %v2947_v7, 16  ;;  %v3173_v53 = vrot.slane %v3171_v41, 4 }
 0x1a4   : > { %12260 = vmatmul.mubr.bf16.vlgmr.msra.gmra.mrb[0].mxu0 %v2982_v46  ;;  %v3091_v46 = vrot.slane %v3089_v31, 5  ;;  %v3142_v31 = vrot.slane %v3140_v11, 5  ;;  %v3176_v14 = vrot.slane %v3174_v43, 5 }
 0x1a5   : > { %12292 = vmatpush3.bf16.msra.mxu0 %v14397_v13  ;;  %12263 = vmatprep.mubr.bf16.mxu0 %v2999_v29  ;;  %v3040_v13 = vrot.slane %v3038_v36, 5  ;;  %v3096_v29 = vrot.slane %v3094_v49, 4  ;;  %v3147_v49 = vrot.slane %v3145_v38, 4 }
 0x1a6   : > { %12293 = vmatprep.subr.bf16.mxu0 %v13494_v47  ;;  %v3092_v33 = vor.u32 %v3091_v46, %v3088_v60  ;;  %v3182_v60 = vshll.u32 %v2946_v25, 16 }
 0x1a7   : > { %v3041_v27 = vor.u32 %v3040_v13, %v3037_v30  ;;  %v3100_v56 = vor.u32 %v3099_v8, %v3096_v29  ;;  %v3151_v46 = vor.u32 %v3150_v63, %v3147_v49  ;;  %v3188_v29 = vshrl.u32 %v14414_v0, 16 }
 0x1a8   : > { %v3191_v8 = vshll.u32 %v14414_v0, 16  ;;  %v3184_v16 = vrot.slane %v3182_v60, 5  ;;  %v3177_v0 = vor.u32 %v3176_v14, %v3173_v53  ;;  %v3554_v63 = vshrl.u32 %v14506_v22, 16  ;;  %v3502_v60 = vld [vmem:[#allocation2 + $0x50] sm:$0xf8] }
 0x1a9   : > { %12294 = vmatpush3.bf16.msra.mxu0 %v13494_v47  ;;  %v3050_v55 = vsel %vm1438_vm2, %v3041_v27, %v3049_v15  ;;  %v2943_v47 = vld [vmem:[#allocation2 + $0xb8] sm:$0x1f]  ;;  %v3101_v23 = vsel %vm1438_vm2, %v3092_v33, %v3100_v56  ;;  %v3165_v27 = vshll.u32 %v2945_v10, 16  ;;  %v14487_v15 = vld [vmem:[%s15575_s1 + $0x1c0] sm:$0xff]   ;;  %v3190_v18 = vrot.slane %v3188_v29, 4 }
 0x1aa   : > { %12295 = vmatprep.subr.bf16.mxu0 %v13495_v20  ;;  %v3128_v36 = vshrl.u32 %v2943_v47, 16  ;;  %v3131_v4 = vshll.u32 %v2943_v47, 16  ;;  %v3198_v33 = vrot.slane %v3196_v52, 4  ;;  %v3201_v56 = vrot.slane %v3199_v54, 5  ;;  %v3504_v53 = vld [vmem:[#allocation2 + $0x60] sm:$0xf8] }
 0x1ab   : > { %v3167_v39 = vrot.slane %v3165_v27, 5  ;;  %v14508_v27 = vld [vmem:[#allocation2 + $0x48] sm:$0xf]  ;;  %v3580_v14 = vshrl.u32 %v3502_v60, 16 }
 0x1ac   : > { %12264 = vmatmul.mubr.bf16.gmra.mrb[4].mxu0 %v3016_v35  ;;  %v3125_v35 = vrot.slane %v3123_v48, 5  ;;  %v3130_v30 = vrot.slane %v3128_v36, 4  ;;  %v3133_v13 = vrot.slane %v3131_v4, 5  ;;  %v3193_v48 = vrot.slane %v3191_v8, 5  ;;  %v2948_v36 = vld [vmem:[#allocation2 + $0x108] sm:$0x1f] }
 0x1ad   : > { %12267 = vmatprep.mubr.bf16.mxu0 %v3033_v51  ;;  %12296 = vmatpush3.bf16.msra.mxu0 %v13495_v20  ;;  %v3113_v20 = vrot.slane %v3111_v62, 4  ;;  %v3137_v51 = vshrl.u32 %v14401_v5, 16  ;;  %v3574_v41 = vshll.u32 %v14508_v27, 16  ;;  %v14516_v8 = vld [vmem:[#allocation2 + $0x58] sm:$0xf] }
 0x1ae   : > { %12297 = vmatprep.subr.bf16.mxu0 %v13496_v45  ;;  %v3126_v50 = vor.u32 %v3125_v35, %v3122_v34  ;;  %v3216_v34 = vshll.u32 %v2948_v36, 16  ;;  %v3194_v40 = vor.u32 %v3193_v48, %v3190_v18  ;;  %v3591_v18 = vshll.u32 %v14516_v8, 16 }
 0x1af   : > { %v3117_v44 = vor.u32 %v3116_v1, %v3113_v20  ;;  %v3139_v17 = vrot.slane %v3137_v51, 4  ;;  %v3208_v20 = vshll.u32 %v14422_v24, 16  ;;  %v3213_v1 = vshrl.u32 %v2948_v36, 16 }
 0x1b0   : > { %v3218_v11 = vrot.slane %v3216_v34, 5  ;;  %v3576_v54 = vrot.slane %v3574_v41, 4  ;;  %v3593_v34 = vrot.slane %v3591_v18, 4 }
 0x1b1   : > { %12298 = vmatpush3.bf16.msra.mxu0 %v13496_v45  ;;  %v3134_v45 = vor.u32 %v3133_v13, %v3130_v30  ;;  %v3118_v5 = vsel %vm1438_vm2, %v3109_v6, %v3117_v44  ;;  %v3207_v6 = vrot.slane %v3205_v57, 4  ;;  %v3210_v44 = vrot.slane %v3208_v20, 5 }
 0x1b2   : > { %12299 = vmatprep.subr.bf16.mxu0 %v13497_v19  ;;  %v3215_v51 = vrot.slane %v3213_v1, 4  ;;  %v3582_v57 = vrot.slane %v3580_v14, 3 }
 0x1b3   : > { %v3135_v2 = vsel %vm1438_vm2, %v3126_v50, %v3134_v45 }
 0x1b4   : > { %12268 = vmatmul.mubr.bf16.gmra.mrb[8].mxu0 %v3050_v55  ;;  %v3179_v55 = vshrl.u32 %v2946_v25, 16  ;;  %v3546_v25 = vshrl.u32 %v3498_v26, 16 }
 0x1b5   : > { %12271 = vmatprep.mubr.bf16.mxu0 %v3067_v21  ;;  %12300 = vmatpush3.bf16.msra.mxu0 %v13497_v19  ;;  %v3156_v19 = vrot.slane %v3154_v28, 4  ;;  %v3143_v21 = vor.u32 %v3142_v31, %v3139_v17  ;;  %v3219_v17 = vor.u32 %v3218_v11, %v3215_v51  ;;  %v3508_v51 = vld [vmem:[#allocation2 + $0x80] sm:$0xf8]  ;;  %v14531_v11 = vld [vmem:[#allocation2 + $0x88] sm:$0xf] }
 0x1b6   : > { %12301 = vmatprep.subr.bf16.mxu0 %v13498_v59  ;;  %v3181_v62 = vrot.slane %v3179_v55, 4  ;;  %v3548_v55 = vrot.slane %v3546_v25, 3 }
 0x1b7   : > { %v3160_v47 = vor.u32 %v3159_v12, %v3156_v19  ;;  %v3152_v37 = vsel %vm1438_vm2, %v3143_v21, %v3151_v46  ;;  %v3557_v19 = vshll.u32 %v14506_v22, 16  ;;  %v3563_v12 = vshrl.u32 %v3500_v61, 16 }
 0x1b8   : > { %v3185_v42 = vor.u32 %v3184_v16, %v3181_v62  ;;  %v3556_v46 = vrot.slane %v3554_v63, 3  ;;  %v3583_v62 = vshll.u32 %v3502_v60, 16  ;;  %v14518_v16 = vld [vmem:[#allocation2 + $0x68] sm:$0xf]  ;;  %v14542_v60 = vld [vmem:[#allocation2 + $0x98] sm:$0xf] }
 0x1b9   : > { %12302 = vmatpush3.bf16.msra.mxu0 %v13498_v59  ;;  %v3168_v59 = vor.u32 %v3167_v39, %v3164_v32  ;;  %v3566_v32 = vshll.u32 %v3500_v61, 16  ;;  %v3571_v39 = vshrl.u32 %v14508_v27, 16  ;;  %v3559_v29 = vrot.slane %v3557_v19, 4 }
 0x1ba   : > { %12303 = vmatprep.subr.bf16.mxu0 %v13499_v58  ;;  %v3186_v10 = vsel %vm1438_vm2, %v3177_v0, %v3185_v42  ;;  %v3605_v0 = vshrl.u32 %v14518_v16, 16  ;;  %v3608_v42 = vshll.u32 %v14518_v16, 16  ;;  %v3585_v20 = vrot.slane %v3583_v62, 4 }
 0x1bb   : > { %v3169_v4 = vsel %vm1438_vm2, %v3160_v47, %v3168_v59  ;;  %v3565_v47 = vrot.slane %v3563_v12, 3  ;;  %v3568_v59 = vrot.slane %v3566_v32, 4  ;;  %v3573_v52 = vrot.slane %v3571_v39, 3 }
 0x1bc   : > { %12272 = vmatmul.mubr.bf16.gmra.mrb[12].mxu0 %v3084_v3  ;;  %v14498_v3 = vld [vmem:[#allocation2 + $0x28] sm:$0xf]  ;;  %v3560_v36 = vor.u32 %v3559_v29, %v3556_v46  ;;  %v3631_v61 = vshrl.u32 %v3508_v51, 16  ;;  %v13504_v46 = vld [vmem:[%s15575_s1 + $0x1d8] sm:$0xff]   ;;  %v3512_v29 = vld [vmem:[#allocation2 + $0xa0] sm:$0xf8] }
 0x1bd   : > { %12275 = vmatprep.mubr.bf16.mxu0 %v3101_v23  ;;  %12304 = vmatpush3.bf16.msra.mxu0 %v13499_v58  ;;  %v3496_v58 = vld [vmem:[#allocation2 + $0x20] sm:$0xf8]  ;;  %v3537_v13 = vshrl.u32 %v14498_v3, 16  ;;  %v3540_v23 = vshll.u32 %v14498_v3, 16  ;;  %v3656_v14 = vshrl.u32 %v14542_v60, 16  ;;  %v3659_v62 = vshll.u32 %v14542_v60, 16 }
 0x1be   : > { %12305 = vmatprep.subr.bf16.mxu0 %v13500_v9  ;;  %v3529_v35 = vshrl.u32 %v3496_v58, 16  ;;  %v3532_v30 = vshll.u32 %v3496_v58, 16  ;;  %v3577_v58 = vor.u32 %v3576_v54, %v3573_v52  ;;  %v3633_v41 = vrot.slane %v3631_v61, 3 }
 0x1bf   : > { %v3539_v24 = vrot.slane %v3537_v13, 3  ;;  %v3542_v38 = vrot.slane %v3540_v23, 4  ;;  %v3668_v18 = vshll.u32 %v3512_v29, 16 }
 0x1c0   : > { %v3531_v50 = vrot.slane %v3529_v35, 3  ;;  %v3534_v45 = vrot.slane %v3532_v30, 4  ;;  %v13502_v35 = vld [vmem:[%s15575_s1 + $0x1c8] sm:$0xff]  }
 0x1c1   : > { %12306 = vmatpush3.bf16.msra.mxu0 %v13500_v9  ;;  %v3202_v9 = vor.u32 %v3201_v56, %v3198_v33  ;;  %v3543_v49 = vor.u32 %v3542_v38, %v3539_v24  ;;  %v3600_v33 = vshll.u32 %v3504_v53, 16  ;;  %v3569_v56 = vor.u32 %v3568_v59, %v3565_v47  ;;  %v14548_v47 = vld [vmem:[#allocation2 + $0xa8] sm:$0xf] }
 0x1c2   : > { %12339 = vmatprep.subr.bf16.mxu0 %v14487_v15  ;;  %v3535_v31 = vor.u32 %v3534_v45, %v3531_v50  ;;  %v3586_v50 = vor.u32 %v3585_v20, %v3582_v57  ;;  %v3658_v57 = vrot.slane %v3656_v14, 3  ;;  %v3514_v20 = vld [vmem:[#allocation2 + $0xb0] sm:$0xf8] }
 0x1c3   : > { %v3203_v28 = vsel %vm1438_vm2, %v3194_v40, %v3202_v9  ;;  %v3602_v23 = vrot.slane %v3600_v33, 4  ;;  %v3506_v40 = vld [vmem:[#allocation2 + $0x70] sm:$0xf8]  ;;  %v14528_v9 = vld [vmem:[#allocation2 + $0x78] sm:$0xf]  ;;  %v3676_v33 = vshll.u32 %v14548_v47, 16 }
 0x1c4   : > { %12276 = vmatmul.mubr.bf16.gmra.mrb[16].mxu0 %v3118_v5  ;;  %v3211_v5 = vor.u32 %v3210_v44, %v3207_v6  ;;  %v3544_v7 = vsel %vm569_vm1, %v3535_v31, %v3543_v49  ;;  %v3607_v6 = vrot.slane %v3605_v0, 3  ;;  %v3610_v44 = vrot.slane %v3608_v42, 4  ;;  %v13503_v31 = vld [vmem:[%s15575_s1 + $0x1d0] sm:$0xff]  }
 0x1c5   : > { %12279 = vmatprep.mubr.bf16.mxu0 %v3135_v2  ;;  %v3549_v2 = vshll.u32 %v3498_v26, 16  ;;  %v3614_v45 = vshrl.u32 %v3506_v40, 16  ;;  %v3617_v24 = vshll.u32 %v3506_v40, 16  ;;  %v3622_v38 = vshrl.u32 %v14528_v9, 16 }
 0x1c6   : > { %v3220_v43 = vsel %vm1438_vm2, %v3211_v5, %v3219_v17  ;;  %v3625_v26 = vshll.u32 %v14528_v9, 16  ;;  %v3634_v5 = vshll.u32 %v3508_v51, 16  ;;  %v3639_v17 = vshrl.u32 %v14531_v11, 16 }
 0x1c7   : > { %v3551_v21 = vrot.slane %v3549_v2, 4  ;;  %v3611_v2 = vor.u32 %v3610_v44, %v3607_v6  ;;  %v3642_v49 = vshll.u32 %v14531_v11, 16  ;;  %v3616_v63 = vrot.slane %v3614_v45, 3  ;;  %v14561_v6 = vld [vmem:[#allocation2 + $0xc8] sm:$0xf] }
 0x1c8   : > { %v3619_v19 = vrot.slane %v3617_v24, 4  ;;  %v3624_v12 = vrot.slane %v3622_v38, 3  ;;  %v3627_v32 = vrot.slane %v3625_v26, 4  ;;  %v3678_v40 = vrot.slane %v3676_v33, 4  ;;  %v13506_v44 = vld [vmem:[%s15575_s1 + $0x1e8] sm:$0xff]  }
 0x1c9   : > { %v3552_v48 = vor.u32 %v3551_v21, %v3548_v55  ;;  %v3641_v55 = vrot.slane %v3639_v17, 3  ;;  %v3644_v21 = vrot.slane %v3642_v49, 4  ;;  %v3682_v51 = vshrl.u32 %v3514_v20, 16 }
 0x1ca   : > { %v3620_v52 = vor.u32 %v3619_v19, %v3616_v63  ;;  %v3628_v54 = vor.u32 %v3627_v32, %v3624_v12  ;;  %v3518_v32 = vld [vmem:[#allocation2 + $0xd0] sm:$0xf8] }
 0x1cb   : > { %v3561_v30 = vsel %vm569_vm1, %v3552_v48, %v3560_v36  ;;  %v3673_v48 = vshrl.u32 %v14548_v47, 16  ;;  %v3684_v49 = vrot.slane %v3682_v51, 3  ;;  %v3719_v14 = vshll.u32 %v3518_v32, 16  ;;  %v3524_v51 = vld [vmem:[#allocation2 + $0x100] sm:$0xf8] }
 0x1cc   : > { %12280 = vmatmul.mubr.bf16.gmra.mrb[20].mxu0 %v3152_v37  ;;  %v3588_v37 = vshrl.u32 %v14516_v8, 16  ;;  %v3629_v0 = vsel %vm569_vm1, %v3620_v52, %v3628_v54 }
 0x1cd   : > { %12283 = vmatprep.mubr.bf16.mxu0 %v3169_v4  ;;  %v3597_v4 = vshrl.u32 %v3504_v53, 16 }
 0x1ce   : > { %v3590_v1 = vrot.slane %v3588_v37, 3  ;;  %v3665_v37 = vshrl.u32 %v3512_v29, 16  ;;  %v14577_v29 = vld [vmem:[#allocation2 + $0xe8] sm:$0xf] }
 0x1cf   : > { %v3599_v13 = vrot.slane %v3597_v4, 3  ;;  %v3645_v4 = vor.u32 %v3644_v21, %v3641_v55  ;;  %v14574_v55 = vld [vmem:[#allocation2 + $0xd8] sm:$0xf] }
 0x1d1   : > { %v3603_v25 = vor.u32 %v3602_v23, %v3599_v13  ;;  %v3675_v13 = vrot.slane %v3673_v48, 3 }
 0x1d4   : > { %12284 = vmatmul.mubr.bf16.gmra.mrb[24].mxu0 %v3186_v10  ;;  %v3578_v10 = vsel %vm569_vm1, %v3569_v56, %v3577_v58  ;;  %v13505_v56 = vld [vmem:[%s15575_s1 + $0x1e0] sm:$0xff]  }
 0x1d5   : > { %12287 = vmatprep.mubr.bf16.mxu0 %v3203_v28  ;;  %v3594_v28 = vor.u32 %v3593_v34, %v3590_v1  ;;  %v14558_v1 = vld [vmem:[#allocation2 + $0xb8] sm:$0xf]  ;;  %v3661_v34 = vrot.slane %v3659_v62, 4  ;;  %v3724_v62 = vshrl.u32 %v14574_v55, 16 }
 0x1d6   : > { %v3690_v45 = vshrl.u32 %v14558_v1, 16  ;;  %v3693_v24 = vshll.u32 %v14558_v1, 16 }
 0x1d7   : > { %v3595_v39 = vsel %vm569_vm1, %v3586_v50, %v3594_v28  ;;  %v3685_v50 = vshll.u32 %v3514_v20, 16  ;;  %v3662_v26 = vor.u32 %v3661_v34, %v3658_v57  ;;  %v3721_v57 = vrot.slane %v3719_v14, 4 }
 0x1d8   : > { %v3692_v19 = vrot.slane %v3690_v45, 3  ;;  %v3695_v12 = vrot.slane %v3693_v24, 4  ;;  %v3726_v20 = vrot.slane %v3724_v62, 3 }
 0x1d9   : > { %v3687_v63 = vrot.slane %v3685_v50, 4  ;;  %v14596_v50 = vld [vmem:[#allocation2 + $0x108] sm:$0xf] }
 0x1da   : > { %v3696_v54 = vor.u32 %v3695_v12, %v3692_v19 }
 0x1db   : > { %v3688_v52 = vor.u32 %v3687_v63, %v3684_v49  ;;  %v3778_v49 = vshll.u32 %v14596_v50, 16 }
 0x1dc   : > { %12288 = vmatmul.mubr.bf16.gmra.mrb[28].mxu0 %v3220_v43  ;;  %v3636_v43 = vrot.slane %v3634_v5, 4  ;;  %v3707_v5 = vshrl.u32 %v14561_v6, 16 }
 0x1dd   : > { %12307 = vmatprep.mubr.bf16.mxu0 %v3544_v7  ;;  %v3612_v7 = vsel %vm569_vm1, %v3603_v25, %v3611_v2  ;;  %v3679_v25 = vor.u32 %v3678_v40, %v3675_v13  ;;  %v3710_v2 = vshll.u32 %v14561_v6, 16 }
 0x1de   : > { %v3637_v36 = vor.u32 %v3636_v43, %v3633_v41  ;;  %v3709_v43 = vrot.slane %v3707_v5, 3 }
 0x1df   : > { %v3712_v21 = vrot.slane %v3710_v2, 4  ;;  %v3770_v2 = vshll.u32 %v3524_v51, 16 }
 0x1e0   : > { %v3646_v23 = vsel %vm569_vm1, %v3637_v36, %v3645_v4  ;;  %v3741_v36 = vshrl.u32 %v14577_v29, 16  ;;  %v3744_v4 = vshll.u32 %v14577_v29, 16 }
 0x1e2   : > { %v3746_v40 = vrot.slane %v3744_v4, 4 }
 0x1e4   : > { %12308 = vmatmul.mubr.bf16.vlgmr.msra.gmra.mrb[0].mxu0 %v3561_v30  ;;  %v3670_v30 = vrot.slane %v3668_v18, 4 }
 0x1e5   : > { %12340 = vmatpush3.bf16.msra.mxu0 %v14487_v15  ;;  %12311 = vmatprep.mubr.bf16.mxu0 %v3578_v10  ;;  %v3510_v15 = vld [vmem:[#allocation2 + $0x90] sm:$0xf8]  ;;  %v3516_v10 = vld [vmem:[#allocation2 + $0xc0] sm:$0xf8] }
 0x1e6   : > { %12341 = vmatprep.subr.bf16.mxu0 %v13502_v35  ;;  %v3648_v59 = vshrl.u32 %v3510_v15, 16  ;;  %v3651_v53 = vshll.u32 %v3510_v15, 16  ;;  %v3699_v28 = vshrl.u32 %v3516_v10, 16  ;;  %v3702_v61 = vshll.u32 %v3516_v10, 16  ;;  %v14592_v10 = vld [vmem:[#allocation2 + $0xf8] sm:$0xf] }
 0x1e8   : > { %v3650_v58 = vrot.slane %v3648_v59, 3  ;;  %v3653_v42 = vrot.slane %v3651_v53, 4  ;;  %v3704_v41 = vrot.slane %v3702_v61, 4  ;;  %v13508_v59 = vld [vmem:[%s15575_s1 + $0x1f8] sm:$0xff]   ;;  %v3716_v53 = vshrl.u32 %v3518_v32, 16 }
 0x1e9   : > { %12342 = vmatpush3.bf16.msra.mxu0 %v13502_v35  ;;  %v3667_v35 = vrot.slane %v3665_v37, 3  ;;  %v3727_v37 = vshll.u32 %v14574_v55, 16 }
 0x1ea   : > { %12343 = vmatprep.subr.bf16.mxu0 %v13503_v31  ;;  %v3654_v38 = vor.u32 %v3653_v42, %v3650_v58  ;;  %v14589_v58 = vld [vmem:[%s15575_s1 + $0x200] sm:$0xff]   ;;  %v3718_v42 = vrot.slane %v3716_v53, 3 }
 0x1eb   : > { %v3671_v17 = vor.u32 %v3670_v30, %v3667_v35  ;;  %v3729_v34 = vrot.slane %v3727_v37, 4  ;;  %v3522_v35 = vld [vmem:[#allocation2 + $0xf0] sm:$0xf8] }
 0x1ec   : > { %12312 = vmatmul.mubr.bf16.gmra.mrb[4].mxu0 %v3595_v39  ;;  %v3663_v15 = vsel %vm569_vm1, %v3654_v38, %v3662_v26  ;;  %v3701_v39 = vrot.slane %v3699_v28, 3  ;;  %v3750_v45 = vshrl.u32 %v3522_v35, 16  ;;  %v3753_v24 = vshll.u32 %v3522_v35, 16 }
 0x1ed   : > { %12315 = vmatprep.mubr.bf16.mxu0 %v3612_v7  ;;  %12344 = vmatpush3.bf16.msra.mxu0 %v13503_v31  ;;  %v13507_v31 = vld [vmem:[%s15575_s1 + $0x1f0] sm:$0xff]   ;;  %v3680_v7 = vsel %vm569_vm1, %v3671_v17, %v3679_v25  ;;  %v3758_v38 = vshrl.u32 %v14592_v10, 16  ;;  %v3761_v26 = vshll.u32 %v14592_v10, 16  ;;  %v3722_v28 = vor.u32 %v3721_v57, %v3718_v42  ;;  %v14610_v57 = vld [vmem:[#allocation2 + $0x20] sm:$0xf0] }
 0x1ee   : > { %12345 = vmatprep.subr.bf16.mxu0 %v13504_v46  ;;  %v3705_v33 = vor.u32 %v3704_v41, %v3701_v39  ;;  %v3730_v61 = vor.u32 %v3729_v34, %v3726_v20  ;;  %v3767_v25 = vshrl.u32 %v3524_v51, 16  ;;  %v3752_v63 = vrot.slane %v3750_v45, 3  ;;  %v3526_v41 = vld [vmem:[#allocation2 + $0x110] sm:$0xf8]  ;;  %v13517_v51 = vld [vmem:[#allocation3 + $0x40] sm:$0xff]   ;;  %v13518_v45 = vld [vmem:[#allocation3 + $0x48] sm:$0xff]  }
 0x1ef   : > { %v3755_v19 = vrot.slane %v3753_v24, 4  ;;  %v3760_v12 = vrot.slane %v3758_v38, 3  ;;  %v3763_v32 = vrot.slane %v3761_v26, 4  ;;  %v3784_v53 = vshrl.u32 %v3526_v41, 16  ;;  %12435 = vmatprep.subr.bf16.mxu1 %v13517_v51 }
 0x1f0   : > { %v3787_v14 = vshll.u32 %v3526_v41, 16  ;;  %v4122_v35 = vrot.slane %v14610_v57, 4  ;;  %v4126_v38 = vrot.slane %v14506_v22, 4  ;;  %12436 = vmatpush3.bf16.msra.mxu1 %v13517_v51  ;;  %v4141_v41 = vrot.slane %v14531_v11, 4 }
 0x1f1   : > { %12346 = vmatpush3.bf16.msra.mxu0 %v13504_v46  ;;  %v3520_v46 = vld [vmem:[#allocation2 + $0xe0] sm:$0xf8]  ;;  %v3786_v4 = vrot.slane %v3784_v53, 3  ;;  %12437 = vmatprep.subr.bf16.mxu1 %v13518_v45 }
 0x1f2   : > { %12347 = vmatprep.subr.bf16.mxu0 %v13505_v56  ;;  %v3733_v18 = vshrl.u32 %v3520_v46, 16  ;;  %v3736_v48 = vshll.u32 %v3520_v46, 16  ;;  %v3780_v46 = vrot.slane %v3778_v49, 4  ;;  %v4135_v49 = vrot.slane %v14518_v16, 4 }
 0x1f4   : > { %12316 = vmatmul.mubr.bf16.gmra.mrb[8].mxu0 %v3629_v0  ;;  %v3697_v0 = vsel %vm569_vm1, %v3688_v52, %v3696_v54  ;;  %v3735_v30 = vrot.slane %v3733_v18, 3  ;;  %v3738_v13 = vrot.slane %v3736_v48, 4  ;;  %v3756_v52 = vor.u32 %v3755_v19, %v3752_v63  ;;  %12438 = vmatpush3.bf16.msra.mxu1 %v13518_v45  ;;  %v13511_v63 = vld [vmem:[%s15575_s1 + $0x210] sm:$0xff]   ;;  %v4444_v45 = vld [vmem:[#allocation2 + $0x28] sm:$0x1f] }
 0x1f5   : > { %12319 = vmatprep.mubr.bf16.mxu0 %v3646_v23  ;;  %12348 = vmatpush3.bf16.msra.mxu0 %v13505_v56  ;;  %v3713_v56 = vor.u32 %v3712_v21, %v3709_v43  ;;  %v3743_v23 = vrot.slane %v3741_v36, 3  ;;  %v3769_v43 = vrot.slane %v3767_v25, 3  ;;  %v3764_v54 = vor.u32 %v3763_v32, %v3760_v12  ;;  %v13510_v25 = vld [vmem:[%s15575_s1 + $0x208] sm:$0xff]   ;;  %v14643_v12 = vld [vmem:[#allocation2 + $0x70] sm:$0xf0] }
 0x1f6   : > { %12349 = vmatprep.subr.bf16.mxu0 %v13506_v44  ;;  %v3739_v5 = vor.u32 %v3738_v13, %v3735_v30  ;;  %v4123_v30 = vrot.slane %v14498_v3, 4  ;;  %v4129_v3 = vrot.slane %v14508_v27, 4  ;;  %v4132_v27 = vrot.slane %v14516_v8, 4  ;;  %v13512_v8 = vld [vmem:[%s15575_s1 + $0x218] sm:$0xff]   ;;  %v14648_v32 = vld [vmem:[#allocation2 + $0x80] sm:$0xf0] }
 0x1f7   : > { %v3747_v17 = vor.u32 %v3746_v40, %v3743_v23  ;;  %v3765_v36 = vsel %vm569_vm1, %v3756_v52, %v3764_v54  ;;  %v14616_v40 = vld [vmem:[#allocation2 + $0x30] sm:$0xf0]  ;;  %v4137_v16 = vrot.slane %v14643_v12, 4  ;;  %v14664_v52 = vld [vmem:[#allocation2 + $0xa0] sm:$0xf0]  ;;  %v4144_v54 = vrot.slane %v14542_v60, 4 }
 0x1f8   : > { %v4124_v23 = vsel %vm922_vm0, %v4122_v35, %v4123_v30  ;;  %v4125_v24 = vrot.slane %v14616_v40, 4  ;;  %v4146_v53 = vrot.slane %v14664_v52, 4  ;;  %v13516_v60 = vld [vmem:[%s15575_s1 + $0x238] sm:$0xff]  }
 0x1f9   : > { %12350 = vmatpush3.bf16.msra.mxu0 %v13506_v44  ;;  %v3714_v44 = vsel %vm569_vm1, %v3705_v33, %v3713_v56  ;;  %v3748_v39 = vsel %vm569_vm1, %v3739_v5, %v3747_v17  ;;  %v3789_v33 = vrot.slane %v3787_v14, 4  ;;  %v14626_v17 = vld [vmem:[#allocation2 + $0x50] sm:$0xf0]  ;;  %v4147_v14 = vrot.slane %v14548_v47, 4 }
 0x1fa   : > { %12351 = vmatprep.subr.bf16.mxu0 %v13507_v31  ;;  %v4131_v22 = vrot.slane %v14626_v17, 4 }
 0x1fb   : > { %v3790_v20 = vor.u32 %v3789_v33, %v3786_v4  ;;  %v4150_v4 = vrot.slane %v14558_v1, 4  ;;  %v4156_v1 = vrot.slane %v14574_v55, 4  ;;  %v4461_v55 = vshrl.u32 %v14610_v57, 16 }
 0x1fc   : > { %12320 = vmatmul.mubr.bf16.gmra.mrb[12].mxu0 %v3663_v15  ;;  %v3731_v15 = vsel %vm569_vm1, %v3722_v28, %v3730_v61  ;;  %v13519_v28 = vld [vmem:[#allocation3 + $0x50] sm:$0xff]   ;;  %v4127_v61 = vsel %vm922_vm0, %v4125_v24, %v4126_v38  ;;  %v4133_v19 = vsel %vm922_vm0, %v4131_v22, %v4132_v27  ;;  %v14700_v24 = vld [vmem:[#allocation2 + $0x100] sm:$0xf0]  ;;  %v4445_v22 = vld [vmem:[#allocation2 + $0x38] sm:$0x1f] }
 0x1fd   : > { %12323 = vmatprep.mubr.bf16.mxu0 %v3680_v7  ;;  %12352 = vmatpush3.bf16.msra.mxu0 %v13507_v31  ;;  %v3775_v31 = vshrl.u32 %v14596_v50, 16  ;;  %v3772_v7 = vrot.slane %v3770_v2, 4  ;;  %v14631_v2 = vld [vmem:[#allocation2 + $0x60] sm:$0xf0]  ;;  %v4463_v27 = vrot.slane %v4461_v55, 4 }
 0x1fe   : > { %12353 = vmatprep.subr.bf16.mxu0 %v13508_v59  ;;  %12439 = vmatprep.subr.bf16.mxu1 %v13519_v28 }
 0x1ff   : > { %v3777_v21 = vrot.slane %v3775_v31, 3  ;;  %v3773_v18 = vor.u32 %v3772_v7, %v3769_v43  ;;  %v4134_v31 = vrot.slane %v14631_v2, 4  ;;  %12440 = vmatpush3.bf16.msra.mxu1 %v13519_v28  ;;  %v13513_v43 = vld [vmem:[%s15575_s1 + $0x220] sm:$0xff]   ;;  %v4472_v28 = vshll.u32 %v4444_v45, 16 }
 0x201   : > { %12354 = vmatpush3.bf16.msra.mxu0 %v13508_v59  ;;  %v14604_v59 = vld [vmem:[#allocation2 + $0x118] sm:$0xf]  ;;  %v3781_v48 = vor.u32 %v3780_v46, %v3777_v21  ;;  %v14659_v46 = vld [vmem:[#allocation2 + $0x90] sm:$0xf0] }
 0x202   : > { %12387 = vmatprep.subr.bf16.mxu0 %v14589_v58  ;;  %v3792_v62 = vshrl.u32 %v14604_v59, 16  ;;  %v3795_v37 = vshll.u32 %v14604_v59, 16  ;;  %v4143_v11 = vrot.slane %v14659_v46, 4 }
 0x203   : > { %v3782_v42 = vsel %vm569_vm1, %v3773_v18, %v3781_v48  ;;  %v4148_v18 = vsel %vm922_vm0, %v4146_v53, %v4147_v14  ;;  %v14675_v48 = vld [vmem:[#allocation2 + $0xb0] sm:$0xf0] }
 0x204   : > { %12324 = vmatmul.mubr.bf16.gmra.mrb[16].mxu0 %v3697_v0  ;;  %v3794_v56 = vrot.slane %v3792_v62, 3  ;;  %v3797_v0 = vrot.slane %v3795_v37, 4  ;;  %v13515_v62 = vld [vmem:[%s15575_s1 + $0x230] sm:$0xff]   ;;  %v4145_v37 = vsel %vm922_vm0, %v4143_v11, %v4144_v54  ;;  %v4149_v47 = vrot.slane %v14675_v48, 4 }
 0x205   : > { %12327 = vmatprep.mubr.bf16.mxu0 %v3714_v44  ;;  %v14618_v44 = vld [vmem:[#allocation2 + $0x40] sm:$0xf0] }
 0x206   : > { %v3798_v34 = vor.u32 %v3797_v0, %v3794_v56  ;;  %v4128_v26 = vrot.slane %v14618_v44, 4  ;;  %v4153_v56 = vrot.slane %v14561_v6, 4  ;;  %v4151_v0 = vsel %vm922_vm0, %v4149_v47, %v4150_v4 }
 0x207   : > { %v4159_v6 = vrot.slane %v14577_v29, 4  ;;  %v4469_v29 = vshrl.u32 %v4444_v45, 16 }
 0x208   : > { %v3799_v13 = vsel %vm569_vm1, %v3790_v20, %v3798_v34  ;;  %v4130_v5 = vsel %vm922_vm0, %v4128_v26, %v4129_v3  ;;  %v14688_v20 = vld [vmem:[#allocation2 + $0xd0] sm:$0xf0]  ;;  %v14690_v34 = vld [vmem:[#allocation2 + $0xe0] sm:$0xf0]  ;;  %v4162_v26 = vrot.slane %v14592_v10, 4  ;;  %v4464_v3 = vshll.u32 %v14610_v57, 16 }
 0x209   : > { %v4155_v35 = vrot.slane %v14688_v20, 4  ;;  %v4158_v30 = vrot.slane %v14690_v34, 4  ;;  %v4481_v57 = vshll.u32 %v14616_v40, 16 }
 0x20b   : > { %v4160_v51 = vsel %vm922_vm0, %v4158_v30, %v4159_v6  ;;  %v4483_v53 = vrot.slane %v4481_v57, 5  ;;  %v4529_v30 = vshrl.u32 %v14631_v2, 16  ;;  %v4532_v6 = vshll.u32 %v14631_v2, 16 }
 0x20c   : > { %12328 = vmatmul.mubr.bf16.gmra.mrb[20].mxu0 %v3731_v15  ;;  %v4138_v15 = vrot.slane %v14528_v9, 4  ;;  %v13514_v9 = vld [vmem:[%s15575_s1 + $0x228] sm:$0xff]   ;;  %v4549_v2 = vshll.u32 %v14643_v12, 16 }
 0x20d   : > { %12331 = vmatprep.mubr.bf16.mxu0 %v3748_v39  ;;  %v4140_v39 = vrot.slane %v14648_v32, 4 }
 0x20e   : > { %v4139_v7 = vsel %vm922_vm0, %v4137_v16, %v4138_v15  ;;  %v4489_v16 = vshll.u32 %v4445_v22, 16  ;;  %v4446_v15 = vld [vmem:[#allocation2 + $0x48] sm:$0x1f] }
 0x20f   : > { %v4142_v21 = vsel %vm922_vm0, %v4140_v39, %v4141_v41  ;;  %v4168_v39 = vrot.slane %v14604_v59, 4  ;;  %v4506_v11 = vshll.u32 %v4446_v15, 16 }
 0x210   : > { %v4491_v14 = vrot.slane %v4489_v16, 5 }
 0x211   : > { %v4508_v4 = vrot.slane %v4506_v11, 5 }
 0x214   : > { %12332 = vmatmul.mubr.bf16.gmra.mrb[24].mxu0 %v3765_v36  ;;  %v14680_v36 = vld [vmem:[#allocation2 + $0xc0] sm:$0xf0] }
 0x215   : > { %12335 = vmatprep.mubr.bf16.mxu0 %v3782_v42  ;;  %v4152_v33 = vrot.slane %v14680_v36, 4 }
 0x217   : > { %v4154_v42 = vsel %vm922_vm0, %v4152_v33, %v4153_v56  ;;  %v4448_v33 = vld [vmem:[#allocation2 + $0x68] sm:$0x1f] }
 0x21c   : > { %12336 = vmatmul.mubr.bf16.gmra.mrb[28].mxu0 %v3799_v13  ;;  %v4157_v13 = vsel %vm922_vm0, %v4155_v35, %v4156_v1 }
 0x21d   : > { %12355 = vmatprep.mubr.bf16.mxu0 %v4124_v23  ;;  %v14697_v23 = vld [vmem:[#allocation2 + $0xf0] sm:$0xf0] }
 0x21e   : > { %v4161_v38 = vrot.slane %v14697_v23, 4 }
 0x224   : > { %12356 = vmatmul.mubr.bf16.vlgmr.msra.gmra.mrb[0].mxu0 %v4127_v61  ;;  %v4164_v61 = vrot.slane %v14700_v24, 4 }
 0x225   : > { %12388 = vmatpush3.bf16.msra.mxu0 %v14589_v58  ;;  %12359 = vmatprep.mubr.bf16.mxu0 %v4130_v5  ;;  %v4136_v58 = vsel %vm922_vm0, %v4134_v31, %v4135_v49  ;;  %v4165_v5 = vrot.slane %v14596_v50, 4  ;;  %v4466_v31 = vrot.slane %v4464_v3, 5  ;;  %v4471_v49 = vrot.slane %v4469_v29, 4 }
 0x226   : > { %12389 = vmatprep.subr.bf16.mxu0 %v13510_v25 }
 0x227   : > { %v4166_v10 = vsel %vm922_vm0, %v4164_v61, %v4165_v5  ;;  %v4467_v41 = vor.u32 %v4466_v31, %v4463_v27  ;;  %v4449_v61 = vld [vmem:[#allocation2 + $0x78] sm:$0x1f]  ;;  %v4531_v5 = vrot.slane %v4529_v30, 4  ;;  %v4546_v31 = vshrl.u32 %v14643_v12, 16 }
 0x229   : > { %12390 = vmatpush3.bf16.msra.mxu0 %v13510_v25  ;;  %v4163_v25 = vsel %vm922_vm0, %v4161_v38, %v4162_v26 }
 0x22a   : > { %12391 = vmatprep.subr.bf16.mxu0 %v13511_v63 }
 0x22c   : > { %12360 = vmatmul.mubr.bf16.gmra.mrb[4].mxu0 %v4133_v19  ;;  %v14710_v19 = vld [vmem:[#allocation2 + $0x110] sm:$0xf0] }
 0x22d   : > { %12363 = vmatprep.mubr.bf16.mxu0 %v4136_v58  ;;  %12392 = vmatpush3.bf16.msra.mxu0 %v13511_v63  ;;  %v4474_v63 = vrot.slane %v4472_v28, 5  ;;  %v4478_v58 = vshrl.u32 %v14616_v40, 16  ;;  %v4167_v50 = vrot.slane %v14710_v19, 4 }
 0x22e   : > { %12393 = vmatprep.subr.bf16.mxu0 %v13512_v8 }
 0x22f   : > { %v4480_v54 = vrot.slane %v4478_v58, 4 }
 0x231   : > { %12394 = vmatpush3.bf16.msra.mxu0 %v13512_v8  ;;  %v4486_v8 = vshrl.u32 %v4445_v22, 16  ;;  %v4484_v56 = vor.u32 %v4483_v53, %v4480_v54  ;;  %v4451_v54 = vld [vmem:[#allocation2 + $0x98] sm:$0x1f] }
 0x232   : > { %12395 = vmatprep.subr.bf16.mxu0 %v13513_v43 }
 0x233   : > { %v4488_v40 = vrot.slane %v4486_v8, 4 }
 0x234   : > { %12364 = vmatmul.mubr.bf16.gmra.mrb[8].mxu0 %v4139_v7  ;;  %v4495_v7 = vshrl.u32 %v14618_v44, 16 }
 0x235   : > { %12367 = vmatprep.mubr.bf16.mxu0 %v4142_v21  ;;  %12396 = vmatpush3.bf16.msra.mxu0 %v13513_v43  ;;  %v4475_v43 = vor.u32 %v4474_v63, %v4471_v49  ;;  %v4498_v21 = vshll.u32 %v14618_v44, 16  ;;  %v4512_v44 = vshrl.u32 %v14626_v17, 16  ;;  %v4554_v49 = vshrl.u32 %v4449_v61, 16 }
 0x236   : > { %12397 = vmatprep.subr.bf16.mxu0 %v13514_v9  ;;  %v4557_v63 = vshll.u32 %v4449_v61, 16 }
 0x237   : > { %v4500_v47 = vrot.slane %v4498_v21, 5  ;;  %v4514_v55 = vrot.slane %v4512_v44, 4  ;;  %v4556_v21 = vrot.slane %v4554_v49, 4 }
 0x239   : > { %12398 = vmatpush3.bf16.msra.mxu0 %v13514_v9  ;;  %v4503_v9 = vshrl.u32 %v4446_v15, 16  ;;  %v4563_v15 = vshrl.u32 %v14648_v32, 16 }
 0x23a   : > { %12399 = vmatprep.subr.bf16.mxu0 %v13515_v62 }
 0x23b   : > { %v4505_v59 = vrot.slane %v4503_v9, 4  ;;  %v4559_v9 = vrot.slane %v4557_v63, 5  ;;  %v4565_v53 = vrot.slane %v4563_v15, 4  ;;  %v4455_v15 = vld [vmem:[#allocation2 + $0xd8] sm:$0x1f] }
 0x23c   : > { %12368 = vmatmul.mubr.bf16.gmra.mrb[12].mxu0 %v4145_v37  ;;  %v4476_v37 = vsel %vm1438_vm2, %v4467_v41, %v4475_v43  ;;  %v4548_v43 = vrot.slane %v4546_v31, 4  ;;  %v4631_v31 = vshrl.u32 %v14680_v36, 16 }
 0x23d   : > { %12371 = vmatprep.mubr.bf16.mxu0 %v4148_v18  ;;  %12400 = vmatpush3.bf16.msra.mxu0 %v13515_v62  ;;  %v4169_v62 = vsel %vm922_vm0, %v4167_v50, %v4168_v39  ;;  %v4447_v18 = vld [vmem:[#allocation2 + $0x58] sm:$0x1f]  ;;  %v4509_v38 = vor.u32 %v4508_v4, %v4505_v59  ;;  %v4566_v50 = vshll.u32 %v14648_v32, 16  ;;  %v4580_v32 = vshrl.u32 %v14659_v46, 16 }
 0x23e   : > { %12401 = vmatprep.subr.bf16.mxu0 %v13516_v60  ;;  %v4520_v35 = vshrl.u32 %v4447_v18, 16  ;;  %v4523_v1 = vshll.u32 %v4447_v18, 16  ;;  %v4588_v59 = vshrl.u32 %v4451_v54, 16  ;;  %v4591_v4 = vshll.u32 %v4451_v54, 16 }
 0x23f   : > { %v4582_v30 = vrot.slane %v4580_v32, 4  ;;  %v4659_v54 = vshll.u32 %v4455_v15, 16 }
 0x240   : > { %v4522_v29 = vrot.slane %v4520_v35, 4  ;;  %v4525_v28 = vrot.slane %v4523_v1, 5 }
 0x241   : > { %12402 = vmatpush3.bf16.msra.mxu0 %v13516_v60  ;;  %v4497_v60 = vrot.slane %v4495_v7, 4  ;;  %v4551_v7 = vrot.slane %v4549_v2, 5  ;;  %v4634_v2 = vshll.u32 %v14680_v36, 16  ;;  %v4648_v36 = vshrl.u32 %v14688_v20, 16 }
 0x242   : > { %v4526_v57 = vor.u32 %v4525_v28, %v4522_v29  ;;  %v4614_v29 = vshrl.u32 %v14675_v48, 16 }
 0x243   : > { %v4501_v45 = vor.u32 %v4500_v47, %v4497_v60  ;;  %v4552_v18 = vor.u32 %v4551_v7, %v4548_v43  ;;  %v4560_v60 = vor.u32 %v4559_v9, %v4556_v21  ;;  %v4583_v47 = vshll.u32 %v14659_v46, 16  ;;  %v4456_v7 = vld [vmem:[#allocation2 + $0xe8] sm:$0x1f] }
 0x244   : > { %12372 = vmatmul.mubr.bf16.gmra.mrb[16].mxu0 %v4151_v0  ;;  %v4492_v0 = vor.u32 %v4491_v14, %v4488_v40  ;;  %v4568_v40 = vrot.slane %v4566_v50, 5  ;;  %v4633_v50 = vrot.slane %v4631_v31, 4  ;;  %v4650_v32 = vrot.slane %v4648_v36, 4  ;;  %v4459_v31 = vld [vmem:[#allocation2 + $0x118] sm:$0x1f]  ;;  %v13521_v36 = vld [vmem:[#allocation3 + $0x60] sm:$0xff]  }
 0x245   : > { %12375 = vmatprep.mubr.bf16.mxu0 %v4154_v42  ;;  %v4515_v42 = vshll.u32 %v14626_v17, 16  ;;  %v4534_v17 = vrot.slane %v4532_v6, 5  ;;  %v4510_v27 = vsel %vm1438_vm2, %v4501_v45, %v4509_v38  ;;  %v4561_v1 = vsel %vm1438_vm2, %v4552_v18, %v4560_v60  ;;  %v4453_v45 = vld [vmem:[#allocation2 + $0xb8] sm:$0x1f] }
 0x246   : > { %v4493_v26 = vsel %vm1438_vm2, %v4484_v56, %v4492_v0  ;;  %v4600_v56 = vshll.u32 %v14664_v52, 16  ;;  %v4585_v6 = vrot.slane %v4583_v47, 5  ;;  %v4622_v28 = vshrl.u32 %v4453_v45, 16 }
 0x247   : > { %v4517_v3 = vrot.slane %v4515_v42, 5  ;;  %v4535_v8 = vor.u32 %v4534_v17, %v4531_v5  ;;  %v4569_v42 = vor.u32 %v4568_v40, %v4565_v53  ;;  %v4625_v61 = vshll.u32 %v4453_v45, 16  ;;  %v4454_v5 = vld [vmem:[#allocation2 + $0xc8] sm:$0x1f] }
 0x248   : > { %v4602_v46 = vrot.slane %v4600_v56, 5  ;;  %v4586_v17 = vor.u32 %v4585_v6, %v4582_v30  ;;  %v4639_v49 = vshrl.u32 %v4454_v5, 16  ;;  %v4642_v63 = vshll.u32 %v4454_v5, 16 }
 0x249   : > { %v4518_v58 = vor.u32 %v4517_v3, %v4514_v55  ;;  %v4665_v53 = vshrl.u32 %v14690_v34, 16  ;;  %v4668_v40 = vshll.u32 %v14690_v34, 16  ;;  %v4682_v34 = vshrl.u32 %v14697_v23, 16 }
 0x24a   : > { %v4644_v43 = vrot.slane %v4642_v63, 5  ;;  %v4719_v63 = vshll.u32 %v14710_v19, 16 }
 0x24b   : > { %v4527_v12 = vsel %vm1438_vm2, %v4518_v58, %v4526_v57  ;;  %v4624_v57 = vrot.slane %v4622_v28, 4  ;;  %v4670_v56 = vrot.slane %v4668_v40, 5  ;;  %v14763_v40 = vld [vmem:[#allocation2] sm:$0xf0] }
 0x24c   : > { %12376 = vmatmul.mubr.bf16.gmra.mrb[20].mxu0 %v4157_v13  ;;  %v4537_v13 = vshrl.u32 %v4448_v33, 16 }
 0x24d   : > { %12379 = vmatprep.mubr.bf16.mxu0 %v4160_v51  ;;  %v4540_v51 = vshll.u32 %v4448_v33, 16  ;;  %v4597_v33 = vshrl.u32 %v14664_v52, 16  ;;  %v4617_v52 = vshll.u32 %v14675_v48, 16 }
 0x24f   : > { %v4542_v22 = vrot.slane %v4540_v51, 5  ;;  %v4593_v51 = vrot.slane %v4591_v4, 5  ;;  %v4599_v38 = vrot.slane %v4597_v33, 4  ;;  %v4619_v58 = vrot.slane %v4617_v52, 5 }
 0x250   : > { %v4661_v4 = vrot.slane %v4659_v54, 5  ;;  %v4667_v33 = vrot.slane %v4665_v53, 4  ;;  %v13524_v54 = vld [vmem:[#allocation3 + $0x78] sm:$0xff]   ;;  %v14761_v53 = vld [vmem:[#allocation2 + $0x8] sm:$0xf] }
 0x252   : > { %v4671_v45 = vor.u32 %v4670_v56, %v4667_v33 }
 0x254   : > { %12380 = vmatmul.mubr.bf16.gmra.mrb[24].mxu0 %v4163_v25  ;;  %v4539_v25 = vrot.slane %v4537_v13, 4  ;;  %v4590_v13 = vrot.slane %v4588_v59, 4 }
 0x255   : > { %12383 = vmatprep.mubr.bf16.mxu0 %v4166_v10  ;;  %v4450_v10 = vld [vmem:[#allocation2 + $0x88] sm:$0x1f] }
 0x256   : > { %v4543_v16 = vor.u32 %v4542_v22, %v4539_v25  ;;  %v4571_v39 = vshrl.u32 %v4450_v10, 16  ;;  %v4574_v41 = vshll.u32 %v4450_v10, 16  ;;  %v4594_v25 = vor.u32 %v4593_v51, %v4590_v13 }
 0x257   : > { %v4603_v22 = vor.u32 %v4602_v46, %v4599_v38  ;;  %v4616_v10 = vrot.slane %v4614_v29, 4  ;;  %v4699_v46 = vshrl.u32 %v14700_v24, 16  ;;  %v4684_v29 = vrot.slane %v4682_v34, 4 }
 0x258   : > { %v4544_v11 = vsel %vm1438_vm2, %v4535_v8, %v4543_v16  ;;  %v4573_v14 = vrot.slane %v4571_v39, 4  ;;  %v4627_v8 = vrot.slane %v4625_v61, 5  ;;  %v4595_v48 = vsel %vm1438_vm2, %v4586_v17, %v4594_v25 }
 0x259   : > { %v4636_v39 = vrot.slane %v4634_v2, 5  ;;  %v4620_v21 = vor.u32 %v4619_v58, %v4616_v10  ;;  %v4701_v17 = vrot.slane %v4699_v46, 4  ;;  %v4724_v10 = vshrl.u32 %v4459_v31, 16 }
 0x25a   : > { %v4628_v9 = vor.u32 %v4627_v8, %v4624_v57  ;;  %v4727_v58 = vshll.u32 %v4459_v31, 16 }
 0x25c   : > { %12384 = vmatmul.mubr.bf16.gmra.mrb[28].mxu0 %v4169_v62  ;;  %v4576_v62 = vrot.slane %v4574_v41, 5  ;;  %v4641_v41 = vrot.slane %v4639_v49, 4  ;;  %v4629_v60 = vsel %vm1438_vm2, %v4620_v21, %v4628_v9  ;;  %v13520_v9 = vld [vmem:[#allocation3 + $0x58] sm:$0xff]  }
 0x25d   : > { %12403 = vmatprep.mubr.bf16.mxu0 %v4476_v37  ;;  %v4452_v37 = vld [vmem:[#allocation2 + $0xa8] sm:$0x1f]  ;;  %12441 = vmatprep.subr.bf16.mxu1 %v13520_v9 }
 0x25e   : > { %v4605_v0 = vshrl.u32 %v4452_v37, 16  ;;  %v4608_v44 = vshll.u32 %v4452_v37, 16  ;;  %v4577_v35 = vor.u32 %v4576_v62, %v4573_v14  ;;  %v4673_v14 = vshrl.u32 %v4456_v7, 16  ;;  %12442 = vmatpush3.bf16.msra.mxu1 %v13520_v9 }
 0x25f   : > { %v4676_v62 = vshll.u32 %v4456_v7, 16  ;;  %v4637_v37 = vor.u32 %v4636_v39, %v4633_v50  ;;  %v4645_v18 = vor.u32 %v4644_v43, %v4641_v41  ;;  %v4726_v50 = vrot.slane %v4724_v10, 4  ;;  %12443 = vmatprep.subr.bf16.mxu1 %v13521_v36 }
 0x260   : > { %v4610_v55 = vrot.slane %v4608_v44, 5  ;;  %v4578_v3 = vsel %vm1438_vm2, %v4569_v42, %v4577_v35  ;;  %v4457_v44 = vld [vmem:[#allocation2 + $0xf8] sm:$0x1f]  ;;  %v4458_v35 = vld [vmem:[#allocation2 + $0x108] sm:$0x1f]  ;;  %v4729_v39 = vrot.slane %v4727_v58, 5 }
 0x261   : > { %v4646_v42 = vsel %vm1438_vm2, %v4637_v37, %v4645_v18  ;;  %v4690_v30 = vshrl.u32 %v4457_v44, 16  ;;  %v4693_v6 = vshll.u32 %v4457_v44, 16  ;;  %v14768_v18 = vld [vmem:[#allocation3] sm:$0xff]  }
 0x262   : > { %v4730_v7 = vor.u32 %v4729_v39, %v4726_v50  ;;  %12444 = vmatpush3.bf16.msra.mxu1 %v13521_v36 }
 0x263   : > { %v4692_v28 = vrot.slane %v4690_v30, 4  ;;  %v4695_v61 = vrot.slane %v4693_v6, 5 }
 0x264   : > { %12404 = vmatmul.mubr.bf16.vlgmr.msra.gmra.mrb[0].mxu0 %v4493_v26  ;;  %v4607_v26 = vrot.slane %v4605_v0, 4  ;;  %v4678_v0 = vrot.slane %v4676_v62, 5  ;;  %v5558_v62 = vrot.slane %v14761_v53, 4 }
 0x265   : > { %12407 = vmatprep.mubr.bf16.mxu0 %v4510_v27  ;;  %v4696_v49 = vor.u32 %v4695_v61, %v4692_v28 }
 0x266   : > { %v4611_v27 = vor.u32 %v4610_v55, %v4607_v26  ;;  %v4702_v26 = vshll.u32 %v14700_v24, 16  ;;  %v4707_v55 = vshrl.u32 %v4458_v35, 16  ;;  %v4716_v24 = vshrl.u32 %v14710_v19, 16  ;;  %v13590_v19 = vld [vmem:[#allocation2] sm:$0xff] }
 0x268   : > { %v4612_v16 = vsel %vm1438_vm2, %v4603_v22, %v4611_v27  ;;  %v4704_v25 = vrot.slane %v4702_v26, 5  ;;  %v4709_v22 = vrot.slane %v4707_v55, 4 }
 0x26a   : > { %v4705_v57 = vor.u32 %v4704_v25, %v4701_v17 }
 0x26c   : > { %12408 = vmatmul.mubr.bf16.gmra.mrb[4].mxu0 %v4527_v12  ;;  %v4651_v12 = vshll.u32 %v14688_v20, 16  ;;  %v4675_v20 = vrot.slane %v4673_v14, 4  ;;  %v5557_v14 = vrot.slane %v14763_v40, 4 }
 0x26d   : > { %12411 = vmatprep.mubr.bf16.mxu0 %v4544_v11  ;;  %v4656_v11 = vshrl.u32 %v4455_v15, 16  ;;  %v4721_v15 = vrot.slane %v4719_v63, 5 }
 0x26e   : > { %v4653_v47 = vrot.slane %v4651_v12, 5  ;;  %v4679_v38 = vor.u32 %v4678_v0, %v4675_v20  ;;  %v13522_v12 = vld [vmem:[#allocation3 + $0x68] sm:$0xff]   ;;  %v5559_v37 = vsel %vm922_vm0, %v5557_v14, %v5558_v62 }
 0x26f   : > { %v4658_v59 = vrot.slane %v4656_v11, 4  ;;  %12445 = vmatprep.subr.bf16.mxu1 %v13522_v12  ;;  %v13523_v11 = vld [vmem:[#allocation3 + $0x70] sm:$0xff]   ;;  %12451 = vmatprep.mubr.bf16.mxu1 %v5559_v37 }
 0x270   : > { %v4654_v13 = vor.u32 %v4653_v47, %v4650_v32  ;;  %12446 = vmatpush3.bf16.msra.mxu1 %v13522_v12 }
 0x271   : > { %v4662_v51 = vor.u32 %v4661_v4, %v4658_v59  ;;  %12447 = vmatprep.subr.bf16.mxu1 %v13523_v11 }
 0x273   : > { %v4663_v5 = vsel %vm1438_vm2, %v4654_v13, %v4662_v51 }
 0x274   : > { %12412 = vmatmul.mubr.bf16.gmra.mrb[8].mxu0 %v4561_v1  ;;  %v4685_v1 = vshll.u32 %v14697_v23, 16  ;;  %v4680_v23 = vsel %vm1438_vm2, %v4671_v45, %v4679_v38  ;;  %12448 = vmatpush3.bf16.msra.mxu1 %v13523_v11 }
 0x275   : > { %12415 = vmatprep.mubr.bf16.mxu0 %v4578_v3  ;;  %v4710_v3 = vshll.u32 %v4458_v35, 16  ;;  %12449 = vmatprep.subr.bf16.mxu1 %v13524_v54 }
 0x276   : > { %v4687_v52 = vrot.slane %v4685_v1, 5 }
 0x277   : > { %v4712_v27 = vrot.slane %v4710_v3, 5 }
 0x278   : > { %v4688_v2 = vor.u32 %v4687_v52, %v4684_v29  ;;  %12450 = vmatpush3.bf16.msra.mxu1 %v13524_v54 }
 0x279   : > { %v4713_v8 = vor.u32 %v4712_v27, %v4709_v22  ;;  %12483 = vmatprep.subr.bf16.mxu1 %v14768_v18 }
 0x27b   : > { %v4714_v41 = vsel %vm1438_vm2, %v4705_v57, %v4713_v8 }
 0x27c   : > { %12416 = vmatmul.mubr.bf16.gmra.mrb[12].mxu0 %v4595_v48  ;;  %v4697_v48 = vsel %vm1438_vm2, %v4688_v2, %v4696_v49 }
 0x27d   : > { %12419 = vmatprep.mubr.bf16.mxu0 %v4612_v16  ;;  %v4718_v16 = vrot.slane %v4716_v24, 4 }
 0x27f   : > { %v4722_v43 = vor.u32 %v4721_v15, %v4718_v16 }
 0x281   : > { %v4731_v21 = vsel %vm1438_vm2, %v4722_v43, %v4730_v7 }
 0x284   : > { %12420 = vmatmul.mubr.bf16.gmra.mrb[16].mxu0 %v4629_v60  ;;  %v14774_v60 = vld [vmem:[%s15576_s2] ss:$0 sm:$0xff] }
 0x285   : > { %12423 = vmatprep.mubr.bf16.mxu0 %v4646_v42 }
 0x28c   : > { %12424 = vmatmul.mubr.bf16.gmra.mrb[20].mxu0 %v4663_v5 }
 0x28d   : > { %12427 = vmatprep.mubr.bf16.mxu0 %v4680_v23 }
 0x294   : > { %12428 = vmatmul.mubr.bf16.gmra.mrb[24].mxu0 %v4697_v48 }
 0x295   : > { %12431 = vmatprep.mubr.bf16.mxu0 %v4714_v41 }
 0x29c   : > { %12432 = vmatmul.mubr.bf16.gmra.mrb[28].mxu0 %v4731_v21  ;;  %v13526_v21 = vld [vmem:[#allocation3 + $0x8] sm:$0xff]  }
 0x29d   : > { %10633 = vmatprep.mubr.bf16.mxu0 %v13590_v19 }
 0x337   : > { %v12405_v32 = vpop.f32.mrb[0].mxu0 }
 0x338   : > { %v5015_v47 = vadd.f32 %v12405_v32, %v14774_v60  ;;  %v4847_v59 = vpop.f32.mrb[1].mxu0  ;;  %v13527_v32 = vld [vmem:[#allocation3 + $0x10] sm:$0xff]  }
 0x339   : > { %v5013_v4 = vadd.f32 %v14774_v60, %v4847_v59  ;;  %v12406_v33 = vpop.f32.mrb[2].mxu0 }
 0x33a   : > { %v5016_v56 = vadd.f32 %v12406_v33, %v14774_v60  ;;  %v4850_v20 = vpop.f32.mrb[3].mxu0  ;;  %v5047_v44 = vmax.f32 %v5015_v47, 0.0 }
 0x33b   : > { %v5014_v0 = vadd.f32 %v14774_v60, %v4850_v20  ;;  %v5045_v35 = vmax.f32 %v5013_v4, 0.0 }
 0x33c   : > { %v5048_v42 = vmax.f32 %v5016_v56, 0.0 }
 0x33d   : > { %v5046_v34 = vmax.f32 %v5014_v0, 0.0 }
 0x33e   : > { %v5078_v1 = vpack.c.bf16 %v5048_v42, %v5047_v44 }
 0x33f   : > { %v5077_v30 = vpack.c.bf16 %v5046_v34, %v5045_v35  ;;  %v12409_v6 = vpop.f32.mrb[4].mxu0 }
 0x340   : > { %v5110_v13 = vrot.slane %v5078_v1, 4  ;;  %v5019_v51 = vadd.f32 %v12409_v6, %v14774_v60  ;;  %v4863_v45 = vpop.f32.mrb[5].mxu0 }
 0x341   : > { %v5109_v38 = vrot.slane %v5077_v30, 4  ;;  %v5017_v46 = vadd.f32 %v14774_v60, %v4863_v45  ;;  %v12410_v26 = vpop.f32.mrb[6].mxu0 }
 0x342   : > { %5143 = vst [vmem:[#allocation2 + $0x28] ss:$-4 sps:$4 sm:$0xff] %v5110_v13   ;;  %v5020_v55 = vadd.f32 %v12410_v26, %v14774_v60  ;;  %v4866_v3 = vpop.f32.mrb[7].mxu0  ;;  %v5051_v52 = vmax.f32 %v5019_v51, 0.0  ;;  %v13528_v26 = vld [vmem:[#allocation3 + $0x18] sm:$0xff]  }
 0x343   : > { %5141 = vst [vmem:[#allocation2 + $0x18] ss:$-4 sps:$4 sm:$0xff] %v5109_v38   ;;  %v5018_v29 = vadd.f32 %v14774_v60, %v4866_v3  ;;  %v5049_v61 = vmax.f32 %v5017_v46, 0.0 }
 0x344   : > { %v5052_v28 = vmax.f32 %v5020_v55, 0.0 }
 0x345   : > { %v5050_v5 = vmax.f32 %v5018_v29, 0.0 }
 0x346   : > { %v5080_v23 = vpack.c.bf16 %v5052_v28, %v5051_v52 }
 0x347   : > { %v5079_v17 = vpack.c.bf16 %v5050_v5, %v5049_v61  ;;  %v12413_v25 = vpop.f32.mrb[8].mxu0 }
 0x348   : > { %v5112_v22 = vrot.slane %v5080_v23, 4  ;;  %v5023_v27 = vadd.f32 %v12413_v25, %v14774_v60  ;;  %v4879_v31 = vpop.f32.mrb[9].mxu0  ;;  %v13529_v23 = vld [vmem:[#allocation3 + $0x20] sm:$0xff]  }
 0x349   : > { %v5111_v2 = vrot.slane %v5079_v17, 4  ;;  %v5021_v49 = vadd.f32 %v14774_v60, %v4879_v31  ;;  %v12414_v24 = vpop.f32.mrb[10].mxu0  ;;  %v14792_v48 = vld [vmem:[#allocation2 + $0x20] sm:$0xf0]  ;;  %v14796_v41 = vld [vmem:[#allocation2 + $0x28] sm:$0xf] }
 0x34a   : > { %5147 = vst [vmem:[#allocation2 + $0x48] ss:$-4 sps:$4 sm:$0xff] %v5112_v22   ;;  %v5024_v63 = vadd.f32 %v12414_v24, %v14774_v60  ;;  %v4882_v10 = vpop.f32.mrb[11].mxu0  ;;  %v14787_v58 = vld [vmem:[#allocation2 + $0x18] sm:$0xf]  ;;  %v5055_v16 = vmax.f32 %v5023_v27, 0.0 }
 0x34b   : > { %v14789_v57 = vld [vmem:[#allocation2 + $0x10] sm:$0xf0]  ;;  %5145 = vst [vmem:[#allocation2 + $0x38] ss:$-4 sps:$4 sm:$0xff] %v5111_v2   ;;  %v5022_v8 = vadd.f32 %v14774_v60, %v4882_v10  ;;  %v5561_v39 = vrot.slane %v14787_v58, 4  ;;  %v5053_v43 = vmax.f32 %v5021_v49, 0.0 }
 0x34c   : > { %v5056_v15 = vmax.f32 %v5024_v63, 0.0  ;;  %v5560_v50 = vrot.slane %v14789_v57, 4  ;;  %v5563_v36 = vrot.slane %v14792_v48, 4  ;;  %v5564_v54 = vrot.slane %v14796_v41, 4 }
 0x34d   : > { %v5054_v7 = vmax.f32 %v5022_v8, 0.0 }
 0x34e   : > { %v5082_v19 = vpack.c.bf16 %v5056_v15, %v5055_v16  ;;  %v5562_v9 = vsel %vm922_vm0, %v5560_v50, %v5561_v39  ;;  %v5565_v59 = vsel %vm922_vm0, %v5563_v36, %v5564_v54 }
 0x34f   : > { %v5081_v12 = vpack.c.bf16 %v5054_v7, %v5053_v43  ;;  %12452 = vmatmul.mubr.bf16.vlgmr.msra.gmra.mrb[0].mxu1 %v5562_v9  ;;  %v12417_v11 = vpop.f32.mrb[12].mxu0  ;;  %v13530_v9 = vld [vmem:[#allocation3 + $0x28] sm:$0xff]  }
 0x350   : > { %v5114_v14 = vrot.slane %v5082_v19, 4  ;;  %v5027_v62 = vadd.f32 %v12417_v11, %v14774_v60  ;;  %12484 = vmatpush3.bf16.msra.mxu1 %v14768_v18  ;;  %v4895_v37 = vpop.f32.mrb[13].mxu0  ;;  %12455 = vmatprep.mubr.bf16.mxu1 %v5565_v59 }
 0x351   : > { %v5113_v47 = vrot.slane %v5081_v12, 4  ;;  %v5025_v4 = vadd.f32 %v14774_v60, %v4895_v37  ;;  %v12418_v33 = vpop.f32.mrb[14].mxu0  ;;  %12485 = vmatprep.subr.bf16.mxu1 %v13526_v21  ;;  %v14805_v56 = vld [vmem:[#allocation2 + $0x48] sm:$0xf]  ;;  %v14807_v20 = vld [vmem:[#allocation2 + $0x40] sm:$0xf0] }
 0x352   : > { %5151 = vst [vmem:[#allocation2 + $0x68] ss:$-4 sps:$4 sm:$0xff] %v5114_v14   ;;  %v5028_v0 = vadd.f32 %v12418_v33, %v14774_v60  ;;  %v4898_v44 = vpop.f32.mrb[15].mxu0  ;;  %v14810_v42 = vld [vmem:[#allocation2 + $0x38] sm:$0xf]  ;;  %v5059_v30 = vmax.f32 %v5027_v62, 0.0 }
 0x353   : > { %v14812_v18 = vld [vmem:[#allocation2 + $0x30] sm:$0xf0]  ;;  %5149 = vst [vmem:[#allocation2 + $0x58] ss:$-4 sps:$4 sm:$0xff] %v5113_v47   ;;  %v5026_v35 = vadd.f32 %v14774_v60, %v4898_v44  ;;  %v5567_v1 = vrot.slane %v14810_v42, 4  ;;  %v5569_v13 = vrot.slane %v14807_v20, 4 }
 0x354   : > { %v5566_v34 = vrot.slane %v14812_v18, 4  ;;  %v5060_v6 = vmax.f32 %v5028_v0, 0.0  ;;  %v5570_v51 = vrot.slane %v14805_v56, 4  ;;  %12486 = vmatpush3.bf16.msra.mxu1 %v13526_v21  ;;  %v5057_v45 = vmax.f32 %v5025_v4, 0.0 }
 0x355   : > { %v5058_v38 = vmax.f32 %v5026_v35, 0.0  ;;  %12487 = vmatprep.subr.bf16.mxu1 %v13527_v32 }
 0x356   : > { %v5568_v46 = vsel %vm922_vm0, %v5566_v34, %v5567_v1  ;;  %v5084_v55 = vpack.c.bf16 %v5060_v6, %v5059_v30  ;;  %v5571_v52 = vsel %vm922_vm0, %v5569_v13, %v5570_v51 }
 0x357   : > { %v5083_v3 = vpack.c.bf16 %v5058_v38, %v5057_v45  ;;  %12456 = vmatmul.mubr.bf16.gmra.mrb[4].mxu1 %v5568_v46  ;;  %v12421_v29 = vpop.f32.mrb[16].mxu0 }
 0x358   : > { %v5116_v28 = vrot.slane %v5084_v55, 4  ;;  %v5031_v61 = vadd.f32 %v12421_v29, %v14774_v60  ;;  %12459 = vmatprep.mubr.bf16.mxu1 %v5571_v52  ;;  %v4911_v5 = vpop.f32.mrb[17].mxu0  ;;  %12488 = vmatpush3.bf16.msra.mxu1 %v13527_v32  ;;  %v13531_v32 = vld [vmem:[#allocation3 + $0x30] sm:$0xff]   ;;  %v13532_v29 = vld [vmem:[#allocation3 + $0x38] sm:$0xff]  }
 0x359   : > { %v5115_v17 = vrot.slane %v5083_v3, 4  ;;  %v5029_v25 = vadd.f32 %v14774_v60, %v4911_v5  ;;  %v12422_v22 = vpop.f32.mrb[18].mxu0  ;;  %v14823_v27 = vld [vmem:[#allocation2 + $0x68] sm:$0xf]  ;;  %v14825_v31 = vld [vmem:[#allocation2 + $0x60] sm:$0xf0]  ;;  %12489 = vmatprep.subr.bf16.mxu1 %v13528_v26 }
 0x35a   : > { %5155 = vst [vmem:[#allocation2 + $0x88] ss:$-4 sps:$4 sm:$0xff] %v5116_v28   ;;  %v5032_v2 = vadd.f32 %v12422_v22, %v14774_v60  ;;  %v4914_v49 = vpop.f32.mrb[19].mxu0  ;;  %v14828_v24 = vld [vmem:[#allocation2 + $0x58] sm:$0xf]  ;;  %v5063_v15 = vmax.f32 %v5031_v61, 0.0 }
 0x35b   : > { %v14830_v63 = vld [vmem:[#allocation2 + $0x50] sm:$0xf0]  ;;  %5153 = vst [vmem:[#allocation2 + $0x78] ss:$-4 sps:$4 sm:$0xff] %v5115_v17   ;;  %v5030_v10 = vadd.f32 %v14774_v60, %v4914_v49  ;;  %v5573_v16 = vrot.slane %v14828_v24, 4  ;;  %v5575_v39 = vrot.slane %v14825_v31, 4 }
 0x35c   : > { %v5572_v8 = vrot.slane %v14830_v63, 4  ;;  %v5064_v50 = vmax.f32 %v5032_v2, 0.0  ;;  %v5576_v43 = vrot.slane %v14823_v27, 4  ;;  %12490 = vmatpush3.bf16.msra.mxu1 %v13528_v26  ;;  %v5061_v7 = vmax.f32 %v5029_v25, 0.0  ;;  %v14858_v22 = vld [vmem:[#allocation3 + $0x80] sm:$0xff]  }
 0x35d   : > { %v5062_v21 = vmax.f32 %v5030_v10, 0.0  ;;  %12491 = vmatprep.subr.bf16.mxu1 %v13529_v23 }
 0x35e   : > { %v5574_v19 = vsel %vm922_vm0, %v5572_v8, %v5573_v16  ;;  %v5086_v36 = vpack.c.bf16 %v5064_v50, %v5063_v15  ;;  %v5577_v54 = vsel %vm922_vm0, %v5575_v39, %v5576_v43 }
 0x35f   : > { %v5085_v12 = vpack.c.bf16 %v5062_v21, %v5061_v7  ;;  %12460 = vmatmul.mubr.bf16.gmra.mrb[8].mxu1 %v5574_v19  ;;  %v12425_v11 = vpop.f32.mrb[20].mxu0 }
 0x360   : > { %v5118_v14 = vrot.slane %v5086_v36, 4  ;;  %v5035_v62 = vadd.f32 %v12425_v11, %v14774_v60  ;;  %12463 = vmatprep.mubr.bf16.mxu1 %v5577_v54  ;;  %v4927_v37 = vpop.f32.mrb[21].mxu0  ;;  %12492 = vmatpush3.bf16.msra.mxu1 %v13529_v23 }
 0x361   : > { %v5117_v47 = vrot.slane %v5085_v12, 4  ;;  %v5033_v59 = vadd.f32 %v14774_v60, %v4927_v37  ;;  %v12426_v4 = vpop.f32.mrb[22].mxu0  ;;  %v14841_v33 = vld [vmem:[#allocation2 + $0x88] sm:$0xf]  ;;  %v14843_v0 = vld [vmem:[#allocation2 + $0x80] sm:$0xf0]  ;;  %12493 = vmatprep.subr.bf16.mxu1 %v13530_v9 }
 0x362   : > { %5159 = vst [vmem:[#allocation2 + $0xa8] ss:$-4 sps:$4 sm:$0xff] %v5118_v14   ;;  %v5036_v44 = vadd.f32 %v12426_v4, %v14774_v60  ;;  %v4930_v35 = vpop.f32.mrb[23].mxu0  ;;  %v14846_v34 = vld [vmem:[#allocation2 + $0x78] sm:$0xf]  ;;  %v5067_v51 = vmax.f32 %v5035_v62, 0.0 }
 0x363   : > { %v14848_v1 = vld [vmem:[#allocation2 + $0x70] sm:$0xf0]  ;;  %5157 = vst [vmem:[#allocation2 + $0x98] ss:$-4 sps:$4 sm:$0xff] %v5117_v47   ;;  %v5034_v30 = vadd.f32 %v14774_v60, %v4930_v35  ;;  %v5579_v13 = vrot.slane %v14846_v34, 4  ;;  %v5581_v38 = vrot.slane %v14843_v0, 4 }
 0x364   : > { %v5578_v6 = vrot.slane %v14848_v1, 4  ;;  %v5068_v45 = vmax.f32 %v5036_v44, 0.0  ;;  %v5582_v46 = vrot.slane %v14841_v33, 4  ;;  %12494 = vmatpush3.bf16.msra.mxu1 %v13530_v9  ;;  %v5065_v26 = vmax.f32 %v5033_v59, 0.0 }
 0x365   : > { %v5066_v55 = vmax.f32 %v5034_v30, 0.0  ;;  %12495 = vmatprep.subr.bf16.mxu1 %v13531_v32 }
 0x366   : > { %v5580_v3 = vsel %vm922_vm0, %v5578_v6, %v5579_v13  ;;  %v5088_v52 = vpack.c.bf16 %v5068_v45, %v5067_v51  ;;  %v5583_v5 = vsel %vm922_vm0, %v5581_v38, %v5582_v46 }
 0x367   : > { %v5087_v28 = vpack.c.bf16 %v5066_v55, %v5065_v26  ;;  %12464 = vmatmul.mubr.bf16.gmra.mrb[12].mxu1 %v5580_v3  ;;  %v12429_v61 = vpop.f32.mrb[24].mxu0 }
 0x368   : > { %v5120_v23 = vrot.slane %v5088_v52, 4  ;;  %v5039_v17 = vadd.f32 %v12429_v61, %v14774_v60  ;;  %12467 = vmatprep.mubr.bf16.mxu1 %v5583_v5  ;;  %v4943_v25 = vpop.f32.mrb[25].mxu0  ;;  %12496 = vmatpush3.bf16.msra.mxu1 %v13531_v32 }
 0x369   : > { %v5119_v2 = vrot.slane %v5087_v28, 4  ;;  %v5037_v49 = vadd.f32 %v14774_v60, %v4943_v25  ;;  %v12430_v10 = vpop.f32.mrb[26].mxu0  ;;  %v14861_v8 = vld [vmem:[#allocation2 + $0xa8] sm:$0xf]  ;;  %v14863_v16 = vld [vmem:[#allocation2 + $0xa0] sm:$0xf0]  ;;  %12497 = vmatprep.subr.bf16.mxu1 %v13532_v29 }
 0x36a   : > { %5163 = vst [vmem:[#allocation2 + $0xc8] ss:$-4 sps:$4 sm:$0xff] %v5120_v23   ;;  %v5040_v15 = vadd.f32 %v12430_v10, %v14774_v60  ;;  %v4946_v50 = vpop.f32.mrb[27].mxu0  ;;  %v14866_v39 = vld [vmem:[#allocation2 + $0x98] sm:$0xf]  ;;  %v5071_v9 = vmax.f32 %v5039_v17, 0.0 }
 0x36b   : > { %v14868_v43 = vld [vmem:[#allocation2 + $0x90] sm:$0xf0]  ;;  %5161 = vst [vmem:[#allocation2 + $0xb8] ss:$-4 sps:$4 sm:$0xff] %v5119_v2   ;;  %v5038_v7 = vadd.f32 %v14774_v60, %v4946_v50  ;;  %v5585_v19 = vrot.slane %v14866_v39, 4  ;;  %v5587_v12 = vrot.slane %v14863_v16, 4 }
 0x36c   : > { %v5584_v21 = vrot.slane %v14868_v43, 4  ;;  %v5072_v36 = vmax.f32 %v5040_v15, 0.0  ;;  %v5588_v11 = vrot.slane %v14861_v8, 4  ;;  %12498 = vmatpush3.bf16.msra.mxu1 %v13532_v29  ;;  %v5069_v54 = vmax.f32 %v5037_v49, 0.0  ;;  %v5173_v49 = vld [vmem:[#allocation2] sm:$0xf8] }
 0x36d   : > { %v5070_v14 = vmax.f32 %v5038_v7, 0.0  ;;  %12531 = vmatprep.subr.bf16.mxu1 %v14858_v22  ;;  %v5206_v7 = vshrl.u32 %v5173_v49, 16 }
 0x36e   : > { %v5586_v62 = vsel %vm922_vm0, %v5584_v21, %v5585_v19  ;;  %v5090_v37 = vpack.c.bf16 %v5072_v36, %v5071_v9  ;;  %v5589_v59 = vsel %vm922_vm0, %v5587_v12, %v5588_v11  ;;  %v5214_v21 = vshrl.u32 %v14761_v53, 16 }
 0x36f   : > { %v5089_v32 = vpack.c.bf16 %v5070_v14, %v5069_v54  ;;  %12468 = vmatmul.mubr.bf16.gmra.mrb[16].mxu1 %v5586_v62  ;;  %v12433_v47 = vpop.f32.mrb[28].mxu0  ;;  %v5217_v19 = vshll.u32 %v14761_v53, 16  ;;  %v5209_v11 = vshll.u32 %v5173_v49, 16  ;;  %v5248_v49 = vshrl.u32 %v14796_v41, 16 }
 0x370   : > { %v5122_v4 = vrot.slane %v5090_v37, 4  ;;  %v5043_v44 = vadd.f32 %v12433_v47, %v14774_v60  ;;  %12471 = vmatprep.mubr.bf16.mxu1 %v5589_v59  ;;  %v4959_v35 = vpop.f32.mrb[29].mxu0  ;;  %v5216_v47 = vrot.slane %v5214_v21, 3 }
 0x371   : > { %v5121_v30 = vrot.slane %v5089_v32, 4  ;;  %v5041_v6 = vadd.f32 %v14774_v60, %v4959_v35  ;;  %v12434_v13 = vpop.f32.mrb[30].mxu0  ;;  %v14880_v51 = vld [vmem:[#allocation2 + $0xc8] sm:$0xf]  ;;  %v14882_v45 = vld [vmem:[#allocation2 + $0xc0] sm:$0xf0] }
 0x372   : > { %5167 = vst [vmem:[#allocation2 + $0xe8] ss:$-4 sps:$4 sm:$0xff] %v5122_v4   ;;  %v5044_v38 = vadd.f32 %v12434_v13, %v14774_v60  ;;  %v4962_v46 = vpop.f32.mrb[31].mxu0  ;;  %v14885_v26 = vld [vmem:[#allocation2 + $0xb8] sm:$0xf]  ;;  %v5075_v28 = vmax.f32 %v5043_v44, 0.0 }
 0x373   : > { %v14887_v55 = vld [vmem:[#allocation2 + $0xb0] sm:$0xf0]  ;;  %5165 = vst [vmem:[#allocation2 + $0xd8] ss:$-4 sps:$4 sm:$0xff] %v5121_v30   ;;  %v5042_v3 = vadd.f32 %v14774_v60, %v4962_v46  ;;  %v5591_v52 = vrot.slane %v14885_v26, 4  ;;  %v5593_v5 = vrot.slane %v14882_v45, 4 }
 0x374   : > { %v5590_v29 = vrot.slane %v14887_v55, 4  ;;  %v5076_v61 = vmax.f32 %v5044_v38, 0.0  ;;  %v5594_v23 = vrot.slane %v14880_v51, 4  ;;  %v5073_v17 = vmax.f32 %v5041_v6, 0.0  ;;  %v5175_v30 = vld [vmem:[#allocation2 + $0x10] sm:$0xf8] }
 0x375   : > { %v5074_v25 = vmax.f32 %v5042_v3, 0.0  ;;  %v5208_v4 = vrot.slane %v5206_v7, 3  ;;  %v5211_v44 = vrot.slane %v5209_v11, 4  ;;  %v5219_v35 = vrot.slane %v5217_v19, 4  ;;  %v5177_v13 = vld [vmem:[#allocation2 + $0x20] sm:$0xf8] }
 0x376   : > { %v5592_v2 = vsel %vm922_vm0, %v5590_v29, %v5591_v52  ;;  %v5092_v10 = vpack.c.bf16 %v5076_v61, %v5075_v28  ;;  %v5595_v60 = vsel %vm922_vm0, %v5593_v5, %v5594_v23  ;;  %v5231_v38 = vshrl.u32 %v14787_v58, 16  ;;  %v5179_v19 = vld [vmem:[#allocation2 + $0x30] sm:$0xf8] }
 0x377   : > { %v5091_v15 = vpack.c.bf16 %v5074_v25, %v5073_v17  ;;  %12472 = vmatmul.mubr.bf16.gmra.mrb[20].mxu1 %v5592_v2  ;;  %v5234_v46 = vshll.u32 %v14787_v58, 16  ;;  %v5223_v3 = vshrl.u32 %v5175_v30, 16  ;;  %v5226_v29 = vshll.u32 %v5175_v30, 16 }
 0x378   : > { %v5124_v50 = vrot.slane %v5092_v10, 4  ;;  %12475 = vmatprep.mubr.bf16.mxu1 %v5595_v60  ;;  %v5212_v52 = vor.u32 %v5211_v44, %v5208_v4  ;;  %v5220_v28 = vor.u32 %v5219_v35, %v5216_v47  ;;  %v5240_v23 = vshrl.u32 %v5177_v13, 16 }
 0x379   : > { %v5123_v9 = vrot.slane %v5091_v15, 4  ;;  %v14898_v36 = vld [vmem:[#allocation2 + $0xe8] sm:$0xf]  ;;  %v14900_v12 = vld [vmem:[#allocation2 + $0xe0] sm:$0xf0]  ;;  %v5243_v17 = vshll.u32 %v5177_v13, 16 }
 0x37a   : > { %5171 = vst [vmem:[#allocation2 + $0x108] ss:$-4 sps:$4 sm:$0xff] %v5124_v50   ;;  %v14902_v54 = vld [vmem:[#allocation2 + $0xd8] sm:$0xf]  ;;  %v14904_v14 = vld [vmem:[#allocation2 + $0xd0] sm:$0xf0]  ;;  %v5221_v21 = vsel %vm569_vm1, %v5212_v52, %v5220_v28 }
 0x37b   : > { %5169 = vst [vmem:[#allocation2 + $0xf8] ss:$-4 sps:$4 sm:$0xff] %v5123_v9   ;;  %v5596_v62 = vrot.slane %v14904_v14, 4  ;;  %v5597_v37 = vrot.slane %v14902_v54, 4  ;;  %v5599_v32 = vrot.slane %v14900_v12, 4  ;;  %v5600_v53 = vrot.slane %v14898_v36, 4 }
 0x37c   : > { %v5251_v10 = vshll.u32 %v14796_v41, 16  ;;  %v5233_v58 = vrot.slane %v5231_v38, 3  ;;  %v5236_v15 = vrot.slane %v5234_v46, 4  ;;  %v5225_v60 = vrot.slane %v5223_v3, 3 }
 0x37d   : > { %v5598_v59 = vsel %vm922_vm0, %v5596_v62, %v5597_v37  ;;  %v5601_v6 = vsel %vm922_vm0, %v5599_v32, %v5600_v53  ;;  %v5228_v50 = vrot.slane %v5226_v29, 4  ;;  %v5242_v9 = vrot.slane %v5240_v23, 3  ;;  %v5181_v32 = vld [vmem:[#allocation2 + $0x40] sm:$0xf8]  ;;  %v13534_v29 = vld [vmem:[#allocation3 + $0x88] sm:$0xff]  }
 0x37e   : > { %v5245_v11 = vrot.slane %v5243_v17, 4  ;;  %v5250_v62 = vrot.slane %v5248_v49, 3  ;;  %v5253_v37 = vrot.slane %v5251_v10, 4  ;;  %v5237_v47 = vor.u32 %v5236_v15, %v5233_v58 }
 0x37f   : > { %12476 = vmatmul.mubr.bf16.gmra.mrb[24].mxu1 %v5598_v59  ;;  %v5229_v53 = vor.u32 %v5228_v50, %v5225_v60  ;;  %v5257_v59 = vshrl.u32 %v5179_v19, 16  ;;  %v5260_v41 = vshll.u32 %v5179_v19, 16  ;;  %v5265_v4 = vshrl.u32 %v14810_v42, 16 }
 0x380   : > { %12479 = vmatprep.mubr.bf16.mxu1 %v5601_v6  ;;  %v5268_v44 = vshll.u32 %v14810_v42, 16  ;;  %v5274_v35 = vshrl.u32 %v5181_v32, 16  ;;  %v5277_v30 = vshll.u32 %v5181_v32, 16  ;;  %v5282_v6 = vshrl.u32 %v14805_v56, 16 }
 0x381   : > { %v5285_v13 = vshll.u32 %v14805_v56, 16  ;;  %v5246_v38 = vor.u32 %v5245_v11, %v5242_v9  ;;  %v5254_v46 = vor.u32 %v5253_v37, %v5250_v62  ;;  %v5238_v3 = vsel %vm569_vm1, %v5229_v53, %v5237_v47 }
 0x382   : > { %v14914_v61 = vld [vmem:[#allocation2 + $0xf8] sm:$0xf]  ;;  %v14916_v5 = vld [vmem:[#allocation2 + $0xf0] sm:$0xf0]  ;;  %v5259_v52 = vrot.slane %v5257_v59, 3  ;;  %v5262_v28 = vrot.slane %v5260_v41, 4 }
 0x383   : > { %v5602_v25 = vrot.slane %v14916_v5, 4  ;;  %v5603_v2 = vrot.slane %v14914_v61, 4  ;;  %v5267_v23 = vrot.slane %v5265_v4, 3  ;;  %v5270_v17 = vrot.slane %v5268_v44, 4 }
 0x384   : > { %v5279_v49 = vrot.slane %v5277_v30, 4  ;;  %v5284_v10 = vrot.slane %v5282_v6, 3  ;;  %v5287_v42 = vrot.slane %v5285_v13, 4  ;;  %v5255_v58 = vsel %vm569_vm1, %v5246_v38, %v5254_v46  ;;  %v5187_v30 = vld [vmem:[#allocation2 + $0x70] sm:$0xf8] }
 0x385   : > { %v5604_v7 = vsel %vm922_vm0, %v5602_v25, %v5603_v2  ;;  %v5183_v25 = vld [vmem:[#allocation2 + $0x50] sm:$0xf8]  ;;  %v5276_v2 = vrot.slane %v5274_v35, 3  ;;  %v5299_v60 = vshrl.u32 %v14828_v24, 16  ;;  %v5302_v50 = vshll.u32 %v14828_v24, 16  ;;  %v13536_v24 = vld [vmem:[#allocation3 + $0x98] sm:$0xff]  }
 0x386   : > { %v5291_v56 = vshrl.u32 %v5183_v25, 16  ;;  %v5294_v15 = vshll.u32 %v5183_v25, 16  ;;  %v5263_v19 = vor.u32 %v5262_v28, %v5259_v52  ;;  %v5271_v9 = vor.u32 %v5270_v17, %v5267_v23  ;;  %v13537_v25 = vld [vmem:[#allocation3 + $0xa0] sm:$0xff]  }
 0x387   : > { %12480 = vmatmul.mubr.bf16.gmra.mrb[28].mxu1 %v5604_v7  ;;  %v5185_v7 = vld [vmem:[#allocation2 + $0x60] sm:$0xf8]  ;;  %v5280_v11 = vor.u32 %v5279_v49, %v5276_v2  ;;  %v5288_v62 = vor.u32 %v5287_v42, %v5284_v10  ;;  %v5316_v53 = vshrl.u32 %v14823_v27, 16  ;;  %v5319_v47 = vshll.u32 %v14823_v27, 16 }
 0x388   : > { %12499 = vmatprep.mubr.bf16.mxu1 %v5221_v21  ;;  %v13535_v21 = vld [vmem:[#allocation3 + $0x90] sm:$0xff]   ;;  %v5308_v37 = vshrl.u32 %v5185_v7, 16  ;;  %v5311_v32 = vshll.u32 %v5185_v7, 16  ;;  %v5296_v59 = vrot.slane %v5294_v15, 4  ;;  %v5301_v41 = vrot.slane %v5299_v60, 3  ;;  %v13538_v60 = vld [vmem:[#allocation3 + $0xa8] sm:$0xff]  }
 0x389   : > { %v5304_v4 = vrot.slane %v5302_v50, 4  ;;  %v5272_v44 = vsel %vm569_vm1, %v5263_v19, %v5271_v9  ;;  %v5289_v35 = vsel %vm569_vm1, %v5280_v11, %v5288_v62  ;;  %v5318_v38 = vrot.slane %v5316_v53, 3  ;;  %v5191_v9 = vld [vmem:[#allocation2 + $0x90] sm:$0xf8] }
 0x38a   : > { %v5310_v6 = vrot.slane %v5308_v37, 3  ;;  %v5313_v13 = vrot.slane %v5311_v32, 4  ;;  %v5321_v46 = vrot.slane %v5319_v47, 4  ;;  %v5325_v52 = vshrl.u32 %v5187_v30, 16 }
 0x38b   : > { %v5328_v28 = vshll.u32 %v5187_v30, 16  ;;  %v5333_v23 = vshrl.u32 %v14846_v34, 16  ;;  %v5336_v17 = vshll.u32 %v14846_v34, 16  ;;  %v5350_v10 = vshrl.u32 %v14841_v33, 16 }
 0x38c   : > { %v5353_v42 = vshll.u32 %v14841_v33, 16  ;;  %v5327_v50 = vrot.slane %v5325_v52, 3  ;;  %v5359_v33 = vshrl.u32 %v5191_v9, 16  ;;  %v5362_v53 = vshll.u32 %v5191_v9, 16 }
 0x38d   : > { %v5330_v7 = vrot.slane %v5328_v28, 4  ;;  %v5338_v19 = vrot.slane %v5336_v17, 4  ;;  %v5352_v62 = vrot.slane %v5350_v10, 3  ;;  %v5367_v47 = vshrl.u32 %v14866_v39, 16  ;;  %v5197_v10 = vld [vmem:[#allocation2 + $0xc0] sm:$0xf8] }
 0x38e   : > { %v5355_v37 = vrot.slane %v5353_v42, 4  ;;  %v5421_v9 = vshll.u32 %v14880_v51, 16 }
 0x38f   : > { %12500 = vmatmul.mubr.bf16.vlgmr.msra.gmra.mrb[0].mxu1 %v5238_v3  ;;  %v5189_v3 = vld [vmem:[#allocation2 + $0x80] sm:$0xf8] }
 0x390   : > { %12503 = vmatprep.mubr.bf16.mxu1 %v5255_v58  ;;  %12532 = vmatpush3.bf16.msra.mxu1 %v14858_v22  ;;  %v5293_v22 = vrot.slane %v5291_v56, 3  ;;  %v5342_v2 = vshrl.u32 %v5189_v3, 16  ;;  %v5345_v49 = vshll.u32 %v5189_v3, 16  ;;  %v5314_v58 = vor.u32 %v5313_v13, %v5310_v6 }
 0x391   : > { %12533 = vmatprep.subr.bf16.mxu1 %v13534_v29  ;;  %v5322_v56 = vor.u32 %v5321_v46, %v5318_v38  ;;  %v5384_v13 = vshrl.u32 %v14861_v8, 16  ;;  %v5387_v38 = vshll.u32 %v14861_v8, 16  ;;  %v5361_v46 = vrot.slane %v5359_v33, 3 }
 0x392   : > { %v5297_v27 = vor.u32 %v5296_v59, %v5293_v22  ;;  %v5344_v34 = vrot.slane %v5342_v2, 3  ;;  %v5347_v11 = vrot.slane %v5345_v49, 4  ;;  %v5370_v22 = vshll.u32 %v14866_v39, 16  ;;  %v5193_v59 = vld [vmem:[#allocation2 + $0xa0] sm:$0xf8]  ;;  %v13540_v39 = vld [vmem:[#allocation3 + $0xb8] sm:$0xff]  }
 0x393   : > { %v5323_v32 = vsel %vm569_vm1, %v5314_v58, %v5322_v56  ;;  %v5376_v30 = vshrl.u32 %v5193_v59, 16  ;;  %v5379_v6 = vshll.u32 %v5193_v59, 16  ;;  %v5364_v3 = vrot.slane %v5362_v53, 4 }
 0x394   : > { %12534 = vmatpush3.bf16.msra.mxu1 %v13534_v29  ;;  %v5305_v29 = vor.u32 %v5304_v4, %v5301_v41  ;;  %v13539_v41 = vld [vmem:[#allocation3 + $0xb0] sm:$0xff]   ;;  %v5331_v4 = vor.u32 %v5330_v7, %v5327_v50  ;;  %v5386_v2 = vrot.slane %v5384_v13, 3  ;;  %v5389_v49 = vrot.slane %v5387_v38, 4  ;;  %v14951_v50 = vld [vmem:[#allocation3 + $0xc0] sm:$0xff]  }
 0x395   : > { %12535 = vmatprep.subr.bf16.mxu1 %v13535_v21  ;;  %v5378_v17 = vrot.slane %v5376_v30, 3  ;;  %v5365_v8 = vor.u32 %v5364_v3, %v5361_v46  ;;  %v5410_v7 = vshrl.u32 %v5197_v10, 16  ;;  %v5201_v30 = vld [vmem:[#allocation2 + $0xe0] sm:$0xf8] }
 0x396   : > { %v5306_v15 = vsel %vm569_vm1, %v5297_v27, %v5305_v29  ;;  %v5369_v27 = vrot.slane %v5367_v47, 3  ;;  %v5372_v29 = vrot.slane %v5370_v22, 4  ;;  %v5199_v47 = vld [vmem:[#allocation2 + $0xd0] sm:$0xf8]  ;;  %v5444_v3 = vshrl.u32 %v5201_v30, 16 }
 0x397   : > { %12504 = vmatmul.mubr.bf16.gmra.mrb[4].mxu1 %v5272_v44  ;;  %v5348_v44 = vor.u32 %v5347_v11, %v5344_v34  ;;  %v5390_v11 = vor.u32 %v5389_v49, %v5386_v2 }
 0x398   : > { %12507 = vmatprep.mubr.bf16.mxu1 %v5289_v35  ;;  %12536 = vmatpush3.bf16.msra.mxu1 %v13535_v21  ;;  %v5335_v21 = vrot.slane %v5333_v23, 3  ;;  %v5356_v35 = vor.u32 %v5355_v37, %v5352_v62  ;;  %v5195_v23 = vld [vmem:[#allocation2 + $0xb0] sm:$0xf8]  ;;  %v5373_v42 = vor.u32 %v5372_v29, %v5369_v27  ;;  %v5447_v27 = vshll.u32 %v5201_v30, 16  ;;  %v6058_v30 = vld [vmem:[#allocation2 + $0x28] sm:$0x1f] }
 0x399   : > { %12537 = vmatprep.subr.bf16.mxu1 %v13536_v24  ;;  %v5393_v58 = vshrl.u32 %v5195_v23, 16  ;;  %v5396_v56 = vshll.u32 %v5195_v23, 16  ;;  %v5452_v29 = vshrl.u32 %v14898_v36, 16  ;;  %v5446_v49 = vrot.slane %v5444_v3, 3 }
 0x39a   : > { %v5357_v28 = vsel %vm569_vm1, %v5348_v44, %v5356_v35  ;;  %v5374_v62 = vsel %vm569_vm1, %v5365_v8, %v5373_v42  ;;  %v5435_v44 = vshrl.u32 %v14902_v54, 16  ;;  %v5438_v35 = vshll.u32 %v14902_v54, 16  ;;  %v6056_v54 = vld [vmem:[#allocation2 + $0x8] sm:$0x1f] }
 0x39b   : > { %v5395_v37 = vrot.slane %v5393_v58, 3  ;;  %v5454_v8 = vrot.slane %v5452_v29, 3  ;;  %v5203_v58 = vld [vmem:[#allocation2 + $0xf0] sm:$0xf8]  ;;  %v6107_v3 = vshrl.u32 %v14792_v48, 16  ;;  %v6115_v29 = vshrl.u32 %v6058_v30, 16 }
 0x39c   : > { %12538 = vmatpush3.bf16.msra.mxu1 %v13536_v24  ;;  %v5339_v24 = vor.u32 %v5338_v19, %v5335_v21  ;;  %v5413_v21 = vshll.u32 %v5197_v10, 16  ;;  %v5418_v19 = vshrl.u32 %v14880_v51, 16  ;;  %v5427_v51 = vshrl.u32 %v5199_v47, 16 }
 0x39d   : > { %12539 = vmatprep.subr.bf16.mxu1 %v13537_v25  ;;  %v5437_v23 = vrot.slane %v5435_v44, 3  ;;  %v5449_v10 = vrot.slane %v5447_v27, 4  ;;  %v6110_v27 = vshll.u32 %v14792_v48, 16 }
 0x39e   : > { %v5340_v52 = vsel %vm569_vm1, %v5331_v4, %v5339_v24  ;;  %v5415_v22 = vrot.slane %v5413_v21, 4  ;;  %v5420_v59 = vrot.slane %v5418_v19, 3  ;;  %v5430_v24 = vshll.u32 %v5199_v47, 16 }
 0x39f   : > { %12508 = vmatmul.mubr.bf16.gmra.mrb[8].mxu1 %v5306_v15  ;;  %v5401_v15 = vshrl.u32 %v14885_v26, 16  ;;  %v6084_v21 = vshll.u32 %v6056_v54, 16  ;;  %v5461_v19 = vshrl.u32 %v5203_v58, 16 }
 0x3a0   : > { %12511 = vmatprep.mubr.bf16.mxu1 %v5323_v32  ;;  %12540 = vmatpush3.bf16.msra.mxu1 %v13537_v25  ;;  %v5381_v25 = vrot.slane %v5379_v6, 4  ;;  %v5398_v32 = vrot.slane %v5396_v56, 4 }
 0x3a1   : > { %12541 = vmatprep.subr.bf16.mxu1 %v13538_v60  ;;  %v5403_v33 = vrot.slane %v5401_v15, 3 }
 0x3a2   : > { %v5382_v34 = vor.u32 %v5381_v25, %v5378_v17  ;;  %v5399_v6 = vor.u32 %v5398_v32, %v5395_v37  ;;  %v5440_v17 = vrot.slane %v5438_v35, 4 }
 0x3a4   : > { %12542 = vmatpush3.bf16.msra.mxu1 %v13538_v60  ;;  %v5404_v60 = vshll.u32 %v14885_v26, 16  ;;  %v5412_v26 = vrot.slane %v5410_v7, 3  ;;  %v5391_v4 = vsel %vm569_vm1, %v5382_v34, %v5390_v11  ;;  %v5441_v15 = vor.u32 %v5440_v17, %v5437_v23 }
 0x3a5   : > { %12543 = vmatprep.subr.bf16.mxu1 %v13539_v41  ;;  %v6081_v7 = vshrl.u32 %v6056_v54, 16  ;;  %v5469_v34 = vshrl.u32 %v14914_v61, 16  ;;  %v5472_v11 = vshll.u32 %v14914_v61, 16  ;;  %v6093_v61 = vshll.u32 %v14789_v57, 16 }
 0x3a6   : > { %v5406_v53 = vrot.slane %v5404_v60, 4  ;;  %v5416_v38 = vor.u32 %v5415_v22, %v5412_v26  ;;  %v6076_v60 = vshll.u32 %v14763_v40, 16  ;;  %v6086_v26 = vrot.slane %v6084_v21, 5  ;;  %v6057_v22 = vld [vmem:[#allocation2 + $0x18] sm:$0x1f] }
 0x3a7   : > { %12512 = vmatmul.mubr.bf16.gmra.mrb[12].mxu1 %v5340_v52  ;;  %v5429_v52 = vrot.slane %v5427_v51, 3  ;;  %v6083_v47 = vrot.slane %v6081_v7, 4  ;;  %v6098_v44 = vshrl.u32 %v6057_v22, 16  ;;  %v6101_v35 = vshll.u32 %v6057_v22, 16 }
 0x3a8   : > { %12515 = vmatprep.mubr.bf16.mxu1 %v5357_v28  ;;  %12544 = vmatpush3.bf16.msra.mxu1 %v13539_v41  ;;  %v5423_v41 = vrot.slane %v5421_v9, 4  ;;  %v5407_v13 = vor.u32 %v5406_v53, %v5403_v33  ;;  %v5432_v28 = vrot.slane %v5430_v24, 4  ;;  %v5464_v9 = vshll.u32 %v5203_v58, 16 }
 0x3a9   : > { %12545 = vmatprep.subr.bf16.mxu1 %v13540_v39  ;;  %v6078_v53 = vrot.slane %v6076_v60, 5  ;;  %v6090_v24 = vshrl.u32 %v14789_v57, 16  ;;  %v6100_v23 = vrot.slane %v6098_v44, 4  ;;  %v6103_v17 = vrot.slane %v6101_v35, 5  ;;  %v13543_v44 = vld [vmem:[#allocation3 + $0xd0] sm:$0xff]  }
 0x3aa   : > { %v5424_v46 = vor.u32 %v5423_v41, %v5420_v59  ;;  %v5408_v25 = vsel %vm569_vm1, %v5399_v6, %v5407_v13  ;;  %v5433_v56 = vor.u32 %v5432_v28, %v5429_v52  ;;  %v5463_v59 = vrot.slane %v5461_v19, 3 }
 0x3ab   : > { %v5466_v41 = vrot.slane %v5464_v9, 4  ;;  %v6087_v13 = vor.u32 %v6086_v26, %v6083_v47  ;;  %v6092_v52 = vrot.slane %v6090_v24, 4  ;;  %v6095_v28 = vrot.slane %v6093_v61, 5  ;;  %v6061_v26 = vld [vmem:[#allocation2 + $0x58] sm:$0x1f] }
 0x3ac   : > { %12546 = vmatpush3.bf16.msra.mxu1 %v13540_v39  ;;  %v5455_v39 = vshll.u32 %v14898_v36, 16  ;;  %v5425_v2 = vsel %vm569_vm1, %v5416_v38, %v5424_v46  ;;  %v6073_v36 = vshrl.u32 %v14763_v40, 16  ;;  %v5442_v32 = vsel %vm569_vm1, %v5433_v56, %v5441_v15  ;;  %v6062_v61 = vld [vmem:[#allocation2 + $0x68] sm:$0x1f] }
 0x3ad   : > { %12579 = vmatprep.subr.bf16.mxu1 %v14951_v50  ;;  %v5471_v40 = vrot.slane %v5469_v34, 3  ;;  %v5467_v38 = vor.u32 %v5466_v41, %v5463_v59  ;;  %v6109_v54 = vrot.slane %v6107_v3, 4  ;;  %v6096_v58 = vor.u32 %v6095_v28, %v6092_v52  ;;  %v13544_v52 = vld [vmem:[#allocation3 + $0xd8] sm:$0xff]  }
 0x3ae   : > { %v5457_v42 = vrot.slane %v5455_v39, 4  ;;  %v6075_v33 = vrot.slane %v6073_v36, 4  ;;  %v6118_v39 = vshll.u32 %v6058_v30, 16  ;;  %v6104_v48 = vor.u32 %v6103_v17, %v6100_v23  ;;  %v6063_v17 = vld [vmem:[#allocation2 + $0x78] sm:$0x1f] }
 0x3af   : > { %12516 = vmatmul.mubr.bf16.gmra.mrb[16].mxu1 %v5374_v62  ;;  %v5450_v62 = vor.u32 %v5449_v10, %v5446_v49  ;;  %v6112_v49 = vrot.slane %v6110_v27, 5  ;;  %v6117_v10 = vrot.slane %v6115_v29, 4  ;;  %v6124_v56 = vshrl.u32 %v14812_v18, 16 }
 0x3b0   : > { %12519 = vmatprep.mubr.bf16.mxu1 %v5391_v4  ;;  %v5458_v37 = vor.u32 %v5457_v42, %v5454_v8  ;;  %v5474_v4 = vrot.slane %v5472_v11, 4  ;;  %v6079_v6 = vor.u32 %v6078_v53, %v6075_v33  ;;  %v6120_v8 = vrot.slane %v6118_v39, 5  ;;  %v6060_v42 = vld [vmem:[#allocation2 + $0x48] sm:$0x1f] }
 0x3b1   : > { %v6127_v15 = vshll.u32 %v14812_v18, 16  ;;  %v6141_v7 = vshrl.u32 %v14807_v20, 16  ;;  %v6144_v21 = vshll.u32 %v14807_v20, 16  ;;  %v6149_v19 = vshrl.u32 %v6060_v42, 16 }
 0x3b2   : > { %v5459_v51 = vsel %vm569_vm1, %v5450_v62, %v5458_v37  ;;  %v5475_v46 = vor.u32 %v5474_v4, %v5471_v40  ;;  %v6088_v57 = vsel %vm1438_vm2, %v6079_v6, %v6087_v13  ;;  %v6152_v9 = vshll.u32 %v6060_v42, 16  ;;  %v13542_v37 = vld [vmem:[#allocation3 + $0xc8] sm:$0xff]  }
 0x3b3   : > { %v6113_v34 = vor.u32 %v6112_v49, %v6109_v54  ;;  %v6121_v11 = vor.u32 %v6120_v8, %v6117_v10  ;;  %v6105_v62 = vsel %vm1438_vm2, %v6096_v58, %v6104_v48  ;;  %v6129_v33 = vrot.slane %v6127_v15, 5 }
 0x3b4   : > { %v6143_v22 = vrot.slane %v6141_v7, 4  ;;  %v6146_v18 = vrot.slane %v6144_v21, 5  ;;  %v6151_v59 = vrot.slane %v6149_v19, 4  ;;  %v6154_v41 = vrot.slane %v6152_v9, 5 }
 0x3b5   : > { %v6122_v40 = vsel %vm1438_vm2, %v6113_v34, %v6121_v11  ;;  %v6158_v20 = vshrl.u32 %v14830_v63, 16  ;;  %v6161_v4 = vshll.u32 %v14830_v63, 16  ;;  %v6169_v24 = vshll.u32 %v6061_v26, 16  ;;  %v6065_v34 = vld [vmem:[#allocation2 + $0x98] sm:$0x1f] }
 0x3b6   : > { %v6147_v6 = vor.u32 %v6146_v18, %v6143_v22  ;;  %v6155_v13 = vor.u32 %v6154_v41, %v6151_v59  ;;  %v6183_v3 = vshrl.u32 %v6062_v61, 16  ;;  %v6186_v27 = vshll.u32 %v6062_v61, 16 }
 0x3b7   : > { %12520 = vmatmul.mubr.bf16.gmra.mrb[20].mxu1 %v5408_v25  ;;  %v5476_v25 = vsel %vm569_vm1, %v5467_v38, %v5475_v46  ;;  %v6175_v38 = vshrl.u32 %v14825_v31, 16  ;;  %v6178_v46 = vshll.u32 %v14825_v31, 16  ;;  %v6163_v29 = vrot.slane %v6161_v4, 5  ;;  %v6064_v31 = vld [vmem:[#allocation2 + $0x88] sm:$0x1f] }
 0x3b8   : > { %12523 = vmatprep.mubr.bf16.mxu1 %v5425_v2  ;;  %v6059_v2 = vld [vmem:[#allocation2 + $0x38] sm:$0x1f]  ;;  %v6171_v63 = vrot.slane %v6169_v24, 5  ;;  %v6156_v23 = vsel %vm1438_vm2, %v6147_v6, %v6155_v13  ;;  %v6188_v54 = vrot.slane %v6186_v27, 5  ;;  %v6192_v8 = vshrl.u32 %v14848_v1, 16 }
 0x3b9   : > { %v6132_v36 = vshrl.u32 %v6059_v2, 16  ;;  %v6135_v60 = vshll.u32 %v6059_v2, 16  ;;  %v6185_v2 = vrot.slane %v6183_v3, 4  ;;  %v6195_v42 = vshll.u32 %v14848_v1, 16  ;;  %v13548_v3 = vld [vmem:[#allocation3 + $0xf8] sm:$0xff]  }
 0x3ba   : > { %v6200_v58 = vshrl.u32 %v6063_v17, 16  ;;  %v6203_v48 = vshll.u32 %v6063_v17, 16  ;;  %v6209_v15 = vshrl.u32 %v14843_v0, 16  ;;  %v6220_v7 = vshll.u32 %v6064_v31, 16 }
 0x3bb   : > { %v6134_v53 = vrot.slane %v6132_v36, 4  ;;  %v6137_v47 = vrot.slane %v6135_v60, 5  ;;  %v6212_v36 = vshll.u32 %v14843_v0, 16  ;;  %v6217_v60 = vshrl.u32 %v6064_v31, 16  ;;  %v15003_v31 = vld [vmem:[#allocation3 + $0x100] sm:$0xff]  }
 0x3bc   : > { %v6189_v19 = vor.u32 %v6188_v54, %v6185_v2  ;;  %v6194_v11 = vrot.slane %v6192_v8, 4  ;;  %v6205_v1 = vrot.slane %v6203_v48, 5  ;;  %v6226_v22 = vshrl.u32 %v14868_v43, 16 }
 0x3bd   : > { %v6138_v30 = vor.u32 %v6137_v47, %v6134_v53  ;;  %v6214_v53 = vrot.slane %v6212_v36, 5  ;;  %v6219_v47 = vrot.slane %v6217_v60, 4  ;;  %v6229_v18 = vshll.u32 %v14868_v43, 16 }
 0x3be   : > { %v6234_v59 = vshrl.u32 %v6065_v34, 16  ;;  %v6237_v41 = vshll.u32 %v6065_v34, 16  ;;  %v6228_v13 = vrot.slane %v6226_v22, 4  ;;  %v6314_v22 = vshll.u32 %v14900_v12, 16 }
 0x3bf   : > { %12524 = vmatmul.mubr.bf16.gmra.mrb[24].mxu1 %v5442_v32  ;;  %v6126_v32 = vrot.slane %v6124_v56, 4  ;;  %v13545_v56 = vld [vmem:[#allocation3 + $0xe0] sm:$0xff]  }
 0x3c0   : > { %12527 = vmatprep.mubr.bf16.mxu1 %v5459_v51  ;;  %v6166_v51 = vshrl.u32 %v6061_v26, 16  ;;  %v6222_v26 = vrot.slane %v6220_v7, 5  ;;  %v6239_v43 = vrot.slane %v6237_v41, 5  ;;  %v6069_v7 = vld [vmem:[#allocation2 + $0xd8] sm:$0x1f] }
 0x3c1   : > { %v6130_v35 = vor.u32 %v6129_v33, %v6126_v32  ;;  %v13546_v32 = vld [vmem:[#allocation3 + $0xe8] sm:$0xff]   ;;  %v6211_v33 = vrot.slane %v6209_v15, 4 }
 0x3c2   : > { %v6168_v39 = vrot.slane %v6166_v51, 4  ;;  %v6223_v61 = vor.u32 %v6222_v26, %v6219_v47 }
 0x3c3   : > { %v6139_v28 = vsel %vm1438_vm2, %v6130_v35, %v6138_v30  ;;  %v6215_v24 = vor.u32 %v6214_v53, %v6211_v33  ;;  %v6246_v35 = vshll.u32 %v14863_v16, 16 }
 0x3c4   : > { %v6172_v10 = vor.u32 %v6171_v63, %v6168_v39 }
 0x3c5   : > { %v6248_v63 = vrot.slane %v6246_v35, 5  ;;  %v6316_v35 = vrot.slane %v6314_v22, 5 }
 0x3c7   : > { %12528 = vmatmul.mubr.bf16.gmra.mrb[28].mxu1 %v5476_v25  ;;  %v6180_v25 = vrot.slane %v6178_v46, 5  ;;  %v6236_v46 = vrot.slane %v6234_v59, 4 }
 0x3c8   : > { %12547 = vmatprep.mubr.bf16.mxu1 %v6088_v57  ;;  %v6177_v57 = vrot.slane %v6175_v38, 4  ;;  %v6231_v38 = vrot.slane %v6229_v18, 5 }
 0x3c9   : > { %v6240_v17 = vor.u32 %v6239_v43, %v6236_v46  ;;  %v6328_v46 = vshrl.u32 %v14916_v5, 16  ;;  %v6331_v43 = vshll.u32 %v14916_v5, 16 }
 0x3ca   : > { %v6181_v21 = vor.u32 %v6180_v25, %v6177_v57  ;;  %v6260_v57 = vshrl.u32 %v14887_v55, 16  ;;  %v6263_v25 = vshll.u32 %v14887_v55, 16 }
 0x3cc   : > { %v6190_v0 = vsel %vm1438_vm2, %v6181_v21, %v6189_v19  ;;  %v6262_v15 = vrot.slane %v6260_v57, 4  ;;  %v6265_v36 = vrot.slane %v6263_v25, 5  ;;  %v6333_v57 = vrot.slane %v6331_v43, 5  ;;  %v6628_v43 = vld [vmem:[#allocation2 + $0x60] sm:$0xf8] }
 0x3ce   : > { %v6266_v33 = vor.u32 %v6265_v36, %v6262_v15 }
 0x3cf   : > { %12548 = vmatmul.mubr.bf16.vlgmr.msra.gmra.mrb[0].mxu1 %v6105_v62  ;;  %v6197_v62 = vrot.slane %v6195_v42, 5 }
 0x3d0   : > { %12551 = vmatprep.mubr.bf16.mxu1 %v6122_v40  ;;  %12580 = vmatpush3.bf16.msra.mxu1 %v14951_v50  ;;  %v6160_v50 = vrot.slane %v6158_v20, 4  ;;  %v6066_v40 = vld [vmem:[#allocation2 + $0xa8] sm:$0x1f]  ;;  %v13547_v20 = vld [vmem:[#allocation3 + $0xf0] sm:$0xff]  }
 0x3d1   : > { %12581 = vmatprep.subr.bf16.mxu1 %v13542_v37  ;;  %v6198_v4 = vor.u32 %v6197_v62, %v6194_v11  ;;  %v6251_v30 = vshrl.u32 %v6066_v40, 16  ;;  %v6254_v6 = vshll.u32 %v6066_v40, 16  ;;  %v6294_v11 = vshrl.u32 %v14904_v14, 16 }
 0x3d2   : > { %v6164_v49 = vor.u32 %v6163_v29, %v6160_v50  ;;  %v6224_v50 = vsel %vm1438_vm2, %v6215_v24, %v6223_v61  ;;  %v6067_v29 = vld [vmem:[#allocation2 + $0xb8] sm:$0x1f]  ;;  %v6297_v62 = vshll.u32 %v14904_v14, 16  ;;  %v6618_v61 = vld [vmem:[#allocation2 + $0x10] sm:$0xf8] }
 0x3d3   : > { %v6268_v2 = vshrl.u32 %v6067_v29, 16  ;;  %v6271_v54 = vshll.u32 %v6067_v29, 16  ;;  %v6296_v41 = vrot.slane %v6294_v11, 4  ;;  %v6071_v24 = vld [vmem:[#allocation2 + $0xf8] sm:$0x1f]  ;;  %v6654_v29 = vshll.u32 %v6618_v61, 16 }
 0x3d4   : > { %12582 = vmatpush3.bf16.msra.mxu1 %v13542_v37  ;;  %v6173_v9 = vsel %vm1438_vm2, %v6164_v49, %v6172_v10  ;;  %v6202_v37 = vrot.slane %v6200_v58, 4  ;;  %v6277_v49 = vshrl.u32 %v14882_v45, 16  ;;  %v6280_v10 = vshll.u32 %v14882_v45, 16 }
 0x3d5   : > { %12583 = vmatprep.subr.bf16.mxu1 %v13543_v44  ;;  %v6270_v60 = vrot.slane %v6268_v2, 4  ;;  %v6273_v55 = vrot.slane %v6271_v54, 5  ;;  %v6299_v40 = vrot.slane %v6297_v62, 5  ;;  %v15023_v54 = vld [vmem:[#allocation2 + $0x28] sm:$0xf] }
 0x3d6   : > { %v6206_v51 = vor.u32 %v6205_v1, %v6202_v37  ;;  %v6279_v21 = vrot.slane %v6277_v49, 4  ;;  %v6282_v19 = vrot.slane %v6280_v10, 5  ;;  %v6302_v37 = vshrl.u32 %v6069_v7, 16 }
 0x3d7   : > { %12552 = vmatmul.mubr.bf16.gmra.mrb[4].mxu1 %v6139_v28  ;;  %v6256_v28 = vrot.slane %v6254_v6, 5  ;;  %v6305_v1 = vshll.u32 %v6069_v7, 16  ;;  %v6274_v53 = vor.u32 %v6273_v55, %v6270_v60  ;;  %v6656_v49 = vrot.slane %v6654_v29, 4  ;;  %v15028_v60 = vld [vmem:[#allocation2 + $0x38] sm:$0xf] }
 0x3d8   : > { %12555 = vmatprep.mubr.bf16.mxu1 %v6156_v23  ;;  %12584 = vmatpush3.bf16.msra.mxu1 %v13543_v44  ;;  %v6243_v44 = vshrl.u32 %v14863_v16, 16  ;;  %v6207_v27 = vsel %vm1438_vm2, %v6198_v4, %v6206_v51  ;;  %v6068_v16 = vld [vmem:[#allocation2 + $0xc8] sm:$0x1f]  ;;  %v6232_v23 = vor.u32 %v6231_v38, %v6228_v13  ;;  %v6283_v47 = vor.u32 %v6282_v19, %v6279_v21  ;;  %v15016_v13 = vld [vmem:[#allocation2 + $0x18] sm:$0xf] }
 0x3d9   : > { %12585 = vmatprep.subr.bf16.mxu1 %v13544_v52  ;;  %v6285_v8 = vshrl.u32 %v6068_v16, 16  ;;  %v6288_v42 = vshll.u32 %v6068_v16, 16  ;;  %v6307_v4 = vrot.slane %v6305_v1, 5  ;;  %v6275_v51 = vsel %vm1438_vm2, %v6266_v33, %v6274_v53 }
 0x3da   : > { %v6245_v39 = vrot.slane %v6243_v44, 4  ;;  %v6676_v15 = vshrl.u32 %v15023_v54, 16  ;;  %v6679_v36 = vshll.u32 %v15023_v54, 16  ;;  %v6696_v11 = vshll.u32 %v15028_v60, 16 }
 0x3db   : > { %v6290_v34 = vrot.slane %v6288_v42, 5 }
 0x3dc   : > { %12586 = vmatpush3.bf16.msra.mxu1 %v13544_v52  ;;  %v6253_v52 = vrot.slane %v6251_v30, 4  ;;  %v6249_v58 = vor.u32 %v6248_v63, %v6245_v39  ;;  %v6659_v39 = vshrl.u32 %v15016_v13, 16  ;;  %v6662_v63 = vshll.u32 %v15016_v13, 16 }
 0x3dd   : > { %12587 = vmatprep.subr.bf16.mxu1 %v13545_v56  ;;  %v6678_v1 = vrot.slane %v6676_v15, 3 }
 0x3de   : > { %v6257_v48 = vor.u32 %v6256_v28, %v6253_v52  ;;  %v6661_v10 = vrot.slane %v6659_v39, 3 }
 0x3df   : > { %12556 = vmatmul.mubr.bf16.gmra.mrb[8].mxu1 %v6173_v9  ;;  %v6287_v9 = vrot.slane %v6285_v8, 4  ;;  %v6664_v8 = vrot.slane %v6662_v63, 4  ;;  %v13550_v63 = vld [vmem:[#allocation3 + $0x108] sm:$0xff]  }
 0x3e0   : > { %12559 = vmatprep.mubr.bf16.mxu1 %v6190_v0  ;;  %12588 = vmatpush3.bf16.msra.mxu1 %v13545_v56  ;;  %v6241_v56 = vsel %vm1438_vm2, %v6232_v23, %v6240_v17  ;;  %v6258_v45 = vsel %vm1438_vm2, %v6249_v58, %v6257_v48  ;;  %v6311_v0 = vshrl.u32 %v14900_v12, 16  ;;  %v6300_v12 = vor.u32 %v6299_v40, %v6296_v41  ;;  %v6620_v23 = vld [vmem:[#allocation2 + $0x20] sm:$0xf8]  ;;  %v6622_v58 = vld [vmem:[#allocation2 + $0x30] sm:$0xf8] }
 0x3e1   : > { %12589 = vmatprep.subr.bf16.mxu1 %v13546_v32  ;;  %v6291_v26 = vor.u32 %v6290_v34, %v6287_v9  ;;  %v6330_v17 = vrot.slane %v6328_v46, 4  ;;  %v6668_v48 = vshrl.u32 %v6620_v23, 16  ;;  %v6665_v19 = vor.u32 %v6664_v8, %v6661_v10  ;;  %v15036_v40 = vld [vmem:[#allocation2 + $0x58] sm:$0xf]  ;;  %v13551_v8 = vld [vmem:[#allocation3 + $0x110] sm:$0xff]  }
 0x3e2   : > { %v6313_v44 = vrot.slane %v6311_v0, 4  ;;  %v6685_v9 = vshrl.u32 %v6622_v58, 16  ;;  %v6688_v34 = vshll.u32 %v6622_v58, 16  ;;  %v6626_v0 = vld [vmem:[#allocation2 + $0x50] sm:$0xf8]  ;;  %v6698_v41 = vrot.slane %v6696_v11, 4 }
 0x3e3   : > { %v6292_v14 = vsel %vm1438_vm2, %v6283_v47, %v6291_v26  ;;  %v6334_v55 = vor.u32 %v6333_v57, %v6330_v17  ;;  %v6670_v62 = vrot.slane %v6668_v48, 3  ;;  %v6624_v47 = vld [vmem:[#allocation2 + $0x40] sm:$0xf8]  ;;  %v15034_v26 = vld [vmem:[#allocation2 + $0x48] sm:$0xf] }
 0x3e4   : > { %12590 = vmatpush3.bf16.msra.mxu1 %v13546_v32  ;;  %v6070_v32 = vld [vmem:[#allocation2 + $0xe8] sm:$0x1f]  ;;  %v6317_v52 = vor.u32 %v6316_v35, %v6313_v44  ;;  %v6687_v22 = vrot.slane %v6685_v9, 3  ;;  %v6719_v44 = vshrl.u32 %v6626_v0, 16  ;;  %v6722_v35 = vshll.u32 %v6626_v0, 16 }
 0x3e5   : > { %12591 = vmatprep.subr.bf16.mxu1 %v13547_v20  ;;  %v6319_v18 = vshrl.u32 %v6070_v32, 16  ;;  %v6322_v59 = vshll.u32 %v6070_v32, 16  ;;  %v6681_v32 = vrot.slane %v6679_v36, 4  ;;  %v6630_v57 = vld [vmem:[#allocation2 + $0x70] sm:$0xf8] }
 0x3e6   : > { %v15049_v10 = vld [vmem:[#allocation2 + $0x78] sm:$0xf]  ;;  %v6753_v15 = vshrl.u32 %v6630_v57, 16  ;;  %v6756_v36 = vshll.u32 %v6630_v57, 16 }
 0x3e7   : > { %12560 = vmatmul.mubr.bf16.gmra.mrb[12].mxu1 %v6207_v27  ;;  %v6321_v30 = vrot.slane %v6319_v18, 4  ;;  %v6324_v6 = vrot.slane %v6322_v59, 5  ;;  %v6339_v27 = vshll.u32 %v6071_v24, 16  ;;  %v6690_v18 = vrot.slane %v6688_v34, 4  ;;  %v13552_v34 = vld [vmem:[#allocation3 + $0x118] sm:$0xff]  }
 0x3e8   : > { %12563 = vmatprep.mubr.bf16.mxu1 %v6224_v50  ;;  %12592 = vmatpush3.bf16.msra.mxu1 %v13547_v20  ;;  %v6304_v20 = vrot.slane %v6302_v37, 4  ;;  %v6651_v50 = vshrl.u32 %v6618_v61, 16  ;;  %v6713_v61 = vshll.u32 %v15034_v26, 16  ;;  %v15057_v0 = vld [vmem:[#allocation2 + $0x98] sm:$0xf] }
 0x3e9   : > { %12593 = vmatprep.subr.bf16.mxu1 %v13548_v3  ;;  %v6325_v28 = vor.u32 %v6324_v6, %v6321_v30  ;;  %v6341_v2 = vrot.slane %v6339_v27, 5  ;;  %v6727_v30 = vshrl.u32 %v15036_v40, 16  ;;  %v6730_v6 = vshll.u32 %v15036_v40, 16 }
 0x3ea   : > { %v6308_v38 = vor.u32 %v6307_v4, %v6304_v20  ;;  %v6653_v5 = vrot.slane %v6651_v50, 3  ;;  %v6682_v4 = vor.u32 %v6681_v32, %v6678_v1  ;;  %v6715_v39 = vrot.slane %v6713_v61, 4  ;;  %v6634_v1 = vld [vmem:[#allocation2 + $0x90] sm:$0xf8] }
 0x3eb   : > { %v6326_v42 = vsel %vm1438_vm2, %v6317_v52, %v6325_v28  ;;  %v6721_v52 = vrot.slane %v6719_v44, 3  ;;  %v6724_v28 = vrot.slane %v6722_v35, 4  ;;  %v6755_v32 = vrot.slane %v6753_v15, 3 }
 0x3ec   : > { %12594 = vmatpush3.bf16.msra.mxu1 %v13548_v3  ;;  %v6336_v3 = vshrl.u32 %v6071_v24, 16  ;;  %v6309_v16 = vsel %vm1438_vm2, %v6300_v12, %v6308_v38  ;;  %v6657_v21 = vor.u32 %v6656_v49, %v6653_v5  ;;  %v6710_v24 = vshrl.u32 %v15034_v26, 16 }
 0x3ed   : > { %12627 = vmatprep.subr.bf16.mxu1 %v15003_v31  ;;  %v6691_v12 = vor.u32 %v6690_v18, %v6687_v22  ;;  %v6725_v48 = vor.u32 %v6724_v28, %v6721_v52  ;;  %v6795_v61 = vshrl.u32 %v15057_v0, 16  ;;  %v6798_v44 = vshll.u32 %v15057_v0, 16 }
 0x3ee   : > { %v6338_v25 = vrot.slane %v6336_v3, 4  ;;  %v6666_v53 = vsel %vm569_vm1, %v6657_v21, %v6665_v19  ;;  %v15043_v3 = vld [vmem:[#allocation2 + $0x68] sm:$0xf]  ;;  %v6712_v29 = vrot.slane %v6710_v24, 3  ;;  %v6790_v24 = vshll.u32 %v6634_v1, 16 }
 0x3ef   : > { %12564 = vmatmul.mubr.bf16.gmra.mrb[16].mxu1 %v6241_v56  ;;  %v6671_v56 = vshll.u32 %v6620_v23, 16  ;;  %v6732_v23 = vrot.slane %v6730_v6, 4  ;;  %v6744_v5 = vshrl.u32 %v15043_v3, 16  ;;  %v6747_v49 = vshll.u32 %v15043_v3, 16 }
 0x3f0   : > { %12567 = vmatprep.mubr.bf16.mxu1 %v6258_v45  ;;  %v6342_v7 = vor.u32 %v6341_v2, %v6338_v25  ;;  %v6693_v45 = vshrl.u32 %v15028_v60, 16  ;;  %v6736_v25 = vshrl.u32 %v6628_v43, 16  ;;  %v6739_v2 = vshll.u32 %v6628_v43, 16 }
 0x3f1   : > { %v6673_v37 = vrot.slane %v6671_v56, 4  ;;  %v6716_v58 = vor.u32 %v6715_v39, %v6712_v29  ;;  %v6746_v19 = vrot.slane %v6744_v5, 3  ;;  %v6749_v9 = vrot.slane %v6747_v49, 4  ;;  %v13554_v29 = vld [vmem:[#allocation3 + $0x128] sm:$0xff]   ;;  %v15069_v5 = vld [vmem:[#allocation2 + $0xb8] sm:$0xf] }
 0x3f2   : > { %v6343_v33 = vsel %vm1438_vm2, %v6334_v55, %v6342_v7  ;;  %v6695_v59 = vrot.slane %v6693_v45, 3  ;;  %v6761_v55 = vshrl.u32 %v15049_v10, 16  ;;  %v6738_v7 = vrot.slane %v6736_v25, 3  ;;  %v13555_v49 = vld [vmem:[#allocation3 + $0x130] sm:$0xff]  }
 0x3f3   : > { %v6674_v20 = vor.u32 %v6673_v37, %v6670_v62  ;;  %v6741_v21 = vrot.slane %v6739_v2, 4  ;;  %v6632_v62 = vld [vmem:[#allocation2 + $0x80] sm:$0xf8]  ;;  %v15055_v37 = vld [vmem:[#allocation2 + $0x88] sm:$0xf]  ;;  %v6750_v18 = vor.u32 %v6749_v9, %v6746_v19  ;;  %v6797_v52 = vrot.slane %v6795_v61, 3 }
 0x3f4   : > { %v6699_v38 = vor.u32 %v6698_v41, %v6695_v59  ;;  %v6770_v59 = vshrl.u32 %v6632_v62, 16  ;;  %v6773_v41 = vshll.u32 %v6632_v62, 16  ;;  %v6800_v28 = vrot.slane %v6798_v44, 4  ;;  %v13556_v9 = vld [vmem:[#allocation3 + $0x138] sm:$0xff]   ;;  %v15075_v62 = vld [vmem:[#allocation2 + $0xc8] sm:$0xf] }
 0x3f5   : > { %v6683_v46 = vsel %vm569_vm1, %v6674_v20, %v6682_v4  ;;  %v6742_v22 = vor.u32 %v6741_v21, %v6738_v7  ;;  %v6778_v20 = vshrl.u32 %v15055_v37, 16  ;;  %v6781_v4 = vshll.u32 %v15055_v37, 16 }
 0x3f6   : > { %v6700_v17 = vsel %vm569_vm1, %v6691_v12, %v6699_v38  ;;  %v6636_v12 = vld [vmem:[#allocation2 + $0xa0] sm:$0xf8]  ;;  %v15064_v38 = vld [vmem:[#allocation2 + $0xa8] sm:$0xf]  ;;  %v6775_v43 = vrot.slane %v6773_v41, 4 }
 0x3f7   : > { %12568 = vmatmul.mubr.bf16.gmra.mrb[20].mxu1 %v6275_v51  ;;  %v6702_v51 = vshrl.u32 %v6624_v47, 16  ;;  %v6751_v6 = vsel %vm569_vm1, %v6742_v22, %v6750_v18  ;;  %v6807_v57 = vshll.u32 %v6636_v12, 16  ;;  %v6812_v25 = vshrl.u32 %v15064_v38, 16  ;;  %v15077_v22 = vld [vmem:[#allocation2 + $0xd8] sm:$0xf] }
 0x3f8   : > { %12571 = vmatprep.mubr.bf16.mxu1 %v6292_v14  ;;  %v6705_v14 = vshll.u32 %v6624_v47, 16  ;;  %v6815_v2 = vshll.u32 %v15064_v38, 16  ;;  %v6863_v44 = vshrl.u32 %v15077_v22, 16 }
 0x3f9   : > { %v6704_v27 = vrot.slane %v6702_v51, 3  ;;  %v13553_v51 = vld [vmem:[#allocation3 + $0x120] sm:$0xff]   ;;  %v6809_v7 = vrot.slane %v6807_v57, 4  ;;  %v6814_v21 = vrot.slane %v6812_v25, 3  ;;  %v15090_v57 = vld [vmem:[#allocation2 + $0xf8] sm:$0xf] }
 0x3fa   : > { %v6707_v50 = vrot.slane %v6705_v14, 4  ;;  %v6787_v14 = vshrl.u32 %v6634_v1, 16  ;;  %v6817_v19 = vrot.slane %v6815_v2, 4  ;;  %v6642_v1 = vld [vmem:[#allocation2 + $0xd0] sm:$0xf8] }
 0x3fb   : > { %v6858_v61 = vshll.u32 %v6642_v1, 16 }
 0x3fc   : > { %v6789_v39 = vrot.slane %v6787_v14, 3  ;;  %v15081_v14 = vld [vmem:[#allocation3 + $0x140] sm:$0xff]  }
 0x3ff   : > { %12572 = vmatmul.mubr.bf16.gmra.mrb[24].mxu1 %v6309_v16  ;;  %v6729_v16 = vrot.slane %v6727_v30, 3 }
 0x400   : > { %12575 = vmatprep.mubr.bf16.mxu1 %v6326_v42  ;;  %v6708_v42 = vor.u32 %v6707_v50, %v6704_v27  ;;  %v6780_v27 = vrot.slane %v6778_v20, 3  ;;  %v6783_v50 = vrot.slane %v6781_v4, 4  ;;  %v6846_v4 = vshrl.u32 %v15075_v62, 16 }
 0x401   : > { %v6733_v56 = vor.u32 %v6732_v23, %v6729_v16  ;;  %v6638_v23 = vld [vmem:[#allocation2 + $0xb0] sm:$0xf8] }
 0x402   : > { %v6717_v45 = vsel %vm569_vm1, %v6708_v42, %v6716_v58  ;;  %v6784_v42 = vor.u32 %v6783_v50, %v6780_v27  ;;  %v6824_v15 = vshll.u32 %v6638_v23, 16  ;;  %v6848_v27 = vrot.slane %v6846_v4, 3 }
 0x403   : > { %v6734_v11 = vsel %vm569_vm1, %v6725_v48, %v6733_v56  ;;  %v6801_v48 = vor.u32 %v6800_v28, %v6797_v52  ;;  %v6821_v56 = vshrl.u32 %v6638_v23, 16  ;;  %v6865_v52 = vrot.slane %v6863_v44, 3 }
 0x407   : > { %12576 = vmatmul.mubr.bf16.gmra.mrb[28].mxu1 %v6343_v33  ;;  %v6758_v33 = vrot.slane %v6756_v36, 4  ;;  %v6829_v36 = vshrl.u32 %v15069_v5, 16 }
 0x408   : > { %12595 = vmatprep.mubr.bf16.mxu1 %v6666_v53  ;;  %v6763_v53 = vrot.slane %v6761_v55, 3  ;;  %v6832_v55 = vshll.u32 %v15069_v5, 16 }
 0x409   : > { %v6759_v35 = vor.u32 %v6758_v33, %v6755_v32  ;;  %v6823_v32 = vrot.slane %v6821_v56, 3  ;;  %v6826_v33 = vrot.slane %v6824_v15, 4 }
 0x40f   : > { %12596 = vmatmul.mubr.bf16.vlgmr.msra.gmra.mrb[0].mxu1 %v6683_v46  ;;  %v6772_v46 = vrot.slane %v6770_v59, 3  ;;  %v6818_v59 = vor.u32 %v6817_v19, %v6814_v21 }
 0x410   : > { %12599 = vmatprep.mubr.bf16.mxu1 %v6700_v17  ;;  %12628 = vmatpush3.bf16.msra.mxu1 %v15003_v31  ;;  %v6764_v31 = vshll.u32 %v15049_v10, 16  ;;  %v6804_v17 = vshrl.u32 %v6636_v12, 16 }
 0x411   : > { %12629 = vmatprep.subr.bf16.mxu1 %v13550_v63 }
 0x412   : > { %v6766_v47 = vrot.slane %v6764_v31, 4  ;;  %v6806_v31 = vrot.slane %v6804_v17, 3  ;;  %v6646_v17 = vld [vmem:[#allocation2 + $0xf0] sm:$0xf8] }
 0x413   : > { %v6889_v15 = vshrl.u32 %v6646_v17, 16 }
 0x414   : > { %12630 = vmatpush3.bf16.msra.mxu1 %v13550_v63  ;;  %v6767_v30 = vor.u32 %v6766_v47, %v6763_v53  ;;  %v6792_v63 = vrot.slane %v6790_v24, 4  ;;  %v6831_v53 = vrot.slane %v6829_v36, 3  ;;  %v6834_v47 = vrot.slane %v6832_v55, 4 }
 0x415   : > { %12631 = vmatprep.subr.bf16.mxu1 %v13551_v8  ;;  %v6810_v18 = vor.u32 %v6809_v7, %v6806_v31  ;;  %v6855_v24 = vshrl.u32 %v6642_v1, 16  ;;  %v6892_v36 = vshll.u32 %v6646_v17, 16  ;;  %v6897_v55 = vshrl.u32 %v15090_v57, 16 }
 0x416   : > { %v6768_v16 = vsel %vm569_vm1, %v6759_v35, %v6767_v30  ;;  %v6793_v58 = vor.u32 %v6792_v63, %v6789_v39  ;;  %v6866_v35 = vshll.u32 %v15077_v22, 16  ;;  %v6827_v30 = vor.u32 %v6826_v33, %v6823_v32 }
 0x417   : > { %12600 = vmatmul.mubr.bf16.gmra.mrb[4].mxu1 %v6717_v45  ;;  %v6819_v12 = vsel %vm569_vm1, %v6810_v18, %v6818_v59  ;;  %v6857_v39 = vrot.slane %v6855_v24, 3  ;;  %v6860_v63 = vrot.slane %v6858_v61, 4  ;;  %v6900_v31 = vshll.u32 %v15090_v57, 16 }
 0x418   : > { %12603 = vmatprep.mubr.bf16.mxu1 %v6734_v11  ;;  %12632 = vmatpush3.bf16.msra.mxu1 %v13551_v8  ;;  %v6776_v8 = vor.u32 %v6775_v43, %v6772_v46  ;;  %v6802_v45 = vsel %vm569_vm1, %v6793_v58, %v6801_v48  ;;  %v6640_v11 = vld [vmem:[#allocation2 + $0xc0] sm:$0xf8]  ;;  %v6868_v28 = vrot.slane %v6866_v35, 4  ;;  %v6891_v1 = vrot.slane %v6889_v15, 3 }
 0x419   : > { %12633 = vmatprep.subr.bf16.mxu1 %v13552_v34  ;;  %v6838_v41 = vshrl.u32 %v6640_v11, 16  ;;  %v6841_v20 = vshll.u32 %v6640_v11, 16  ;;  %v6861_v48 = vor.u32 %v6860_v63, %v6857_v39  ;;  %v6648_v11 = vld [vmem:[#allocation2 + $0x100] sm:$0xf8]  ;;  %v6894_v32 = vrot.slane %v6892_v36, 4 }
 0x41a   : > { %v6869_v56 = vor.u32 %v6868_v28, %v6865_v52  ;;  %v6899_v33 = vrot.slane %v6897_v55, 3  ;;  %v7245_v39 = vrot.slane %v15016_v13, 4  ;;  %v15110_v28 = vld [vmem:[#allocation2 + $0x20] sm:$0xf0]  ;;  %v7254_v15 = vrot.slane %v15034_v26, 4  ;;  %v13560_v55 = vld [vmem:[#allocation3 + $0x158] sm:$0xff]  }
 0x41b   : > { %v6840_v46 = vrot.slane %v6838_v41, 3  ;;  %v6843_v43 = vrot.slane %v6841_v20, 4  ;;  %v6906_v41 = vshrl.u32 %v6648_v11, 16  ;;  %v6909_v20 = vshll.u32 %v6648_v11, 16  ;;  %v13561_v26 = vld [vmem:[#allocation3 + $0x160] sm:$0xff]  }
 0x41c   : > { %12634 = vmatpush3.bf16.msra.mxu1 %v13552_v34  ;;  %v6785_v34 = vsel %vm569_vm1, %v6776_v8, %v6784_v42  ;;  %v6895_v24 = vor.u32 %v6894_v32, %v6891_v1  ;;  %v7247_v17 = vrot.slane %v15110_v28, 4  ;;  %v7257_v36 = vrot.slane %v15036_v40, 4  ;;  %v15141_v32 = vld [vmem:[#allocation2 + $0x80] sm:$0xf0] }
 0x41d   : > { %12635 = vmatprep.subr.bf16.mxu1 %v13553_v51  ;;  %v6844_v42 = vor.u32 %v6843_v43, %v6840_v46  ;;  %v6908_v35 = vrot.slane %v6906_v41, 3  ;;  %v15104_v43 = vld [vmem:[#allocation2 + $0x10] sm:$0xf0]  ;;  %v7260_v40 = vrot.slane %v15043_v3, 4  ;;  %v13564_v41 = vld [vmem:[#allocation3 + $0x178] sm:$0xff]  }
 0x41e   : > { %v13563_v3 = vld [vmem:[#allocation3 + $0x170] sm:$0xff]  }
 0x41f   : > { %12604 = vmatmul.mubr.bf16.gmra.mrb[8].mxu1 %v6751_v6  ;;  %v6835_v6 = vor.u32 %v6834_v47, %v6831_v53  ;;  %v6902_v53 = vrot.slane %v6900_v31, 4  ;;  %v15098_v47 = vld [vmem:[#allocation2 + $0x108] sm:$0xf] }
 0x420   : > { %12607 = vmatprep.mubr.bf16.mxu1 %v6768_v16  ;;  %12636 = vmatpush3.bf16.msra.mxu1 %v13553_v51  ;;  %v6849_v51 = vshll.u32 %v15075_v62, 16  ;;  %v15087_v16 = vld [vmem:[#allocation2 + $0xe8] sm:$0xf]  ;;  %v6914_v4 = vshrl.u32 %v15098_v47, 16 }
 0x421   : > { %12637 = vmatprep.subr.bf16.mxu1 %v13554_v29  ;;  %v6836_v23 = vsel %vm569_vm1, %v6827_v30, %v6835_v6  ;;  %v6883_v8 = vshll.u32 %v15087_v16, 16  ;;  %v6903_v61 = vor.u32 %v6902_v53, %v6899_v33  ;;  %v6911_v30 = vrot.slane %v6909_v20, 4  ;;  %v15143_v33 = vld [vmem:[#allocation2 + $0x90] sm:$0xf0] }
 0x422   : > { %v6851_v50 = vrot.slane %v6849_v51, 4  ;;  %v6917_v51 = vshll.u32 %v15098_v47, 16  ;;  %v6916_v6 = vrot.slane %v6914_v4, 3  ;;  %v7265_v53 = vrot.slane %v15141_v32, 4 }
 0x423   : > { %v6904_v46 = vsel %vm569_vm1, %v6895_v24, %v6903_v61  ;;  %v15153_v24 = vld [vmem:[#allocation2 + $0xb0] sm:$0xf0] }
 0x424   : > { %12638 = vmatpush3.bf16.msra.mxu1 %v13554_v29  ;;  %v6644_v29 = vld [vmem:[#allocation2 + $0xe0] sm:$0xf8]  ;;  %v6852_v58 = vor.u32 %v6851_v50, %v6848_v27  ;;  %v6912_v27 = vor.u32 %v6911_v30, %v6908_v35  ;;  %v7275_v35 = vrot.slane %v15069_v5, 4  ;;  %v7281_v5 = vrot.slane %v15077_v22, 4 }
 0x425   : > { %12639 = vmatprep.subr.bf16.mxu1 %v13555_v49  ;;  %v6872_v25 = vshrl.u32 %v6644_v29, 16  ;;  %v6875_v2 = vshll.u32 %v6644_v29, 16  ;;  %v7244_v29 = vrot.slane %v15104_v43, 4 }
 0x427   : > { %12608 = vmatmul.mubr.bf16.gmra.mrb[12].mxu1 %v6785_v34  ;;  %v6874_v7 = vrot.slane %v6872_v25, 3  ;;  %v6877_v21 = vrot.slane %v6875_v2, 4  ;;  %v6853_v34 = vsel %vm569_vm1, %v6844_v42, %v6852_v58  ;;  %v7246_v52 = vsel %vm922_vm0, %v7244_v29, %v7245_v39  ;;  %v15120_v58 = vld [vmem:[#allocation2 + $0x40] sm:$0xf0] }
 0x428   : > { %12611 = vmatprep.mubr.bf16.mxu1 %v6802_v45  ;;  %12640 = vmatpush3.bf16.msra.mxu1 %v13555_v49  ;;  %v6880_v49 = vshrl.u32 %v15087_v16, 16  ;;  %v6870_v45 = vsel %vm569_vm1, %v6861_v48, %v6869_v56  ;;  %v7248_v25 = vrot.slane %v15023_v54, 4  ;;  %v15123_v48 = vld [vmem:[#allocation2 + $0x50] sm:$0xf0]  ;;  %v7253_v54 = vrot.slane %v15120_v58, 4 }
 0x429   : > { %12641 = vmatprep.subr.bf16.mxu1 %v13556_v9  ;;  %v6878_v18 = vor.u32 %v6877_v21, %v6874_v7  ;;  %v13559_v56 = vld [vmem:[#allocation3 + $0x150] sm:$0xff]   ;;  %v15131_v7 = vld [vmem:[#allocation2 + $0x60] sm:$0xf0] }
 0x42a   : > { %v6882_v19 = vrot.slane %v6880_v49, 3  ;;  %v7251_v49 = vrot.slane %v15028_v60, 4  ;;  %v7249_v13 = vsel %vm922_vm0, %v7247_v17, %v7248_v25  ;;  %v7256_v60 = vrot.slane %v15123_v48, 4  ;;  %v15133_v21 = vld [vmem:[#allocation2 + $0x70] sm:$0xf0] }
 0x42b   : > { %v7255_v31 = vsel %vm922_vm0, %v7253_v54, %v7254_v15  ;;  %v7566_v17 = vld [vmem:[#allocation2 + $0x18] sm:$0x1f] }
 0x42c   : > { %12642 = vmatpush3.bf16.msra.mxu1 %v13556_v9  ;;  %v6885_v9 = vrot.slane %v6883_v8, 4  ;;  %v13558_v8 = vld [vmem:[#allocation3 + $0x148] sm:$0xff]  }
 0x42d   : > { %12675 = vmatprep.subr.bf16.mxu1 %v15081_v14 }
 0x42e   : > { %v6886_v59 = vor.u32 %v6885_v9, %v6882_v19  ;;  %v7259_v19 = vrot.slane %v15131_v7, 4  ;;  %v7262_v9 = vrot.slane %v15133_v21, 4 }
 0x42f   : > { %12612 = vmatmul.mubr.bf16.gmra.mrb[16].mxu1 %v6819_v12  ;;  %v6919_v12 = vrot.slane %v6917_v51, 4  ;;  %v15151_v51 = vld [vmem:[#allocation2 + $0xa0] sm:$0xf0] }
 0x430   : > { %12615 = vmatprep.mubr.bf16.mxu1 %v6836_v23  ;;  %v6887_v44 = vsel %vm569_vm1, %v6878_v18, %v6886_v59  ;;  %v15112_v23 = vld [vmem:[#allocation2 + $0x30] sm:$0xf0]  ;;  %v7261_v11 = vsel %vm922_vm0, %v7259_v19, %v7260_v40  ;;  %v7268_v18 = vrot.slane %v15143_v33, 4  ;;  %v7269_v59 = vrot.slane %v15057_v0, 4  ;;  %v7568_v19 = vld [vmem:[#allocation2 + $0x38] sm:$0x1f] }
 0x431   : > { %v6920_v50 = vor.u32 %v6919_v12, %v6916_v6  ;;  %v7250_v2 = vrot.slane %v15112_v23, 4  ;;  %v7271_v61 = vrot.slane %v15151_v51, 4  ;;  %v7272_v0 = vrot.slane %v15064_v38, 4  ;;  %v15164_v12 = vld [vmem:[#allocation2 + $0xc0] sm:$0xf0] }
 0x432   : > { %v7270_v4 = vsel %vm922_vm0, %v7268_v18, %v7269_v59  ;;  %v7278_v38 = vrot.slane %v15075_v62, 4  ;;  %v7583_v62 = vshrl.u32 %v15104_v43, 16 }
 0x433   : > { %v6921_v63 = vsel %vm569_vm1, %v6912_v27, %v6920_v50  ;;  %v7252_v42 = vsel %vm922_vm0, %v7250_v2, %v7251_v49  ;;  %v7273_v30 = vsel %vm922_vm0, %v7271_v61, %v7272_v0  ;;  %v7277_v27 = vrot.slane %v15164_v12, 4 }
 0x434   : > { %v7284_v2 = vrot.slane %v15087_v16, 4  ;;  %v7586_v49 = vshll.u32 %v15104_v43, 16  ;;  %v7585_v15 = vrot.slane %v7583_v62, 4  ;;  %v7600_v43 = vshrl.u32 %v15110_v28, 16 }
 0x435   : > { %v7279_v29 = vsel %vm922_vm0, %v7277_v27, %v7278_v38  ;;  %v7637_v27 = vshll.u32 %v15120_v58, 16 }
 0x437   : > { %12616 = vmatmul.mubr.bf16.gmra.mrb[20].mxu1 %v6853_v34  ;;  %v7263_v34 = vrot.slane %v15049_v10, 4  ;;  %v7266_v10 = vrot.slane %v15055_v37, 4  ;;  %v15155_v37 = vld [vmem:[#allocation3 + $0x180] sm:$0xff]  }
 0x438   : > { %12619 = vmatprep.mubr.bf16.mxu1 %v6870_v45  ;;  %v13562_v45 = vld [vmem:[#allocation3 + $0x168] sm:$0xff]  }
 0x439   : > { %v7264_v1 = vsel %vm922_vm0, %v7262_v9, %v7263_v34  ;;  %v7267_v20 = vsel %vm922_vm0, %v7265_v53, %v7266_v10  ;;  %v7290_v9 = vrot.slane %v15098_v47, 4  ;;  %v7628_v53 = vshll.u32 %v7568_v19, 16 }
 0x43a   : > { %v7602_v10 = vrot.slane %v7600_v43, 4 }
 0x43f   : > { %12620 = vmatmul.mubr.bf16.gmra.mrb[24].mxu1 %v6887_v44  ;;  %v7274_v44 = vrot.slane %v15153_v24, 4 }
 0x440   : > { %12623 = vmatprep.mubr.bf16.mxu1 %v6904_v46  ;;  %v15166_v46 = vld [vmem:[#allocation2 + $0xd0] sm:$0xf0] }
 0x441   : > { %v7276_v6 = vsel %vm922_vm0, %v7274_v44, %v7275_v35  ;;  %v7280_v50 = vrot.slane %v15166_v46, 4  ;;  %v7630_v44 = vrot.slane %v7628_v53, 5  ;;  %v7570_v35 = vld [vmem:[#allocation2 + $0x58] sm:$0x1f] }
 0x443   : > { %v7282_v39 = vsel %vm922_vm0, %v7280_v50, %v7281_v5  ;;  %v7651_v5 = vshrl.u32 %v15123_v48, 16 }
 0x447   : > { %12624 = vmatmul.mubr.bf16.gmra.mrb[28].mxu1 %v6921_v63  ;;  %v15174_v63 = vld [vmem:[#allocation2 + $0xe0] sm:$0xf0] }
 0x448   : > { %12643 = vmatprep.mubr.bf16.mxu1 %v7246_v52  ;;  %v15176_v52 = vld [vmem:[#allocation2 + $0xf0] sm:$0xf0]  ;;  %v7283_v25 = vrot.slane %v15174_v63, 4 }
 0x449   : > { %v7286_v22 = vrot.slane %v15176_v52, 4 }
 0x44a   : > { %v7285_v54 = vsel %vm922_vm0, %v7283_v25, %v7284_v2 }
 0x44f   : > { %12644 = vmatmul.mubr.bf16.vlgmr.msra.gmra.mrb[0].mxu1 %v7249_v13  ;;  %v7591_v13 = vshrl.u32 %v7566_v17, 16 }
 0x450   : > { %12647 = vmatprep.mubr.bf16.mxu1 %v7252_v42  ;;  %12676 = vmatpush3.bf16.msra.mxu1 %v15081_v14  ;;  %v7258_v14 = vsel %vm922_vm0, %v7256_v60, %v7257_v36  ;;  %v7594_v42 = vshll.u32 %v7566_v17, 16  ;;  %v7588_v60 = vrot.slane %v7586_v49, 5  ;;  %v7662_v17 = vshll.u32 %v7570_v35, 16  ;;  %v7571_v49 = vld [vmem:[#allocation2 + $0x68] sm:$0x1f] }
 0x451   : > { %12677 = vmatprep.subr.bf16.mxu1 %v13558_v8  ;;  %v7593_v16 = vrot.slane %v7591_v13, 4  ;;  %v7679_v43 = vshll.u32 %v7571_v49, 16 }
 0x452   : > { %v7589_v34 = vor.u32 %v7588_v60, %v7585_v15  ;;  %v7664_v60 = vrot.slane %v7662_v17, 5 }
 0x454   : > { %12678 = vmatpush3.bf16.msra.mxu1 %v13558_v8  ;;  %v7287_v8 = vrot.slane %v15090_v57, 4 }
 0x455   : > { %12679 = vmatprep.subr.bf16.mxu1 %v13559_v56 }
 0x456   : > { %v7288_v36 = vsel %vm922_vm0, %v7286_v22, %v7287_v8  ;;  %v7639_v8 = vrot.slane %v7637_v27, 5  ;;  %v7719_v27 = vshrl.u32 %v15143_v33, 16 }
 0x457   : > { %12648 = vmatmul.mubr.bf16.gmra.mrb[4].mxu1 %v7255_v31  ;;  %v7596_v31 = vrot.slane %v7594_v42, 5 }
 0x458   : > { %12651 = vmatprep.mubr.bf16.mxu1 %v7258_v14  ;;  %12680 = vmatpush3.bf16.msra.mxu1 %v13559_v56  ;;  %v7567_v56 = vld [vmem:[#allocation2 + $0x28] sm:$0x1f]  ;;  %v7603_v14 = vshll.u32 %v15110_v28, 16 }
 0x459   : > { %12681 = vmatprep.subr.bf16.mxu1 %v13560_v55  ;;  %v7608_v57 = vshrl.u32 %v7567_v56, 16 }
 0x45a   : > { %v7605_v18 = vrot.slane %v7603_v14, 5  ;;  %v7572_v14 = vld [vmem:[#allocation2 + $0x78] sm:$0x1f] }
 0x45b   : > { %v7610_v59 = vrot.slane %v7608_v57, 4  ;;  %v13567_v57 = vld [vmem:[#allocation3 + $0x190] sm:$0xff]  }
 0x45c   : > { %12682 = vmatpush3.bf16.msra.mxu1 %v13560_v55  ;;  %v15186_v55 = vld [vmem:[#allocation2 + $0x100] sm:$0xf0] }
 0x45d   : > { %12683 = vmatprep.subr.bf16.mxu1 %v13561_v26  ;;  %v7289_v40 = vrot.slane %v15186_v55, 4 }
 0x45f   : > { %12652 = vmatmul.mubr.bf16.gmra.mrb[8].mxu1 %v7261_v11  ;;  %v7597_v11 = vor.u32 %v7596_v31, %v7593_v16  ;;  %v7291_v28 = vsel %vm922_vm0, %v7289_v40, %v7290_v9  ;;  %v7671_v16 = vshll.u32 %v15131_v7, 16  ;;  %v7676_v31 = vshrl.u32 %v7571_v49, 16 }
 0x460   : > { %12655 = vmatprep.mubr.bf16.mxu1 %v7264_v1  ;;  %12684 = vmatpush3.bf16.msra.mxu1 %v13561_v26  ;;  %v7611_v26 = vshll.u32 %v7567_v56, 16  ;;  %v7620_v1 = vshll.u32 %v15112_v23, 16  ;;  %v13566_v56 = vld [vmem:[#allocation3 + $0x188] sm:$0xff]  }
 0x461   : > { %12685 = vmatprep.subr.bf16.mxu1 %v13562_v45  ;;  %v7598_v61 = vsel %vm1438_vm2, %v7589_v34, %v7597_v11  ;;  %v7685_v34 = vshrl.u32 %v15133_v21, 16  ;;  %v7693_v11 = vshrl.u32 %v7572_v14, 16  ;;  %v7678_v53 = vrot.slane %v7676_v31, 4 }
 0x462   : > { %v7622_v47 = vrot.slane %v7620_v1, 5  ;;  %v7696_v1 = vshll.u32 %v7572_v14, 16 }
 0x464   : > { %12686 = vmatpush3.bf16.msra.mxu1 %v13562_v45  ;;  %v7617_v45 = vshrl.u32 %v15112_v23, 16 }
 0x465   : > { %12687 = vmatprep.subr.bf16.mxu1 %v13563_v3 }
 0x467   : > { %12656 = vmatmul.mubr.bf16.gmra.mrb[12].mxu1 %v7267_v20  ;;  %v7619_v20 = vrot.slane %v7617_v45, 4  ;;  %v7688_v45 = vshll.u32 %v15133_v21, 16  ;;  %v7574_v21 = vld [vmem:[#allocation2 + $0x98] sm:$0x1f] }
 0x468   : > { %12659 = vmatprep.mubr.bf16.mxu1 %v7270_v4  ;;  %12688 = vmatpush3.bf16.msra.mxu1 %v13563_v3  ;;  %v7625_v3 = vshrl.u32 %v7568_v19, 16  ;;  %v7569_v4 = vld [vmem:[#allocation2 + $0x48] sm:$0x1f] }
 0x469   : > { %12689 = vmatprep.subr.bf16.mxu1 %v13564_v41  ;;  %v7642_v38 = vshrl.u32 %v7569_v4, 16  ;;  %v7645_v50 = vshll.u32 %v7569_v4, 16  ;;  %v7623_v25 = vor.u32 %v7622_v47, %v7619_v20  ;;  %v7690_v20 = vrot.slane %v7688_v45, 5 }
 0x46a   : > { %v7627_v0 = vrot.slane %v7625_v3, 4  ;;  %v7673_v3 = vrot.slane %v7671_v16, 5  ;;  %v7695_v4 = vrot.slane %v7693_v11, 4  ;;  %v13572_v11 = vld [vmem:[#allocation3 + $0x1b8] sm:$0xff]  }
 0x46b   : > { %v7644_v13 = vrot.slane %v7642_v38, 4  ;;  %v7647_v42 = vrot.slane %v7645_v50, 5  ;;  %v7722_v38 = vshll.u32 %v15143_v33, 16  ;;  %v7727_v50 = vshrl.u32 %v7574_v21, 16 }
 0x46c   : > { %12690 = vmatpush3.bf16.msra.mxu1 %v13564_v41  ;;  %v7613_v41 = vrot.slane %v7611_v26, 5  ;;  %v7631_v2 = vor.u32 %v7630_v44, %v7627_v0  ;;  %v7702_v44 = vshrl.u32 %v15141_v32, 16 }
 0x46d   : > { %12723 = vmatprep.subr.bf16.mxu1 %v15155_v37  ;;  %v7648_v19 = vor.u32 %v7647_v42, %v7644_v13  ;;  %v7724_v13 = vrot.slane %v7722_v38, 5  ;;  %v7729_v42 = vrot.slane %v7727_v50, 4 }
 0x46e   : > { %v7614_v23 = vor.u32 %v7613_v41, %v7610_v59  ;;  %v7573_v41 = vld [vmem:[#allocation2 + $0x88] sm:$0x1f] }
 0x46f   : > { %12660 = vmatmul.mubr.bf16.gmra.mrb[16].mxu1 %v7273_v30  ;;  %v7606_v30 = vor.u32 %v7605_v18, %v7602_v10  ;;  %v13568_v10 = vld [vmem:[#allocation3 + $0x198] sm:$0xff]  }
 0x470   : > { %12663 = vmatprep.mubr.bf16.mxu1 %v7276_v6  ;;  %v7634_v6 = vshrl.u32 %v15120_v58, 16 }
 0x471   : > { %v7615_v62 = vsel %vm1438_vm2, %v7606_v30, %v7614_v23  ;;  %v7710_v30 = vshrl.u32 %v7573_v41, 16  ;;  %v7713_v23 = vshll.u32 %v7573_v41, 16 }
 0x472   : > { %v7636_v22 = vrot.slane %v7634_v6, 4  ;;  %v13569_v6 = vld [vmem:[#allocation3 + $0x1a0] sm:$0xff]  }
 0x473   : > { %v7712_v49 = vrot.slane %v7710_v30, 4 }
 0x474   : > { %v7640_v26 = vor.u32 %v7639_v8, %v7636_v22  ;;  %v13570_v22 = vld [vmem:[#allocation3 + $0x1a8] sm:$0xff]   ;;  %v7721_v8 = vrot.slane %v7719_v27, 4 }
 0x476   : > { %v7649_v18 = vsel %vm1438_vm2, %v7640_v26, %v7648_v19  ;;  %v7756_v26 = vshll.u32 %v15153_v24, 16 }
 0x477   : > { %12664 = vmatmul.mubr.bf16.gmra.mrb[20].mxu1 %v7279_v29  ;;  %v7654_v29 = vshll.u32 %v15123_v48, 16  ;;  %v7668_v48 = vshrl.u32 %v15131_v7, 16  ;;  %v7681_v7 = vrot.slane %v7679_v43, 5  ;;  %v7725_v43 = vor.u32 %v7724_v13, %v7721_v8 }
 0x478   : > { %12667 = vmatprep.mubr.bf16.mxu1 %v7282_v39  ;;  %v7659_v39 = vshrl.u32 %v7570_v35, 16  ;;  %v7705_v35 = vshll.u32 %v15141_v32, 16  ;;  %v7715_v32 = vrot.slane %v7713_v23, 5 }
 0x479   : > { %v7656_v58 = vrot.slane %v7654_v29, 5  ;;  %v7682_v0 = vor.u32 %v7681_v7, %v7678_v53  ;;  %v7758_v7 = vrot.slane %v7756_v26, 5 }
 0x47a   : > { %v7661_v15 = vrot.slane %v7659_v39, 4  ;;  %v7716_v31 = vor.u32 %v7715_v32, %v7712_v49 }
 0x47c   : > { %v7665_v9 = vor.u32 %v7664_v60, %v7661_v15 }
 0x47f   : > { %12668 = vmatmul.mubr.bf16.gmra.mrb[24].mxu1 %v7285_v54  ;;  %v7653_v54 = vrot.slane %v7651_v5, 4  ;;  %v7730_v5 = vshll.u32 %v7574_v21, 16  ;;  %v15223_v21 = vld [vmem:[#allocation3 + $0x1c0] sm:$0xff]  }
 0x480   : > { %12671 = vmatprep.mubr.bf16.mxu1 %v7288_v36  ;;  %v7632_v36 = vsel %vm1438_vm2, %v7623_v25, %v7631_v2  ;;  %v7575_v25 = vld [vmem:[#allocation2 + $0xa8] sm:$0x1f]  ;;  %v7704_v2 = vrot.slane %v7702_v44, 4 }
 0x481   : > { %v7657_v40 = vor.u32 %v7656_v58, %v7653_v54  ;;  %v7736_v54 = vshrl.u32 %v15151_v51, 16  ;;  %v7739_v58 = vshll.u32 %v15151_v51, 16  ;;  %v7744_v15 = vshrl.u32 %v7575_v25, 16 }
 0x482   : > { %v7747_v60 = vshll.u32 %v7575_v25, 16 }
 0x483   : > { %v7666_v59 = vsel %vm1438_vm2, %v7657_v40, %v7665_v9  ;;  %v7738_v9 = vrot.slane %v7736_v54, 4  ;;  %v7746_v45 = vrot.slane %v7744_v15, 4  ;;  %v7824_v54 = vshll.u32 %v15176_v52, 16 }
 0x484   : > { %v7749_v51 = vrot.slane %v7747_v60, 5 }
 0x485   : > { %v7826_v26 = vrot.slane %v7824_v54, 5 }
 0x486   : > { %v7750_v41 = vor.u32 %v7749_v51, %v7746_v45  ;;  %v7838_v45 = vshrl.u32 %v15186_v55, 16  ;;  %v7841_v51 = vshll.u32 %v15186_v55, 16 }
 0x487   : > { %12672 = vmatmul.mubr.bf16.gmra.mrb[28].mxu1 %v7291_v28  ;;  %v7687_v28 = vrot.slane %v7685_v34, 4  ;;  %v7741_v34 = vrot.slane %v7739_v58, 5 }
 0x488   : > { %12691 = vmatprep.mubr.bf16.mxu1 %v7598_v61  ;;  %v7698_v61 = vrot.slane %v7696_v1, 5 }
 0x489   : > { %v7691_v29 = vor.u32 %v7690_v20, %v7687_v28  ;;  %v7770_v28 = vshrl.u32 %v15164_v12, 16  ;;  %v7773_v20 = vshll.u32 %v15164_v12, 16 }
 0x48a   : > { %v7699_v39 = vor.u32 %v7698_v61, %v7695_v4 }
 0x48b   : > { %v7772_v27 = vrot.slane %v7770_v28, 4  ;;  %v7775_v38 = vrot.slane %v7773_v20, 5  ;;  %v7843_v28 = vrot.slane %v7841_v51, 5  ;;  %v8138_v51 = vld [vmem:[#allocation2 + $0x70] sm:$0xf8] }
 0x48c   : > { %v7700_v33 = vsel %vm1438_vm2, %v7691_v29, %v7699_v39 }
 0x48d   : > { %v7776_v8 = vor.u32 %v7775_v38, %v7772_v27 }
 0x48f   : > { %12692 = vmatmul.mubr.bf16.vlgmr.msra.gmra.mrb[0].mxu1 %v7615_v62  ;;  %v7707_v62 = vrot.slane %v7705_v35, 5 }
 0x490   : > { %12695 = vmatprep.mubr.bf16.mxu1 %v7632_v36  ;;  %12724 = vmatpush3.bf16.msra.mxu1 %v15155_v37  ;;  %v7670_v37 = vrot.slane %v7668_v48, 4  ;;  %v7576_v36 = vld [vmem:[#allocation2 + $0xb8] sm:$0x1f]  ;;  %v13571_v48 = vld [vmem:[#allocation3 + $0x1b0] sm:$0xff]  }
 0x491   : > { %12725 = vmatprep.subr.bf16.mxu1 %v13566_v56  ;;  %v7708_v16 = vor.u32 %v7707_v62, %v7704_v2  ;;  %v7761_v19 = vshrl.u32 %v7576_v36, 16  ;;  %v7764_v40 = vshll.u32 %v7576_v36, 16  ;;  %v7804_v2 = vshrl.u32 %v15174_v63, 16 }
 0x492   : > { %v7674_v47 = vor.u32 %v7673_v3, %v7670_v37  ;;  %v7577_v3 = vld [vmem:[#allocation2 + $0xc8] sm:$0x1f]  ;;  %v7807_v62 = vshll.u32 %v15174_v63, 16 }
 0x493   : > { %v7717_v1 = vsel %vm1438_vm2, %v7708_v16, %v7716_v31  ;;  %v7778_v4 = vshrl.u32 %v7577_v3, 16  ;;  %v7781_v61 = vshll.u32 %v7577_v3, 16  ;;  %v7806_v60 = vrot.slane %v7804_v2, 4 }
 0x494   : > { %12726 = vmatpush3.bf16.msra.mxu1 %v13566_v56  ;;  %v7683_v17 = vsel %vm1438_vm2, %v7674_v47, %v7682_v0  ;;  %v7732_v56 = vrot.slane %v7730_v5, 5  ;;  %v7787_v47 = vshrl.u32 %v15166_v46, 16  ;;  %v7790_v0 = vshll.u32 %v15166_v46, 16  ;;  %v7579_v5 = vld [vmem:[#allocation2 + $0xe8] sm:$0x1f] }
 0x495   : > { %12727 = vmatprep.subr.bf16.mxu1 %v13567_v57  ;;  %v7780_v50 = vrot.slane %v7778_v4, 4  ;;  %v7783_v12 = vrot.slane %v7781_v61, 5  ;;  %v7812_v49 = vshrl.u32 %v7579_v5, 16  ;;  %v7815_v32 = vshll.u32 %v7579_v5, 16  ;;  %v15243_v61 = vld [vmem:[#allocation2 + $0x38] sm:$0xf] }
 0x496   : > { %v7733_v14 = vor.u32 %v7732_v56, %v7729_v42  ;;  %v7789_v29 = vrot.slane %v7787_v47, 4  ;;  %v7792_v39 = vrot.slane %v7790_v0, 5  ;;  %v7809_v36 = vrot.slane %v7807_v62, 5 }
 0x497   : > { %12696 = vmatmul.mubr.bf16.gmra.mrb[4].mxu1 %v7649_v18  ;;  %v7766_v18 = vrot.slane %v7764_v40, 5  ;;  %v7784_v13 = vor.u32 %v7783_v12, %v7780_v50  ;;  %v7817_v16 = vrot.slane %v7815_v32, 5  ;;  %v8186_v27 = vshrl.u32 %v15243_v61, 16  ;;  %v15248_v50 = vld [vmem:[#allocation2 + $0x48] sm:$0xf] }
 0x498   : > { %12699 = vmatprep.mubr.bf16.mxu1 %v7666_v59  ;;  %12728 = vmatpush3.bf16.msra.mxu1 %v13567_v57  ;;  %v7753_v57 = vshrl.u32 %v15153_v24, 16  ;;  %v7734_v37 = vsel %vm1438_vm2, %v7725_v43, %v7733_v14  ;;  %v7578_v24 = vld [vmem:[#allocation2 + $0xd8] sm:$0x1f]  ;;  %v7742_v59 = vor.u32 %v7741_v34, %v7738_v9  ;;  %v7793_v42 = vor.u32 %v7792_v39, %v7789_v29  ;;  %v7581_v43 = vld [vmem:[#allocation2 + $0x108] sm:$0x1f] }
 0x499   : > { %12729 = vmatprep.subr.bf16.mxu1 %v13568_v10  ;;  %v7795_v44 = vshrl.u32 %v7578_v24, 16  ;;  %v7798_v35 = vshll.u32 %v7578_v24, 16  ;;  %v7785_v31 = vsel %vm1438_vm2, %v7776_v8, %v7784_v13  ;;  %v8128_v14 = vld [vmem:[#allocation2 + $0x20] sm:$0xf8]  ;;  %v15236_v9 = vld [vmem:[#allocation2 + $0x28] sm:$0xf] }
 0x49a   : > { %v7755_v53 = vrot.slane %v7753_v57, 4  ;;  %v8164_v3 = vshll.u32 %v8128_v14, 16  ;;  %v8189_v38 = vshll.u32 %v15243_v61, 16  ;;  %v8206_v2 = vshll.u32 %v15248_v50, 16 }
 0x49b   : > { %v7800_v25 = vrot.slane %v7798_v35, 5  ;;  %v8188_v32 = vrot.slane %v8186_v27, 3 }
 0x49c   : > { %12730 = vmatpush3.bf16.msra.mxu1 %v13568_v10  ;;  %v7763_v10 = vrot.slane %v7761_v19, 4  ;;  %v7759_v30 = vor.u32 %v7758_v7, %v7755_v53  ;;  %v8169_v53 = vshrl.u32 %v15236_v9, 16  ;;  %v8172_v7 = vshll.u32 %v15236_v9, 16 }
 0x49d   : > { %12731 = vmatprep.subr.bf16.mxu1 %v13569_v6  ;;  %v8166_v47 = vrot.slane %v8164_v3, 4 }
 0x49e   : > { %v7767_v23 = vor.u32 %v7766_v18, %v7763_v10  ;;  %v8171_v0 = vrot.slane %v8169_v53, 3 }
 0x49f   : > { %12700 = vmatmul.mubr.bf16.gmra.mrb[8].mxu1 %v7683_v17  ;;  %v7797_v17 = vrot.slane %v7795_v44, 4  ;;  %v8174_v44 = vrot.slane %v8172_v7, 4  ;;  %v13574_v7 = vld [vmem:[#allocation3 + $0x1c8] sm:$0xff]  }
 0x4a0   : > { %12703 = vmatprep.mubr.bf16.mxu1 %v7700_v33  ;;  %12732 = vmatpush3.bf16.msra.mxu1 %v13569_v6  ;;  %v7751_v6 = vsel %vm1438_vm2, %v7742_v59, %v7750_v41  ;;  %v7768_v46 = vsel %vm1438_vm2, %v7759_v30, %v7767_v23  ;;  %v7821_v33 = vshrl.u32 %v15176_v52, 16  ;;  %v7810_v52 = vor.u32 %v7809_v36, %v7806_v60  ;;  %v8130_v59 = vld [vmem:[#allocation2 + $0x30] sm:$0xf8]  ;;  %v8132_v30 = vld [vmem:[#allocation2 + $0x40] sm:$0xf8] }
 0x4a1   : > { %12733 = vmatprep.subr.bf16.mxu1 %v13570_v22  ;;  %v7801_v56 = vor.u32 %v7800_v25, %v7797_v17  ;;  %v7840_v41 = vrot.slane %v7838_v45, 4  ;;  %v8178_v23 = vshrl.u32 %v8130_v59, 16  ;;  %v8175_v39 = vor.u32 %v8174_v44, %v8171_v0  ;;  %v15256_v36 = vld [vmem:[#allocation2 + $0x68] sm:$0xf]  ;;  %v13575_v44 = vld [vmem:[#allocation3 + $0x1d0] sm:$0xff]  }
 0x4a2   : > { %v7823_v57 = vrot.slane %v7821_v33, 4  ;;  %v8195_v17 = vshrl.u32 %v8132_v30, 16  ;;  %v8198_v25 = vshll.u32 %v8132_v30, 16  ;;  %v8136_v33 = vld [vmem:[#allocation2 + $0x60] sm:$0xf8]  ;;  %v8208_v60 = vrot.slane %v8206_v2, 4 }
 0x4a3   : > { %v7802_v63 = vsel %vm1438_vm2, %v7793_v42, %v7801_v56  ;;  %v7844_v12 = vor.u32 %v7843_v28, %v7840_v41  ;;  %v8180_v62 = vrot.slane %v8178_v23, 3  ;;  %v8134_v42 = vld [vmem:[#allocation2 + $0x50] sm:$0xf8]  ;;  %v15254_v56 = vld [vmem:[#allocation2 + $0x58] sm:$0xf] }
 0x4a4   : > { %12734 = vmatpush3.bf16.msra.mxu1 %v13570_v22  ;;  %v7580_v22 = vld [vmem:[#allocation2 + $0xf8] sm:$0x1f]  ;;  %v7827_v10 = vor.u32 %v7826_v26, %v7823_v57  ;;  %v8197_v54 = vrot.slane %v8195_v17, 3  ;;  %v8229_v57 = vshrl.u32 %v8136_v33, 16  ;;  %v8232_v26 = vshll.u32 %v8136_v33, 16 }
 0x4a5   : > { %12735 = vmatprep.subr.bf16.mxu1 %v13571_v48  ;;  %v7829_v58 = vshrl.u32 %v7580_v22, 16  ;;  %v7832_v15 = vshll.u32 %v7580_v22, 16  ;;  %v8191_v22 = vrot.slane %v8189_v38, 4  ;;  %v8140_v28 = vld [vmem:[#allocation2 + $0x80] sm:$0xf8] }
 0x4a6   : > { %v15269_v0 = vld [vmem:[#allocation2 + $0x88] sm:$0xf]  ;;  %v8263_v27 = vshrl.u32 %v8140_v28, 16  ;;  %v8266_v38 = vshll.u32 %v8140_v28, 16 }
 0x4a7   : > { %12704 = vmatmul.mubr.bf16.gmra.mrb[12].mxu1 %v7717_v1  ;;  %v7831_v19 = vrot.slane %v7829_v58, 4  ;;  %v7834_v40 = vrot.slane %v7832_v15, 5  ;;  %v7849_v1 = vshll.u32 %v7581_v43, 16  ;;  %v8200_v58 = vrot.slane %v8198_v25, 4  ;;  %v13576_v25 = vld [vmem:[#allocation3 + $0x1d8] sm:$0xff]  }
 0x4a8   : > { %12707 = vmatprep.mubr.bf16.mxu1 %v7734_v37  ;;  %12736 = vmatpush3.bf16.msra.mxu1 %v13571_v48  ;;  %v7814_v48 = vrot.slane %v7812_v49, 4  ;;  %v8161_v37 = vshrl.u32 %v8128_v14, 16  ;;  %v8223_v14 = vshll.u32 %v15254_v56, 16  ;;  %v15277_v33 = vld [vmem:[#allocation2 + $0xa8] sm:$0xf] }
 0x4a9   : > { %12737 = vmatprep.subr.bf16.mxu1 %v13572_v11  ;;  %v7835_v18 = vor.u32 %v7834_v40, %v7831_v19  ;;  %v7851_v4 = vrot.slane %v7849_v1, 5  ;;  %v8237_v19 = vshrl.u32 %v15256_v36, 16  ;;  %v8240_v40 = vshll.u32 %v15256_v36, 16 }
 0x4aa   : > { %v7818_v34 = vor.u32 %v7817_v16, %v7814_v48  ;;  %v8163_v55 = vrot.slane %v8161_v37, 3  ;;  %v8192_v16 = vor.u32 %v8191_v22, %v8188_v32  ;;  %v8225_v53 = vrot.slane %v8223_v14, 4  ;;  %v8144_v32 = vld [vmem:[#allocation2 + $0xa0] sm:$0xf8] }
 0x4ab   : > { %v7836_v35 = vsel %vm1438_vm2, %v7827_v10, %v7835_v18  ;;  %v8231_v10 = vrot.slane %v8229_v57, 3  ;;  %v8234_v18 = vrot.slane %v8232_v26, 4  ;;  %v8265_v22 = vrot.slane %v8263_v27, 3 }
 0x4ac   : > { %12738 = vmatpush3.bf16.msra.mxu1 %v13572_v11  ;;  %v7846_v11 = vshrl.u32 %v7581_v43, 16  ;;  %v7819_v24 = vsel %vm1438_vm2, %v7810_v52, %v7818_v34  ;;  %v8167_v29 = vor.u32 %v8166_v47, %v8163_v55  ;;  %v8220_v43 = vshrl.u32 %v15254_v56, 16 }
 0x4ad   : > { %12771 = vmatprep.subr.bf16.mxu1 %v15223_v21  ;;  %v8201_v52 = vor.u32 %v8200_v58, %v8197_v54  ;;  %v8235_v23 = vor.u32 %v8234_v18, %v8231_v10  ;;  %v8305_v14 = vshrl.u32 %v15277_v33, 16  ;;  %v8308_v57 = vshll.u32 %v15277_v33, 16 }
 0x4ae   : > { %v7848_v20 = vrot.slane %v7846_v11, 4  ;;  %v8176_v13 = vsel %vm569_vm1, %v8167_v29, %v8175_v39  ;;  %v15263_v11 = vld [vmem:[#allocation2 + $0x78] sm:$0xf]  ;;  %v8222_v3 = vrot.slane %v8220_v43, 3  ;;  %v8300_v43 = vshll.u32 %v8144_v32, 16 }
 0x4af   : > { %12708 = vmatmul.mubr.bf16.gmra.mrb[16].mxu1 %v7751_v6  ;;  %v8181_v6 = vshll.u32 %v8130_v59, 16  ;;  %v8242_v59 = vrot.slane %v8240_v40, 4  ;;  %v8254_v55 = vshrl.u32 %v15263_v11, 16  ;;  %v8257_v47 = vshll.u32 %v15263_v11, 16 }
 0x4b0   : > { %12711 = vmatprep.mubr.bf16.mxu1 %v7768_v46  ;;  %v7852_v5 = vor.u32 %v7851_v4, %v7848_v20  ;;  %v8203_v46 = vshrl.u32 %v15248_v50, 16  ;;  %v8246_v20 = vshrl.u32 %v8138_v51, 16  ;;  %v8249_v4 = vshll.u32 %v8138_v51, 16 }
 0x4b1   : > { %v8183_v49 = vrot.slane %v8181_v6, 4  ;;  %v8226_v30 = vor.u32 %v8225_v53, %v8222_v3  ;;  %v8256_v39 = vrot.slane %v8254_v55, 3  ;;  %v8259_v17 = vrot.slane %v8257_v47, 4  ;;  %v13578_v3 = vld [vmem:[#allocation3 + $0x1e8] sm:$0xff]   ;;  %v13579_v47 = vld [vmem:[#allocation3 + $0x1f0] sm:$0xff]  }
 0x4b2   : > { %v7853_v8 = vsel %vm1438_vm2, %v7844_v12, %v7852_v5  ;;  %v8205_v15 = vrot.slane %v8203_v46, 3  ;;  %v8271_v12 = vshrl.u32 %v15269_v0, 16  ;;  %v8248_v5 = vrot.slane %v8246_v20, 3  ;;  %v15289_v55 = vld [vmem:[#allocation2 + $0xc8] sm:$0xf] }
 0x4b3   : > { %v8184_v48 = vor.u32 %v8183_v49, %v8180_v62  ;;  %v8251_v29 = vrot.slane %v8249_v4, 4  ;;  %v8142_v62 = vld [vmem:[#allocation2 + $0x90] sm:$0xf8]  ;;  %v15275_v49 = vld [vmem:[#allocation2 + $0x98] sm:$0xf]  ;;  %v8260_v58 = vor.u32 %v8259_v17, %v8256_v39  ;;  %v8307_v10 = vrot.slane %v8305_v14, 3 }
 0x4b4   : > { %v8209_v34 = vor.u32 %v8208_v60, %v8205_v15  ;;  %v8280_v15 = vshrl.u32 %v8142_v62, 16  ;;  %v8283_v60 = vshll.u32 %v8142_v62, 16  ;;  %v8310_v18 = vrot.slane %v8308_v57, 4  ;;  %v13580_v17 = vld [vmem:[#allocation3 + $0x1f8] sm:$0xff]  }
 0x4b5   : > { %v8193_v45 = vsel %vm569_vm1, %v8184_v48, %v8192_v16  ;;  %v8252_v54 = vor.u32 %v8251_v29, %v8248_v5  ;;  %v8288_v48 = vshrl.u32 %v15275_v49, 16  ;;  %v8291_v16 = vshll.u32 %v15275_v49, 16  ;;  %v15295_v62 = vld [vmem:[#allocation2 + $0xd8] sm:$0xf] }
 0x4b6   : > { %v8210_v41 = vsel %vm569_vm1, %v8201_v52, %v8209_v34  ;;  %v8146_v52 = vld [vmem:[#allocation2 + $0xb0] sm:$0xf8]  ;;  %v15284_v34 = vld [vmem:[#allocation2 + $0xb8] sm:$0xf]  ;;  %v8285_v51 = vrot.slane %v8283_v60, 4 }
 0x4b7   : > { %12712 = vmatmul.mubr.bf16.gmra.mrb[20].mxu1 %v7785_v31  ;;  %v8212_v31 = vshrl.u32 %v8134_v42, 16  ;;  %v8261_v40 = vsel %vm569_vm1, %v8252_v54, %v8260_v58  ;;  %v8317_v28 = vshll.u32 %v8146_v52, 16  ;;  %v8322_v20 = vshrl.u32 %v15284_v34, 16  ;;  %v15297_v54 = vld [vmem:[#allocation2 + $0xe8] sm:$0xf] }
 0x4b8   : > { %12715 = vmatprep.mubr.bf16.mxu1 %v7802_v63  ;;  %v8215_v63 = vshll.u32 %v8134_v42, 16  ;;  %v8325_v4 = vshll.u32 %v15284_v34, 16  ;;  %v8373_v57 = vshrl.u32 %v15297_v54, 16 }
 0x4b9   : > { %v8214_v1 = vrot.slane %v8212_v31, 3  ;;  %v13577_v31 = vld [vmem:[#allocation3 + $0x1e0] sm:$0xff]   ;;  %v8319_v5 = vrot.slane %v8317_v28, 4  ;;  %v8324_v29 = vrot.slane %v8322_v20, 3  ;;  %v15310_v28 = vld [vmem:[#allocation2 + $0x108] sm:$0xf] }
 0x4ba   : > { %v8217_v37 = vrot.slane %v8215_v63, 4  ;;  %v8297_v63 = vshrl.u32 %v8144_v32, 16  ;;  %v8327_v39 = vrot.slane %v8325_v4, 4  ;;  %v8152_v32 = vld [vmem:[#allocation2 + $0xe0] sm:$0xf8] }
 0x4bb   : > { %v8368_v14 = vshll.u32 %v8152_v32, 16 }
 0x4bc   : > { %v8299_v53 = vrot.slane %v8297_v63, 3  ;;  %v15301_v63 = vld [vmem:[#allocation3 + $0x200] sm:$0xff]  }
 0x4bf   : > { %12716 = vmatmul.mubr.bf16.gmra.mrb[24].mxu1 %v7819_v24  ;;  %v8239_v24 = vrot.slane %v8237_v19, 3 }
 0x4c0   : > { %12719 = vmatprep.mubr.bf16.mxu1 %v7836_v35  ;;  %v8218_v35 = vor.u32 %v8217_v37, %v8214_v1  ;;  %v8290_v1 = vrot.slane %v8288_v48, 3  ;;  %v8293_v37 = vrot.slane %v8291_v16, 4  ;;  %v8356_v16 = vshrl.u32 %v15295_v62, 16 }
 0x4c1   : > { %v8243_v6 = vor.u32 %v8242_v59, %v8239_v24  ;;  %v8148_v59 = vld [vmem:[#allocation2 + $0xc0] sm:$0xf8] }
 0x4c2   : > { %v8227_v46 = vsel %vm569_vm1, %v8218_v35, %v8226_v30  ;;  %v8294_v35 = vor.u32 %v8293_v37, %v8290_v1  ;;  %v8334_v27 = vshll.u32 %v8148_v59, 16  ;;  %v8358_v1 = vrot.slane %v8356_v16, 3 }
 0x4c3   : > { %v8244_v2 = vsel %vm569_vm1, %v8235_v23, %v8243_v6  ;;  %v8311_v23 = vor.u32 %v8310_v18, %v8307_v10  ;;  %v8331_v6 = vshrl.u32 %v8148_v59, 16  ;;  %v8154_v18 = vld [vmem:[#allocation2 + $0xf0] sm:$0xf8]  ;;  %v15308_v59 = vld [vmem:[#allocation2 + $0xf8] sm:$0xf] }
 0x4c7   : > { %12720 = vmatmul.mubr.bf16.gmra.mrb[28].mxu1 %v7853_v8  ;;  %v8268_v8 = vrot.slane %v8266_v38, 4  ;;  %v8339_v38 = vshrl.u32 %v15289_v55, 16 }
 0x4c8   : > { %12739 = vmatprep.mubr.bf16.mxu1 %v8176_v13  ;;  %v8273_v13 = vrot.slane %v8271_v12, 3  ;;  %v8342_v12 = vshll.u32 %v15289_v55, 16 }
 0x4c9   : > { %v8269_v26 = vor.u32 %v8268_v8, %v8265_v22  ;;  %v8333_v22 = vrot.slane %v8331_v6, 3  ;;  %v8336_v8 = vrot.slane %v8334_v27, 4  ;;  %v8393_v6 = vshll.u32 %v15308_v59, 16 }
 0x4cf   : > { %12740 = vmatmul.mubr.bf16.vlgmr.msra.gmra.mrb[0].mxu1 %v8193_v45  ;;  %v8282_v45 = vrot.slane %v8280_v15, 3  ;;  %v8328_v15 = vor.u32 %v8327_v39, %v8324_v29  ;;  %v8158_v39 = vld [vmem:[#allocation2 + $0x110] sm:$0xf8] }
 0x4d0   : > { %12743 = vmatprep.mubr.bf16.mxu1 %v8210_v41  ;;  %12772 = vmatpush3.bf16.msra.mxu1 %v15223_v21  ;;  %v8274_v21 = vshll.u32 %v15269_v0, 16  ;;  %v8314_v41 = vshrl.u32 %v8146_v52, 16 }
 0x4d1   : > { %12773 = vmatprep.subr.bf16.mxu1 %v13574_v7 }
 0x4d2   : > { %v8276_v42 = vrot.slane %v8274_v21, 4  ;;  %v8316_v21 = vrot.slane %v8314_v41, 3  ;;  %v8156_v41 = vld [vmem:[#allocation2 + $0x100] sm:$0xf8] }
 0x4d3   : > { %v8399_v27 = vshrl.u32 %v8156_v41, 16 }
 0x4d4   : > { %12774 = vmatpush3.bf16.msra.mxu1 %v13574_v7  ;;  %v8277_v19 = vor.u32 %v8276_v42, %v8273_v13  ;;  %v8302_v7 = vrot.slane %v8300_v43, 4  ;;  %v8341_v13 = vrot.slane %v8339_v38, 3  ;;  %v8344_v42 = vrot.slane %v8342_v12, 4 }
 0x4d5   : > { %12775 = vmatprep.subr.bf16.mxu1 %v13575_v44  ;;  %v8320_v58 = vor.u32 %v8319_v5, %v8316_v21  ;;  %v8365_v43 = vshrl.u32 %v8152_v32, 16  ;;  %v8402_v38 = vshll.u32 %v8156_v41, 16  ;;  %v8407_v12 = vshrl.u32 %v15310_v28, 16 }
 0x4d6   : > { %v8278_v24 = vsel %vm569_vm1, %v8269_v26, %v8277_v19  ;;  %v8303_v30 = vor.u32 %v8302_v7, %v8299_v53  ;;  %v8376_v26 = vshll.u32 %v15297_v54, 16  ;;  %v8337_v19 = vor.u32 %v8336_v8, %v8333_v22 }
 0x4d7   : > { %12744 = vmatmul.mubr.bf16.gmra.mrb[4].mxu1 %v8227_v46  ;;  %v8329_v52 = vsel %vm569_vm1, %v8320_v58, %v8328_v15  ;;  %v8370_v53 = vrot.slane %v8368_v14, 4  ;;  %v8375_v7 = vrot.slane %v8373_v57, 3  ;;  %v8410_v21 = vshll.u32 %v15310_v28, 16 }
 0x4d8   : > { %12747 = vmatprep.mubr.bf16.mxu1 %v8244_v2  ;;  %12776 = vmatpush3.bf16.msra.mxu1 %v13575_v44  ;;  %v8286_v44 = vor.u32 %v8285_v51, %v8282_v45  ;;  %v8312_v46 = vsel %vm569_vm1, %v8303_v30, %v8311_v23  ;;  %v8150_v2 = vld [vmem:[#allocation2 + $0xd0] sm:$0xf8]  ;;  %v8378_v10 = vrot.slane %v8376_v26, 4  ;;  %v8390_v23 = vshrl.u32 %v15308_v59, 16 }
 0x4d9   : > { %12777 = vmatprep.subr.bf16.mxu1 %v13576_v25  ;;  %v8348_v60 = vshrl.u32 %v8150_v2, 16  ;;  %v8351_v48 = vshll.u32 %v8150_v2, 16  ;;  %v8395_v32 = vrot.slane %v8393_v6, 4  ;;  %v8401_v22 = vrot.slane %v8399_v27, 3  ;;  %v13583_v6 = vld [vmem:[#allocation3 + $0x210] sm:$0xff]  }
 0x4da   : > { %v8379_v30 = vor.u32 %v8378_v10, %v8375_v7  ;;  %v8392_v2 = vrot.slane %v8390_v23, 3  ;;  %v8404_v8 = vrot.slane %v8402_v38, 4  ;;  %v8416_v58 = vshrl.u32 %v8158_v39, 16  ;;  %v15343_v23 = vld [vmem:[#allocation2 + $0x60] sm:$0xf0] }
 0x4db   : > { %v8350_v45 = vrot.slane %v8348_v60, 3  ;;  %v8353_v51 = vrot.slane %v8351_v48, 4  ;;  %v8419_v15 = vshll.u32 %v8158_v39, 16  ;;  %v8764_v27 = vrot.slane %v15254_v56, 4  ;;  %v13585_v56 = vld [vmem:[#allocation3 + $0x220] sm:$0xff]  }
 0x4dc   : > { %12778 = vmatpush3.bf16.msra.mxu1 %v13576_v25  ;;  %v8295_v25 = vsel %vm569_vm1, %v8286_v44, %v8294_v35  ;;  %v8385_v44 = vshll.u32 %v8154_v18, 16  ;;  %v8418_v57 = vrot.slane %v8416_v58, 3  ;;  %v8767_v38 = vrot.slane %v15256_v36, 4 }
 0x4dd   : > { %12779 = vmatprep.subr.bf16.mxu1 %v13577_v31  ;;  %v8354_v20 = vor.u32 %v8353_v51, %v8350_v45  ;;  %v8421_v26 = vrot.slane %v8419_v15, 4  ;;  %v8770_v36 = vrot.slane %v15263_v11, 4  ;;  %v13587_v11 = vld [vmem:[#allocation3 + $0x230] sm:$0xff]   ;;  %v8779_v15 = vrot.slane %v15277_v33, 4 }
 0x4df   : > { %12748 = vmatmul.mubr.bf16.gmra.mrb[8].mxu1 %v8261_v40  ;;  %v8345_v40 = vor.u32 %v8344_v42, %v8341_v13  ;;  %v8409_v13 = vrot.slane %v8407_v12, 3  ;;  %v8412_v42 = vrot.slane %v8410_v21, 4  ;;  %v8422_v51 = vor.u32 %v8421_v26, %v8418_v57  ;;  %v13584_v12 = vld [vmem:[#allocation3 + $0x218] sm:$0xff]  }
 0x4e0   : > { %12751 = vmatprep.mubr.bf16.mxu1 %v8278_v24  ;;  %12780 = vmatpush3.bf16.msra.mxu1 %v13577_v31  ;;  %v8359_v31 = vshll.u32 %v15295_v62, 16  ;;  %v8785_v57 = vrot.slane %v15289_v55, 4 }
 0x4e1   : > { %12781 = vmatprep.subr.bf16.mxu1 %v13578_v3  ;;  %v8346_v24 = vsel %vm569_vm1, %v8337_v19, %v8345_v40  ;;  %v8413_v14 = vor.u32 %v8412_v42, %v8409_v13  ;;  %v15363_v13 = vld [vmem:[#allocation2 + $0xa0] sm:$0xf0] }
 0x4e2   : > { %v8361_v37 = vrot.slane %v8359_v31, 4  ;;  %v8396_v31 = vor.u32 %v8395_v32, %v8392_v2  ;;  %v13586_v2 = vld [vmem:[#allocation3 + $0x228] sm:$0xff]   ;;  %v8778_v58 = vrot.slane %v15363_v13, 4 }
 0x4e4   : > { %12782 = vmatpush3.bf16.msra.mxu1 %v13578_v3  ;;  %v8367_v3 = vrot.slane %v8365_v43, 3  ;;  %v8362_v4 = vor.u32 %v8361_v37, %v8358_v1  ;;  %v8405_v43 = vor.u32 %v8404_v8, %v8401_v22  ;;  %v15324_v37 = vld [vmem:[#allocation2 + $0x20] sm:$0xf0]  ;;  %v15361_v8 = vld [vmem:[#allocation2 + $0x90] sm:$0xf0] }
 0x4e5   : > { %12783 = vmatprep.subr.bf16.mxu1 %v13579_v47  ;;  %v8775_v42 = vrot.slane %v15361_v8, 4 }
 0x4e6   : > { %v8371_v35 = vor.u32 %v8370_v53, %v8367_v3  ;;  %v8363_v5 = vsel %vm569_vm1, %v8354_v20, %v8362_v4  ;;  %v8414_v45 = vsel %vm569_vm1, %v8405_v43, %v8413_v14  ;;  %v8754_v3 = vrot.slane %v15324_v37, 4  ;;  %v15373_v43 = vld [vmem:[#allocation2 + $0xc0] sm:$0xf0] }
 0x4e7   : > { %12752 = vmatmul.mubr.bf16.gmra.mrb[12].mxu1 %v8295_v25  ;;  %v8755_v53 = vrot.slane %v15236_v9, 4  ;;  %v8758_v20 = vrot.slane %v15243_v61, 4  ;;  %v8782_v14 = vrot.slane %v15284_v34, 4  ;;  %v8784_v33 = vrot.slane %v15373_v43, 4 }
 0x4e8   : > { %12755 = vmatprep.mubr.bf16.mxu1 %v8312_v46  ;;  %12784 = vmatpush3.bf16.msra.mxu1 %v13579_v47  ;;  %v8382_v47 = vshrl.u32 %v8154_v18, 16  ;;  %v8380_v25 = vsel %vm569_vm1, %v8371_v35, %v8379_v30  ;;  %v8387_v46 = vrot.slane %v8385_v44, 4  ;;  %v15330_v18 = vld [vmem:[#allocation2 + $0x30] sm:$0xf0]  ;;  %v13582_v44 = vld [vmem:[#allocation3 + $0x208] sm:$0xff]  }
 0x4e9   : > { %12785 = vmatprep.subr.bf16.mxu1 %v13580_v17  ;;  %v8756_v10 = vsel %vm922_vm0, %v8754_v3, %v8755_v53  ;;  %v8757_v41 = vrot.slane %v15330_v18, 4  ;;  %v15340_v30 = vld [vmem:[#allocation2 + $0x50] sm:$0xf0] }
 0x4ea   : > { %v8384_v29 = vrot.slane %v8382_v47, 3  ;;  %v8761_v47 = vrot.slane %v15248_v50, 4  ;;  %v8763_v61 = vrot.slane %v15340_v30, 4  ;;  %v8766_v50 = vrot.slane %v15343_v23, 4  ;;  %v15391_v53 = vld [vmem:[#allocation2 + $0xf0] sm:$0xf0] }
 0x4eb   : > { %v8759_v9 = vsel %vm922_vm0, %v8757_v41, %v8758_v20  ;;  %v8793_v41 = vrot.slane %v15391_v53, 4  ;;  %v8794_v20 = vrot.slane %v15308_v59, 4 }
 0x4ec   : > { %12786 = vmatpush3.bf16.msra.mxu1 %v13580_v17  ;;  %v15317_v17 = vld [vmem:[#allocation2 + $0x118] sm:$0xf]  ;;  %v8388_v16 = vor.u32 %v8387_v46, %v8384_v29  ;;  %v8765_v21 = vsel %vm922_vm0, %v8763_v61, %v8764_v27  ;;  %v15353_v29 = vld [vmem:[#allocation2 + $0x80] sm:$0xf0]  ;;  %v8773_v46 = vrot.slane %v15269_v0, 4  ;;  %v8776_v0 = vrot.slane %v15275_v49, 4 }
 0x4ed   : > { %12819 = vmatprep.subr.bf16.mxu1 %v15301_v63  ;;  %v8424_v60 = vshrl.u32 %v15317_v17, 16  ;;  %v8427_v48 = vshll.u32 %v15317_v17, 16 }
 0x4ef   : > { %12756 = vmatmul.mubr.bf16.gmra.mrb[16].mxu1 %v8329_v52  ;;  %v8426_v19 = vrot.slane %v8424_v60, 3  ;;  %v8429_v40 = vrot.slane %v8427_v48, 4  ;;  %v8397_v52 = vsel %vm569_vm1, %v8388_v16, %v8396_v31  ;;  %v13588_v60 = vld [vmem:[#allocation3 + $0x238] sm:$0xff]   ;;  %v8777_v48 = vsel %vm922_vm0, %v8775_v42, %v8776_v0  ;;  %v15371_v31 = vld [vmem:[#allocation2 + $0xb0] sm:$0xf0] }
 0x4f0   : > { %12759 = vmatprep.mubr.bf16.mxu1 %v8346_v24  ;;  %v15332_v24 = vld [vmem:[#allocation2 + $0x40] sm:$0xf0]  ;;  %v8780_v16 = vsel %vm922_vm0, %v8778_v58, %v8779_v15  ;;  %v8781_v49 = vrot.slane %v15371_v31, 4 }
 0x4f1   : > { %v8430_v1 = vor.u32 %v8429_v40, %v8426_v19  ;;  %v8760_v4 = vrot.slane %v15332_v24, 4  ;;  %v8786_v19 = vsel %vm922_vm0, %v8784_v33, %v8785_v57  ;;  %v15381_v40 = vld [vmem:[#allocation2 + $0xd0] sm:$0xf0]  ;;  %v9080_v33 = vld [vmem:[#allocation2 + $0x68] sm:$0x1f]  ;;  %v9147_v57 = vshll.u32 %v15340_v30, 16 }
 0x4f2   : > { %v8783_v26 = vsel %vm922_vm0, %v8781_v49, %v8782_v14 }
 0x4f3   : > { %v8431_v7 = vsel %vm569_vm1, %v8422_v51, %v8430_v1  ;;  %v8762_v35 = vsel %vm922_vm0, %v8760_v4, %v8761_v47  ;;  %v8788_v51 = vrot.slane %v15295_v62, 4  ;;  %v8791_v1 = vrot.slane %v15297_v54, 4 }
 0x4f4   : > { %v9093_v62 = vshrl.u32 %v15324_v37, 16  ;;  %v9096_v4 = vshll.u32 %v15324_v37, 16  ;;  %v8797_v47 = vrot.slane %v15310_v28, 4  ;;  %v9078_v28 = vld [vmem:[#allocation2 + $0x48] sm:$0x1f] }
 0x4f6   : > { %v9095_v61 = vrot.slane %v9093_v62, 4  ;;  %v9098_v27 = vrot.slane %v9096_v4, 5  ;;  %v9149_v62 = vrot.slane %v9147_v57, 5 }
 0x4f7   : > { %12760 = vmatmul.mubr.bf16.gmra.mrb[20].mxu1 %v8363_v5  ;;  %v15351_v5 = vld [vmem:[#allocation2 + $0x70] sm:$0xf0] }
 0x4f8   : > { %12763 = vmatprep.mubr.bf16.mxu1 %v8380_v25  ;;  %v8769_v39 = vrot.slane %v15351_v5, 4  ;;  %v8772_v25 = vrot.slane %v15353_v29, 4 }
 0x4fa   : > { %v8771_v32 = vsel %vm922_vm0, %v8769_v39, %v8770_v36  ;;  %v8774_v22 = vsel %vm922_vm0, %v8772_v25, %v8773_v46  ;;  %v9099_v39 = vor.u32 %v9098_v27, %v9095_v61  ;;  %v9127_v46 = vshrl.u32 %v15332_v24, 16  ;;  %v9081_v27 = vld [vmem:[#allocation2 + $0x78] sm:$0x1f] }
 0x4ff   : > { %12764 = vmatmul.mubr.bf16.gmra.mrb[24].mxu1 %v8397_v52  ;;  %v15383_v52 = vld [vmem:[#allocation2 + $0xe0] sm:$0xf0] }
 0x500   : > { %12767 = vmatprep.mubr.bf16.mxu1 %v8414_v45  ;;  %v8787_v45 = vrot.slane %v15381_v40, 4  ;;  %v8790_v34 = vrot.slane %v15383_v52, 4 }
 0x502   : > { %v8789_v55 = vsel %vm922_vm0, %v8787_v45, %v8788_v51  ;;  %v8792_v3 = vsel %vm922_vm0, %v8790_v34, %v8791_v1  ;;  %v9161_v34 = vshrl.u32 %v15343_v23, 16  ;;  %v9164_v1 = vshll.u32 %v15343_v23, 16  ;;  %v9082_v23 = vld [vmem:[#allocation2 + $0x88] sm:$0x1f] }
 0x507   : > { %12768 = vmatmul.mubr.bf16.gmra.mrb[28].mxu1 %v8431_v7  ;;  %v15393_v7 = vld [vmem:[#allocation2 + $0x100] sm:$0xf0] }
 0x508   : > { %12787 = vmatprep.mubr.bf16.mxu1 %v8756_v10  ;;  %v9076_v10 = vld [vmem:[#allocation2 + $0x28] sm:$0x1f]  ;;  %v8796_v54 = vrot.slane %v15393_v7, 4 }
 0x50f   : > { %12788 = vmatmul.mubr.bf16.vlgmr.msra.gmra.mrb[0].mxu1 %v8759_v9  ;;  %v9104_v9 = vshll.u32 %v9076_v10, 16 }
 0x510   : > { %12791 = vmatprep.mubr.bf16.mxu1 %v8762_v35  ;;  %12820 = vmatpush3.bf16.msra.mxu1 %v15301_v63  ;;  %v8768_v63 = vsel %vm922_vm0, %v8766_v50, %v8767_v38  ;;  %v15401_v35 = vld [vmem:[#allocation2 + $0x110] sm:$0xf0]  ;;  %v8798_v50 = vsel %vm922_vm0, %v8796_v54, %v8797_v47 }
 0x511   : > { %12821 = vmatprep.subr.bf16.mxu1 %v13582_v44  ;;  %v9106_v38 = vrot.slane %v9104_v9, 5  ;;  %v8799_v37 = vrot.slane %v15401_v35, 4 }
 0x514   : > { %12822 = vmatpush3.bf16.msra.mxu1 %v13582_v44  ;;  %v9101_v44 = vshrl.u32 %v9076_v10, 16  ;;  %v9169_v10 = vshrl.u32 %v9080_v33, 16 }
 0x515   : > { %12823 = vmatprep.subr.bf16.mxu1 %v13583_v6 }
 0x516   : > { %v9103_v59 = vrot.slane %v9101_v44, 4  ;;  %v9163_v44 = vrot.slane %v9161_v34, 4 }
 0x517   : > { %12792 = vmatmul.mubr.bf16.gmra.mrb[4].mxu1 %v8765_v21  ;;  %v8800_v21 = vrot.slane %v15317_v17, 4 }
 0x518   : > { %12795 = vmatprep.mubr.bf16.mxu1 %v8768_v63  ;;  %12824 = vmatpush3.bf16.msra.mxu1 %v13583_v6  ;;  %v8795_v6 = vsel %vm922_vm0, %v8793_v41, %v8794_v20  ;;  %v9110_v63 = vshrl.u32 %v15330_v18, 16  ;;  %v9172_v41 = vshll.u32 %v9080_v33, 16  ;;  %v9229_v33 = vshrl.u32 %v15363_v13, 16 }
 0x519   : > { %12825 = vmatprep.subr.bf16.mxu1 %v13584_v12  ;;  %v8801_v42 = vsel %vm922_vm0, %v8799_v37, %v8800_v21  ;;  %v9186_v21 = vshrl.u32 %v9081_v27, 16 }
 0x51a   : > { %v9112_v0 = vrot.slane %v9110_v63, 4  ;;  %v9174_v61 = vrot.slane %v9172_v41, 5  ;;  %v9195_v63 = vshrl.u32 %v15353_v29, 16 }
 0x51c   : > { %12826 = vmatpush3.bf16.msra.mxu1 %v13584_v12  ;;  %v9077_v12 = vld [vmem:[#allocation2 + $0x38] sm:$0x1f] }
 0x51d   : > { %12827 = vmatprep.subr.bf16.mxu1 %v13585_v56  ;;  %v9118_v36 = vshrl.u32 %v9077_v12, 16  ;;  %v9121_v25 = vshll.u32 %v9077_v12, 16  ;;  %v9181_v12 = vshll.u32 %v15351_v5, 16 }
 0x51f   : > { %12796 = vmatmul.mubr.bf16.gmra.mrb[8].mxu1 %v8771_v32  ;;  %v9130_v32 = vshll.u32 %v15332_v24, 16  ;;  %v9120_v17 = vrot.slane %v9118_v36, 4  ;;  %v9123_v15 = vrot.slane %v9121_v25, 5  ;;  %v9144_v24 = vshrl.u32 %v15340_v30, 16 }
 0x520   : > { %12799 = vmatprep.mubr.bf16.mxu1 %v8774_v22  ;;  %12828 = vmatpush3.bf16.msra.mxu1 %v13585_v56  ;;  %v9113_v56 = vshll.u32 %v15330_v18, 16  ;;  %v9135_v22 = vshrl.u32 %v9078_v28, 16  ;;  %v9166_v30 = vrot.slane %v9164_v1, 5  ;;  %v9203_v36 = vshrl.u32 %v9082_v23, 16 }
 0x521   : > { %12829 = vmatprep.subr.bf16.mxu1 %v13586_v2  ;;  %v9124_v51 = vor.u32 %v9123_v15, %v9120_v17  ;;  %v9146_v20 = vrot.slane %v9144_v24, 4  ;;  %v9206_v25 = vshll.u32 %v9082_v23, 16  ;;  %v9232_v24 = vshll.u32 %v15363_v13, 16  ;;  %v9086_v13 = vld [vmem:[#allocation2 + $0xc8] sm:$0x1f] }
 0x522   : > { %v9115_v58 = vrot.slane %v9113_v56, 5  ;;  %v9137_v49 = vrot.slane %v9135_v22, 4  ;;  %v9167_v37 = vor.u32 %v9166_v30, %v9163_v44  ;;  %v9188_v22 = vrot.slane %v9186_v21, 4 }
 0x523   : > { %v9205_v17 = vrot.slane %v9203_v36, 4  ;;  %v9208_v15 = vrot.slane %v9206_v25, 5  ;;  %v9246_v44 = vshrl.u32 %v15371_v31, 16  ;;  %v9249_v30 = vshll.u32 %v15371_v31, 16 }
 0x524   : > { %12830 = vmatpush3.bf16.msra.mxu1 %v13586_v2  ;;  %v9107_v2 = vor.u32 %v9106_v38, %v9103_v59  ;;  %v9116_v45 = vor.u32 %v9115_v58, %v9112_v0  ;;  %v9178_v38 = vshrl.u32 %v15351_v5, 16  ;;  %v9083_v0 = vld [vmem:[#allocation2 + $0x98] sm:$0x1f] }
 0x525   : > { %12831 = vmatprep.subr.bf16.mxu1 %v13587_v11  ;;  %v9251_v21 = vrot.slane %v9249_v30, 5 }
 0x526   : > { %v9108_v18 = vsel %vm1438_vm2, %v9099_v39, %v9107_v2  ;;  %v9125_v47 = vsel %vm1438_vm2, %v9116_v45, %v9124_v51  ;;  %v9198_v39 = vshll.u32 %v15353_v29, 16  ;;  %v9180_v2 = vrot.slane %v9178_v38, 4 }
 0x527   : > { %12800 = vmatmul.mubr.bf16.gmra.mrb[12].mxu1 %v8777_v48  ;;  %v9079_v48 = vld [vmem:[#allocation2 + $0x58] sm:$0x1f]  ;;  %v9212_v29 = vshrl.u32 %v15361_v8, 16  ;;  %v9274_v38 = vshll.u32 %v9086_v13, 16 }
 0x528   : > { %12803 = vmatprep.mubr.bf16.mxu1 %v8780_v16  ;;  %12832 = vmatpush3.bf16.msra.mxu1 %v13587_v11  ;;  %v9138_v11 = vshll.u32 %v9078_v28, 16  ;;  %v9132_v16 = vrot.slane %v9130_v32, 5  ;;  %v9189_v28 = vshll.u32 %v9081_v27, 16  ;;  %v9183_v32 = vrot.slane %v9181_v12, 5 }
 0x529   : > { %12833 = vmatprep.subr.bf16.mxu1 %v13588_v60  ;;  %v9200_v58 = vrot.slane %v9198_v39, 5  ;;  %v9214_v51 = vrot.slane %v9212_v29, 4  ;;  %v9263_v27 = vshrl.u32 %v15373_v43, 16  ;;  %v9087_v39 = vld [vmem:[#allocation2 + $0xd8] sm:$0x1f] }
 0x52a   : > { %v9140_v14 = vrot.slane %v9138_v11, 5  ;;  %v9191_v11 = vrot.slane %v9189_v28, 5 }
 0x52c   : > { %12834 = vmatpush3.bf16.msra.mxu1 %v13588_v60  ;;  %v9129_v60 = vrot.slane %v9127_v46, 4 }
 0x52f   : > { %12804 = vmatmul.mubr.bf16.gmra.mrb[16].mxu1 %v8783_v26  ;;  %v9152_v26 = vshrl.u32 %v9079_v48, 16 }
 0x530   : > { %12807 = vmatprep.mubr.bf16.mxu1 %v8786_v19  ;;  %v9155_v19 = vshll.u32 %v9079_v48, 16  ;;  %v9215_v48 = vshll.u32 %v15361_v8, 16  ;;  %v9234_v8 = vrot.slane %v9232_v24, 5 }
 0x531   : > { %v9154_v4 = vrot.slane %v9152_v26, 4  ;;  %v9209_v26 = vor.u32 %v9208_v15, %v9205_v17 }
 0x532   : > { %v9157_v54 = vrot.slane %v9155_v19, 5  ;;  %v9217_v34 = vrot.slane %v9215_v48, 5 }
 0x534   : > { %v9158_v59 = vor.u32 %v9157_v54, %v9154_v4  ;;  %v9085_v4 = vld [vmem:[#allocation2 + $0xb8] sm:$0x1f]  ;;  %v9218_v54 = vor.u32 %v9217_v34, %v9214_v51  ;;  %v9314_v34 = vshrl.u32 %v15391_v53, 16 }
 0x537   : > { %12808 = vmatmul.mubr.bf16.gmra.mrb[20].mxu1 %v8789_v55  ;;  %v9133_v55 = vor.u32 %v9132_v16, %v9129_v60  ;;  %v9084_v60 = vld [vmem:[#allocation2 + $0xa8] sm:$0x1f]  ;;  %v9223_v16 = vshll.u32 %v9083_v0, 16 }
 0x538   : > { %12811 = vmatprep.mubr.bf16.mxu1 %v8792_v3  ;;  %v9141_v3 = vor.u32 %v9140_v14, %v9137_v49  ;;  %v9184_v49 = vor.u32 %v9183_v32, %v9180_v2  ;;  %v9192_v14 = vor.u32 %v9191_v11, %v9188_v22  ;;  %v9237_v19 = vshrl.u32 %v9084_v60, 16  ;;  %v9088_v2 = vld [vmem:[#allocation2 + $0xe8] sm:$0x1f] }
 0x539   : > { %v9240_v45 = vshll.u32 %v9084_v60, 16  ;;  %v9283_v32 = vshll.u32 %v15381_v40, 16  ;;  %v9288_v22 = vshrl.u32 %v9087_v39, 16  ;;  %v9291_v11 = vshll.u32 %v9087_v39, 16 }
 0x53a   : > { %v9142_v9 = vsel %vm1438_vm2, %v9133_v55, %v9141_v3  ;;  %v9225_v55 = vrot.slane %v9223_v16, 5  ;;  %v9193_v3 = vsel %vm1438_vm2, %v9184_v49, %v9192_v14  ;;  %v9305_v60 = vshrl.u32 %v9088_v2, 16 }
 0x53b   : > { %v9308_v29 = vshll.u32 %v9088_v2, 16  ;;  %v9290_v16 = vrot.slane %v9288_v22, 4  ;;  %v9293_v49 = vrot.slane %v9291_v11, 5  ;;  %v9757_v22 = vld [vmem:[#allocation5 + $0x40] sm:$0xff]  ;;  %v9750_v11 = vld [vmem:[#allocation5 + $0x8] sm:$0xff] }
 0x53d   : > { %v9294_v51 = vor.u32 %v9293_v49, %v9290_v16  ;;  %v9774_v16 = vld [vmem:[#allocation5 + $0xc8] sm:$0xff] }
 0x53f   : > { %12812 = vmatmul.mubr.bf16.gmra.mrb[24].mxu1 %v8795_v6  ;;  %v9171_v6 = vrot.slane %v9169_v10, 4  ;;  %v9231_v10 = vrot.slane %v9229_v33, 4 }
 0x540   : > { %12815 = vmatprep.mubr.bf16.mxu1 %v8798_v50  ;;  %v9150_v50 = vor.u32 %v9149_v62, %v9146_v20  ;;  %v9239_v20 = vrot.slane %v9237_v19, 4  ;;  %v9242_v62 = vrot.slane %v9240_v45, 5  ;;  %v9089_v19 = vld [vmem:[#allocation2 + $0xf8] sm:$0x1f] }
 0x541   : > { %v9175_v56 = vor.u32 %v9174_v61, %v9171_v6  ;;  %v9254_v6 = vshrl.u32 %v9085_v4, 16  ;;  %v9257_v61 = vshll.u32 %v9085_v4, 16 }
 0x542   : > { %v9159_v46 = vsel %vm1438_vm2, %v9150_v50, %v9158_v59  ;;  %v9243_v23 = vor.u32 %v9242_v62, %v9239_v20  ;;  %v9266_v50 = vshll.u32 %v15373_v43, 16  ;;  %v9271_v59 = vshrl.u32 %v9086_v13, 16 }
 0x543   : > { %v9176_v5 = vsel %vm1438_vm2, %v9167_v37, %v9175_v56  ;;  %v9248_v37 = vrot.slane %v9246_v44, 4  ;;  %v9256_v28 = vrot.slane %v9254_v6, 4  ;;  %v9265_v56 = vrot.slane %v9263_v27, 4 }
 0x544   : > { %v9268_v36 = vrot.slane %v9266_v50, 5  ;;  %v9273_v25 = vrot.slane %v9271_v59, 4  ;;  %v9280_v43 = vshrl.u32 %v15381_v40, 16  ;;  %v9334_v20 = vshll.u32 %v15393_v7, 16 }
 0x545   : > { %v9348_v50 = vshrl.u32 %v15401_v35, 16 }
 0x546   : > { %v9269_v17 = vor.u32 %v9268_v36, %v9265_v56  ;;  %v9282_v48 = vrot.slane %v9280_v43, 4  ;;  %v15454_v43 = vld [vmem:[#allocation2] sm:$0xff] }
 0x547   : > { %12816 = vmatmul.mubr.bf16.gmra.mrb[28].mxu1 %v8801_v42  ;;  %v9197_v42 = vrot.slane %v9195_v63, 4  ;;  %v9259_v63 = vrot.slane %v9257_v61, 5  ;;  %v9336_v61 = vrot.slane %v9334_v20, 5  ;;  %v9813_v20 = vld [vmem:[#allocation5 + $0x200] sm:$0xff] }
 0x548   : > { %12835 = vmatprep.mubr.bf16.mxu1 %v9108_v18  ;;  %v9220_v18 = vshrl.u32 %v9083_v0, 16 }
 0x549   : > { %v9201_v57 = vor.u32 %v9200_v58, %v9197_v42  ;;  %v9252_v42 = vor.u32 %v9251_v21, %v9248_v37  ;;  %v9260_v0 = vor.u32 %v9259_v63, %v9256_v28  ;;  %v9300_v58 = vshll.u32 %v15383_v52, 16 }
 0x54a   : > { %v9222_v1 = vrot.slane %v9220_v18, 4  ;;  %v9285_v18 = vrot.slane %v9283_v32, 5  ;;  %v9350_v63 = vrot.slane %v9348_v50, 4  ;;  %v9749_v32 = vld [vmem:[#allocation5] sm:$0xff] }
 0x54b   : > { %v9210_v41 = vsel %vm1438_vm2, %v9201_v57, %v9209_v26  ;;  %v9261_v14 = vsel %vm1438_vm2, %v9252_v42, %v9260_v0  ;;  %v9302_v40 = vrot.slane %v9300_v58, 5  ;;  %v9307_v57 = vrot.slane %v9305_v60, 4  ;;  %v9773_v60 = vld [vmem:[#allocation5 + $0xc0] sm:$0xff] }
 0x54c   : > { %v9310_v26 = vrot.slane %v9308_v29, 5  ;;  %v9286_v45 = vor.u32 %v9285_v18, %v9282_v48  ;;  %v11440_v42 = vcombine.low %v9749_v32, %v9757_v22  ;;  %v11441_v0 = vcombine.high %v9749_v32, %v9757_v22  ;;  %v9766_v29 = vld [vmem:[#allocation5 + $0x88] sm:$0xff]  ;;  %v9845_v50 = vld [vmem:[#allocation5 + $0x300] sm:$0xff] }
 0x54d   : > { %v11458_v49 = vcombine.low %v9766_v29, %v9774_v16 }
 0x54e   : > { %v9295_v13 = vsel %vm1438_vm2, %v9286_v45, %v9294_v51  ;;  %10601 = vmatprep.subr.bf16.mxu0 %v11441_v0  ;;  %v9797_v51 = vld [vmem:[#allocation5 + $0x180] sm:$0xff] }
 0x54f   : > { %12836 = vmatmul.mubr.bf16.vlgmr.msra.gmra.mrb[0].mxu1 %v9125_v47  ;;  %v9226_v47 = vor.u32 %v9225_v55, %v9222_v1  ;;  %v9317_v1 = vshll.u32 %v15391_v53, 16  ;;  %10602 = vmatpush1.bf16.msra.mxu0 %v11440_v42 }
 0x550   : > { %12839 = vmatprep.mubr.bf16.mxu1 %v9142_v9  ;;  %v9235_v9 = vor.u32 %v9234_v8, %v9231_v10  ;;  %v9325_v10 = vshll.u32 %v9089_v19, 16  ;;  %v9331_v8 = vshrl.u32 %v15393_v7, 16  ;;  %v9351_v7 = vshll.u32 %v15401_v35, 16 }
 0x551   : > { %v9227_v12 = vsel %vm1438_vm2, %v9218_v54, %v9226_v47  ;;  %v9316_v54 = vrot.slane %v9314_v34, 4  ;;  %v9091_v47 = vld [vmem:[#allocation2 + $0x118] sm:$0x1f]  ;;  %v9319_v44 = vrot.slane %v9317_v1, 5  ;;  %v9805_v34 = vld [vmem:[#allocation5 + $0x1c0] sm:$0xff]  ;;  %v9798_v1 = vld [vmem:[#allocation5 + $0x188] sm:$0xff] }
 0x552   : > { %v9244_v31 = vsel %vm1438_vm2, %v9235_v9, %v9243_v23  ;;  %v9327_v9 = vrot.slane %v9325_v10, 5  ;;  %v9333_v6 = vrot.slane %v9331_v8, 4  ;;  %v9356_v59 = vshrl.u32 %v9091_v47, 16  ;;  %v9806_v10 = vld [vmem:[#allocation5 + $0x1c8] sm:$0xff] }
 0x553   : > { %v9353_v56 = vrot.slane %v9351_v7, 5  ;;  %v11490_v8 = vcombine.low %v9798_v1, %v9806_v10  ;;  %v9853_v7 = vld [vmem:[#allocation5 + $0x340] sm:$0xff] }
 0x554   : > { %v9337_v21 = vor.u32 %v9336_v61, %v9333_v6  ;;  %v9358_v39 = vrot.slane %v9356_v59, 4  ;;  %v9837_v6 = vld [vmem:[#allocation5 + $0x2c0] sm:$0xff] }
 0x557   : > { %12840 = vmatmul.mubr.bf16.gmra.mrb[4].mxu1 %v9159_v46  ;;  %v9276_v46 = vrot.slane %v9274_v38, 5  ;;  %v9359_v38 = vshll.u32 %v9091_v47, 16  ;;  %v9822_v47 = vld [vmem:[#allocation5 + $0x248] sm:$0xff] }
 0x558   : > { %12843 = vmatprep.mubr.bf16.mxu1 %v9176_v5  ;;  %v9297_v5 = vshrl.u32 %v15383_v52, 16  ;;  %v9090_v52 = vld [vmem:[#allocation2 + $0x108] sm:$0x1f] }
 0x559   : > { %v9277_v15 = vor.u32 %v9276_v46, %v9273_v25  ;;  %v9339_v62 = vshrl.u32 %v9090_v52, 16  ;;  %v9342_v4 = vshll.u32 %v9090_v52, 16  ;;  %v9354_v46 = vor.u32 %v9353_v56, %v9350_v63  ;;  %v9869_v56 = vld [vmem:[#allocation5 + $0x3c0] sm:$0xff] }
 0x55a   : > { %v9299_v33 = vrot.slane %v9297_v5, 4  ;;  %v9758_v5 = vld [vmem:[#allocation5 + $0x48] sm:$0xff] }
 0x55b   : > { %v9278_v24 = vsel %vm1438_vm2, %v9269_v17, %v9277_v15  ;;  %v9341_v27 = vrot.slane %v9339_v62, 4  ;;  %v9344_v23 = vrot.slane %v9342_v4, 5  ;;  %v11442_v58 = vcombine.low %v9750_v11, %v9758_v5  ;;  %v9765_v15 = vld [vmem:[#allocation5 + $0x80] sm:$0xff]  ;;  %v9814_v4 = vld [vmem:[#allocation5 + $0x208] sm:$0xff] }
 0x55c   : > { %v9303_v55 = vor.u32 %v9302_v40, %v9299_v33  ;;  %v11443_v17 = vcombine.high %v9750_v11, %v9758_v5  ;;  %v11456_v48 = vcombine.low %v9765_v15, %v9773_v60  ;;  %v11457_v18 = vcombine.high %v9765_v15, %v9773_v60  ;;  %v9781_v33 = vld [vmem:[#allocation5 + $0x100] sm:$0xff]  ;;  %v15465_v11 = vld [vmem:[#allocation5 + $0x58] sm:$0xff] }
 0x55d   : > { %v9345_v28 = vor.u32 %v9344_v23, %v9341_v27  ;;  %v9789_v40 = vld [vmem:[#allocation5 + $0x140] sm:$0xff]  ;;  %v9838_v23 = vld [vmem:[#allocation5 + $0x2c8] sm:$0xff] }
 0x55e   : > { %10642 = vmatprep.subr.bf16.mxu1 %v11443_v17  ;;  %10603 = vmatprep.subr.bf16.mxu0 %v11457_v18  ;;  %v9821_v62 = vld [vmem:[#allocation5 + $0x240] sm:$0xff] }
 0x55f   : > { %12844 = vmatmul.mubr.bf16.gmra.mrb[8].mxu1 %v9193_v3  ;;  %v9322_v3 = vshrl.u32 %v9089_v19, 16  ;;  %v9346_v25 = vsel %vm1438_vm2, %v9337_v21, %v9345_v28  ;;  %10604 = vmatpush1.bf16.msra.mxu0 %v11456_v48  ;;  %v9790_v19 = vld [vmem:[#allocation5 + $0x148] sm:$0xff]  ;;  %v9861_v28 = vld [vmem:[#allocation5 + $0x380] sm:$0xff] }
 0x560   : > { %12847 = vmatprep.mubr.bf16.mxu1 %v9210_v41  ;;  %v9311_v41 = vor.u32 %v9310_v26, %v9307_v57  ;;  %10643 = vmatpush1.bf16.msra.mxu1 %v11442_v58  ;;  %v11472_v57 = vcombine.low %v9781_v33, %v9789_v40  ;;  %v11473_v26 = vcombine.high %v9781_v33, %v9789_v40  ;;  %v9854_v21 = vld [vmem:[#allocation5 + $0x348] sm:$0xff]  ;;  %v15476_v60 = vld [vmem:[%s15578_s4] ss:$0 sm:$0xff] }
 0x561   : > { %v9324_v30 = vrot.slane %v9322_v3, 4  ;;  %v11489_v3 = vcombine.high %v9797_v51, %v9805_v34  ;;  %v11553_v32 = vcombine.high %v9861_v28, %v9869_v56  ;;  %v11552_v5 = vcombine.low %v9861_v28, %v9869_v56 }
 0x562   : > { %v9312_v53 = vsel %vm1438_vm2, %v9303_v55, %v9311_v41  ;;  %10605 = vmatprep.subr.bf16.mxu0 %v11473_v26  ;;  %v11488_v55 = vcombine.low %v9797_v51, %v9805_v34  ;;  %v11491_v41 = vcombine.high %v9798_v1, %v9806_v10 }
 0x563   : > { %v9328_v37 = vor.u32 %v9327_v9, %v9324_v30  ;;  %10606 = vmatpush1.bf16.msra.mxu0 %v11472_v57  ;;  %v11507_v30 = vcombine.high %v9814_v4, %v9822_v47  ;;  %v9829_v9 = vld [vmem:[#allocation5 + $0x280] sm:$0xff] }
 0x564   : > { %10607 = vmatprep.subr.bf16.mxu0 %v11489_v3  ;;  %v11520_v61 = vcombine.low %v9829_v9, %v9837_v6  ;;  %v11521_v27 = vcombine.high %v9829_v9, %v9837_v6 }
 0x567   : > { %12848 = vmatmul.mubr.bf16.gmra.mrb[12].mxu1 %v9227_v12  ;;  %v9320_v12 = vor.u32 %v9319_v44, %v9316_v54  ;;  %10608 = vmatpush1.bf16.msra.mxu0 %v11488_v55  ;;  %v11505_v54 = vcombine.high %v9813_v20, %v9821_v62  ;;  %v11506_v44 = vcombine.low %v9814_v4, %v9822_v47 }
 0x568   : > { %12851 = vmatprep.mubr.bf16.mxu1 %v9244_v31  ;;  %v9361_v31 = vrot.slane %v9359_v38, 5 }
 0x569   : > { %v9329_v36 = vsel %vm1438_vm2, %v9320_v12, %v9328_v37  ;;  %10609 = vmatprep.subr.bf16.mxu0 %v11505_v54  ;;  %v11537_v12 = vcombine.high %v9845_v50, %v9853_v7  ;;  %v9846_v37 = vld [vmem:[#allocation5 + $0x308] sm:$0xff] }
 0x56a   : > { %v9362_v2 = vor.u32 %v9361_v31, %v9358_v39  ;;  %v11539_v63 = vcombine.high %v9846_v37, %v9854_v21  ;;  %v9862_v39 = vld [vmem:[#allocation5 + $0x388] sm:$0xff] }
 0x56b   : > { %v9870_v31 = vld [vmem:[#allocation5 + $0x3c8] sm:$0xff] }
 0x56c   : > { %v9363_v35 = vsel %vm1438_vm2, %v9354_v46, %v9362_v2  ;;  %v15459_v46 = vld [vmem:[#allocation5 + $0x50] sm:$0xff]  ;;  %v15461_v2 = vld [vmem:[#allocation5 + $0x18] sm:$0xff]  ;;  %v11555_v42 = vcombine.high %v9862_v39, %v9870_v31  ;;  %v11554_v58 = vcombine.low %v9862_v39, %v9870_v31 }
 0x56d   : > { %v11446_v0 = vcombine.low %v15461_v2, %v15465_v11  ;;  %v11447_v15 = vcombine.high %v15461_v2, %v15465_v11  ;;  %v9815_v11 = vld [vmem:[#allocation5 + $0x210] sm:$0xff] }
 0x56f   : > { %12852 = vmatmul.mubr.bf16.gmra.mrb[16].mxu1 %v9261_v14  ;;  %v11459_v14 = vcombine.high %v9766_v29, %v9774_v16 }
 0x570   : > { %12855 = vmatprep.mubr.bf16.mxu1 %v9278_v24  ;;  %v9782_v24 = vld [vmem:[#allocation5 + $0x108] sm:$0xff] }
 0x571   : > { %10644 = vmatprep.subr.bf16.mxu1 %v11459_v14  ;;  %v11474_v52 = vcombine.low %v9782_v24, %v9790_v19  ;;  %v11475_v45 = vcombine.high %v9782_v24, %v9790_v19 }
 0x572   : > { %10645 = vmatpush1.bf16.msra.mxu1 %v11458_v49 }
 0x573   : > { %10646 = vmatprep.subr.bf16.mxu1 %v11475_v45 }
 0x576   : > { %10647 = vmatpush1.bf16.msra.mxu1 %v11474_v52 }
 0x577   : > { %12856 = vmatmul.mubr.bf16.gmra.mrb[20].mxu1 %v9295_v13  ;;  %10648 = vmatprep.subr.bf16.mxu1 %v11491_v41  ;;  %v11504_v13 = vcombine.low %v9813_v20, %v9821_v62 }
 0x578   : > { %12859 = vmatprep.mubr.bf16.mxu1 %v9312_v53  ;;  %v9830_v53 = vld [vmem:[#allocation5 + $0x288] sm:$0xff] }
 0x579   : > { %10610 = vmatpush1.bf16.msra.mxu0 %v11504_v13  ;;  %v11522_v59 = vcombine.low %v9830_v53, %v9838_v23  ;;  %v11523_v38 = vcombine.high %v9830_v53, %v9838_v23 }
 0x57a   : > { %10649 = vmatpush1.bf16.msra.mxu1 %v11490_v8  ;;  %10611 = vmatprep.subr.bf16.mxu0 %v11521_v27 }
 0x57b   : > { %10650 = vmatprep.subr.bf16.mxu1 %v11507_v30 }
 0x57d   : > { %10612 = vmatpush1.bf16.msra.mxu0 %v11520_v61 }
 0x57e   : > { %10651 = vmatpush1.bf16.msra.mxu1 %v11506_v44  ;;  %10613 = vmatprep.subr.bf16.mxu0 %v11537_v12 }
 0x57f   : > { %12860 = vmatmul.mubr.bf16.gmra.mrb[24].mxu1 %v9329_v36  ;;  %10652 = vmatprep.subr.bf16.mxu1 %v11523_v38  ;;  %v11536_v36 = vcombine.low %v9845_v50, %v9853_v7 }
 0x580   : > { %12863 = vmatprep.mubr.bf16.mxu1 %v9346_v25  ;;  %v15457_v25 = vld [vmem:[#allocation5 + $0x10] sm:$0xff] }
 0x581   : > { %v11444_v22 = vcombine.low %v15457_v25, %v15459_v46  ;;  %10614 = vmatpush1.bf16.msra.mxu0 %v11536_v36  ;;  %v11445_v17 = vcombine.high %v15457_v25, %v15459_v46 }
 0x582   : > { %10653 = vmatpush1.bf16.msra.mxu1 %v11522_v59  ;;  %10615 = vmatprep.subr.bf16.mxu0 %v11553_v32 }
 0x583   : > { %10654 = vmatprep.subr.bf16.mxu1 %v11539_v63 }
 0x585   : > { %10616 = vmatpush1.bf16.msra.mxu0 %v11552_v5 }
 0x586   : > { %10683 = vmatprep.subr.bf16.mxu0 %v11445_v17 }
 0x587   : > { %12864 = vmatmul.mubr.bf16.gmra.mrb[28].mxu1 %v9363_v35  ;;  %v11538_v35 = vcombine.low %v9846_v37, %v9854_v21 }
 0x588   : > { %10674 = vmatprep.mubr.bf16.mxu1 %v15454_v43 }
 0x589   : > { %10655 = vmatpush1.bf16.msra.mxu1 %v11538_v35 }
 0x58a   : > { %10656 = vmatprep.subr.bf16.mxu1 %v11555_v42 }
 0x58d   : > { %10657 = vmatpush1.bf16.msra.mxu1 %v11554_v58 }
 0x58e   : > { %10724 = vmatprep.subr.bf16.mxu1 %v11447_v15 }
 0x622   : > { %v12837_v29 = vpop.f32.mrb[0].mxu1 }
 0x623   : > { %v9479_v48 = vpop.f32.mrb[1].mxu1  ;;  %v9647_v14 = vadd.f32 %v12837_v29, %v15476_v60 }
 0x624   : > { %v9645_v18 = vadd.f32 %v15476_v60, %v9479_v48  ;;  %v12838_v16 = vpop.f32.mrb[2].mxu1 }
 0x625   : > { %v9482_v49 = vpop.f32.mrb[3].mxu1  ;;  %v9648_v24 = vadd.f32 %v12838_v16, %v15476_v60  ;;  %v9679_v26 = vmax.f32 %v9647_v14, 0.0 }
 0x626   : > { %v9646_v33 = vadd.f32 %v15476_v60, %v9482_v49  ;;  %v9677_v40 = vmax.f32 %v9645_v18, 0.0 }
 0x627   : > { %v9680_v51 = vmax.f32 %v9648_v24, 0.0 }
 0x628   : > { %v9678_v57 = vmax.f32 %v9646_v33, 0.0 }
 0x62a   : > { %v9709_v19 = vadd.f32 %v9678_v57, %v9677_v40  ;;  %v12841_v52 = vpop.f32.mrb[4].mxu1 }
 0x62b   : > { %v9495_v45 = vpop.f32.mrb[5].mxu1  ;;  %v9651_v10 = vadd.f32 %v12841_v52, %v15476_v60 }
 0x62c   : > { %v9710_v34 = vadd.f32 %v9709_v19, %v9679_v26  ;;  %v9649_v1 = vadd.f32 %v15476_v60, %v9495_v45  ;;  %v12842_v55 = vpop.f32.mrb[6].mxu1 }
 0x62d   : > { %v9498_v3 = vpop.f32.mrb[7].mxu1  ;;  %v9652_v4 = vadd.f32 %v12842_v55, %v15476_v60  ;;  %v9683_v54 = vmax.f32 %v9651_v10, 0.0 }
 0x62e   : > { %v9681_v8 = vmax.f32 %v9649_v1, 0.0  ;;  %v9711_v41 = vadd.f32 %v9710_v34, %v9680_v51  ;;  %v9650_v20 = vadd.f32 %v15476_v60, %v9498_v3 }
 0x62f   : > { %v9684_v9 = vmax.f32 %v9652_v4, 0.0 }
 0x630   : > { %v9712_v62 = vadd.f32 %v9711_v41, %v9681_v8  ;;  %v9682_v13 = vmax.f32 %v9650_v20, 0.0 }
 0x632   : > { %v9713_v47 = vadd.f32 %v9712_v62, %v9682_v13  ;;  %v12845_v44 = vpop.f32.mrb[8].mxu1 }
 0x633   : > { %v9511_v30 = vpop.f32.mrb[9].mxu1  ;;  %v9655_v23 = vadd.f32 %v12845_v44, %v15476_v60 }
 0x634   : > { %v9714_v6 = vadd.f32 %v9713_v47, %v9683_v54  ;;  %v9653_v53 = vadd.f32 %v15476_v60, %v9511_v30  ;;  %v12846_v61 = vpop.f32.mrb[10].mxu1 }
 0x635   : > { %v9514_v27 = vpop.f32.mrb[11].mxu1  ;;  %v9656_v12 = vadd.f32 %v12846_v61, %v15476_v60  ;;  %v9687_v21 = vmax.f32 %v9655_v23, 0.0 }
 0x636   : > { %v9685_v50 = vmax.f32 %v9653_v53, 0.0  ;;  %v9715_v7 = vadd.f32 %v9714_v6, %v9684_v9  ;;  %v9654_v59 = vadd.f32 %v15476_v60, %v9514_v27 }
 0x637   : > { %v9688_v39 = vmax.f32 %v9656_v12, 0.0 }
 0x638   : > { %v9716_v38 = vadd.f32 %v9715_v7, %v9685_v50  ;;  %v9686_v37 = vmax.f32 %v9654_v59, 0.0 }
 0x63a   : > { %v9717_v28 = vadd.f32 %v9716_v38, %v9686_v37  ;;  %v12849_v63 = vpop.f32.mrb[12].mxu1 }
 0x63b   : > { %v9527_v56 = vpop.f32.mrb[13].mxu1  ;;  %v9659_v42 = vadd.f32 %v12849_v63, %v15476_v60 }
 0x63c   : > { %v9718_v31 = vadd.f32 %v9717_v28, %v9687_v21  ;;  %v9657_v36 = vadd.f32 %v15476_v60, %v9527_v56  ;;  %v12850_v35 = vpop.f32.mrb[14].mxu1 }
 0x63d   : > { %v9530_v32 = vpop.f32.mrb[15].mxu1  ;;  %v9660_v29 = vadd.f32 %v12850_v35, %v15476_v60  ;;  %v9691_v18 = vmax.f32 %v9659_v42, 0.0 }
 0x63e   : > { %v9689_v5 = vmax.f32 %v9657_v36, 0.0  ;;  %v9719_v58 = vadd.f32 %v9718_v31, %v9688_v39  ;;  %v9658_v17 = vadd.f32 %v15476_v60, %v9530_v32 }
 0x63f   : > { %v9692_v33 = vmax.f32 %v9660_v29, 0.0 }
 0x640   : > { %v9720_v15 = vadd.f32 %v9719_v58, %v9689_v5  ;;  %v9690_v48 = vmax.f32 %v9658_v17, 0.0 }
 0x642   : > { %v9721_v16 = vadd.f32 %v9720_v15, %v9690_v48  ;;  %v12853_v49 = vpop.f32.mrb[16].mxu1 }
 0x643   : > { %v9543_v14 = vpop.f32.mrb[17].mxu1  ;;  %v9663_v19 = vadd.f32 %v12853_v49, %v15476_v60 }
 0x644   : > { %v9722_v40 = vadd.f32 %v9721_v16, %v9691_v18  ;;  %v9661_v24 = vadd.f32 %v15476_v60, %v9543_v14  ;;  %v12854_v57 = vpop.f32.mrb[18].mxu1 }
 0x645   : > { %v9546_v26 = vpop.f32.mrb[19].mxu1  ;;  %v9664_v1 = vadd.f32 %v12854_v57, %v15476_v60  ;;  %v9695_v3 = vmax.f32 %v9663_v19, 0.0 }
 0x646   : > { %v9693_v52 = vmax.f32 %v9661_v24, 0.0  ;;  %v9723_v45 = vadd.f32 %v9722_v40, %v9692_v33  ;;  %v9662_v51 = vadd.f32 %v15476_v60, %v9546_v26 }
 0x647   : > { %v9696_v20 = vmax.f32 %v9664_v1, 0.0 }
 0x648   : > { %v9724_v34 = vadd.f32 %v9723_v45, %v9693_v52  ;;  %v9694_v55 = vmax.f32 %v9662_v51, 0.0 }
 0x64a   : > { %v9725_v10 = vadd.f32 %v9724_v34, %v9694_v55  ;;  %v12857_v8 = vpop.f32.mrb[20].mxu1 }
 0x64b   : > { %v9559_v41 = vpop.f32.mrb[21].mxu1  ;;  %v9667_v47 = vadd.f32 %v12857_v8, %v15476_v60 }
 0x64c   : > { %v9726_v62 = vadd.f32 %v9725_v10, %v9695_v3  ;;  %v9665_v4 = vadd.f32 %v15476_v60, %v9559_v41  ;;  %v12858_v13 = vpop.f32.mrb[22].mxu1  ;;  %v9767_v41 = vld [vmem:[#allocation5 + $0x90] sm:$0xff] }
 0x64d   : > { %v9562_v54 = vpop.f32.mrb[23].mxu1  ;;  %v9668_v53 = vadd.f32 %v12858_v13, %v15476_v60  ;;  %v9699_v27 = vmax.f32 %v9667_v47, 0.0 }
 0x64e   : > { %v9697_v44 = vmax.f32 %v9665_v4, 0.0  ;;  %v9727_v30 = vadd.f32 %v9726_v62, %v9696_v20  ;;  %v9666_v9 = vadd.f32 %v15476_v60, %v9562_v54  ;;  %v9775_v20 = vld [vmem:[#allocation5 + $0xd0] sm:$0xff]  ;;  %v9768_v62 = vld [vmem:[#allocation5 + $0x98] sm:$0xff] }
 0x64f   : > { %v9700_v59 = vmax.f32 %v9668_v53, 0.0  ;;  %v9776_v4 = vld [vmem:[#allocation5 + $0xd8] sm:$0xff]  ;;  %v11460_v53 = vcombine.low %v9767_v41, %v9775_v20 }
 0x650   : > { %v9728_v6 = vadd.f32 %v9727_v30, %v9697_v44  ;;  %v9698_v61 = vmax.f32 %v9666_v9, 0.0  ;;  %v11463_v47 = vcombine.high %v9768_v62, %v9776_v4  ;;  %v9783_v44 = vld [vmem:[#allocation5 + $0x110] sm:$0xff]  ;;  %v9784_v9 = vld [vmem:[#allocation5 + $0x118] sm:$0xff] }
 0x651   : > { %v9791_v30 = vld [vmem:[#allocation5 + $0x150] sm:$0xff] }
 0x652   : > { %v9729_v23 = vadd.f32 %v9728_v6, %v9698_v61  ;;  %v12861_v50 = vpop.f32.mrb[24].mxu1  ;;  %v9792_v6 = vld [vmem:[#allocation5 + $0x158] sm:$0xff]  ;;  %v11462_v61 = vcombine.low %v9768_v62, %v9776_v4  ;;  %v11476_v25 = vcombine.low %v9783_v44, %v9791_v30  ;;  %v9777_v62 = vld [vmem:[#allocation5 + $0xe0] sm:$0xff]  ;;  %v9770_v4 = vld [vmem:[#allocation5 + $0xa8] sm:$0xff] }
 0x653   : > { %v9575_v7 = vpop.f32.mrb[25].mxu1  ;;  %v9671_v28 = vadd.f32 %v12861_v50, %v15476_v60  ;;  %v9799_v50 = vld [vmem:[#allocation5 + $0x190] sm:$0xff]  ;;  %v11478_v46 = vcombine.low %v9784_v9, %v9792_v6 }
 0x654   : > { %v9730_v38 = vadd.f32 %v9729_v23, %v9699_v27  ;;  %v9669_v12 = vadd.f32 %v15476_v60, %v9575_v7  ;;  %v12862_v37 = vpop.f32.mrb[26].mxu1  ;;  %v11477_v27 = vcombine.high %v9783_v44, %v9791_v30  ;;  %v11479_v23 = vcombine.high %v9784_v9, %v9792_v6  ;;  %v9807_v7 = vld [vmem:[#allocation5 + $0x1d0] sm:$0xff]  ;;  %v9785_v9 = vld [vmem:[#allocation5 + $0x120] sm:$0xff] }
 0x655   : > { %v9578_v21 = vpop.f32.mrb[27].mxu1  ;;  %v9672_v36 = vadd.f32 %v12862_v37, %v15476_v60  ;;  %v9703_v32 = vmax.f32 %v9671_v28, 0.0  ;;  %v11493_v2 = vcombine.high %v9799_v50, %v9807_v7  ;;  %v9824_v37 = vld [vmem:[#allocation5 + $0x258] sm:$0xff]  ;;  %v9793_v6 = vld [vmem:[#allocation5 + $0x160] sm:$0xff] }
 0x656   : > { %v9701_v63 = vmax.f32 %v9669_v12, 0.0  ;;  %v9731_v56 = vadd.f32 %v9730_v38, %v9700_v59  ;;  %v9670_v39 = vadd.f32 %v15476_v60, %v9578_v21  ;;  %v9800_v59 = vld [vmem:[#allocation5 + $0x198] sm:$0xff]  ;;  %v11492_v21 = vcombine.low %v9799_v50, %v9807_v7 }
 0x657   : > { %v9704_v17 = vmax.f32 %v9672_v36, 0.0  ;;  %v9808_v38 = vld [vmem:[#allocation5 + $0x1d8] sm:$0xff]  ;;  %v11481_v50 = vcombine.high %v9785_v9, %v9793_v6 }
 0x658   : > { %v9732_v31 = vadd.f32 %v9731_v56, %v9701_v63  ;;  %v9702_v35 = vmax.f32 %v9670_v39, 0.0  ;;  %v9816_v12 = vld [vmem:[#allocation5 + $0x218] sm:$0xff]  ;;  %v11494_v28 = vcombine.low %v9800_v59, %v9808_v38  ;;  %v9831_v39 = vld [vmem:[#allocation5 + $0x290] sm:$0xff] }
 0x659   : > { %v11511_v56 = vcombine.high %v9816_v12, %v9824_v37  ;;  %v9832_v36 = vld [vmem:[#allocation5 + $0x298] sm:$0xff] }
 0x65a   : > { %v9733_v42 = vadd.f32 %v9732_v31, %v9702_v35  ;;  %v12865_v5 = vpop.f32.mrb[28].mxu1  ;;  %v9839_v31 = vld [vmem:[#allocation5 + $0x2d0] sm:$0xff]  ;;  %v9840_v35 = vld [vmem:[#allocation5 + $0x2d8] sm:$0xff] }
 0x65b   : > { %v9591_v58 = vpop.f32.mrb[29].mxu1  ;;  %v9675_v16 = vadd.f32 %v12865_v5, %v15476_v60  ;;  %v11525_v5 = vcombine.high %v9831_v39, %v9839_v31 }
 0x65c   : > { %v9734_v15 = vadd.f32 %v9733_v42, %v9703_v32  ;;  %v9673_v29 = vadd.f32 %v15476_v60, %v9591_v58  ;;  %v12866_v48 = vpop.f32.mrb[30].mxu1  ;;  %v11510_v42 = vcombine.low %v9816_v12, %v9824_v37  ;;  %v11527_v58 = vcombine.high %v9832_v36, %v9840_v35  ;;  %v9817_v12 = vld [vmem:[#allocation5 + $0x220] sm:$0xff] }
 0x65d   : > { %v9594_v18 = vpop.f32.mrb[31].mxu1  ;;  %v9676_v24 = vadd.f32 %v12866_v48, %v15476_v60  ;;  %v9707_v26 = vmax.f32 %v9675_v16, 0.0  ;;  %v9856_v48 = vld [vmem:[#allocation5 + $0x358] sm:$0xff]  ;;  %v11526_v16 = vcombine.low %v9832_v36, %v9840_v35  ;;  %v9825_v37 = vld [vmem:[#allocation5 + $0x260] sm:$0xff] }
 0x65e   : > { %v9705_v49 = vmax.f32 %v9673_v29, 0.0  ;;  %v9735_v14 = vadd.f32 %v9734_v15, %v9704_v17  ;;  %v9674_v33 = vadd.f32 %v15476_v60, %v9594_v18  ;;  %v11461_v60 = vcombine.high %v9767_v41, %v9775_v20  ;;  %v9847_v17 = vld [vmem:[#allocation5 + $0x310] sm:$0xff]  ;;  %v9848_v29 = vld [vmem:[#allocation5 + $0x318] sm:$0xff]  ;;  %v9769_v20 = vld [vmem:[#allocation5 + $0xa0] sm:$0xff] }
 0x65f   : > { %v9708_v52 = vmax.f32 %v9676_v24, 0.0  ;;  %v9855_v15 = vld [vmem:[#allocation5 + $0x350] sm:$0xff]  ;;  %v11524_v18 = vcombine.low %v9831_v39, %v9839_v31  ;;  %v9864_v24 = vld [vmem:[#allocation5 + $0x398] sm:$0xff]  ;;  %v11465_v44 = vcombine.high %v9769_v20, %v9777_v62  ;;  %v11513_v39 = vcombine.high %v9817_v12, %v9825_v37  ;;  %v9833_v36 = vld [vmem:[#allocation5 + $0x2a0] sm:$0xff] }
 0x660   : > { %v9736_v40 = vadd.f32 %v9735_v14, %v9705_v49  ;;  %v9706_v57 = vmax.f32 %v9674_v33, 0.0  ;;  %v11541_v49 = vcombine.high %v9847_v17, %v9855_v15  ;;  %v11543_v14 = vcombine.high %v9848_v29, %v9856_v48  ;;  %v9863_v33 = vld [vmem:[#allocation5 + $0x390] sm:$0xff]  ;;  %v9841_v35 = vld [vmem:[#allocation5 + $0x2e0] sm:$0xff] }
 0x662   : > { %v9737_v19 = vadd.f32 %v9736_v40, %v9706_v57  ;;  %v9871_v40 = vld [vmem:[#allocation5 + $0x3d0] sm:$0xff]  ;;  %v9872_v57 = vld [vmem:[#allocation5 + $0x3d8] sm:$0xff] }
 0x664   : > { %v9738_v45 = vadd.f32 %v9737_v19, %v9707_v26  ;;  %v11540_v26 = vcombine.low %v9847_v17, %v9855_v15  ;;  %v11542_v19 = vcombine.low %v9848_v29, %v9856_v48  ;;  %v11529_v17 = vcombine.high %v9833_v36, %v9841_v35  ;;  %v9849_v29 = vld [vmem:[#allocation5 + $0x320] sm:$0xff] }
 0x665   : > { %v9857_v48 = vld [vmem:[#allocation5 + $0x360] sm:$0xff] }
 0x666   : > { %v9739_v51 = vadd.f32 %v9738_v45, %v9708_v52  ;;  %v11557_v52 = vcombine.high %v9863_v33, %v9871_v40  ;;  %v11559_v45 = vcombine.high %v9864_v24, %v9872_v57 }
 0x668   : > { %v9740_v34 = vrot.slane %v9739_v51, 4 }
 0x66a   : > { %v9741_v1 = vadd.f32 %v9740_v34, %v9739_v51  ;;  %v9753_v51 = vld [vmem:[#allocation5 + $0x20] sm:$0xff] }
 0x66b   : > { %v9761_v34 = vld [vmem:[#allocation5 + $0x60] sm:$0xff] }
 0x66c   : > { %v9742_v55 = vrot.slane %v9741_v1, 2 }
 0x66e   : > { %v9743_v3 = vadd.f32 %v9742_v55, %v9741_v1  ;;  %v9754_v1 = vld [vmem:[#allocation5 + $0x28] sm:$0xff] }
 0x66f   : > { %v9762_v55 = vld [vmem:[#allocation5 + $0x68] sm:$0xff] }
 0x670   : > { %v9744_v10 = vrot.slane %v9743_v3, 1  ;;  %v11451_v41 = vcombine.high %v9754_v1, %v9762_v55 }
 0x672   : > { %v9745_v8 = vadd.f32 %v9744_v10, %v9743_v3  ;;  %v11556_v3 = vcombine.low %v9863_v33, %v9871_v40  ;;  %v11558_v10 = vcombine.low %v9864_v24, %v9872_v57  ;;  %v11545_v33 = vcombine.high %v9849_v29, %v9857_v48  ;;  %v9865_v24 = vld [vmem:[#allocation5 + $0x3a0] sm:$0xff] }
 0x673   : > { %v9873_v57 = vld [vmem:[#allocation5 + $0x3e0] sm:$0xff] }
 0x674   : > { %v9747_v13 = vmul.f32 0.00390625, %v9745_v8  ;;  %v11449_v8 = vcombine.high %v9753_v51, %v9761_v34 }
 0x676   : > { %v15510_v54 = vpack.c.bf16 %v9747_v13, %v9747_v13  ;;  %v9778_v13 = vld [vmem:[#allocation5 + $0xe8] sm:$0xff] }
 0x677   : > { %v11467_v30 = vcombine.high %v9770_v4, %v9778_v13 }
 0x678   : > { %10634 = vmatmul.mubr.bf16.vlgmr.msra.gmra.mrb[32].mxu0 %v15510_v54  ;;  %10675 = vmatmul.mubr.bf16.vlgmr.msra.gmra.mrb[32].mxu1 %v15510_v54 }
 0x679   : > { %10684 = vmatpush1.bf16.msra.mxu0 %v11444_v22  ;;  %10725 = vmatpush1.bf16.msra.mxu1 %v11446_v0  ;;  %v11495_v22 = vcombine.high %v9800_v59, %v9808_v38  ;;  %v9823_v0 = vld [vmem:[#allocation5 + $0x250] sm:$0xff]  ;;  %v9801_v59 = vld [vmem:[#allocation5 + $0x1a0] sm:$0xff] }
 0x67a   : > { %10685 = vmatprep.subr.bf16.mxu0 %v11461_v60  ;;  %10726 = vmatprep.subr.bf16.mxu1 %v11463_v47  ;;  %v11509_v63 = vcombine.high %v9815_v11, %v9823_v0  ;;  %v11508_v32 = vcombine.low %v9815_v11, %v9823_v0  ;;  %v11448_v60 = vcombine.low %v9753_v51, %v9761_v34  ;;  %v9809_v38 = vld [vmem:[#allocation5 + $0x1e0] sm:$0xff] }
 0x67b   : > { %10715 = vmatprep.mubr.bf16.mxu0 %v15454_v43  ;;  %10756 = vmatprep.mubr.bf16.mxu1 %v15454_v43  ;;  %v11450_v47 = vcombine.low %v9754_v1, %v9762_v55  ;;  %v11497_v11 = vcombine.high %v9801_v59, %v9809_v38  ;;  %v11561_v51 = vcombine.high %v9865_v24, %v9873_v57  ;;  %v9755_v1 = vld [vmem:[#allocation5 + $0x30] sm:$0xff] }
 0x67c   : > { %v9763_v55 = vld [vmem:[#allocation5 + $0x70] sm:$0xff] }
 0x67d   : > { %10686 = vmatpush1.bf16.msra.mxu0 %v11460_v53  ;;  %10727 = vmatpush1.bf16.msra.mxu1 %v11462_v61  ;;  %v9786_v53 = vld [vmem:[#allocation5 + $0x128] sm:$0xff] }
 0x67e   : > { %10687 = vmatprep.subr.bf16.mxu0 %v11477_v27  ;;  %10728 = vmatprep.subr.bf16.mxu1 %v11479_v23  ;;  %v9794_v61 = vld [vmem:[#allocation5 + $0x168] sm:$0xff]  ;;  %v11464_v27 = vcombine.low %v9769_v20, %v9777_v62  ;;  %v11466_v23 = vcombine.low %v9770_v4, %v9778_v13  ;;  %v11453_v20 = vcombine.high %v9755_v1, %v9763_v55  ;;  %v9771_v4 = vld [vmem:[#allocation5 + $0xb0] sm:$0xff] }
 0x67f   : > { %v11483_v7 = vcombine.high %v9786_v53, %v9794_v61  ;;  %v9779_v13 = vld [vmem:[#allocation5 + $0xf0] sm:$0xff] }
 0x681   : > { %10688 = vmatpush1.bf16.msra.mxu0 %v11476_v25  ;;  %10729 = vmatpush1.bf16.msra.mxu1 %v11478_v46  ;;  %v9802_v25 = vld [vmem:[#allocation5 + $0x1a8] sm:$0xff] }
 0x682   : > { %10689 = vmatprep.subr.bf16.mxu0 %v11493_v2  ;;  %10730 = vmatprep.subr.bf16.mxu1 %v11495_v22  ;;  %v9810_v46 = vld [vmem:[#allocation5 + $0x1e8] sm:$0xff]  ;;  %v11480_v2 = vcombine.low %v9785_v9, %v9793_v6  ;;  %v11482_v22 = vcombine.low %v9786_v53, %v9794_v61  ;;  %v11469_v9 = vcombine.high %v9771_v4, %v9779_v13  ;;  %v9787_v53 = vld [vmem:[#allocation5 + $0x130] sm:$0xff] }
 0x683   : > { %v11499_v0 = vcombine.high %v9802_v25, %v9810_v46  ;;  %v9795_v61 = vld [vmem:[#allocation5 + $0x170] sm:$0xff] }
 0x685   : > { %10690 = vmatpush1.bf16.msra.mxu0 %v11492_v21  ;;  %10731 = vmatpush1.bf16.msra.mxu1 %v11494_v28  ;;  %v9818_v21 = vld [vmem:[#allocation5 + $0x228] sm:$0xff] }
 0x686   : > { %10691 = vmatprep.subr.bf16.mxu0 %v11509_v63  ;;  %10732 = vmatprep.subr.bf16.mxu1 %v11511_v56  ;;  %v9826_v28 = vld [vmem:[#allocation5 + $0x268] sm:$0xff]  ;;  %v11496_v63 = vcombine.low %v9801_v59, %v9809_v38  ;;  %v11498_v56 = vcombine.low %v9802_v25, %v9810_v46  ;;  %v11485_v59 = vcombine.high %v9787_v53, %v9795_v61  ;;  %v9803_v25 = vld [vmem:[#allocation5 + $0x1b0] sm:$0xff] }
 0x687   : > { %v11515_v31 = vcombine.high %v9818_v21, %v9826_v28  ;;  %v9811_v46 = vld [vmem:[#allocation5 + $0x1f0] sm:$0xff] }
 0x689   : > { %10692 = vmatpush1.bf16.msra.mxu0 %v11508_v32  ;;  %10733 = vmatpush1.bf16.msra.mxu1 %v11510_v42  ;;  %v9834_v32 = vld [vmem:[#allocation5 + $0x2a8] sm:$0xff] }
 0x68a   : > { %10693 = vmatprep.subr.bf16.mxu0 %v11525_v5  ;;  %10734 = vmatprep.subr.bf16.mxu1 %v11527_v58  ;;  %v9842_v42 = vld [vmem:[#allocation5 + $0x2e8] sm:$0xff]  ;;  %v11512_v5 = vcombine.low %v9817_v12, %v9825_v37  ;;  %v11514_v58 = vcombine.low %v9818_v21, %v9826_v28  ;;  %v11501_v12 = vcombine.high %v9803_v25, %v9811_v46  ;;  %v9819_v21 = vld [vmem:[#allocation5 + $0x230] sm:$0xff] }
 0x68b   : > { %v11531_v15 = vcombine.high %v9834_v32, %v9842_v42  ;;  %v9827_v28 = vld [vmem:[#allocation5 + $0x270] sm:$0xff] }
 0x68d   : > { %10694 = vmatpush1.bf16.msra.mxu0 %v11524_v18  ;;  %10735 = vmatpush1.bf16.msra.mxu1 %v11526_v16  ;;  %v9850_v18 = vld [vmem:[#allocation5 + $0x328] sm:$0xff] }
 0x68e   : > { %10695 = vmatprep.subr.bf16.mxu0 %v11541_v49  ;;  %10736 = vmatprep.subr.bf16.mxu1 %v11543_v14  ;;  %v9858_v16 = vld [vmem:[#allocation5 + $0x368] sm:$0xff]  ;;  %v11528_v49 = vcombine.low %v9833_v36, %v9841_v35  ;;  %v11530_v14 = vcombine.low %v9834_v32, %v9842_v42  ;;  %v11517_v36 = vcombine.high %v9819_v21, %v9827_v28  ;;  %v9835_v35 = vld [vmem:[#allocation5 + $0x2b0] sm:$0xff]  ;;  %v9836_v42 = vld [vmem:[#allocation5 + $0x2b8] sm:$0xff] }
 0x68f   : > { %v11547_v40 = vcombine.high %v9850_v18, %v9858_v16  ;;  %v9843_v32 = vld [vmem:[#allocation5 + $0x2f0] sm:$0xff] }
 0x691   : > { %10696 = vmatpush1.bf16.msra.mxu0 %v11540_v26  ;;  %10737 = vmatpush1.bf16.msra.mxu1 %v11542_v19  ;;  %v9866_v26 = vld [vmem:[#allocation5 + $0x3a8] sm:$0xff] }
 0x692   : > { %10697 = vmatprep.subr.bf16.mxu0 %v11557_v52  ;;  %10738 = vmatprep.subr.bf16.mxu1 %v11559_v45  ;;  %v9874_v19 = vld [vmem:[#allocation5 + $0x3e8] sm:$0xff]  ;;  %v11544_v52 = vcombine.low %v9849_v29, %v9857_v48  ;;  %v11546_v45 = vcombine.low %v9850_v18, %v9858_v16  ;;  %v9851_v48 = vld [vmem:[#allocation5 + $0x330] sm:$0xff]  ;;  %v9852_v16 = vld [vmem:[#allocation5 + $0x338] sm:$0xff] }
 0x693   : > { %v11563_v34 = vcombine.high %v9866_v26, %v9874_v19  ;;  %v9859_v18 = vld [vmem:[#allocation5 + $0x370] sm:$0xff] }
 0x695   : > { %10698 = vmatpush1.bf16.msra.mxu0 %v11556_v3  ;;  %10739 = vmatpush1.bf16.msra.mxu1 %v11558_v10  ;;  %v9756_v3 = vld [vmem:[#allocation5 + $0x38] sm:$0xff] }
 0x696   : > { %10765 = vmatprep.subr.bf16.mxu0 %v11449_v8  ;;  %10806 = vmatprep.subr.bf16.mxu1 %v11451_v41  ;;  %v9764_v10 = vld [vmem:[#allocation5 + $0x78] sm:$0xff]  ;;  %v11560_v8 = vcombine.low %v9865_v24, %v9873_v57  ;;  %v11562_v41 = vcombine.low %v9866_v26, %v9874_v19  ;;  %v9867_v57 = vld [vmem:[#allocation5 + $0x3b0] sm:$0xff] }
 0x697   : > { %v11455_v62 = vcombine.high %v9756_v3, %v9764_v10  ;;  %v9875_v26 = vld [vmem:[#allocation5 + $0x3f0] sm:$0xff]  ;;  %v9868_v19 = vld [vmem:[#allocation5 + $0x3b8] sm:$0xff] }
 0x698   : > { %10716 = vmatmul.mubr.bf16.vlgmr.msra.gmra.mrb[36].mxu0 %v15510_v54  ;;  %10757 = vmatmul.mubr.bf16.vlgmr.msra.gmra.mrb[36].mxu1 %v15510_v54 }
 0x699   : > { %10766 = vmatpush1.bf16.msra.mxu0 %v11448_v60  ;;  %10807 = vmatpush1.bf16.msra.mxu1 %v11450_v47  ;;  %v9772_v60 = vld [vmem:[#allocation5 + $0xb8] sm:$0xff] }
 0x69a   : > { %10767 = vmatprep.subr.bf16.mxu0 %v11465_v44  ;;  %10808 = vmatprep.subr.bf16.mxu1 %v11467_v30  ;;  %v9780_v47 = vld [vmem:[#allocation5 + $0xf8] sm:$0xff]  ;;  %v11452_v44 = vcombine.low %v9755_v1, %v9763_v55  ;;  %v11454_v30 = vcombine.low %v9756_v3, %v9764_v10  ;;  %v11564_v55 = vcombine.low %v9867_v57, %v9875_v26  ;;  %v10521_v10 = vlaneseq }
 0x69b   : > { %10797 = vmatprep.mubr.bf16.mxu0 %v15454_v43  ;;  %10838 = vmatprep.mubr.bf16.mxu1 %v15454_v43  ;;  %v11471_v6 = vcombine.high %v9772_v60, %v9780_v47 }
 0x69d   : > { %10768 = vmatpush1.bf16.msra.mxu0 %v11464_v27  ;;  %10809 = vmatpush1.bf16.msra.mxu1 %v11466_v23  ;;  %v9788_v27 = vld [vmem:[#allocation5 + $0x138] sm:$0xff] }
 0x69e   : > { %10769 = vmatprep.subr.bf16.mxu0 %v11481_v50  ;;  %10810 = vmatprep.subr.bf16.mxu1 %v11483_v7  ;;  %v9796_v23 = vld [vmem:[#allocation5 + $0x178] sm:$0xff]  ;;  %v11468_v50 = vcombine.low %v9771_v4, %v9779_v13  ;;  %v11470_v7 = vcombine.low %v9772_v60, %v9780_v47  ;;  %v13670_v13 = vmov 1966171168  }
 0x69f   : > { %v11487_v38 = vcombine.high %v9788_v27, %v9796_v23  ;;  %v10950_v60 = vunpack.c.l.s4 %v13670_v13 }
 0x6a1   : > { %10770 = vmatpush1.bf16.msra.mxu0 %v11480_v2  ;;  %10811 = vmatpush1.bf16.msra.mxu1 %v11482_v22  ;;  %v9804_v2 = vld [vmem:[#allocation5 + $0x1b8] sm:$0xff] }
 0x6a2   : > { %10771 = vmatprep.subr.bf16.mxu0 %v11497_v11  ;;  %10812 = vmatprep.subr.bf16.mxu1 %v11499_v0  ;;  %v9812_v22 = vld [vmem:[#allocation5 + $0x1f8] sm:$0xff]  ;;  %v11484_v11 = vcombine.low %v9787_v53, %v9795_v61  ;;  %v11486_v0 = vcombine.low %v9788_v27, %v9796_v23 }
 0x6a3   : > { %v11503_v37 = vcombine.high %v9804_v2, %v9812_v22 }
 0x6a5   : > { %10772 = vmatpush1.bf16.msra.mxu0 %v11496_v63  ;;  %10813 = vmatpush1.bf16.msra.mxu1 %v11498_v56  ;;  %v9820_v63 = vld [vmem:[#allocation5 + $0x238] sm:$0xff] }
 0x6a6   : > { %10773 = vmatprep.subr.bf16.mxu0 %v11513_v39  ;;  %10814 = vmatprep.subr.bf16.mxu1 %v11515_v31  ;;  %v9828_v56 = vld [vmem:[#allocation5 + $0x278] sm:$0xff]  ;;  %v11500_v39 = vcombine.low %v9803_v25, %v9811_v46  ;;  %v11502_v31 = vcombine.low %v9804_v2, %v9812_v22 }
 0x6a9   : > { %10774 = vmatpush1.bf16.msra.mxu0 %v11512_v5  ;;  %10815 = vmatpush1.bf16.msra.mxu1 %v11514_v58  ;;  %v9844_v5 = vld [vmem:[#allocation5 + $0x2f8] sm:$0xff]  ;;  %v11516_v58 = vcombine.low %v9819_v21, %v9827_v28 }
 0x6aa   : > { %10775 = vmatprep.subr.bf16.mxu0 %v11529_v17  ;;  %10816 = vmatprep.subr.bf16.mxu1 %v11531_v15  ;;  %v11518_v17 = vcombine.low %v9820_v63, %v9828_v56  ;;  %v11533_v15 = vcombine.high %v9835_v35, %v9843_v32  ;;  %v11535_v29 = vcombine.high %v9836_v42, %v9844_v5 }
 0x6ad   : > { %10776 = vmatpush1.bf16.msra.mxu0 %v11528_v49  ;;  %10817 = vmatpush1.bf16.msra.mxu1 %v11530_v14  ;;  %v9860_v49 = vld [vmem:[#allocation5 + $0x378] sm:$0xff]  ;;  %v11532_v14 = vcombine.low %v9835_v35, %v9843_v32 }
 0x6ae   : > { %10777 = vmatprep.subr.bf16.mxu0 %v11545_v33  ;;  %10818 = vmatprep.subr.bf16.mxu1 %v11547_v40  ;;  %v11534_v33 = vcombine.low %v9836_v42, %v9844_v5  ;;  %v11549_v40 = vcombine.high %v9851_v48, %v9859_v18  ;;  %v11551_v24 = vcombine.high %v9852_v16, %v9860_v49 }
 0x6b1   : > { %10778 = vmatpush1.bf16.msra.mxu0 %v11544_v52  ;;  %10819 = vmatpush1.bf16.msra.mxu1 %v11546_v45  ;;  %v9876_v52 = vld [vmem:[#allocation5 + $0x3f8] sm:$0xff]  ;;  %v11548_v45 = vcombine.low %v9851_v48, %v9859_v18 }
 0x6b2   : > { %10779 = vmatprep.subr.bf16.mxu0 %v11561_v51  ;;  %10820 = vmatprep.subr.bf16.mxu1 %v11563_v34  ;;  %v11550_v51 = vcombine.low %v9852_v16, %v9860_v49  ;;  %v11565_v34 = vcombine.high %v9867_v57, %v9875_v26  ;;  %v11567_v1 = vcombine.high %v9868_v19, %v9876_v52 }
 0x6b3   : > { %v11566_v3 = vcombine.low %v9868_v19, %v9876_v52 }
 0x6b5   : > { %10780 = vmatpush1.bf16.msra.mxu0 %v11560_v8  ;;  %10821 = vmatpush1.bf16.msra.mxu1 %v11562_v41  ;;  %v15532_v8 = vshrl.u32 %v10521_v10, 7 }
 0x6b6   : > { %10847 = vmatprep.subr.bf16.mxu0 %v11453_v20  ;;  %10888 = vmatprep.subr.bf16.mxu1 %v11455_v62  ;;  %v9877_v62 = vld [vmem:[%s15580_s6] sm:$0xff] }
 0x6b7   : > { %v10523_v41 = vsub.s32 0, %v15532_v8  ;;  %v10531_v20 = vsub.s32 2, %v15532_v8  ;;  %v10527_v4 = vsub.s32 1, %v15532_v8  ;;  %v10535_v47 = vsub.s32 3, %v15532_v8 }
 0x6b8   : > { %10798 = vmatmul.mubr.bf16.vlgmr.msra.gmra.mrb[40].mxu0 %v15510_v54  ;;  %10839 = vmatmul.mubr.bf16.vlgmr.msra.gmra.mrb[40].mxu1 %v15510_v54 }
 0x6b9   : > { %10848 = vmatpush1.bf16.msra.mxu0 %v11452_v44  ;;  %10889 = vmatpush1.bf16.msra.mxu1 %v11454_v30  ;;  %v10524_v44 = vrot.slane %v9877_v62, %v10523_v41  ;;  %v10532_v30 = vrot.slane %v9877_v62, %v10531_v20 }
 0x6ba   : > { %10849 = vmatprep.subr.bf16.mxu0 %v11469_v9  ;;  %10890 = vmatprep.subr.bf16.mxu1 %v11471_v6  ;;  %v10951_v9 = vunpack.c.0.s8 %v10950_v60  ;;  %v10536_v6 = vrot.slane %v9877_v62, %v10535_v47 }
 0x6bb   : > { %10879 = vmatprep.mubr.bf16.mxu0 %v15454_v43  ;;  %10920 = vmatprep.mubr.bf16.mxu1 %v15454_v43  ;;  %v11519_v43 = vcombine.high %v9820_v63, %v9828_v56  ;;  %v10539_v63 = vsub.s32 4, %v15532_v8  ;;  %v10547_v56 = vsub.s32 6, %v15532_v8 }
 0x6bd   : > { %10850 = vmatpush1.bf16.msra.mxu0 %v11468_v50  ;;  %10891 = vmatpush1.bf16.msra.mxu1 %v11470_v7 }
 0x6be   : > { %10851 = vmatprep.subr.bf16.mxu0 %v11485_v59  ;;  %10892 = vmatprep.subr.bf16.mxu1 %v11487_v38  ;;  %v15542_v38 = vsub.s32 %v10951_v9, %v15532_v8 }
 0x6c1   : > { %10852 = vmatpush1.bf16.msra.mxu0 %v11484_v11  ;;  %10893 = vmatpush1.bf16.msra.mxu1 %v11486_v0 }
 0x6c2   : > { %10853 = vmatprep.subr.bf16.mxu0 %v11501_v12  ;;  %10894 = vmatprep.subr.bf16.mxu1 %v11503_v37 }
 0x6c5   : > { %10854 = vmatpush1.bf16.msra.mxu0 %v11500_v39  ;;  %10895 = vmatpush1.bf16.msra.mxu1 %v11502_v31  ;;  %v10543_v39 = vsub.s32 5, %v15532_v8  ;;  %v10551_v31 = vsub.s32 7, %v15532_v8 }
 0x6c6   : > { %10855 = vmatprep.subr.bf16.mxu0 %v11517_v36  ;;  %10896 = vmatprep.subr.bf16.mxu1 %v11519_v43  ;;  %v10540_v36 = vrot.slane %v9877_v62, %v10539_v63  ;;  %v10548_v43 = vrot.slane %v9877_v62, %v10547_v56 }
 0x6c7   : > { %v10544_v35 = vrot.slane %v9877_v62, %v10543_v39  ;;  %v10552_v32 = vrot.slane %v9877_v62, %v10551_v31 }
 0x6c9   : > { %10856 = vmatpush1.bf16.msra.mxu0 %v11516_v58  ;;  %10897 = vmatpush1.bf16.msra.mxu1 %v11518_v17 }
 0x6ca   : > { %10857 = vmatprep.subr.bf16.mxu0 %v11533_v15  ;;  %10898 = vmatprep.subr.bf16.mxu1 %v11535_v29 }
 0x6cd   : > { %10858 = vmatpush1.bf16.msra.mxu0 %v11532_v14  ;;  %10899 = vmatpush1.bf16.msra.mxu1 %v11534_v33 }
 0x6ce   : > { %10859 = vmatprep.subr.bf16.mxu0 %v11549_v40  ;;  %10900 = vmatprep.subr.bf16.mxu1 %v11551_v24 }
 0x6d1   : > { %10860 = vmatpush1.bf16.msra.mxu0 %v11548_v45  ;;  %10901 = vmatpush1.bf16.msra.mxu1 %v11550_v51 }
 0x6d2   : > { %10861 = vmatprep.subr.bf16.mxu0 %v11565_v34  ;;  %10902 = vmatprep.subr.bf16.mxu1 %v11567_v1  ;;  %v9878_v34 = vld [vmem:[%s15580_s6 + $0x8] sm:$0xff] }
 0x6d3   : > { %v10556_v1 = vrot.slane %v9878_v34, %v10523_v41  ;;  %v10568_v10 = vrot.slane %v9878_v34, %v10535_v47  ;;  %v10580_v47 = vrot.slane %v9878_v34, %v10547_v56 }
 0x6d5   : > { %10862 = vmatpush1.bf16.msra.mxu0 %v11564_v55  ;;  %10903 = vmatpush1.bf16.msra.mxu1 %v11566_v3  ;;  %v10564_v55 = vrot.slane %v9878_v34, %v10531_v20  ;;  %v10560_v3 = vrot.slane %v9878_v34, %v10527_v4 }
 0x6d8   : > { %10880 = vmatmul.mubr.bf16.vlgmr.msra.gmra.mrb[44].mxu0 %v15510_v54  ;;  %10921 = vmatmul.mubr.bf16.vlgmr.msra.gmra.mrb[44].mxu1 %v15510_v54  ;;  %v10528_v54 = vrot.slane %v9877_v62, %v10527_v4  ;;  %v10572_v4 = vrot.slane %v9878_v34, %v10539_v63 }
 0x74b   : > { %v10635_v53 = vpop.f32.mrb[32].mxu0  ;;  %v10676_v61 = vpop.f32.mrb[32].mxu1 }
 0x74c   : > { %v10636_v27 = vadd.f32 %v10635_v53, %v10524_v44  ;;  %v10677_v23 = vadd.f32 %v10676_v61, %v10532_v30  ;;  %v10637_v50 = vpop.f32.mrb[33].mxu0  ;;  %v10678_v7 = vpop.f32.mrb[33].mxu1 }
 0x74d   : > { %v10638_v59 = vadd.f32 %v10637_v50, %v10528_v54  ;;  %v10679_v25 = vadd.f32 %v10678_v7, %v10536_v6  ;;  %v10639_v46 = vpop.f32.mrb[34].mxu0  ;;  %v10680_v2 = vpop.f32.mrb[34].mxu1 }
 0x74e   : > { %v10640_v22 = vpop.f32.mrb[35].mxu0  ;;  %v10681_v11 = vpop.f32.mrb[35].mxu1 }
 0x74f   : > { %v10945_v0 = vcombine.low %v10636_v27, %v10638_v59  ;;  %v10946_v12 = vcombine.low %v10677_v23, %v10679_v25  ;;  %v10576_v59 = vrot.slane %v9878_v34, %v10543_v39  ;;  %v10584_v25 = vrot.slane %v9878_v34, %v10551_v31 }
 0x751   : > { %v10955_v37 = vrot.slane %v10945_v0, %v15542_v38  ;;  %v10962_v21 = vrot.slane %v10946_v12, %v15542_v38 }
 0x753   : > { %v10977_v28 = vcombine.low %v10955_v37, %v10962_v21 }
 0x755   : > { %v10985_v52 = vrot.slane %v10977_v28, %v15542_v38 }
 0x76b   : > { %v10717_v42 = vpop.f32.mrb[36].mxu0  ;;  %v10758_v5 = vpop.f32.mrb[36].mxu1 }
 0x76c   : > { %v10718_v58 = vadd.f32 %v10717_v42, %v10540_v36  ;;  %v10759_v17 = vadd.f32 %v10758_v5, %v10548_v43  ;;  %v10719_v15 = vpop.f32.mrb[37].mxu0  ;;  %v10760_v29 = vpop.f32.mrb[37].mxu1 }
 0x76d   : > { %v10720_v48 = vadd.f32 %v10719_v15, %v10544_v35  ;;  %v10761_v18 = vadd.f32 %v10760_v29, %v10552_v32  ;;  %v10721_v16 = vpop.f32.mrb[38].mxu0  ;;  %v10762_v49 = vpop.f32.mrb[38].mxu1 }
 0x76e   : > { %v10722_v14 = vpop.f32.mrb[39].mxu0  ;;  %v10763_v33 = vpop.f32.mrb[39].mxu1 }
 0x76f   : > { %v10947_v40 = vcombine.low %v10718_v58, %v10720_v48  ;;  %v10948_v24 = vcombine.low %v10759_v17, %v10761_v18 }
 0x771   : > { %v10969_v57 = vrot.slane %v10947_v40, %v15542_v38  ;;  %v10976_v26 = vrot.slane %v10948_v24, %v15542_v38 }
 0x773   : > { %v10978_v19 = vcombine.low %v10969_v57, %v10976_v26 }
 0x775   : > { %v10992_v45 = vrot.slane %v10978_v19, %v15542_v38 }
 0x777   : > { %v10993_v51 = vcombine.low %v10985_v52, %v10992_v45 }
 0x779   : > { %11045 = vst [vmem:[%s15558_s23] sm:$0xff] %v10993_v51 }
 0x78b   : > { %v10799_v8 = vpop.f32.mrb[40].mxu0  ;;  %v10840_v62 = vpop.f32.mrb[40].mxu1 }
 0x78c   : > { %v10800_v13 = vadd.f32 %v10799_v8, %v10556_v1  ;;  %v10841_v60 = vadd.f32 %v10840_v62, %v10564_v55  ;;  %v10801_v44 = vpop.f32.mrb[41].mxu0  ;;  %v10842_v30 = vpop.f32.mrb[41].mxu1 }
 0x78d   : > { %v10802_v54 = vadd.f32 %v10801_v44, %v10560_v3  ;;  %v10843_v9 = vadd.f32 %v10842_v30, %v10568_v10  ;;  %v10803_v6 = vpop.f32.mrb[42].mxu0  ;;  %v10844_v53 = vpop.f32.mrb[42].mxu1 }
 0x78e   : > { %v10804_v61 = vpop.f32.mrb[43].mxu0  ;;  %v10845_v27 = vpop.f32.mrb[43].mxu1 }
 0x78f   : > { %v10994_v23 = vcombine.low %v10800_v13, %v10802_v54  ;;  %v10995_v50 = vcombine.low %v10841_v60, %v10843_v9 }
 0x791   : > { %v11004_v7 = vrot.slane %v10994_v23, %v15542_v38  ;;  %v11011_v41 = vrot.slane %v10995_v50, %v15542_v38 }
 0x793   : > { %v11026_v20 = vcombine.low %v11004_v7, %v11011_v41 }
 0x795   : > { %v11034_v31 = vrot.slane %v11026_v20, %v15542_v38 }
 0x7ab   : > { %v10881_v46 = vpop.f32.mrb[44].mxu0  ;;  %v10922_v2 = vpop.f32.mrb[44].mxu1 }
 0x7ac   : > { %v10882_v22 = vadd.f32 %v10881_v46, %v10572_v4  ;;  %v10923_v11 = vadd.f32 %v10922_v2, %v10580_v47  ;;  %v10883_v0 = vpop.f32.mrb[45].mxu0  ;;  %v10924_v12 = vpop.f32.mrb[45].mxu1 }
 0x7ad   : > { %v10884_v37 = vadd.f32 %v10883_v0, %v10576_v59  ;;  %v10925_v21 = vadd.f32 %v10924_v12, %v10584_v25  ;;  %v10885_v28 = vpop.f32.mrb[46].mxu0  ;;  %v10926_v36 = vpop.f32.mrb[46].mxu1 }
 0x7ae   : > { %v10886_v43 = vpop.f32.mrb[47].mxu0  ;;  %v10927_v35 = vpop.f32.mrb[47].mxu1 }
 0x7af   : > { %v10996_v32 = vcombine.low %v10882_v22, %v10884_v37  ;;  %v10997_v42 = vcombine.low %v10923_v11, %v10925_v21 }
 0x7b1   : > { %v11018_v63 = vrot.slane %v10996_v32, %v15542_v38  ;;  %v11025_v56 = vrot.slane %v10997_v42, %v15542_v38 }
 0x7b3   : > { %v11027_v39 = vcombine.low %v11018_v63, %v11025_v56 }
 0x7b5   : > { %v11041_v5 = vrot.slane %v11027_v39, %v15542_v38 }
 0x7b7   : > { %v11042_v58 = vcombine.low %v11034_v31, %v11041_v5 }
 0x7b9   : > { %11046 = vst [vmem:[%s15558_s23 + $0x8] sm:$0xff] %v11042_v58 }
 0x7ba PF: > { %s19_s24 = sadd.s32 1, %s13662_s24  }
 0x7bb   : > { %p16_p9 = scmp.ge.s32.totalorder %s19_s24, 4  }
 0x7bd   :  { %18 = sbr.rel (!%p16_p9) target bundleno = 2 (0x2), region = 105 }
 0x7c4   :  { %11066 = vsyncpa [#allocation4], 1 }
 0x7c5   :  { %11068 = vsyncpa [#allocation4 + $0x1], 1 }
 0x7c6   :  { %11069 = vsyncpa [#allocation6], 1 }

</bundles_post_ra>
